<compile_context>
chip_gen: v5e
topology: v5e:2x2
jax: 0.10.0
libtpu: 0.0.40
codegen_flags: <defaults>
</compile_context>

<pallas_src>
from functools import partial

import jax
import jax.numpy as jnp
from jax import lax
from jax.experimental import pallas as pl
from jax.experimental.pallas import tpu as pltpu


# ----------------------------------------------------------------------------
# Fused kernel: per batch b and task k
#   (once per b)  A_t = softmax(F_t F_t^T)      for every auxiliary task t   -> VMEM scratch
#   A_agg        = sum_t alpha[k, t] * A_t
#   Y_j          = Y_{j-1} @ A_agg^T            j = 1..iterations   (Y = F^T, shape (C, N))
#   out          = (1 - beta) * Y_0 + beta * Y_K
# ----------------------------------------------------------------------------
def _fused_affinity_diffusion_kernel(
    alpha_ref,      # SMEM  (n_tasks, n_aux) f32 : softmaxed mixing weights
    aux_ref,        # VMEM  (n_aux, 1, N, C)     : aux features (row-major, for the Gram)
    taskf_ref,      # VMEM  (1, 1, C, N)         : this task's features (channel-major)
    out_ref,        # VMEM  (1, 1, C, N)
    aff_scratch,    # VMEM  (n_aux, N, N) f32    : per-batch softmaxed Gram matrices
    *, iterations, beta, n_aux,
):
    task_idx = pl.program_id(1)

    # ---- per-aux-task affinity, computed once per batch (task axis is sequential) ----
    @pl.when(task_idx == 0)
    def _compute_affinities():
        for t in range(n_aux):
            f = aux_ref[t, 0]                                          # (N, C)
            # Gram: s[i, j] = sum_c f[i, c] * f[j, c]   (F F^T without materializing F^T)
            s = lax.dot_general(
                f, f, (((1,), (1,)), ((), ())),
                preferred_element_type=jnp.float32)                    # (N, N)
            m = jnp.max(s, axis=-1, keepdims=True)
            e = jnp.exp(s - m)
            denom = jnp.sum(e, axis=-1, keepdims=True)                 # (N, 1)
            aff_scratch[t] = e * pl.reciprocal(denom, approx=False)

    # ---- aggregate affinities with this task's alpha weights (VPU) ----
    agg = alpha_ref[task_idx, 0] * aff_scratch[0]
    for t in range(1, n_aux):
        agg = agg + alpha_ref[task_idx, t] * aff_scratch[t]            # (N, N)

    # ---- diffusion in (C, N) layout:  Y_j[c, n] = sum_m Y_{j-1}[c, m] * A[n, m] ----
    y0 = taskf_ref[0, 0]                                               # (C, N)
    y = y0
    for _ in range(iterations):
        y = lax.dot_general(
            y, agg, (((1,), (1,)), ((), ())),
            preferred_element_type=jnp.float32)                        # (C, N)

    out_ref[0, 0] = (1.0 - beta) * y0 + beta * y


def pallas_affinity_diffusion(alpha, aux_feats_nc, task_feats_cn, *, iterations, beta):
    """
    alpha:          (K, T)       f32  per-task softmaxed mixing weights (SMEM scalars)
    aux_feats_nc:   (T, B, N, C) f32  auxiliary features, (N, C) per (t, b)
    task_feats_cn:  (K, B, C, N) f32  task features, channel-major
    returns:        (K, B, C, N) f32
    """
    K, T = alpha.shape
    T2, B, N, C = aux_feats_nc.shape
    assert T2 == T and task_feats_cn.shape == (K, B, C, N)

    kernel = partial(
        _fused_affinity_diffusion_kernel,
        iterations=iterations, beta=float(beta), n_aux=T,
    )
    return pl.pallas_call(
        kernel,
        out_shape=jax.ShapeDtypeStruct((K, B, C, N), jnp.float32),
        grid=(B, K),
        in_specs=[
            pl.BlockSpec(memory_space=pltpu.MemorySpace.SMEM),            # alpha scalars
            pl.BlockSpec((T, 1, N, C), lambda b, k: (0, b, 0, 0)),         # aux feats (per b)
            pl.BlockSpec((1, 1, C, N), lambda b, k: (k, b, 0, 0)),         # task feats
        ],
        out_specs=pl.BlockSpec((1, 1, C, N), lambda b, k: (k, b, 0, 0)),
        scratch_shapes=[pltpu.VMEM((T, N, N), jnp.float32)],
        compiler_params=pltpu.CompilerParams(
            dimension_semantics=("parallel", "arbitrary"),
            vmem_limit_bytes=48 * 1024 * 1024,
        ),
    )(alpha, aux_feats_nc, task_feats_cn)


# ----------------------------------------------------------------------------
# Module wrapper (glue in plain JAX)
# ----------------------------------------------------------------------------
class AffinityDiffusionPallas:
    def __init__(self, tasks, auxilary_tasks, iterations=6, beta=0.05):
        self.tasks = list(tasks)
        self.auxilary_tasks = list(auxilary_tasks)
        self.iterations = iterations
        self.beta = beta
        # Deterministic parameter init matching the PyTorch module:
        # alpha[task][t] = 1.0 if t == task else 0.0
        self.alpha_raw = {
            task: {t: (1.0 if t == task else 0.0) for t in self.auxilary_tasks}
            for task in self.tasks
        }

    def __call__(self, x):
        a0 = x['features_%s' % self.auxilary_tasks[0]]
        init_shape = a0.shape
        B, C, H, W = init_shape
        N = H * W

        # alpha softmax over the auxiliary tasks (tiny scalar math -> plain JAX glue).
        alpha = jnp.stack(
            [jax.nn.softmax(jnp.array(
                [self.alpha_raw[task][t] for t in self.auxilary_tasks], dtype=jnp.float32))
             for task in self.tasks],
            axis=0,
        )  # (K, T)

        # Auxiliary features as (T, B, N, C): this is the flatten(-2).transpose(2, 1)
        # view used for the Gram matrices (small tensors: only C*N per item).
        aux_feats = jnp.stack(
            [jnp.transpose(x['features_%s' % a].reshape(B, C, N), (0, 2, 1))
             for a in self.auxilary_tasks],
            axis=0,
        )  # (T, B, N, C)

        # Task features stay channel-major (C, N): the kernel diffuses in this layout so
        # the big output stores are lane-dense and no output transpose is needed.
        task_feats = jnp.stack(
            [x['features_%s' % t].reshape(B, C, N) for t in self.tasks], axis=0
        )  # (K, B, C, N)

        out = pallas_affinity_diffusion(
            alpha, aux_feats, task_feats,
            iterations=self.iterations, beta=self.beta,
        )  # (K, B, C, N)

        return {
            'aggregated_features_%s' % task: out[i].reshape(init_shape)
            for i, task in enumerate(self.tasks)
        }


# ----------------------------------------------------------------------------
# Pure-JAX reference (for correctness checking only)
# ----------------------------------------------------------------------------
def reference_forward(x, tasks, aux_tasks, alpha_raw, iterations, beta):
    a0 = x['features_%s' % aux_tasks[0]]
    B, C, H, W = a0.shape
    N = H * W
    feats = {a: jnp.transpose(x['features_%s' % a].reshape(B, C, N), (0, 2, 1))
             for a in set(aux_tasks) | set(tasks)}
    aff = {a: jax.nn.softmax(jnp.einsum('bnc,bmc->bnm', feats[a], feats[a]), axis=2)
           for a in aux_tasks}
    out = {}
    for task in tasks:
        raw = jnp.array([alpha_raw[task][t] for t in aux_tasks], dtype=jnp.float32)
        w = jnp.exp(raw) / jnp.sum(jnp.exp(raw))
        agg = sum(w[i] * aff[t] for i, t in enumerate(aux_tasks))
        f = feats[task]
        for _ in range(iterations):
            f = jnp.einsum('bnm,bmc->bnc', agg, f)
        o = (1.0 - beta) * feats[task] + beta * f
        out['aggregated_features_%s' % task] = jnp.transpose(o, (0, 2, 1)).reshape(B, C, H, W)
    return out


if __name__ == "__main__":
    tasks = ['semseg', 'depth']
    auxilary_tasks = ['semseg', 'depth', 'normals']

    B, C, H, W = 2, 4, 16, 16
    key = jax.random.PRNGKey(0)
    x = {}
    for a in auxilary_tasks:
        key, sub = jax.random.split(key)
        x['features_%s' % a] = jax.random.normal(sub, (B, C, H, W), dtype=jnp.float32)

    module = AffinityDiffusionPallas(tasks, auxilary_tasks, iterations=6, beta=0.05)
    out = module(x)
    out = jax.tree_util.tree_map(jax.block_until_ready, out)

    ref = reference_forward(x, tasks, auxilary_tasks, module.alpha_raw, 6, 0.05)
    for k in ref:
        assert out[k].shape == ref[k].shape, (k, out[k].shape, ref[k].shape)
        assert jnp.allclose(out[k], ref[k], atol=2e-4, rtol=2e-4), f"mismatch in {k}"

    print("KERNEL_OK")
</pallas_src>

<mosaic_0001>
module attributes {stable_mosaic.version = 11 : i64} {
  func.func @_fused_affinity_diffusion_kernel(%arg0: i32, %arg1: i32, %arg2: memref<2x3xf32, #tpu.memory_space<smem>>, %arg3: memref<3x1x256x4xf32, #tpu.memory_space<vmem>>, %arg4: memref<1x1x4x256xf32, #tpu.memory_space<vmem>>, %arg5: memref<1x1x4x256xf32, #tpu.memory_space<vmem>>, %arg6: memref<3x256x256xf32, #tpu.memory_space<vmem>>) attributes {dimension_semantics = [#tpu.dimension_semantics<parallel>, #tpu.dimension_semantics<arbitrary>], iteration_bounds = array<i64: 2, 2>, scalar_prefetch = 0 : i64, scratch_operands = 1 : i64, tpu.core_type = #tpu.core_type<tc>, window_params = [{transform_indices = @transform_0, window_bounds = array<i64: 2, 3>}, {transform_indices = @transform_1, window_bounds = array<i64: 3, 1, 256, 4>}, {transform_indices = @transform_2, window_bounds = array<i64: 1, 1, 4, 256>}, {transform_indices = @transform_3, window_bounds = array<i64: 1, 1, 4, 256>}]} {
    %c0_i32 = arith.constant 0 : i32
    %0 = arith.cmpi eq, %arg1, %c0_i32 : i32
    %1 = arith.extui %0 : i1 to i32
    %c0_i32_0 = arith.constant 0 : i32
    %2 = arith.cmpi ne, %1, %c0_i32_0 : i32
    scf.if %2 {
      %c0_25 = arith.constant 0 : index
      %c0_26 = arith.constant 0 : index
      %c0_27 = arith.constant 0 : index
      %c0_28 = arith.constant 0 : index
      %39 = vector.load %arg3[%c0_25, %c0_26, %c0_27, %c0_28] : memref<3x1x256x4xf32, #tpu.memory_space<vmem>>, vector<1x1x256x4xf32>
      %40 = vector.shape_cast %39 : vector<1x1x256x4xf32> to vector<256x4xf32>
      %cst_29 = arith.constant dense<0.000000e+00> : vector<256x256xf32>
      %41 = tpu.matmul %40, %40, %cst_29 {dimension_numbers = #tpu.dot_dimension_numbers<[1], [1], [0], [0], [0, 0, 1, 0], [], []>} : vector<256x4xf32>, vector<256x4xf32>, vector<256x256xf32> -> vector<256x256xf32>
      %cst_30 = arith.constant dense<0xFF800000> : vector<256xf32>
      %42 = vector.multi_reduction <maximumf>, %41, %cst_30 [1] : vector<256x256xf32> to vector<256xf32>
      %43 = vector.shape_cast %42 : vector<256xf32> to vector<256x1xf32>
      %44 = vector.broadcast %43 : vector<256x1xf32> to vector<256x256xf32>
      %45 = arith.subf %41, %44 : vector<256x256xf32>
      %46 = math.exp %45 : vector<256x256xf32>
      %cst_31 = arith.constant dense<0.000000e+00> : vector<256xf32>
      %47 = vector.multi_reduction <add>, %46, %cst_31 [1] : vector<256x256xf32> to vector<256xf32>
      %48 = vector.shape_cast %47 : vector<256xf32> to vector<256x1xf32>
      %49 = tpu.reciprocal %48 : vector<256x1xf32> -> vector<256x1xf32>
      %50 = vector.broadcast %49 : vector<256x1xf32> to vector<256x256xf32>
      %51 = arith.mulf %46, %50 : vector<256x256xf32>
      %c0_32 = arith.constant 0 : index
      %c0_33 = arith.constant 0 : index
      %c0_34 = arith.constant 0 : index
      %52 = vector.load %arg6[%c0_32, %c0_33, %c0_34] : memref<3x256x256xf32, #tpu.memory_space<vmem>>, vector<1x256x256xf32>
      %53 = vector.shape_cast %52 : vector<1x256x256xf32> to vector<256x256xf32>
      %54 = vector.shape_cast %51 : vector<256x256xf32> to vector<1x256x256xf32>
      tpu.vector_store %arg6[%c0_32, %c0_33, %c0_34], %54 {strides = array<i32>} : memref<3x256x256xf32, #tpu.memory_space<vmem>>, vector<1x256x256xf32>,
      %c1_35 = arith.constant 1 : index
      %c0_36 = arith.constant 0 : index
      %c0_37 = arith.constant 0 : index
      %c0_38 = arith.constant 0 : index
      %55 = vector.load %arg3[%c1_35, %c0_36, %c0_37, %c0_38] : memref<3x1x256x4xf32, #tpu.memory_space<vmem>>, vector<1x1x256x4xf32>
      %56 = vector.shape_cast %55 : vector<1x1x256x4xf32> to vector<256x4xf32>
      %cst_39 = arith.constant dense<0.000000e+00> : vector<256x256xf32>
      %57 = tpu.matmul %56, %56, %cst_39 {dimension_numbers = #tpu.dot_dimension_numbers<[1], [1], [0], [0], [0, 0, 1, 0], [], []>} : vector<256x4xf32>, vector<256x4xf32>, vector<256x256xf32> -> vector<256x256xf32>
      %cst_40 = arith.constant dense<0xFF800000> : vector<256xf32>
      %58 = vector.multi_reduction <maximumf>, %57, %cst_40 [1] : vector<256x256xf32> to vector<256xf32>
      %59 = vector.shape_cast %58 : vector<256xf32> to vector<256x1xf32>
      %60 = vector.broadcast %59 : vector<256x1xf32> to vector<256x256xf32>
      %61 = arith.subf %57, %60 : vector<256x256xf32>
      %62 = math.exp %61 : vector<256x256xf32>
      %cst_41 = arith.constant dense<0.000000e+00> : vector<256xf32>
      %63 = vector.multi_reduction <add>, %62, %cst_41 [1] : vector<256x256xf32> to vector<256xf32>
      %64 = vector.shape_cast %63 : vector<256xf32> to vector<256x1xf32>
      %65 = tpu.reciprocal %64 : vector<256x1xf32> -> vector<256x1xf32>
      %66 = vector.broadcast %65 : vector<256x1xf32> to vector<256x256xf32>
      %67 = arith.mulf %62, %66 : vector<256x256xf32>
      %c1_42 = arith.constant 1 : index
      %c0_43 = arith.constant 0 : index
      %c0_44 = arith.constant 0 : index
      %68 = vector.load %arg6[%c1_42, %c0_43, %c0_44] : memref<3x256x256xf32, #tpu.memory_space<vmem>>, vector<1x256x256xf32>
      %69 = vector.shape_cast %68 : vector<1x256x256xf32> to vector<256x256xf32>
      %70 = vector.shape_cast %67 : vector<256x256xf32> to vector<1x256x256xf32>
      tpu.vector_store %arg6[%c1_42, %c0_43, %c0_44], %70 {strides = array<i32>} : memref<3x256x256xf32, #tpu.memory_space<vmem>>, vector<1x256x256xf32>,
      %c2_45 = arith.constant 2 : index
      %c0_46 = arith.constant 0 : index
      %c0_47 = arith.constant 0 : index
      %c0_48 = arith.constant 0 : index
      %71 = vector.load %arg3[%c2_45, %c0_46, %c0_47, %c0_48] : memref<3x1x256x4xf32, #tpu.memory_space<vmem>>, vector<1x1x256x4xf32>
      %72 = vector.shape_cast %71 : vector<1x1x256x4xf32> to vector<256x4xf32>
      %cst_49 = arith.constant dense<0.000000e+00> : vector<256x256xf32>
      %73 = tpu.matmul %72, %72, %cst_49 {dimension_numbers = #tpu.dot_dimension_numbers<[1], [1], [0], [0], [0, 0, 1, 0], [], []>} : vector<256x4xf32>, vector<256x4xf32>, vector<256x256xf32> -> vector<256x256xf32>
      %cst_50 = arith.constant dense<0xFF800000> : vector<256xf32>
      %74 = vector.multi_reduction <maximumf>, %73, %cst_50 [1] : vector<256x256xf32> to vector<256xf32>
      %75 = vector.shape_cast %74 : vector<256xf32> to vector<256x1xf32>
      %76 = vector.broadcast %75 : vector<256x1xf32> to vector<256x256xf32>
      %77 = arith.subf %73, %76 : vector<256x256xf32>
      %78 = math.exp %77 : vector<256x256xf32>
      %cst_51 = arith.constant dense<0.000000e+00> : vector<256xf32>
      %79 = vector.multi_reduction <add>, %78, %cst_51 [1] : vector<256x256xf32> to vector<256xf32>
      %80 = vector.shape_cast %79 : vector<256xf32> to vector<256x1xf32>
      %81 = tpu.reciprocal %80 : vector<256x1xf32> -> vector<256x1xf32>
      %82 = vector.broadcast %81 : vector<256x1xf32> to vector<256x256xf32>
      %83 = arith.mulf %78, %82 : vector<256x256xf32>
      %c2_52 = arith.constant 2 : index
      %c0_53 = arith.constant 0 : index
      %c0_54 = arith.constant 0 : index
      %84 = vector.load %arg6[%c2_52, %c0_53, %c0_54] : memref<3x256x256xf32, #tpu.memory_space<vmem>>, vector<1x256x256xf32>
      %85 = vector.shape_cast %84 : vector<1x256x256xf32> to vector<256x256xf32>
      %86 = vector.shape_cast %83 : vector<256x256xf32> to vector<1x256x256xf32>
      tpu.vector_store %arg6[%c2_52, %c0_53, %c0_54], %86 {strides = array<i32>} : memref<3x256x256xf32, #tpu.memory_space<vmem>>, vector<1x256x256xf32>,
    } else {
    }
    %3 = arith.index_cast %arg1 : i32 to index
    %c0 = arith.constant 0 : index
    %4 = memref.load %arg2[%3, %c0] : memref<2x3xf32, #tpu.memory_space<smem>>
    %c0_1 = arith.constant 0 : index
    %c0_2 = arith.constant 0 : index
    %c0_3 = arith.constant 0 : index
    %5 = vector.load %arg6[%c0_1, %c0_2, %c0_3] : memref<3x256x256xf32, #tpu.memory_space<vmem>>, vector<1x256x256xf32>
    %6 = vector.shape_cast %5 : vector<1x256x256xf32> to vector<256x256xf32>
    %7 = vector.broadcast %4 : f32 to vector<256x256xf32>
    %8 = arith.mulf %7, %6 : vector<256x256xf32>
    %9 = arith.index_cast %arg1 : i32 to index
    %c1 = arith.constant 1 : index
    %10 = memref.load %arg2[%9, %c1] : memref<2x3xf32, #tpu.memory_space<smem>>
    %c1_4 = arith.constant 1 : index
    %c0_5 = arith.constant 0 : index
    %c0_6 = arith.constant 0 : index
    %11 = vector.load %arg6[%c1_4, %c0_5, %c0_6] : memref<3x256x256xf32, #tpu.memory_space<vmem>>, vector<1x256x256xf32>
    %12 = vector.shape_cast %11 : vector<1x256x256xf32> to vector<256x256xf32>
    %13 = vector.broadcast %10 : f32 to vector<256x256xf32>
    %14 = arith.mulf %13, %12 : vector<256x256xf32>
    %15 = arith.addf %8, %14 : vector<256x256xf32>
    %16 = arith.index_cast %arg1 : i32 to index
    %c2 = arith.constant 2 : index
    %17 = memref.load %arg2[%16, %c2] : memref<2x3xf32, #tpu.memory_space<smem>>
    %c2_7 = arith.constant 2 : index
    %c0_8 = arith.constant 0 : index
    %c0_9 = arith.constant 0 : index
    %18 = vector.load %arg6[%c2_7, %c0_8, %c0_9] : memref<3x256x256xf32, #tpu.memory_space<vmem>>, vector<1x256x256xf32>
    %19 = vector.shape_cast %18 : vector<1x256x256xf32> to vector<256x256xf32>
    %20 = vector.broadcast %17 : f32 to vector<256x256xf32>
    %21 = arith.mulf %20, %19 : vector<256x256xf32>
    %22 = arith.addf %15, %21 : vector<256x256xf32>
    %c0_10 = arith.constant 0 : index
    %c0_11 = arith.constant 0 : index
    %c0_12 = arith.constant 0 : index
    %c0_13 = arith.constant 0 : index
    %23 = vector.load %arg4[%c0_10, %c0_11, %c0_12, %c0_13] : memref<1x1x4x256xf32, #tpu.memory_space<vmem>>, vector<1x1x4x256xf32>
    %24 = vector.shape_cast %23 : vector<1x1x4x256xf32> to vector<4x256xf32>
    %cst = arith.constant dense<0.000000e+00> : vector<4x256xf32>
    %25 = tpu.matmul %24, %22, %cst {dimension_numbers = #tpu.dot_dimension_numbers<[1], [1], [0], [0], [0, 0, 1, 0], [], []>} : vector<4x256xf32>, vector<256x256xf32>, vector<4x256xf32> -> vector<4x256xf32>
    %cst_14 = arith.constant dense<0.000000e+00> : vector<4x256xf32>
    %26 = tpu.matmul %25, %22, %cst_14 {dimension_numbers = #tpu.dot_dimension_numbers<[1], [1], [0], [0], [0, 0, 1, 0], [], []>} : vector<4x256xf32>, vector<256x256xf32>, vector<4x256xf32> -> vector<4x256xf32>
    %cst_15 = arith.constant dense<0.000000e+00> : vector<4x256xf32>
    %27 = tpu.matmul %26, %22, %cst_15 {dimension_numbers = #tpu.dot_dimension_numbers<[1], [1], [0], [0], [0, 0, 1, 0], [], []>} : vector<4x256xf32>, vector<256x256xf32>, vector<4x256xf32> -> vector<4x256xf32>
    %cst_16 = arith.constant dense<0.000000e+00> : vector<4x256xf32>
    %28 = tpu.matmul %27, %22, %cst_16 {dimension_numbers = #tpu.dot_dimension_numbers<[1], [1], [0], [0], [0, 0, 1, 0], [], []>} : vector<4x256xf32>, vector<256x256xf32>, vector<4x256xf32> -> vector<4x256xf32>
    %cst_17 = arith.constant dense<0.000000e+00> : vector<4x256xf32>
    %29 = tpu.matmul %28, %22, %cst_17 {dimension_numbers = #tpu.dot_dimension_numbers<[1], [1], [0], [0], [0, 0, 1, 0], [], []>} : vector<4x256xf32>, vector<256x256xf32>, vector<4x256xf32> -> vector<4x256xf32>
    %cst_18 = arith.constant dense<0.000000e+00> : vector<4x256xf32>
    %30 = tpu.matmul %29, %22, %cst_18 {dimension_numbers = #tpu.dot_dimension_numbers<[1], [1], [0], [0], [0, 0, 1, 0], [], []>} : vector<4x256xf32>, vector<256x256xf32>, vector<4x256xf32> -> vector<4x256xf32>
    %cst_19 = arith.constant 0.949999988 : f32
    %31 = vector.broadcast %cst_19 : f32 to vector<4x256xf32>
    %32 = arith.mulf %31, %24 : vector<4x256xf32>
    %cst_20 = arith.constant 5.000000e-02 : f32
    %33 = vector.broadcast %cst_20 : f32 to vector<4x256xf32>
    %34 = arith.mulf %33, %30 : vector<4x256xf32>
    %35 = arith.addf %32, %34 : vector<4x256xf32>
    %c0_21 = arith.constant 0 : index
    %c0_22 = arith.constant 0 : index
    %c0_23 = arith.constant 0 : index
    %c0_24 = arith.constant 0 : index
    %36 = vector.load %arg5[%c0_21, %c0_22, %c0_23, %c0_24] : memref<1x1x4x256xf32, #tpu.memory_space<vmem>>, vector<1x1x4x256xf32>
    %37 = vector.shape_cast %36 : vector<1x1x4x256xf32> to vector<4x256xf32>
    %38 = vector.shape_cast %35 : vector<4x256xf32> to vector<1x1x4x256xf32>
    tpu.vector_store %arg5[%c0_21, %c0_22, %c0_23, %c0_24], %38 {strides = array<i32>} : memref<1x1x4x256xf32, #tpu.memory_space<vmem>>, vector<1x1x4x256xf32>,
    return
  }
  func.func @transform_0(%arg0: i32, %arg1: i32) -> (i32, i32) {
    %c0_i32 = arith.constant 0 : i32
    %c0_i32_0 = arith.constant 0 : i32
    %c0_i32_1 = arith.constant 0 : i32
    return %c0_i32, %c0_i32_0 : i32, i32
  }
  func.func @transform_1(%arg0: i32, %arg1: i32) -> (i32, i32, i32, i32) {
    %c0_i32 = arith.constant 0 : i32
    %c0_i32_0 = arith.constant 0 : i32
    %c0_i32_1 = arith.constant 0 : i32
    %c0_i32_2 = arith.constant 0 : i32
    return %c0_i32, %arg0, %c0_i32_0, %c0_i32_1 : i32, i32, i32, i32
  }
  func.func @transform_2(%arg0: i32, %arg1: i32) -> (i32, i32, i32, i32) {
    %c0_i32 = arith.constant 0 : i32
    %c0_i32_0 = arith.constant 0 : i32
    %c0_i32_1 = arith.constant 0 : i32
    return %arg1, %arg0, %c0_i32, %c0_i32_0 : i32, i32, i32, i32
  }
  func.func @transform_3(%arg0: i32, %arg1: i32) -> (i32, i32, i32, i32) {
    %c0_i32 = arith.constant 0 : i32
    %c0_i32_0 = arith.constant 0 : i32
    %c0_i32_1 = arith.constant 0 : i32
    return %arg1, %arg0, %c0_i32, %c0_i32_0 : i32, i32, i32, i32
  }
}

</mosaic_0001>

<bundles_post_ra>
// kernel: tpu_custom_call.1
= control target key start
LH: loop header
LB: loop body
LE: loop exit
PB: predicated region body
PF: predicated region fallthrough
CT: control target
= control target key end

     0   :  { %s12258_s0 = inlined_call_operand.vmem [shape: f32[2,3], index: 0, kind: input, shape index: {}]   ;;  %s12259_s1 = inlined_call_operand.vmem [shape: f32[3,2,256,4], index: 1, kind: input, shape index: {}]   ;;  %s12260_s2 = inlined_call_operand.vmem [shape: f32[2,2,4,256], index: 2, kind: input, shape index: {}]   ;;  %s12261_s3 = inlined_call_operand.hbm [shape: f32[2,2,4,256], index: 3, kind: output, shape index: {}]  }
   0x1   :  { %12586 = sst [smem:[#allocation148_spill]] %s12258_s0 }
   0x2   :  { %8 = vsyncpa [#allocation5], 0 }
   0x3   :  { %9 = vsyncpa [#allocation4], 0 }
   0x4   :  { %11 = vsyncpa [#allocation4 + $0x1], 0  ;;  %s7002_s12 = smov 0   ;;  %s7004_s13 = smov 0  }
   0x5   :  { %s7006_s14 = smov 0   ;;  %s7008_s15 = smov 0  }
   0x6   :  { %s7010_s16 = smov 0   ;;  %s7012_s17 = smov 0  }
   0x7   :  { %s7014_s18 = smov 0   ;;  %s7016_s19 = smov 0  }
   0x8   :  { %s7018_s20 = smov 0   ;;  %s7020_s21 = smov 0  }
   0x9 LB: > { %s5750_s22 = sadd.s32 4294967295, %s6979_s21   ;;  %s5751_s23 = sadd.s32 4294967294, %s6979_s21   ;;  %s6979_s21 = sphi %s7020_s21, %s17_s21   ;;  %s6975_s20 = sphi %s7018_s20, %s13367_s20   ;;  %s6971_s19 = sphi %s7016_s19, %s13366_s19   ;;  %s6967_s18 = sphi %s7014_s18, %s13365_s18   ;;  %s6963_s17 = sphi %s7012_s17, %s13364_s17   ;;  %s6959_s16 = sphi %s7010_s16, %s13363_s16   ;;  %s6955_s15 = sphi %s7008_s15, %s13362_s15   ;;  %s6951_s14 = sphi %s7006_s14, %s13361_s14   ;;  %s6947_s13 = sphi %s7004_s13, %s13360_s13   ;;  %s6943_s12 = sphi %s7002_s12, %s13359_s12  }
   0xa   : > { %s26_s24 = sadd.s32 1, %s6971_s19  ;;  %s29_s25 = sadd.s32 1, %s6975_s20 }
   0xb   : > { %p27_p0 = scmp.ge.s32.totalorder %s26_s24, 2  ;;  %s57_s26 = sadd.s32 1, %s6959_s16 }
   0xc   : > { %p64_p1 = scmp.ne.s32.totalorder %s6959_s16, %s6955_s15  ;;  %p65_p2 = scmp.eq.s32.totalorder %s6979_s21, 0 }
   0xd   : > { %s13369_s24 = smov (%p27_p0, %s26_s24), 0  ;;  %s13371_s25 = smov (!%p27_p0, %s29_s25), %s6975_s20 }
   0xe   : > { %p7063_p3 = por %p65_p2, %p64_p1  ;;  %s108_s28 = ssub.s32 %s6971_s19, %s13369_s24 }
   0xf   : > { %p31_p4 = scmp.ge.s32.totalorder %s13371_s25, 2  ;;  %s113_s29 = sadd.s32 1, %s6951_s14 }
  0x10   : > { %p123_p5 = scmp.ne.s32.totalorder %s6951_s14, %s6947_s13  ;;  %p124_p6 = scmp.eq.s32.totalorder %s5750_s22, 3 }
  0x11   : > { %s13373_s25 = smov (%p31_p4, %s13371_s25), 0  ;;  %p129_p8 = scmp.ne.s32.totalorder %s6947_s13, %s6943_s12 }
  0x12   : > { %p7074_p7 = por %p124_p6, %p123_p5  ;;  %s54_s4 = ssub.s32 %s6975_s20, %s13373_s25 }
  0x13   : > { %p130_p9 = scmp.eq.s32.totalorder %s5751_s23, 3  ;;  %p55_p10 = scmp.eq.s32.totalorder %s54_s4, 0 }
  0x14   : > { %s110_s5 = sor.u32 %s108_s28, %s54_s4  ;;  %p5752_p13 = scmp.ge.s32.totalorder %s6979_s21, 1 }
  0x15   : > { %p111_p11 = scmp.eq.s32.totalorder %s110_s5, 0  ;;  %p7082_p12 = por %p130_p9, %p129_p8 }
  0x16   : > { %s7087_s7 = scalar_select %p55_p10, %s6959_s16, %s57_s26  }
  0x17   : > { %s7090_s8 = scalar_select %p111_p11, %s6951_s14, %s113_s29  }
  0x18   : > { %p137_p0 = scmp.lt.s32.totalorder %s6979_s21, 5  ;;  %p7094_p1 = scmp.eq.s32.totalorder %s5750_s22, 0 }
  0x19   : > { %s12592_s0 = sld [smem:[#allocation148_spill]]  ;;  %s6981_s26 = smov [#allocation3]  }
  0x1a   : > { %p7098_p2 = pnand %p5752_p13, %p137_p0  ;;  %p5754_p6 = scmp.ge.s32.totalorder %s6979_s21, 4 }
  0x1c   : > { %p6164_p4 = pneg %p7098_p2  ;;  %156 = sbr.rel (%p5754_p6) target bundleno = 133 (0x85), region = 20 }
  0x1e   : > { %p6165_p5 = pnand %p7094_p1, %p6164_p4 }
  0x1f   : > { %s149_s28 = sshll.u32 %s12592_s0, 4  ;;  %s150_s28 = int_to_ptr.vmem [resolvable:$true] %s149_s28 }
  0x20   : > { %6167 = dma.vmem_to_smem (!%p6165_p5), %s150_s28, 32, %s6981_s26, [#allocation5]  }
  0x21   : > { %159 = sbr.rel (!%p7063_p3) target bundleno = 133 (0x85), region = 24  ;;  %s161_s22 = sand.u32 (%p7063_p3), 1, %s6959_s16  }
  0x22   : > { %s6123_s29 = sshll.u32 (%p7063_p3), %s6975_s20, 8  ;;  %s6156_s4 = smul.u32 (%p7063_p3), 768, %s161_s22 }
  0x23   : > { %s7117_s23 = scalar_lea.vmem (%p7063_p3), %s12259_s1, %s6123_s29 }
  0x24   : > { %v385_v0 = vld [vmem:[%s7117_s23] sm:$0xff] (%p7063_p3)  ;;  %v387_v1 = vld [vmem:[%s7117_s23 + $0x8] sm:$0xff] (%p7063_p3)  ;;  %v389_v2 = vld [vmem:[%s7117_s23 + $0x10] sm:$0xff] (%p7063_p3)  ;;  %s7122_s27 = scalar_lea.vmem (%p7063_p3), [#allocation6], %s6156_s4 }
  0x25   : > { %386 = vst [vmem:[%s7122_s27] sm:$0xff] (%p7063_p3), %v385_v0  ;;  %v391_v3 = vld [vmem:[%s7117_s23 + $0x18] sm:$0xff] (%p7063_p3)  ;;  %v393_v4 = vld [vmem:[%s7117_s23 + $0x20] sm:$0xff] (%p7063_p3)  ;;  %v395_v5 = vld [vmem:[%s7117_s23 + $0x28] sm:$0xff] (%p7063_p3) }
  0x26   : > { %388 = vst [vmem:[%s7122_s27 + $0x8] sm:$0xff] %v387_v1  ;;  %v397_v6 = vld [vmem:[%s7117_s23 + $0x30] sm:$0xff]  ;;  %v399_v7 = vld [vmem:[%s7117_s23 + $0x38] sm:$0xff]  ;;  %v401_v8 = vld [vmem:[%s7117_s23 + $0x40] sm:$0xff] }
  0x27   : > { %390 = vst [vmem:[%s7122_s27 + $0x10] sm:$0xff] %v389_v2  ;;  %v403_v9 = vld [vmem:[%s7117_s23 + $0x48] sm:$0xff]  ;;  %v405_v10 = vld [vmem:[%s7117_s23 + $0x50] sm:$0xff]  ;;  %v407_v11 = vld [vmem:[%s7117_s23 + $0x58] sm:$0xff] }
  0x28   : > { %392 = vst [vmem:[%s7122_s27 + $0x18] sm:$0xff] %v391_v3  ;;  %v409_v12 = vld [vmem:[%s7117_s23 + $0x60] sm:$0xff]  ;;  %v411_v13 = vld [vmem:[%s7117_s23 + $0x68] sm:$0xff]  ;;  %v413_v14 = vld [vmem:[%s7117_s23 + $0x70] sm:$0xff] }
  0x29   : > { %394 = vst [vmem:[%s7122_s27 + $0x20] sm:$0xff] %v393_v4  ;;  %v415_v15 = vld [vmem:[%s7117_s23 + $0x78] sm:$0xff]  ;;  %v417_v16 = vld [vmem:[%s7117_s23 + $0x80] sm:$0xff]  ;;  %v419_v17 = vld [vmem:[%s7117_s23 + $0x88] sm:$0xff] }
  0x2a   : > { %396 = vst [vmem:[%s7122_s27 + $0x28] sm:$0xff] %v395_v5  ;;  %v421_v18 = vld [vmem:[%s7117_s23 + $0x90] sm:$0xff]  ;;  %v423_v19 = vld [vmem:[%s7117_s23 + $0x98] sm:$0xff]  ;;  %v425_v20 = vld [vmem:[%s7117_s23 + $0xa0] sm:$0xff] }
  0x2b   : > { %398 = vst [vmem:[%s7122_s27 + $0x30] sm:$0xff] %v397_v6  ;;  %v427_v21 = vld [vmem:[%s7117_s23 + $0xa8] sm:$0xff]  ;;  %v429_v22 = vld [vmem:[%s7117_s23 + $0xb0] sm:$0xff]  ;;  %v431_v23 = vld [vmem:[%s7117_s23 + $0xb8] sm:$0xff] }
  0x2c   : > { %400 = vst [vmem:[%s7122_s27 + $0x38] sm:$0xff] %v399_v7  ;;  %v433_v24 = vld [vmem:[%s7117_s23 + $0xc0] sm:$0xff]  ;;  %v435_v25 = vld [vmem:[%s7117_s23 + $0xc8] sm:$0xff]  ;;  %v437_v26 = vld [vmem:[%s7117_s23 + $0xd0] sm:$0xff] }
  0x2d   : > { %402 = vst [vmem:[%s7122_s27 + $0x40] sm:$0xff] %v401_v8  ;;  %v439_v27 = vld [vmem:[%s7117_s23 + $0xd8] sm:$0xff]  ;;  %v441_v28 = vld [vmem:[%s7117_s23 + $0xe0] sm:$0xff]  ;;  %v443_v29 = vld [vmem:[%s7117_s23 + $0xe8] sm:$0xff] }
  0x2e   : > { %404 = vst [vmem:[%s7122_s27 + $0x48] sm:$0xff] %v403_v9  ;;  %v445_v30 = vld [vmem:[%s7117_s23 + $0xf0] sm:$0xff]  ;;  %v447_v31 = vld [vmem:[%s7117_s23 + $0xf8] sm:$0xff]  ;;  %v449_v32 = vld [vmem:[%s7117_s23 + $0x200] sm:$0xff] }
  0x2f   : > { %406 = vst [vmem:[%s7122_s27 + $0x50] sm:$0xff] %v405_v10  ;;  %v451_v33 = vld [vmem:[%s7117_s23 + $0x208] sm:$0xff]  ;;  %v453_v34 = vld [vmem:[%s7117_s23 + $0x210] sm:$0xff]  ;;  %v455_v35 = vld [vmem:[%s7117_s23 + $0x218] sm:$0xff] }
  0x30   : > { %408 = vst [vmem:[%s7122_s27 + $0x58] sm:$0xff] %v407_v11  ;;  %v457_v36 = vld [vmem:[%s7117_s23 + $0x220] sm:$0xff]  ;;  %v459_v37 = vld [vmem:[%s7117_s23 + $0x228] sm:$0xff]  ;;  %v461_v38 = vld [vmem:[%s7117_s23 + $0x230] sm:$0xff] }
  0x31   : > { %410 = vst [vmem:[%s7122_s27 + $0x60] sm:$0xff] %v409_v12  ;;  %v463_v39 = vld [vmem:[%s7117_s23 + $0x238] sm:$0xff]  ;;  %v465_v40 = vld [vmem:[%s7117_s23 + $0x240] sm:$0xff]  ;;  %v467_v41 = vld [vmem:[%s7117_s23 + $0x248] sm:$0xff] }
  0x32   : > { %412 = vst [vmem:[%s7122_s27 + $0x68] sm:$0xff] %v411_v13  ;;  %v469_v42 = vld [vmem:[%s7117_s23 + $0x250] sm:$0xff]  ;;  %v471_v43 = vld [vmem:[%s7117_s23 + $0x258] sm:$0xff]  ;;  %v473_v44 = vld [vmem:[%s7117_s23 + $0x260] sm:$0xff] }
  0x33   : > { %414 = vst [vmem:[%s7122_s27 + $0x70] sm:$0xff] %v413_v14  ;;  %v475_v45 = vld [vmem:[%s7117_s23 + $0x268] sm:$0xff]  ;;  %v477_v46 = vld [vmem:[%s7117_s23 + $0x270] sm:$0xff]  ;;  %v479_v47 = vld [vmem:[%s7117_s23 + $0x278] sm:$0xff] }
  0x34   : > { %416 = vst [vmem:[%s7122_s27 + $0x78] sm:$0xff] %v415_v15  ;;  %v481_v48 = vld [vmem:[%s7117_s23 + $0x280] sm:$0xff]  ;;  %v483_v49 = vld [vmem:[%s7117_s23 + $0x288] sm:$0xff]  ;;  %v485_v50 = vld [vmem:[%s7117_s23 + $0x290] sm:$0xff] }
  0x35   : > { %418 = vst [vmem:[%s7122_s27 + $0x80] sm:$0xff] %v417_v16  ;;  %v487_v51 = vld [vmem:[%s7117_s23 + $0x298] sm:$0xff]  ;;  %v489_v52 = vld [vmem:[%s7117_s23 + $0x2a0] sm:$0xff]  ;;  %v491_v53 = vld [vmem:[%s7117_s23 + $0x2a8] sm:$0xff] }
  0x36   : > { %420 = vst [vmem:[%s7122_s27 + $0x88] sm:$0xff] %v419_v17  ;;  %v493_v54 = vld [vmem:[%s7117_s23 + $0x2b0] sm:$0xff]  ;;  %v495_v55 = vld [vmem:[%s7117_s23 + $0x2b8] sm:$0xff]  ;;  %v497_v56 = vld [vmem:[%s7117_s23 + $0x2c0] sm:$0xff] }
  0x37   : > { %422 = vst [vmem:[%s7122_s27 + $0x90] sm:$0xff] %v421_v18  ;;  %v499_v57 = vld [vmem:[%s7117_s23 + $0x2c8] sm:$0xff]  ;;  %v501_v58 = vld [vmem:[%s7117_s23 + $0x2d0] sm:$0xff]  ;;  %v503_v59 = vld [vmem:[%s7117_s23 + $0x2d8] sm:$0xff] }
  0x38   : > { %424 = vst [vmem:[%s7122_s27 + $0x98] sm:$0xff] %v423_v19  ;;  %v505_v60 = vld [vmem:[%s7117_s23 + $0x2e0] sm:$0xff]  ;;  %v507_v61 = vld [vmem:[%s7117_s23 + $0x2e8] sm:$0xff]  ;;  %v509_v62 = vld [vmem:[%s7117_s23 + $0x2f0] sm:$0xff] }
  0x39   : > { %426 = vst [vmem:[%s7122_s27 + $0xa0] sm:$0xff] %v425_v20  ;;  %v511_v63 = vld [vmem:[%s7117_s23 + $0x2f8] sm:$0xff]  ;;  %v513_v0 = vld [vmem:[%s7117_s23 + $0x400] sm:$0xff]  ;;  %v515_v1 = vld [vmem:[%s7117_s23 + $0x408] sm:$0xff] }
  0x3a   : > { %428 = vst [vmem:[%s7122_s27 + $0xa8] sm:$0xff] %v427_v21  ;;  %v517_v2 = vld [vmem:[%s7117_s23 + $0x410] sm:$0xff]  ;;  %v519_v3 = vld [vmem:[%s7117_s23 + $0x418] sm:$0xff]  ;;  %v521_v4 = vld [vmem:[%s7117_s23 + $0x420] sm:$0xff] }
  0x3b   : > { %430 = vst [vmem:[%s7122_s27 + $0xb0] sm:$0xff] %v429_v22  ;;  %v523_v5 = vld [vmem:[%s7117_s23 + $0x428] sm:$0xff]  ;;  %v525_v6 = vld [vmem:[%s7117_s23 + $0x430] sm:$0xff]  ;;  %v527_v7 = vld [vmem:[%s7117_s23 + $0x438] sm:$0xff] }
  0x3c   : > { %432 = vst [vmem:[%s7122_s27 + $0xb8] sm:$0xff] %v431_v23  ;;  %v529_v8 = vld [vmem:[%s7117_s23 + $0x440] sm:$0xff]  ;;  %v531_v9 = vld [vmem:[%s7117_s23 + $0x448] sm:$0xff]  ;;  %v533_v10 = vld [vmem:[%s7117_s23 + $0x450] sm:$0xff] }
  0x3d   : > { %434 = vst [vmem:[%s7122_s27 + $0xc0] sm:$0xff] %v433_v24  ;;  %v535_v11 = vld [vmem:[%s7117_s23 + $0x458] sm:$0xff]  ;;  %v537_v12 = vld [vmem:[%s7117_s23 + $0x460] sm:$0xff]  ;;  %v539_v13 = vld [vmem:[%s7117_s23 + $0x468] sm:$0xff] }
  0x3e   : > { %436 = vst [vmem:[%s7122_s27 + $0xc8] sm:$0xff] %v435_v25  ;;  %v541_v14 = vld [vmem:[%s7117_s23 + $0x470] sm:$0xff]  ;;  %v543_v15 = vld [vmem:[%s7117_s23 + $0x478] sm:$0xff]  ;;  %v545_v16 = vld [vmem:[%s7117_s23 + $0x480] sm:$0xff] }
  0x3f   : > { %438 = vst [vmem:[%s7122_s27 + $0xd0] sm:$0xff] %v437_v26  ;;  %v547_v17 = vld [vmem:[%s7117_s23 + $0x488] sm:$0xff]  ;;  %v549_v18 = vld [vmem:[%s7117_s23 + $0x490] sm:$0xff]  ;;  %v551_v19 = vld [vmem:[%s7117_s23 + $0x498] sm:$0xff] }
  0x40   : > { %440 = vst [vmem:[%s7122_s27 + $0xd8] sm:$0xff] %v439_v27  ;;  %v553_v20 = vld [vmem:[%s7117_s23 + $0x4a0] sm:$0xff]  ;;  %v555_v21 = vld [vmem:[%s7117_s23 + $0x4a8] sm:$0xff]  ;;  %v557_v22 = vld [vmem:[%s7117_s23 + $0x4b0] sm:$0xff] }
  0x41   : > { %442 = vst [vmem:[%s7122_s27 + $0xe0] sm:$0xff] %v441_v28  ;;  %v559_v23 = vld [vmem:[%s7117_s23 + $0x4b8] sm:$0xff]  ;;  %v561_v24 = vld [vmem:[%s7117_s23 + $0x4c0] sm:$0xff]  ;;  %v563_v25 = vld [vmem:[%s7117_s23 + $0x4c8] sm:$0xff] }
  0x42   : > { %444 = vst [vmem:[%s7122_s27 + $0xe8] sm:$0xff] %v443_v29  ;;  %v565_v26 = vld [vmem:[%s7117_s23 + $0x4d0] sm:$0xff]  ;;  %v567_v27 = vld [vmem:[%s7117_s23 + $0x4d8] sm:$0xff]  ;;  %v569_v28 = vld [vmem:[%s7117_s23 + $0x4e0] sm:$0xff] }
  0x43   : > { %446 = vst [vmem:[%s7122_s27 + $0xf0] sm:$0xff] %v445_v30  ;;  %v571_v29 = vld [vmem:[%s7117_s23 + $0x4e8] sm:$0xff]  ;;  %v573_v30 = vld [vmem:[%s7117_s23 + $0x4f0] sm:$0xff] }
  0x44   : > { %448 = vst [vmem:[%s7122_s27 + $0xf8] sm:$0xff] %v447_v31  ;;  %v575_v31 = vld [vmem:[%s7117_s23 + $0x4f8] sm:$0xff] }
  0x45   : > { %450 = vst [vmem:[%s7122_s27 + $0x100] sm:$0xff] %v449_v32 }
  0x46   : > { %452 = vst [vmem:[%s7122_s27 + $0x108] sm:$0xff] %v451_v33 }
  0x47   : > { %454 = vst [vmem:[%s7122_s27 + $0x110] sm:$0xff] %v453_v34 }
  0x48   : > { %456 = vst [vmem:[%s7122_s27 + $0x118] sm:$0xff] %v455_v35 }
  0x49   : > { %458 = vst [vmem:[%s7122_s27 + $0x120] sm:$0xff] %v457_v36 }
  0x4a   : > { %460 = vst [vmem:[%s7122_s27 + $0x128] sm:$0xff] %v459_v37 }
  0x4b   : > { %462 = vst [vmem:[%s7122_s27 + $0x130] sm:$0xff] %v461_v38 }
  0x4c   : > { %464 = vst [vmem:[%s7122_s27 + $0x138] sm:$0xff] %v463_v39 }
  0x4d   : > { %466 = vst [vmem:[%s7122_s27 + $0x140] sm:$0xff] %v465_v40 }
  0x4e   : > { %468 = vst [vmem:[%s7122_s27 + $0x148] sm:$0xff] %v467_v41 }
  0x4f   : > { %470 = vst [vmem:[%s7122_s27 + $0x150] sm:$0xff] %v469_v42 }
  0x50   : > { %472 = vst [vmem:[%s7122_s27 + $0x158] sm:$0xff] %v471_v43 }
  0x51   : > { %474 = vst [vmem:[%s7122_s27 + $0x160] sm:$0xff] %v473_v44 }
  0x52   : > { %476 = vst [vmem:[%s7122_s27 + $0x168] sm:$0xff] %v475_v45 }
  0x53   : > { %478 = vst [vmem:[%s7122_s27 + $0x170] sm:$0xff] %v477_v46 }
  0x54   : > { %480 = vst [vmem:[%s7122_s27 + $0x178] sm:$0xff] %v479_v47 }
  0x55   : > { %482 = vst [vmem:[%s7122_s27 + $0x180] sm:$0xff] %v481_v48 }
  0x56   : > { %484 = vst [vmem:[%s7122_s27 + $0x188] sm:$0xff] %v483_v49 }
  0x57   : > { %486 = vst [vmem:[%s7122_s27 + $0x190] sm:$0xff] %v485_v50 }
  0x58   : > { %488 = vst [vmem:[%s7122_s27 + $0x198] sm:$0xff] %v487_v51 }
  0x59   : > { %490 = vst [vmem:[%s7122_s27 + $0x1a0] sm:$0xff] %v489_v52 }
  0x5a   : > { %492 = vst [vmem:[%s7122_s27 + $0x1a8] sm:$0xff] %v491_v53 }
  0x5b   : > { %494 = vst [vmem:[%s7122_s27 + $0x1b0] sm:$0xff] %v493_v54 }
  0x5c   : > { %496 = vst [vmem:[%s7122_s27 + $0x1b8] sm:$0xff] %v495_v55 }
  0x5d   : > { %498 = vst [vmem:[%s7122_s27 + $0x1c0] sm:$0xff] %v497_v56 }
  0x5e   : > { %500 = vst [vmem:[%s7122_s27 + $0x1c8] sm:$0xff] %v499_v57 }
  0x5f   : > { %502 = vst [vmem:[%s7122_s27 + $0x1d0] sm:$0xff] %v501_v58 }
  0x60   : > { %504 = vst [vmem:[%s7122_s27 + $0x1d8] sm:$0xff] %v503_v59 }
  0x61   : > { %506 = vst [vmem:[%s7122_s27 + $0x1e0] sm:$0xff] %v505_v60 }
  0x62   : > { %508 = vst [vmem:[%s7122_s27 + $0x1e8] sm:$0xff] %v507_v61 }
  0x63   : > { %510 = vst [vmem:[%s7122_s27 + $0x1f0] sm:$0xff] %v509_v62 }
  0x64   : > { %512 = vst [vmem:[%s7122_s27 + $0x1f8] sm:$0xff] %v511_v63 }
  0x65   : > { %514 = vst [vmem:[%s7122_s27 + $0x200] sm:$0xff] %v513_v0 }
  0x66   : > { %516 = vst [vmem:[%s7122_s27 + $0x208] sm:$0xff] %v515_v1 }
  0x67   : > { %518 = vst [vmem:[%s7122_s27 + $0x210] sm:$0xff] %v517_v2 }
  0x68   : > { %520 = vst [vmem:[%s7122_s27 + $0x218] sm:$0xff] %v519_v3 }
  0x69   : > { %522 = vst [vmem:[%s7122_s27 + $0x220] sm:$0xff] %v521_v4 }
  0x6a   : > { %524 = vst [vmem:[%s7122_s27 + $0x228] sm:$0xff] %v523_v5 }
  0x6b   : > { %526 = vst [vmem:[%s7122_s27 + $0x230] sm:$0xff] %v525_v6 }
  0x6c   : > { %528 = vst [vmem:[%s7122_s27 + $0x238] sm:$0xff] %v527_v7 }
  0x6d   : > { %530 = vst [vmem:[%s7122_s27 + $0x240] sm:$0xff] %v529_v8 }
  0x6e   : > { %532 = vst [vmem:[%s7122_s27 + $0x248] sm:$0xff] %v531_v9 }
  0x6f   : > { %534 = vst [vmem:[%s7122_s27 + $0x250] sm:$0xff] %v533_v10 }
  0x70   : > { %536 = vst [vmem:[%s7122_s27 + $0x258] sm:$0xff] %v535_v11 }
  0x71   : > { %538 = vst [vmem:[%s7122_s27 + $0x260] sm:$0xff] %v537_v12 }
  0x72   : > { %540 = vst [vmem:[%s7122_s27 + $0x268] sm:$0xff] %v539_v13 }
  0x73   : > { %542 = vst [vmem:[%s7122_s27 + $0x270] sm:$0xff] %v541_v14 }
  0x74   : > { %544 = vst [vmem:[%s7122_s27 + $0x278] sm:$0xff] %v543_v15 }
  0x75   : > { %546 = vst [vmem:[%s7122_s27 + $0x280] sm:$0xff] %v545_v16 }
  0x76   : > { %548 = vst [vmem:[%s7122_s27 + $0x288] sm:$0xff] %v547_v17 }
  0x77   : > { %550 = vst [vmem:[%s7122_s27 + $0x290] sm:$0xff] %v549_v18 }
  0x78   : > { %552 = vst [vmem:[%s7122_s27 + $0x298] sm:$0xff] %v551_v19 }
  0x79   : > { %554 = vst [vmem:[%s7122_s27 + $0x2a0] sm:$0xff] %v553_v20 }
  0x7a   : > { %556 = vst [vmem:[%s7122_s27 + $0x2a8] sm:$0xff] %v555_v21 }
  0x7b   : > { %558 = vst [vmem:[%s7122_s27 + $0x2b0] sm:$0xff] %v557_v22 }
  0x7c   : > { %560 = vst [vmem:[%s7122_s27 + $0x2b8] sm:$0xff] %v559_v23 }
  0x7d   : > { %562 = vst [vmem:[%s7122_s27 + $0x2c0] sm:$0xff] %v561_v24 }
  0x7e   : > { %564 = vst [vmem:[%s7122_s27 + $0x2c8] sm:$0xff] %v563_v25 }
  0x7f   : > { %566 = vst [vmem:[%s7122_s27 + $0x2d0] sm:$0xff] %v565_v26 }
  0x80   : > { %568 = vst [vmem:[%s7122_s27 + $0x2d8] sm:$0xff] %v567_v27 }
  0x81   : > { %570 = vst [vmem:[%s7122_s27 + $0x2e0] sm:$0xff] %v569_v28 }
  0x82   : > { %572 = vst [vmem:[%s7122_s27 + $0x2e8] sm:$0xff] %v571_v29 }
  0x83   : > { %574 = vst [vmem:[%s7122_s27 + $0x2f0] sm:$0xff] %v573_v30 }
  0x84   : > { %576 = vst [vmem:[%s7122_s27 + $0x2f8] sm:$0xff] %v575_v31 }
  0x85 PF: > { %597 = sbr.rel (%p7098_p2) target bundleno = 2026 (0x7ea), region = 66 }
  0x8a   : > { %6934 = dma.done.wait (%p7094_p1), [#allocation5], 32  }
  0x8b   : > { %6936 = vsyncadd (%p7094_p1), [#allocation5], 4294967264  ;;  %s605_s28 = sand.u32 1, %s6955_s15  }
  0x8c   : > { %s6157_s26 = smul.u32 768, %s605_s28 }
  0x8e   : > { %s7320_s22 = scalar_lea.vmem [#allocation6], %s6157_s26 }
  0x8f   : > { %611 = sfence }
  0x90   : > { %s635_s10 = sand.u32 1, %s6947_s13   ;;  %p638_p3 = scmp.lt.s32.totalorder %s6963_s17, 1 }
  0x91   : > { %s7326_s29 = sshll.u32 %s635_s10, 3  ;;  %p640_p8 = scmp.lt.s32.totalorder %s6967_s18, 1 }
  0x92   : > { %s639_s9 = scalar_select %p638_p3, %s6963_s17, 1 }
  0x93   : > { %s641_s4 = scalar_select %p640_p8, %s6967_s18, 1 }
  0x94   : > { %s5761_s15 = sshll.u32 %s639_s9, 2  ;;  %s637_s0 = scalar_lea.vmem [#allocation7], %s7326_s29 }
  0x95   : > { %s5760_s5 = sshll.u32 %s641_s4, 1  ;;  %p5763_p9 = scmp.ne.s32.totalorder %s6963_s17, 0 }
  0x96   : > { %s644_s11 = sadd.s32 %s5761_s15, %s5760_s5 }
  0x97   : > { %s5762_s23 = sshll.u32 %s644_s11, 2  ;;  %650 = sbr.rel (%p5763_p9) target bundleno = 1113 (0x459), region = 78 }
  0x98   : > { %s7334_s26 = scalar_lea.vmem %s12260_s2, %s5762_s23 }
  0x9c   : > { %v7339_v32 = vld [vmem:[%s7320_s22 + $0x78] sm:$0xff]  ;;  %vm683_vm0 = vcmask 31744   ;;  %v7353_v34 = vld [vmem:[%s7320_s22 + $0x70] sm:$0xff]  ;;  %v7367_v36 = vld [vmem:[%s7320_s22 + $0x68] sm:$0xff] }
  0x9d   : > { %v7342_v33 = vld [vmem:[%s7320_s22 + $0xf8] sm:$0xff]  ;;  %5764 = vmatpush.xpose.msk.msra.mxu0 %vm683_vm0, %v7339_v32  ;;  %6124 = vmatpush.xpose.msk.msra.mxu2 %vm683_vm0, %v7339_v32  ;;  %v7356_v35 = vld [vmem:[%s7320_s22 + $0xf0] sm:$0xff]  ;;  %v7370_v37 = vld [vmem:[%s7320_s22 + $0xe8] sm:$0xff] }
  0x9e   : > { %5812 = vmatpush.xpose.msk.msra.mxu1 %vm683_vm0, %v7342_v33  ;;  %6140 = vmatpush.xpose.msk.msra.mxu3 %vm683_vm0, %v7342_v33  ;;  %v7381_v38 = vld [vmem:[%s7320_s22 + $0x60] sm:$0xff]  ;;  %v7395_v40 = vld [vmem:[%s7320_s22 + $0x58] sm:$0xff]  ;;  %v7409_v42 = vld [vmem:[%s7320_s22 + $0x50] sm:$0xff] }
  0x9f   : > { %v7384_v39 = vld [vmem:[%s7320_s22 + $0xe0] sm:$0xff]  ;;  %v7398_v41 = vld [vmem:[%s7320_s22 + $0xd8] sm:$0xff]  ;;  %v7412_v43 = vld [vmem:[%s7320_s22 + $0xd0] sm:$0xff] }
  0xa0   : > { %v7423_v44 = vld [vmem:[%s7320_s22 + $0x48] sm:$0xff]  ;;  %v7437_v46 = vld [vmem:[%s7320_s22 + $0x40] sm:$0xff]  ;;  %v7451_v48 = vld [vmem:[%s7320_s22 + $0x38] sm:$0xff] }
  0xa1   : > { %5765 = vmatpush.xpose.msk.msra.mxu0 %vm683_vm0, %v7353_v34  ;;  %6125 = vmatpush.xpose.msk.msra.mxu2 %vm683_vm0, %v7353_v34  ;;  %v7426_v45 = vld [vmem:[%s7320_s22 + $0xc8] sm:$0xff]  ;;  %v7440_v47 = vld [vmem:[%s7320_s22 + $0xc0] sm:$0xff]  ;;  %v7454_v49 = vld [vmem:[%s7320_s22 + $0xb8] sm:$0xff] }
  0xa2   : > { %5813 = vmatpush.xpose.msk.msra.mxu1 %vm683_vm0, %v7356_v35  ;;  %6141 = vmatpush.xpose.msk.msra.mxu3 %vm683_vm0, %v7356_v35  ;;  %v7465_v50 = vld [vmem:[%s7320_s22 + $0x30] sm:$0xff]  ;;  %v7479_v52 = vld [vmem:[%s7320_s22 + $0x28] sm:$0xff]  ;;  %v7493_v54 = vld [vmem:[%s7320_s22 + $0x20] sm:$0xff] }
  0xa3   : > { %v7468_v51 = vld [vmem:[%s7320_s22 + $0xb0] sm:$0xff]  ;;  %v7482_v53 = vld [vmem:[%s7320_s22 + $0xa8] sm:$0xff]  ;;  %v7496_v55 = vld [vmem:[%s7320_s22 + $0xa0] sm:$0xff] }
  0xa4   : > { %v7507_v56 = vld [vmem:[%s7320_s22 + $0x18] sm:$0xff]  ;;  %v7521_v58 = vld [vmem:[%s7320_s22 + $0x10] sm:$0xff]  ;;  %v652_v60 = vld [vmem:[%s7320_s22 + $0x8] sm:$0xff] }
  0xa5   : > { %5766 = vmatpush.xpose.msk.msra.mxu0 %vm683_vm0, %v7367_v36  ;;  %6126 = vmatpush.xpose.msk.msra.mxu2 %vm683_vm0, %v7367_v36  ;;  %v7510_v57 = vld [vmem:[%s7320_s22 + $0x98] sm:$0xff]  ;;  %v7524_v59 = vld [vmem:[%s7320_s22 + $0x90] sm:$0xff]  ;;  %v668_v61 = vld [vmem:[%s7320_s22 + $0x88] sm:$0xff] }
  0xa6   : > { %5814 = vmatpush.xpose.msk.msra.mxu1 %vm683_vm0, %v7370_v37  ;;  %6142 = vmatpush.xpose.msk.msra.mxu3 %vm683_vm0, %v7370_v37  ;;  %v651_v62 = vld [vmem:[%s7320_s22] sm:$0xff]  ;;  %v7543_v0 = vld [vmem:[%s7320_s22 + $0x278] sm:$0xff]  ;;  %v7560_v4 = vld [vmem:[%s7320_s22 + $0x270] sm:$0xff] }
  0xa7   : > { %v667_v63 = vld [vmem:[%s7320_s22 + $0x80] sm:$0xff]  ;;  %v6019_v1 = vld [vmem:[%s7320_s22 + $0x2f8] sm:$0xff]  ;;  %v6018_v5 = vld [vmem:[%s7320_s22 + $0x2f0] sm:$0xff] }
  0xa8   : > { %v7554_v2 = vld [vmem:[%s7320_s22 + $0x178] sm:$0xff]  ;;  %v7572_v6 = vld [vmem:[%s7320_s22 + $0x170] sm:$0xff]  ;;  %v7576_v8 = vld [vmem:[%s7320_s22 + $0x268] sm:$0xff] }
  0xa9   : > { %5767 = vmatpush.xpose.msk.msra.mxu0 %vm683_vm0, %v7381_v38  ;;  %6127 = vmatpush.xpose.msk.msra.mxu2 %vm683_vm0, %v7381_v38  ;;  %v5891_v3 = vld [vmem:[%s7320_s22 + $0x1f8] sm:$0xff]  ;;  %v5890_v7 = vld [vmem:[%s7320_s22 + $0x1f0] sm:$0xff]  ;;  %v6017_v9 = vld [vmem:[%s7320_s22 + $0x2e8] sm:$0xff] }
  0xaa   : > { %5815 = vmatpush.xpose.msk.msra.mxu1 %vm683_vm0, %v7384_v39  ;;  %6143 = vmatpush.xpose.msk.msra.mxu3 %vm683_vm0, %v7384_v39  ;;  %v7586_v10 = vld [vmem:[%s7320_s22 + $0x168] sm:$0xff]  ;;  %v7592_v12 = vld [vmem:[%s7320_s22 + $0x260] sm:$0xff]  ;;  %v7608_v16 = vld [vmem:[%s7320_s22 + $0x258] sm:$0xff] }
  0xab   : > { %v5889_v11 = vld [vmem:[%s7320_s22 + $0x1e8] sm:$0xff]  ;;  %v6016_v13 = vld [vmem:[%s7320_s22 + $0x2e0] sm:$0xff]  ;;  %v6015_v17 = vld [vmem:[%s7320_s22 + $0x2d8] sm:$0xff] }
  0xac   : > { %v7604_v14 = vld [vmem:[%s7320_s22 + $0x160] sm:$0xff]  ;;  %v7618_v18 = vld [vmem:[%s7320_s22 + $0x158] sm:$0xff]  ;;  %v7626_v20 = vld [vmem:[%s7320_s22 + $0x250] sm:$0xff] }
  0xad   : > { %5768 = vmatpush.xpose.msk.msra.mxu0 %vm683_vm0, %v7395_v40  ;;  %6128 = vmatpush.xpose.msk.msra.mxu2 %vm683_vm0, %v7395_v40  ;;  %v5888_v15 = vld [vmem:[%s7320_s22 + $0x1e0] sm:$0xff]  ;;  %v5887_v19 = vld [vmem:[%s7320_s22 + $0x1d8] sm:$0xff]  ;;  %v6014_v21 = vld [vmem:[%s7320_s22 + $0x2d0] sm:$0xff] }
  0xae   : > { %5816 = vmatpush.xpose.msk.msra.mxu1 %vm683_vm0, %v7398_v41  ;;  %6144 = vmatpush.xpose.msk.msra.mxu3 %vm683_vm0, %v7398_v41  ;;  %v7640_v22 = vld [vmem:[%s7320_s22 + $0x150] sm:$0xff]  ;;  %v7644_v24 = vld [vmem:[%s7320_s22 + $0x248] sm:$0xff]  ;;  %v7666_v28 = vld [vmem:[%s7320_s22 + $0x240] sm:$0xff] }
  0xaf   : > { %v5886_v23 = vld [vmem:[%s7320_s22 + $0x1d0] sm:$0xff]  ;;  %v6013_v25 = vld [vmem:[%s7320_s22 + $0x2c8] sm:$0xff]  ;;  %v6012_v29 = vld [vmem:[%s7320_s22 + $0x2c0] sm:$0xff] }
  0xb0   : > { %v7654_v26 = vld [vmem:[%s7320_s22 + $0x148] sm:$0xff]  ;;  %v7676_v30 = vld [vmem:[%s7320_s22 + $0x140] sm:$0xff] }
  0xb1   : > { %5769 = vmatpush.xpose.msk.msra.mxu0 %vm683_vm0, %v7409_v42  ;;  %6129 = vmatpush.xpose.msk.msra.mxu2 %vm683_vm0, %v7409_v42  ;;  %v5885_v27 = vld [vmem:[%s7320_s22 + $0x1c8] sm:$0xff]  ;;  %v5884_v31 = vld [vmem:[%s7320_s22 + $0x1c0] sm:$0xff] }
  0xb2   : > { %5817 = vmatpush.xpose.msk.msra.mxu1 %vm683_vm0, %v7412_v43  ;;  %6145 = vmatpush.xpose.msk.msra.mxu3 %vm683_vm0, %v7412_v43 }
  0xb5   : > { %5770 = vmatpush.xpose.msk.msra.mxu0 %vm683_vm0, %v7423_v44  ;;  %6130 = vmatpush.xpose.msk.msra.mxu2 %vm683_vm0, %v7423_v44 }
  0xb6   : > { %5818 = vmatpush.xpose.msk.msra.mxu1 %vm683_vm0, %v7426_v45  ;;  %6146 = vmatpush.xpose.msk.msra.mxu3 %vm683_vm0, %v7426_v45 }
  0xb9   : > { %5771 = vmatpush.xpose.msk.msra.mxu0 %vm683_vm0, %v7437_v46  ;;  %6131 = vmatpush.xpose.msk.msra.mxu2 %vm683_vm0, %v7437_v46 }
  0xba   : > { %5819 = vmatpush.xpose.msk.msra.mxu1 %vm683_vm0, %v7440_v47  ;;  %6147 = vmatpush.xpose.msk.msra.mxu3 %vm683_vm0, %v7440_v47 }
  0xbd   : > { %5772 = vmatpush.xpose.msk.msra.mxu0 %vm683_vm0, %v7451_v48  ;;  %6132 = vmatpush.xpose.msk.msra.mxu2 %vm683_vm0, %v7451_v48 }
  0xbe   : > { %5820 = vmatpush.xpose.msk.msra.mxu1 %vm683_vm0, %v7454_v49  ;;  %6148 = vmatpush.xpose.msk.msra.mxu3 %vm683_vm0, %v7454_v49 }
  0xc1   : > { %5773 = vmatpush.xpose.msk.msra.mxu0 %vm683_vm0, %v7465_v50  ;;  %6133 = vmatpush.xpose.msk.msra.mxu2 %vm683_vm0, %v7465_v50 }
  0xc2   : > { %5821 = vmatpush.xpose.msk.msra.mxu1 %vm683_vm0, %v7468_v51  ;;  %6149 = vmatpush.xpose.msk.msra.mxu3 %vm683_vm0, %v7468_v51 }
  0xc5   : > { %5774 = vmatpush.xpose.msk.msra.mxu0 %vm683_vm0, %v7479_v52  ;;  %6134 = vmatpush.xpose.msk.msra.mxu2 %vm683_vm0, %v7479_v52 }
  0xc6   : > { %5822 = vmatpush.xpose.msk.msra.mxu1 %vm683_vm0, %v7482_v53  ;;  %6150 = vmatpush.xpose.msk.msra.mxu3 %vm683_vm0, %v7482_v53 }
  0xc9   : > { %5775 = vmatpush.xpose.msk.msra.mxu0 %vm683_vm0, %v7493_v54  ;;  %6135 = vmatpush.xpose.msk.msra.mxu2 %vm683_vm0, %v7493_v54 }
  0xca   : > { %5823 = vmatpush.xpose.msk.msra.mxu1 %vm683_vm0, %v7496_v55  ;;  %6151 = vmatpush.xpose.msk.msra.mxu3 %vm683_vm0, %v7496_v55 }
  0xcd   : > { %5776 = vmatpush.xpose.msk.msra.mxu0 %vm683_vm0, %v7507_v56  ;;  %6136 = vmatpush.xpose.msk.msra.mxu2 %vm683_vm0, %v7507_v56 }
  0xce   : > { %5824 = vmatpush.xpose.msk.msra.mxu1 %vm683_vm0, %v7510_v57  ;;  %6152 = vmatpush.xpose.msk.msra.mxu3 %vm683_vm0, %v7510_v57 }
  0xd1   : > { %5777 = vmatpush.xpose.msk.msra.mxu0 %vm683_vm0, %v7521_v58  ;;  %6137 = vmatpush.xpose.msk.msra.mxu2 %vm683_vm0, %v7521_v58 }
  0xd2   : > { %5825 = vmatpush.xpose.msk.msra.mxu1 %vm683_vm0, %v7524_v59  ;;  %6153 = vmatpush.xpose.msk.msra.mxu3 %vm683_vm0, %v7524_v59 }
  0xd5   : > { %5778 = vmatpush.xpose.msk.msra.mxu0 %vm683_vm0, %v652_v60  ;;  %6138 = vmatpush.xpose.msk.msra.mxu2 %vm683_vm0, %v652_v60 }
  0xd6   : > { %5826 = vmatpush.xpose.msk.msra.mxu1 %vm683_vm0, %v668_v61  ;;  %6154 = vmatpush.xpose.msk.msra.mxu3 %vm683_vm0, %v668_v61 }
  0xd9   : > { %5779 = vmatpush.xpose.msk.msra.mxu0 %vm683_vm0, %v651_v62  ;;  %6139 = vmatpush.xpose.msk.msra.mxu2 %vm683_vm0, %v651_v62 }
  0xda   : > { %5827 = vmatpush.xpose.msk.msra.mxu1 %vm683_vm0, %v667_v63  ;;  %6155 = vmatpush.xpose.msk.msra.mxu3 %vm683_vm0, %v667_v63 }
  0xdc   : > { %5780 = vmatmul.msk.f32.vlgmr.msra.gmra.mxu0 %vm683_vm0, %v651_v62  ;;  %5796 = vmatmul.msk.f32.vlgmr.msra.gmra.mxu2 %vm683_vm0, %v667_v63 }
  0xdd   : > { %6020 = vmatpush.xpose.msk.msrb.mxu0 %vm683_vm0, %v7543_v0  ;;  %5828 = vmatmul.msk.f32.vlgmr.msra.gmra.mxu1 %vm683_vm0, %v651_v62  ;;  %v7750_v62 = vld [vmem:[%s7320_s22 + $0x128] sm:$0xff] }
  0xde   : > { %6068 = vmatpush.xpose.msk.msrb.mxu1 %vm683_vm0, %v6019_v1  ;;  %5844 = vmatmul.msk.f32.vlgmr.msra.gmra.mxu3 %vm683_vm0, %v667_v63  ;;  %v7757_v63 = vld [vmem:[%s7320_s22 + $0x1a8] sm:$0xff]  ;;  %v7778_v1 = vld [vmem:[%s7320_s22 + $0x120] sm:$0xff] }
  0xdf   : > { %5892 = vmatpush.xpose.msk.msrb.mxu2 %vm683_vm0, %v7554_v2  ;;  %5940 = vmatpush.xpose.msk.msrb.mxu3 %vm683_vm0, %v5891_v3  ;;  %v7785_v3 = vld [vmem:[%s7320_s22 + $0x1a0] sm:$0xff] }
  0xe1   : > { %6021 = vmatpush.xpose.msk.msrb.mxu0 %vm683_vm0, %v7560_v4 }
  0xe2   : > { %6069 = vmatpush.xpose.msk.msrb.mxu1 %vm683_vm0, %v6018_v5  ;;  %v7806_v5 = vld [vmem:[%s7320_s22 + $0x118] sm:$0xff] }
  0xe3   : > { %5893 = vmatpush.xpose.msk.msrb.mxu2 %vm683_vm0, %v7572_v6  ;;  %5941 = vmatpush.xpose.msk.msrb.mxu3 %vm683_vm0, %v5890_v7  ;;  %v7813_v7 = vld [vmem:[%s7320_s22 + $0x198] sm:$0xff] }
  0xe4   : > { %5781 = vmatmul.msk.f32.gmra.mxu0 %vm683_vm0, %v652_v60  ;;  %5797 = vmatmul.msk.f32.gmra.mxu2 %vm683_vm0, %v668_v61 }
  0xe5   : > { %6022 = vmatpush.xpose.msk.msrb.mxu0 %vm683_vm0, %v7576_v8  ;;  %5829 = vmatmul.msk.f32.gmra.mxu1 %vm683_vm0, %v652_v60  ;;  %v7722_v60 = vld [vmem:[%s7320_s22 + $0x130] sm:$0xff] }
  0xe6   : > { %6070 = vmatpush.xpose.msk.msrb.mxu1 %vm683_vm0, %v6017_v9  ;;  %5845 = vmatmul.msk.f32.gmra.mxu3 %vm683_vm0, %v668_v61  ;;  %v7729_v61 = vld [vmem:[%s7320_s22 + $0x1b0] sm:$0xff] }
  0xe7   : > { %5894 = vmatpush.xpose.msk.msrb.mxu2 %vm683_vm0, %v7586_v10  ;;  %5942 = vmatpush.xpose.msk.msrb.mxu3 %vm683_vm0, %v5889_v11  ;;  %12595 = vst [vmem:[#allocation12_spill] sm:$0xff] %v7729_v61  ;;  %v7834_v9 = vld [vmem:[%s7320_s22 + $0x110] sm:$0xff] }
  0xe8   : > { %v7841_v11 = vld [vmem:[%s7320_s22 + $0x190] sm:$0xff] }
  0xe9   : > { %6023 = vmatpush.xpose.msk.msrb.mxu0 %vm683_vm0, %v7592_v12 }
  0xea   : > { %6071 = vmatpush.xpose.msk.msrb.mxu1 %vm683_vm0, %v6016_v13  ;;  %v5861_v13 = vld [vmem:[%s7320_s22 + $0x108] sm:$0xff] }
  0xeb   : > { %5895 = vmatpush.xpose.msk.msrb.mxu2 %vm683_vm0, %v7604_v14  ;;  %5943 = vmatpush.xpose.msk.msrb.mxu3 %vm683_vm0, %v5888_v15  ;;  %v7864_v15 = vld [vmem:[%s7320_s22 + $0x188] sm:$0xff] }
  0xec   : > { %5782 = vmatmul.msk.f32.gmra.mxu0 %vm683_vm0, %v7521_v58  ;;  %5798 = vmatmul.msk.f32.gmra.mxu2 %vm683_vm0, %v7524_v59 }
  0xed   : > { %6024 = vmatpush.xpose.msk.msrb.mxu0 %vm683_vm0, %v7608_v16  ;;  %5830 = vmatmul.msk.f32.gmra.mxu1 %vm683_vm0, %v7521_v58  ;;  %v7697_v58 = vld [vmem:[%s7320_s22 + $0x138] sm:$0xff] }
  0xee   : > { %6072 = vmatpush.xpose.msk.msrb.mxu1 %vm683_vm0, %v6015_v17  ;;  %5846 = vmatmul.msk.f32.gmra.mxu3 %vm683_vm0, %v7524_v59  ;;  %v5883_v59 = vld [vmem:[%s7320_s22 + $0x1b8] sm:$0xff]  ;;  %v5860_v17 = vld [vmem:[%s7320_s22 + $0x100] sm:$0xff] }
  0xef   : > { %5896 = vmatpush.xpose.msk.msrb.mxu2 %vm683_vm0, %v7618_v18  ;;  %5944 = vmatpush.xpose.msk.msrb.mxu3 %vm683_vm0, %v5887_v19  ;;  %v7886_v19 = vld [vmem:[%s7320_s22 + $0x180] sm:$0xff] }
  0xf1   : > { %6025 = vmatpush.xpose.msk.msrb.mxu0 %vm683_vm0, %v7626_v20 }
  0xf2   : > { %6073 = vmatpush.xpose.msk.msrb.mxu1 %vm683_vm0, %v6014_v21 }
  0xf3   : > { %5897 = vmatpush.xpose.msk.msrb.mxu2 %vm683_vm0, %v7640_v22  ;;  %5945 = vmatpush.xpose.msk.msrb.mxu3 %vm683_vm0, %v5886_v23 }
  0xf4   : > { %5783 = vmatmul.msk.f32.gmra.mxu0 %vm683_vm0, %v7507_v56  ;;  %5799 = vmatmul.msk.f32.gmra.mxu2 %vm683_vm0, %v7510_v57 }
  0xf5   : > { %6026 = vmatpush.xpose.msk.msrb.mxu0 %vm683_vm0, %v7644_v24  ;;  %5831 = vmatmul.msk.f32.gmra.mxu1 %vm683_vm0, %v7507_v56  ;;  %v7691_v56 = vld [vmem:[%s7320_s22 + $0x238] sm:$0xff] }
  0xf6   : > { %6074 = vmatpush.xpose.msk.msrb.mxu1 %vm683_vm0, %v6013_v25  ;;  %5847 = vmatmul.msk.f32.gmra.mxu3 %vm683_vm0, %v7510_v57  ;;  %v7694_v57 = vld [vmem:[%s7320_s22 + $0x2b8] sm:$0xff] }
  0xf7   : > { %5898 = vmatpush.xpose.msk.msrb.mxu2 %vm683_vm0, %v7654_v26  ;;  %5946 = vmatpush.xpose.msk.msrb.mxu3 %vm683_vm0, %v5885_v27  ;;  %12593 = vst [vmem:[#allocation10_spill] sm:$0xff] %v7694_v57 }
  0xf9   : > { %6027 = vmatpush.xpose.msk.msrb.mxu0 %vm683_vm0, %v7666_v28 }
  0xfa   : > { %6075 = vmatpush.xpose.msk.msrb.mxu1 %vm683_vm0, %v6012_v29 }
  0xfb   : > { %5899 = vmatpush.xpose.msk.msrb.mxu2 %vm683_vm0, %v7676_v30  ;;  %5947 = vmatpush.xpose.msk.msrb.mxu3 %vm683_vm0, %v5884_v31 }
  0xfc   : > { %5784 = vmatmul.msk.f32.gmra.mxu0 %vm683_vm0, %v7493_v54  ;;  %5800 = vmatmul.msk.f32.gmra.mxu2 %vm683_vm0, %v7496_v55 }
  0xfd   : > { %5832 = vmatmul.msk.f32.gmra.mxu1 %vm683_vm0, %v7493_v54  ;;  %6028 = vmatpush.xpose.msk.msrb.mxu0 %vm683_vm0, %v7691_v56  ;;  %v7716_v54 = vld [vmem:[%s7320_s22 + $0x230] sm:$0xff] }
  0xfe   : > { %5848 = vmatmul.msk.f32.gmra.mxu3 %vm683_vm0, %v7496_v55  ;;  %6076 = vmatpush.xpose.msk.msrb.mxu1 %vm683_vm0, %v7694_v57  ;;  %v7719_v55 = vld [vmem:[%s7320_s22 + $0x2b0] sm:$0xff] }
  0xff   : > { %5900 = vmatpush.xpose.msk.msrb.mxu2 %vm683_vm0, %v7697_v58  ;;  %5948 = vmatpush.xpose.msk.msrb.mxu3 %vm683_vm0, %v5883_v59  ;;  %12594 = vst [vmem:[#allocation11_spill] sm:$0xff] %v7719_v55 }
 0x101   : > { %6029 = vmatpush.xpose.msk.msrb.mxu0 %vm683_vm0, %v7716_v54 }
 0x102   : > { %6077 = vmatpush.xpose.msk.msrb.mxu1 %vm683_vm0, %v7719_v55 }
 0x103   : > { %5901 = vmatpush.xpose.msk.msrb.mxu2 %vm683_vm0, %v7722_v60  ;;  %5949 = vmatpush.xpose.msk.msrb.mxu3 %vm683_vm0, %v7729_v61 }
 0x104   : > { %5785 = vmatmul.msk.f32.gmra.mxu0 %vm683_vm0, %v7479_v52  ;;  %5801 = vmatmul.msk.f32.gmra.mxu2 %vm683_vm0, %v7482_v53 }
 0x105   : > { %5833 = vmatmul.msk.f32.gmra.mxu1 %vm683_vm0, %v7479_v52  ;;  %v7744_v52 = vld [vmem:[%s7320_s22 + $0x228] sm:$0xff] }
 0x106   : > { %5849 = vmatmul.msk.f32.gmra.mxu3 %vm683_vm0, %v7482_v53  ;;  %v7747_v53 = vld [vmem:[%s7320_s22 + $0x2a8] sm:$0xff]  ;;  %6030 = vmatpush.xpose.msk.msrb.mxu0 %vm683_vm0, %v7744_v52 }
 0x107   : > { %6078 = vmatpush.xpose.msk.msrb.mxu1 %vm683_vm0, %v7747_v53  ;;  %5902 = vmatpush.xpose.msk.msrb.mxu2 %vm683_vm0, %v7750_v62 }
 0x108   : > { %5950 = vmatpush.xpose.msk.msrb.mxu3 %vm683_vm0, %v7757_v63 }
 0x10b   : > { %5903 = vmatpush.xpose.msk.msrb.mxu2 %vm683_vm0, %v7778_v1 }
 0x10c   : > { %5786 = vmatmul.msk.f32.gmra.mxu0 %vm683_vm0, %v7465_v50  ;;  %5802 = vmatmul.msk.f32.gmra.mxu2 %vm683_vm0, %v7468_v51 }
 0x10d   : > { %5834 = vmatmul.msk.f32.gmra.mxu1 %vm683_vm0, %v7465_v50  ;;  %v7772_v50 = vld [vmem:[%s7320_s22 + $0x220] sm:$0xff]  ;;  %5951 = vmatpush.xpose.msk.msrb.mxu3 %vm683_vm0, %v7785_v3 }
 0x10e   : > { %5850 = vmatmul.msk.f32.gmra.mxu3 %vm683_vm0, %v7468_v51  ;;  %v7775_v51 = vld [vmem:[%s7320_s22 + $0x2a0] sm:$0xff]  ;;  %6031 = vmatpush.xpose.msk.msrb.mxu0 %vm683_vm0, %v7772_v50 }
 0x10f   : > { %6079 = vmatpush.xpose.msk.msrb.mxu1 %vm683_vm0, %v7775_v51  ;;  %5904 = vmatpush.xpose.msk.msrb.mxu2 %vm683_vm0, %v7806_v5 }
 0x111   : > { %5952 = vmatpush.xpose.msk.msrb.mxu3 %vm683_vm0, %v7813_v7 }
 0x113   : > { %5905 = vmatpush.xpose.msk.msrb.mxu2 %vm683_vm0, %v7834_v9 }
 0x114   : > { %5787 = vmatmul.msk.f32.gmra.mxu0 %vm683_vm0, %v7451_v48  ;;  %5803 = vmatmul.msk.f32.gmra.mxu2 %vm683_vm0, %v7454_v49 }
 0x115   : > { %5835 = vmatmul.msk.f32.gmra.mxu1 %vm683_vm0, %v7451_v48  ;;  %v7800_v48 = vld [vmem:[%s7320_s22 + $0x218] sm:$0xff]  ;;  %5953 = vmatpush.xpose.msk.msrb.mxu3 %vm683_vm0, %v7841_v11 }
 0x116   : > { %5851 = vmatmul.msk.f32.gmra.mxu3 %vm683_vm0, %v7454_v49  ;;  %v7803_v49 = vld [vmem:[%s7320_s22 + $0x298] sm:$0xff]  ;;  %6032 = vmatpush.xpose.msk.msrb.mxu0 %vm683_vm0, %v7800_v48 }
 0x117   : > { %6080 = vmatpush.xpose.msk.msrb.mxu1 %vm683_vm0, %v7803_v49  ;;  %5906 = vmatpush.xpose.msk.msrb.mxu2 %vm683_vm0, %v5861_v13 }
 0x119   : > { %5954 = vmatpush.xpose.msk.msrb.mxu3 %vm683_vm0, %v7864_v15 }
 0x11b   : > { %5907 = vmatpush.xpose.msk.msrb.mxu2 %vm683_vm0, %v5860_v17 }
 0x11c   : > { %5788 = vmatmul.msk.f32.gmra.mxu0 %vm683_vm0, %v7437_v46  ;;  %5804 = vmatmul.msk.f32.gmra.mxu2 %vm683_vm0, %v7440_v47 }
 0x11d   : > { %5836 = vmatmul.msk.f32.gmra.mxu1 %vm683_vm0, %v7437_v46  ;;  %v7828_v46 = vld [vmem:[%s7320_s22 + $0x210] sm:$0xff]  ;;  %5955 = vmatpush.xpose.msk.msrb.mxu3 %vm683_vm0, %v7886_v19 }
 0x11e   : > { %5852 = vmatmul.msk.f32.gmra.mxu3 %vm683_vm0, %v7440_v47  ;;  %v7831_v47 = vld [vmem:[%s7320_s22 + $0x290] sm:$0xff]  ;;  %6033 = vmatpush.xpose.msk.msrb.mxu0 %vm683_vm0, %v7828_v46 }
 0x11f   : > { %6081 = vmatpush.xpose.msk.msrb.mxu1 %vm683_vm0, %v7831_v47 }
 0x124   : > { %5789 = vmatmul.msk.f32.gmra.mxu0 %vm683_vm0, %v7423_v44  ;;  %5805 = vmatmul.msk.f32.gmra.mxu2 %vm683_vm0, %v7426_v45 }
 0x125   : > { %5837 = vmatmul.msk.f32.gmra.mxu1 %vm683_vm0, %v7423_v44  ;;  %v5989_v44 = vld [vmem:[%s7320_s22 + $0x208] sm:$0xff] }
 0x126   : > { %5853 = vmatmul.msk.f32.gmra.mxu3 %vm683_vm0, %v7426_v45  ;;  %v7857_v45 = vld [vmem:[%s7320_s22 + $0x288] sm:$0xff]  ;;  %6034 = vmatpush.xpose.msk.msrb.mxu0 %vm683_vm0, %v5989_v44 }
 0x127   : > { %6082 = vmatpush.xpose.msk.msrb.mxu1 %vm683_vm0, %v7857_v45 }
 0x12c   : > { %5790 = vmatmul.msk.f32.gmra.mxu0 %vm683_vm0, %v7409_v42  ;;  %5806 = vmatmul.msk.f32.gmra.mxu2 %vm683_vm0, %v7412_v43 }
 0x12d   : > { %5838 = vmatmul.msk.f32.gmra.mxu1 %vm683_vm0, %v7409_v42  ;;  %v5988_v42 = vld [vmem:[%s7320_s22 + $0x200] sm:$0xff] }
 0x12e   : > { %5854 = vmatmul.msk.f32.gmra.mxu3 %vm683_vm0, %v7412_v43  ;;  %v7879_v43 = vld [vmem:[%s7320_s22 + $0x280] sm:$0xff]  ;;  %6035 = vmatpush.xpose.msk.msrb.mxu0 %vm683_vm0, %v5988_v42 }
 0x12f   : > { %6083 = vmatpush.xpose.msk.msrb.mxu1 %vm683_vm0, %v7879_v43 }
 0x134   : > { %5791 = vmatmul.msk.f32.gmra.mxu0 %vm683_vm0, %v7395_v40  ;;  %5807 = vmatmul.msk.f32.gmra.mxu2 %vm683_vm0, %v7398_v41 }
 0x135   : > { %5839 = vmatmul.msk.f32.gmra.mxu1 %vm683_vm0, %v7395_v40 }
 0x136   : > { %5855 = vmatmul.msk.f32.gmra.mxu3 %vm683_vm0, %v7398_v41 }
 0x13c   : > { %5792 = vmatmul.msk.f32.gmra.mxu0 %vm683_vm0, %v7381_v38  ;;  %5808 = vmatmul.msk.f32.gmra.mxu2 %vm683_vm0, %v7384_v39 }
 0x13d   : > { %5840 = vmatmul.msk.f32.gmra.mxu1 %vm683_vm0, %v7381_v38 }
 0x13e   : > { %5856 = vmatmul.msk.f32.gmra.mxu3 %vm683_vm0, %v7384_v39 }
 0x144   : > { %5793 = vmatmul.msk.f32.gmra.mxu0 %vm683_vm0, %v7367_v36  ;;  %5809 = vmatmul.msk.f32.gmra.mxu2 %vm683_vm0, %v7370_v37 }
 0x145   : > { %5841 = vmatmul.msk.f32.gmra.mxu1 %vm683_vm0, %v7367_v36 }
 0x146   : > { %5857 = vmatmul.msk.f32.gmra.mxu3 %vm683_vm0, %v7370_v37 }
 0x14c   : > { %5794 = vmatmul.msk.f32.gmra.mxu0 %vm683_vm0, %v7353_v34  ;;  %5810 = vmatmul.msk.f32.gmra.mxu2 %vm683_vm0, %v7356_v35 }
 0x14d   : > { %5842 = vmatmul.msk.f32.gmra.mxu1 %vm683_vm0, %v7353_v34 }
 0x14e   : > { %5858 = vmatmul.msk.f32.gmra.mxu3 %vm683_vm0, %v7356_v35 }
 0x154   : > { %5795 = vmatmul.msk.f32.gmra.mxu0 %vm683_vm0, %v7339_v32  ;;  %5811 = vmatmul.msk.f32.gmra.mxu2 %vm683_vm0, %v7342_v33 }
 0x155   : > { %5843 = vmatmul.msk.f32.gmra.mxu1 %vm683_vm0, %v7339_v32 }
 0x156   : > { %5859 = vmatmul.msk.f32.gmra.mxu3 %vm683_vm0, %v7342_v33 }
 0x159   : > { %v7923_v36 = vpop.f32.mrf.mxu0 }
 0x15a   : > { %v7925_v37 = vpop.f32.mrf.mxu1 }
 0x15b   : > { %v1006_v34 = vmax.f32 %v7923_v36, %v7925_v37 }
 0x15c   : > { %5908 = vmatmul.msk.f32.vlgmr.msrb.gmra.mxu2 %vm683_vm0, %v5860_v17  ;;  %6036 = vmatmul.msk.f32.vlgmr.msrb.gmra.mxu0 %vm683_vm0, %v5988_v42 }
 0x15d   : > { %6084 = vmatmul.msk.f32.vlgmr.msrb.gmra.mxu1 %vm683_vm0, %v5988_v42  ;;  %1007 = vmax.xlane.f32.xlu0 %v1006_v34 }
 0x15e   : > { %5956 = vmatmul.msk.f32.vlgmr.msrb.gmra.mxu3 %vm683_vm0, %v5860_v17 }
 0x15f   : > { %v7933_v32 = vpop.f32.mrf.mxu2 }
 0x161   : > { %v7935_v35 = vpop.f32.mrf.mxu3  ;;  %v7937_v33 = vpop.f32.mrf.mxu0 }
 0x162   : > { %v1054_v38 = vmax.f32 %v7933_v32, %v7935_v35  ;;  %v7941_v39 = vpop.f32.mrf.mxu1 }
 0x163   : > { %v1009_v40 = vmax.f32 %v7937_v33, %v7941_v39 }
 0x164   : > { %1055 = vmax.xlane.f32.xlu1 %v1054_v38  ;;  %5909 = vmatmul.msk.f32.gmra.mxu2 %vm683_vm0, %v5861_v13 }
 0x165   : > { %6037 = vmatmul.msk.f32.gmra.mxu0 %vm683_vm0, %v5989_v44  ;;  %6085 = vmatmul.msk.f32.gmra.mxu1 %vm683_vm0, %v5989_v44 }
 0x166   : > { %5957 = vmatmul.msk.f32.gmra.mxu3 %vm683_vm0, %v5861_v13  ;;  %1010 = vmax.xlane.f32.xlu0 %v1009_v40 }
 0x167   : > { %v7949_v41 = vpop.f32.mrf.mxu2 }
 0x169   : > { %v7951_v21 = vpop.f32.mrf.mxu3  ;;  %v7953_v23 = vpop.f32.mrf.mxu0 }
 0x16a   : > { %v1057_v25 = vmax.f32 %v7949_v41, %v7951_v21  ;;  %v7957_v27 = vpop.f32.mrf.mxu1 }
 0x16b   : > { %v1012_v29 = vmax.f32 %v7953_v23, %v7957_v27 }
 0x16c   : > { %1058 = vmax.xlane.f32.xlu2 %v1057_v25  ;;  %5910 = vmatmul.msk.f32.gmra.mxu2 %vm683_vm0, %v7834_v9 }
 0x16d   : > { %6038 = vmatmul.msk.f32.gmra.mxu0 %vm683_vm0, %v7828_v46  ;;  %1013 = vmax.xlane.f32.xlu1 %v1012_v29 }
 0x16e   : > { %6086 = vmatmul.msk.f32.gmra.mxu1 %vm683_vm0, %v7828_v46  ;;  %5958 = vmatmul.msk.f32.gmra.mxu3 %vm683_vm0, %v7834_v9 }
 0x16f   : > { %v7969_v31 = vpop.f32.mrf.mxu2 }
 0x171   : > { %v7971_v59 = vpop.f32.mrf.mxu3  ;;  %v7973_v44 = vpop.f32.mrf.mxu0 }
 0x172   : > { %v1060_v13 = vmax.f32 %v7969_v31, %v7971_v59  ;;  %v7977_v42 = vpop.f32.mrf.mxu1 }
 0x173   : > { %v1015_v17 = vmax.f32 %v7973_v44, %v7977_v42 }
 0x174   : > { %1061 = vmax.xlane.f32.xlu0 %v1060_v13  ;;  %5911 = vmatmul.msk.f32.gmra.mxu2 %vm683_vm0, %v7806_v5 }
 0x175   : > { %6039 = vmatmul.msk.f32.gmra.mxu0 %vm683_vm0, %v7800_v48  ;;  %1016 = vmax.xlane.f32.xlu1 %v1015_v17 }
 0x176   : > { %6087 = vmatmul.msk.f32.gmra.mxu1 %vm683_vm0, %v7800_v48  ;;  %5959 = vmatmul.msk.f32.gmra.mxu3 %vm683_vm0, %v7806_v5 }
 0x177   : > { %v7989_v46 = vpop.f32.mrf.mxu2 }
 0x179   : > { %v7991_v9 = vpop.f32.mrf.mxu3  ;;  %v7993_v34 = vpop.f32.mrf.mxu0 }
 0x17a   : > { %v1063_v38 = vmax.f32 %v7989_v46, %v7991_v9  ;;  %v7997_v40 = vpop.f32.mrf.mxu1 }
 0x17b   : > { %v1018_v25 = vmax.f32 %v7993_v34, %v7997_v40 }
 0x17c   : > { %5912 = vmatmul.msk.f32.gmra.mxu2 %vm683_vm0, %v7778_v1 }
 0x17d   : > { %6040 = vmatmul.msk.f32.gmra.mxu0 %vm683_vm0, %v7772_v50  ;;  %1064 = vmax.xlane.f32.xlu1 %v1063_v38 }
 0x17e   : > { %1019 = vmax.xlane.f32.xlu2 %v1018_v25  ;;  %5960 = vmatmul.msk.f32.gmra.mxu3 %vm683_vm0, %v7778_v1 }
 0x17f   : > { %6088 = vmatmul.msk.f32.gmra.mxu1 %vm683_vm0, %v7772_v50  ;;  %v8009_v48 = vpop.f32.mrf.mxu2 }
 0x181   : > { %v8011_v5 = vpop.f32.mrf.mxu3  ;;  %v8013_v29 = vpop.f32.mrf.mxu0 }
 0x182   : > { %v1066_v13 = vmax.f32 %v8009_v48, %v8011_v5  ;;  %v8017_v17 = vpop.f32.mrf.mxu1 }
 0x183   : > { %12596 = vst [vmem:[#allocation13_spill] sm:$0xff] %v8017_v17 }
 0x184   : > { %5913 = vmatmul.msk.f32.gmra.mxu2 %vm683_vm0, %v7750_v62 }
 0x185   : > { %6041 = vmatmul.msk.f32.gmra.mxu0 %vm683_vm0, %v7744_v52 }
 0x186   : > { %1067 = vmax.xlane.f32.xlu2 %v1066_v13  ;;  %5961 = vmatmul.msk.f32.gmra.mxu3 %vm683_vm0, %v7750_v62  ;;  %v1021_v13 = vmax.f32 %v8013_v29, %v8017_v17 }
 0x187   : > { %6089 = vmatmul.msk.f32.gmra.mxu1 %vm683_vm0, %v7744_v52  ;;  %v8027_v50 = vpop.f32.mrf.mxu2 }
 0x189   : > { %v8029_v1 = vpop.f32.mrf.mxu3  ;;  %v8031_v38 = vpop.f32.mrf.mxu0 }
 0x18a   : > { %v1069_v25 = vmax.f32 %v8027_v50, %v8029_v1  ;;  %v8035_v57 = vpop.f32.mrf.mxu1 }
 0x18b   : > { %12597 = vst [vmem:[#allocation14_spill] sm:$0xff] %v8035_v57  ;;  %v1024_v55 = vmax.f32 %v8031_v38, %v8035_v57 }
 0x18c   : > { %1070 = vmax.xlane.f32.xlu0 %v1069_v25  ;;  %5914 = vmatmul.msk.f32.gmra.mxu2 %vm683_vm0, %v7722_v60 }
 0x18d   : > { %6042 = vmatmul.msk.f32.gmra.mxu0 %vm683_vm0, %v7716_v54 }
 0x18e   : > { %1022 = vmax.xlane.f32.xlu2 %v1021_v13  ;;  %5962 = vmatmul.msk.f32.gmra.mxu3 %vm683_vm0, %v7722_v60 }
 0x18f   : > { %6090 = vmatmul.msk.f32.gmra.mxu1 %vm683_vm0, %v7716_v54  ;;  %v8047_v52 = vpop.f32.mrf.mxu2 }
 0x191   : > { %v8049_v62 = vpop.f32.mrf.mxu3  ;;  %v8051_v25 = vpop.f32.mrf.mxu0 }
 0x192   : > { %12598 = vst [vmem:[#allocation15_spill] sm:$0xff] %v8051_v25  ;;  %v1072_v61 = vmax.f32 %v8047_v52, %v8049_v62  ;;  %v8057_v17 = vpop.f32.mrf.mxu1 }
 0x193   : > { %12599 = vst [vmem:[#allocation16_spill] sm:$0xff] %v8057_v17 }
 0x194   : > { %1073 = vmax.xlane.f32.xlu1 %v1072_v61  ;;  %1025 = vmax.xlane.f32.xlu0 %v1024_v55  ;;  %v1027_v61 = vmax.f32 %v8051_v25, %v8057_v17 }
 0x195   : > { %5915 = vmatmul.msk.f32.gmra.mxu2 %vm683_vm0, %v7697_v58  ;;  %6043 = vmatmul.msk.f32.gmra.mxu0 %vm683_vm0, %v7691_v56 }
 0x196   : > { %5963 = vmatmul.msk.f32.gmra.mxu3 %vm683_vm0, %v7697_v58 }
 0x197   : > { %6091 = vmatmul.msk.f32.gmra.mxu1 %vm683_vm0, %v7691_v56  ;;  %v8067_v54 = vpop.f32.mrf.mxu2 }
 0x199   : > { %v8069_v60 = vpop.f32.mrf.mxu3  ;;  %v8071_v13 = vpop.f32.mrf.mxu0 }
 0x19a   : > { %12600 = vst [vmem:[#allocation17_spill] sm:$0xff] %v8071_v13  ;;  %v1075_v55 = vmax.f32 %v8067_v54, %v8069_v60  ;;  %v8077_v57 = vpop.f32.mrf.mxu1 }
 0x19b   : > { %12601 = vst [vmem:[#allocation18_spill] sm:$0xff] %v8077_v57 }
 0x19c   : > { %1076 = vmax.xlane.f32.xlu2 %v1075_v55  ;;  %1028 = vmax.xlane.f32.xlu1 %v1027_v61  ;;  %v1030_v61 = vmax.f32 %v8071_v13, %v8077_v57 }
 0x19d   : > { %6044 = vmatmul.msk.f32.gmra.mxu0 %vm683_vm0, %v7666_v28  ;;  %5916 = vmatmul.msk.f32.gmra.mxu2 %vm683_vm0, %v7676_v30 }
 0x19e   : > { %5964 = vmatmul.msk.f32.gmra.mxu3 %vm683_vm0, %v7676_v30 }
 0x19f   : > { %6092 = vmatmul.msk.f32.gmra.mxu1 %vm683_vm0, %v7666_v28  ;;  %v8087_v56 = vpop.f32.mrf.mxu2 }
 0x1a1   : > { %v8089_v58 = vpop.f32.mrf.mxu3  ;;  %v8091_v17 = vpop.f32.mrf.mxu0 }
 0x1a2   : > { %12602 = vst [vmem:[#allocation19_spill] sm:$0xff] %v8091_v17  ;;  %v1078_v55 = vmax.f32 %v8087_v56, %v8089_v58  ;;  %v8097_v25 = vpop.f32.mrf.mxu1 }
 0x1a3   : > { %12603 = vst [vmem:[#allocation20_spill] sm:$0xff] %v8097_v25 }
 0x1a4   : > { %1079 = vmax.xlane.f32.xlu0 %v1078_v55  ;;  %1031 = vmax.xlane.f32.xlu2 %v1030_v61  ;;  %v1033_v61 = vmax.f32 %v8091_v17, %v8097_v25 }
 0x1a5   : > { %6045 = vmatmul.msk.f32.gmra.mxu0 %vm683_vm0, %v7644_v24  ;;  %5917 = vmatmul.msk.f32.gmra.mxu2 %vm683_vm0, %v7654_v26 }
 0x1a6   : > { %5965 = vmatmul.msk.f32.gmra.mxu3 %vm683_vm0, %v7654_v26 }
 0x1a7   : > { %6093 = vmatmul.msk.f32.gmra.mxu1 %vm683_vm0, %v7644_v24  ;;  %v8107_v28 = vpop.f32.mrf.mxu2 }
 0x1a9   : > { %v8109_v30 = vpop.f32.mrf.mxu3  ;;  %v8111_v57 = vpop.f32.mrf.mxu0 }
 0x1aa   : > { %12604 = vst [vmem:[#allocation21_spill] sm:$0xff] %v8111_v57  ;;  %v1081_v55 = vmax.f32 %v8107_v28, %v8109_v30  ;;  %v8117_v13 = vpop.f32.mrf.mxu1 }
 0x1ab   : > { %12605 = vst [vmem:[#allocation22_spill] sm:$0xff] %v8117_v13 }
 0x1ac   : > { %1082 = vmax.xlane.f32.xlu1 %v1081_v55  ;;  %1034 = vmax.xlane.f32.xlu0 %v1033_v61  ;;  %v1036_v61 = vmax.f32 %v8111_v57, %v8117_v13 }
 0x1ad   : > { %5918 = vmatmul.msk.f32.gmra.mxu2 %vm683_vm0, %v7640_v22  ;;  %6046 = vmatmul.msk.f32.gmra.mxu0 %vm683_vm0, %v7626_v20 }
 0x1ae   : > { %5966 = vmatmul.msk.f32.gmra.mxu3 %vm683_vm0, %v7640_v22 }
 0x1af   : > { %6094 = vmatmul.msk.f32.gmra.mxu1 %vm683_vm0, %v7626_v20  ;;  %v8127_v24 = vpop.f32.mrf.mxu2 }
 0x1b1   : > { %v8129_v26 = vpop.f32.mrf.mxu3  ;;  %v8131_v25 = vpop.f32.mrf.mxu0 }
 0x1b2   : > { %12606 = vst [vmem:[#allocation23_spill] sm:$0xff] %v8131_v25  ;;  %v1084_v55 = vmax.f32 %v8127_v24, %v8129_v26  ;;  %v8137_v17 = vpop.f32.mrf.mxu1 }
 0x1b3   : > { %12607 = vst [vmem:[#allocation24_spill] sm:$0xff] %v8137_v17 }
 0x1b4   : > { %1085 = vmax.xlane.f32.xlu2 %v1084_v55  ;;  %1037 = vmax.xlane.f32.xlu1 %v1036_v61  ;;  %v1039_v61 = vmax.f32 %v8131_v25, %v8137_v17 }
 0x1b5   : > { %6047 = vmatmul.msk.f32.gmra.mxu0 %vm683_vm0, %v7608_v16  ;;  %5919 = vmatmul.msk.f32.gmra.mxu2 %vm683_vm0, %v7618_v18 }
 0x1b6   : > { %5967 = vmatmul.msk.f32.gmra.mxu3 %vm683_vm0, %v7618_v18 }
 0x1b7   : > { %6095 = vmatmul.msk.f32.gmra.mxu1 %vm683_vm0, %v7608_v16  ;;  %v8147_v20 = vpop.f32.mrf.mxu2 }
 0x1b9   : > { %v8149_v22 = vpop.f32.mrf.mxu3  ;;  %v8151_v13 = vpop.f32.mrf.mxu0 }
 0x1ba   : > { %12608 = vst [vmem:[#allocation25_spill] sm:$0xff] %v8151_v13  ;;  %v1087_v55 = vmax.f32 %v8147_v20, %v8149_v22  ;;  %v8157_v57 = vpop.f32.mrf.mxu1 }
 0x1bb   : > { %12609 = vst [vmem:[#allocation26_spill] sm:$0xff] %v8157_v57 }
 0x1bc   : > { %1088 = vmax.xlane.f32.xlu0 %v1087_v55  ;;  %1040 = vmax.xlane.f32.xlu2 %v1039_v61  ;;  %v1042_v61 = vmax.f32 %v8151_v13, %v8157_v57 }
 0x1bd   : > { %6048 = vmatmul.msk.f32.gmra.mxu0 %vm683_vm0, %v7592_v12  ;;  %5920 = vmatmul.msk.f32.gmra.mxu2 %vm683_vm0, %v7604_v14 }
 0x1be   : > { %5968 = vmatmul.msk.f32.gmra.mxu3 %vm683_vm0, %v7604_v14 }
 0x1bf   : > { %6096 = vmatmul.msk.f32.gmra.mxu1 %vm683_vm0, %v7592_v12  ;;  %v8167_v16 = vpop.f32.mrf.mxu2 }
 0x1c1   : > { %v8169_v18 = vpop.f32.mrf.mxu3  ;;  %v8171_v17 = vpop.f32.mrf.mxu0 }
 0x1c2   : > { %12610 = vst [vmem:[#allocation27_spill] sm:$0xff] %v8169_v18  ;;  %v1090_v55 = vmax.f32 %v8167_v16, %v8169_v18  ;;  %v8177_v25 = vpop.f32.mrf.mxu1 }
 0x1c3   : > { %12611 = vst [vmem:[#allocation28_spill] sm:$0xff] %v8171_v17 }
 0x1c4   : > { %12612 = vst [vmem:[#allocation29_spill] sm:$0xff] %v8177_v25  ;;  %1091 = vmax.xlane.f32.xlu1 %v1090_v55  ;;  %1043 = vmax.xlane.f32.xlu0 %v1042_v61  ;;  %v1045_v61 = vmax.f32 %v8171_v17, %v8177_v25 }
 0x1c5   : > { %5921 = vmatmul.msk.f32.gmra.mxu2 %vm683_vm0, %v7586_v10  ;;  %6049 = vmatmul.msk.f32.gmra.mxu0 %vm683_vm0, %v7576_v8 }
 0x1c6   : > { %5969 = vmatmul.msk.f32.gmra.mxu3 %vm683_vm0, %v7586_v10 }
 0x1c7   : > { %6097 = vmatmul.msk.f32.gmra.mxu1 %vm683_vm0, %v7576_v8  ;;  %v8187_v12 = vpop.f32.mrf.mxu2 }
 0x1c8   : > { %12613 = vst [vmem:[#allocation30_spill] sm:$0xff] %v8187_v12 }
 0x1c9   : > { %v8189_v14 = vpop.f32.mrf.mxu3  ;;  %v8191_v57 = vpop.f32.mrf.mxu0 }
 0x1ca   : > { %12614 = vst [vmem:[#allocation31_spill] sm:$0xff] %v8189_v14  ;;  %v1093_v55 = vmax.f32 %v8187_v12, %v8189_v14  ;;  %v8197_v13 = vpop.f32.mrf.mxu1 }
 0x1cb   : > { %12615 = vst [vmem:[#allocation32_spill] sm:$0xff] %v8197_v13 }
 0x1cc   : > { %1094 = vmax.xlane.f32.xlu2 %v1093_v55  ;;  %1046 = vmax.xlane.f32.xlu1 %v1045_v61  ;;  %v1048_v61 = vmax.f32 %v8191_v57, %v8197_v13 }
 0x1cd   : > { %6050 = vmatmul.msk.f32.gmra.mxu0 %vm683_vm0, %v7560_v4  ;;  %5922 = vmatmul.msk.f32.gmra.mxu2 %vm683_vm0, %v7572_v6 }
 0x1ce   : > { %5970 = vmatmul.msk.f32.gmra.mxu3 %vm683_vm0, %v7572_v6 }
 0x1cf   : > { %6098 = vmatmul.msk.f32.gmra.mxu1 %vm683_vm0, %v7560_v4  ;;  %v8207_v8 = vpop.f32.mrf.mxu2 }
 0x1d0   : > { %v1008_v25 = vpop.xlane.xlu0 %1007 }
 0x1d1   : > { %v8209_v10 = vpop.f32.mrf.mxu3  ;;  %v8211_v17 = vpop.f32.mrf.mxu0  ;;  %v1102_v14 = vsub.f32 %v7923_v36, %v1008_v25  ;;  %v1103_v4 = vsub.f32 %v7925_v37, %v1008_v25 }
 0x1d2   : > { %12616 = vst [vmem:[#allocation33_spill] sm:$0xff] %v8209_v10  ;;  %v1096_v55 = vmax.f32 %v8207_v8, %v8209_v10  ;;  %v8219_v12 = vpop.f32.mrf.mxu1 }
 0x1d3   : > { %12617 = vst [vmem:[#allocation34_spill] sm:$0xff] %v8219_v12  ;;  %v1166_v6 = vmul.f32 1.442695, %v1102_v14  ;;  %v1168_v18 = vmul.f32 1.442695, %v1103_v4 }
 0x1d4   : > { %1097 = vmax.xlane.f32.xlu0 %v1096_v55  ;;  %1049 = vmax.xlane.f32.xlu2 %v1048_v61  ;;  %v1051_v61 = vmax.f32 %v8211_v17, %v8219_v12 }
 0x1d5   : > { %6051 = vmatmul.msk.f32.gmra.mxu0 %vm683_vm0, %v7543_v0  ;;  %5923 = vmatmul.msk.f32.gmra.mxu2 %vm683_vm0, %v7554_v2  ;;  %6256 = vpow2.f32 %v1166_v6 }
 0x1d6   : > { %5971 = vmatmul.msk.f32.gmra.mxu3 %vm683_vm0, %v7554_v2  ;;  %6258 = vpow2.f32 %v1168_v18 }
 0x1d7   : > { %v1056_v10 = vpop.xlane.xlu1 %1055  ;;  %6099 = vmatmul.msk.f32.gmra.mxu1 %vm683_vm0, %v7543_v0  ;;  %v8231_v25 = vpop.f32.mrf.mxu2 }
 0x1d8   : > { %v1134_v36 = vsub.f32 %v7933_v32, %v1056_v10  ;;  %v1135_v37 = vsub.f32 %v7935_v35, %v1056_v10 }
 0x1d9   : > { %v8233_v55 = vpop.f32.mrf.mxu3  ;;  %v8237_v13 = vpop.f32.mrf.mxu0 }
 0x1da   : > { %v1230_v14 = vmul.f32 1.442695, %v1134_v36  ;;  %v1232_v4 = vmul.f32 1.442695, %v1135_v37  ;;  %12618 = vst [vmem:[#allocation35_spill] sm:$0xff] %v8237_v13  ;;  %v1099_v0 = vmax.f32 %v8231_v25, %v8233_v55  ;;  %v8241_v2 = vpop.f32.mrf.mxu1  ;;  %v1011_v35 = vpop.xlane.xlu0 %1010 }
 0x1db   : > { %12619 = vst [vmem:[#allocation36_spill] sm:$0xff] %v8241_v2  ;;  %v3637_v32 = vmax.f32 %v8237_v13, %v8241_v2  ;;  %v8253_v18 = vpop.eup %6256  ;;  %v1105_v13 = vsub.f32 %v7941_v39, %v1011_v35 }
 0x1dc   : > { %6260 = vpow2.f32 %v1230_v14  ;;  %1100 = vmax.xlane.f32.xlu1 %v1099_v0  ;;  %1052 = vmax.xlane.f32.xlu0 %v1051_v61  ;;  %v8259_v61 = vpop.eup %6258  ;;  %v1104_v14 = vsub.f32 %v7937_v33, %v1011_v35 }
 0x1dd   : > { %6262 = vpow2.f32 %v1232_v4  ;;  %5924 = vmatmul.msk.f32.gmra.mxu2 %vm683_vm0, %v7886_v19  ;;  %6052 = vmatmul.msk.f32.gmra.mxu0 %vm683_vm0, %v7879_v43  ;;  %12620 = vst [vmem:[#allocation37_spill] sm:$0xff] %v8259_v61  ;;  %v1294_v33 = vadd.f32 %v8259_v61, %v8253_v18  ;;  %v1172_v39 = vmul.f32 1.442695, %v1105_v13 }
 0x1de   : > { %3638 = vmax.xlane.f32.xlu2 %v3637_v32  ;;  %5972 = vmatmul.msk.f32.gmra.mxu3 %vm683_vm0, %v7886_v19 }
 0x1df   : > { %v1059_v10 = vpop.xlane.xlu2 %1058  ;;  %6100 = vmatmul.msk.f32.gmra.mxu1 %vm683_vm0, %v7879_v43  ;;  %v8257_v37 = vpop.f32.mrf.mxu2 }
 0x1e0   : > { %v1136_v6 = vsub.f32 %v7949_v41, %v1059_v10  ;;  %v1137_v36 = vsub.f32 %v7951_v21, %v1059_v10  ;;  %v1014_v0 = vpop.xlane.xlu1 %1013 }
 0x1e1   : > { %v8262_v4 = vpop.f32.mrf.mxu3 }
 0x1e2   : > { %v8264_v32 = vpop.eup %6260  ;;  %v1234_v19 = vmul.f32 1.442695, %v1136_v6  ;;  %v1236_v2 = vmul.f32 1.442695, %v1137_v36  ;;  %v2321_v41 = vmax.f32 %v8257_v37, %v8262_v4  ;;  %v8275_v10 = vpop.f32.mrf.mxu0  ;;  %v1170_v6 = vmul.f32 1.442695, %v1104_v14 }
 0x1e3   : > { %v8266_v43 = vpop.eup %6262  ;;  %v8277_v12 = vpop.f32.mrf.mxu1 }
 0x1e4   : > { %6264 = vpow2.f32 %v1234_v19  ;;  %v1342_v21 = vadd.f32 %v8266_v43, %v8264_v32  ;;  %2322 = vmax.xlane.f32.xlu1 %v2321_v41 }
 0x1e5   : > { %6266 = vpow2.f32 %v1236_v2  ;;  %6053 = vmatmul.msk.f32.gmra.mxu0 %vm683_vm0, %v7857_v45  ;;  %5925 = vmatmul.msk.f32.gmra.mxu2 %vm683_vm0, %v7864_v15 }
 0x1e6   : > { %1343 = vadd.xlane.f32.xlu0 %v1342_v21  ;;  %1295 = vadd.xlane.f32.xlu2 %v1294_v33  ;;  %6268 = vpow2.f32 %v1170_v6 }
 0x1e7   : > { %v1062_v35 = vpop.xlane.xlu0 %1061  ;;  %6101 = vmatmul.msk.f32.gmra.mxu1 %vm683_vm0, %v7857_v45  ;;  %v8287_v14 = vpop.f32.mrf.mxu2  ;;  %5973 = vmatmul.msk.f32.gmra.mxu3 %vm683_vm0, %v7864_v15  ;;  %v1106_v45 = vsub.f32 %v7953_v23, %v1014_v0  ;;  %6270 = vpow2.f32 %v1172_v39 }
 0x1e8   : > { %v1138_v36 = vsub.f32 %v7969_v31, %v1062_v35  ;;  %v1139_v19 = vsub.f32 %v7971_v59, %v1062_v35  ;;  %v1017_v2 = vpop.xlane.xlu1 %1016  ;;  %v3640_v31 = vmax.f32 %v8275_v10, %v8277_v12  ;;  %v1107_v59 = vsub.f32 %v7957_v27, %v1014_v0 }
 0x1e9   : > { %v8291_v41 = vpop.f32.mrf.mxu3  ;;  %v1174_v23 = vmul.f32 1.442695, %v1106_v45 }
 0x1ea   : > { %v8293_v13 = vpop.eup %6264  ;;  %v1238_v21 = vmul.f32 1.442695, %v1138_v36  ;;  %v1240_v33 = vmul.f32 1.442695, %v1139_v19  ;;  %v2324_v15 = vmax.f32 %v8287_v14, %v8291_v41  ;;  %v8307_v35 = vpop.f32.mrf.mxu0  ;;  %v1176_v27 = vmul.f32 1.442695, %v1107_v59 }
 0x1eb   : > { %12621 = vst [vmem:[#allocation38_spill] sm:$0xff] %v8293_v13  ;;  %v8298_v61 = vpop.eup %6266  ;;  %v8309_v36 = vpop.f32.mrf.mxu1  ;;  %v1108_v19 = vsub.f32 %v7973_v44, %v1017_v2 }
 0x1ec   : > { %12622 = vst [vmem:[#allocation39_spill] sm:$0xff] %v8298_v61  ;;  %6272 = vpow2.f32 %v1238_v21  ;;  %v1345_v6 = vadd.f32 %v8298_v61, %v8293_v13  ;;  %v8311_v39 = vpop.eup %6268 }
 0x1ed   : > { %6274 = vpow2.f32 %v1240_v33  ;;  %6054 = vmatmul.msk.f32.gmra.mxu0 %vm683_vm0, %v7831_v47  ;;  %5926 = vmatmul.msk.f32.gmra.mxu2 %vm683_vm0, %v7841_v11  ;;  %v8319_v0 = vpop.eup %6270 }
 0x1ee   : > { %1346 = vadd.xlane.f32.xlu1 %v1345_v6  ;;  %3641 = vmax.xlane.f32.xlu0 %v3640_v31  ;;  %6276 = vpow2.f32 %v1174_v23  ;;  %v1297_v44 = vadd.f32 %v8319_v0, %v8311_v39 }
 0x1ef   : > { %2325 = vmax.xlane.f32.xlu2 %v2324_v15  ;;  %6102 = vmatmul.msk.f32.gmra.mxu1 %vm683_vm0, %v7831_v47  ;;  %v3643_v47 = vmax.f32 %v8307_v35, %v8309_v36  ;;  %6278 = vpow2.f32 %v1176_v27  ;;  %v1109_v15 = vsub.f32 %v7977_v42, %v1017_v2  ;;  %v8337_v61 = vpop.f32.mrf.mxu2 }
 0x1f0   : > { %5974 = vmatmul.msk.f32.gmra.mxu3 %vm683_vm0, %v7841_v11  ;;  %v1065_v45 = vpop.xlane.xlu1 %1064 }
 0x1f1   : > { %v8322_v21 = vpop.xlane.xlu2 %1019  ;;  %v1140_v31 = vsub.f32 %v7989_v46, %v1065_v45  ;;  %v1141_v11 = vsub.f32 %v7991_v9, %v1065_v45  ;;  %v8339_v23 = vpop.f32.mrf.mxu3  ;;  %v1178_v46 = vmul.f32 1.442695, %v1108_v19  ;;  %v1180_v2 = vmul.f32 1.442695, %v1109_v15 }
 0x1f2   : > { %v8324_v33 = vpop.eup %6272  ;;  %v8347_v27 = vpop.f32.mrf.mxu0 }
 0x1f3   : > { %v8329_v59 = vpop.eup %6274  ;;  %v1242_v13 = vmul.f32 1.442695, %v1140_v31  ;;  %v1244_v9 = vmul.f32 1.442695, %v1141_v11  ;;  %v8349_v45 = vpop.f32.mrf.mxu1  ;;  %6280 = vpow2.f32 %v1178_v46 }
 0x1f4   : > { %v1348_v6 = vadd.f32 %v8329_v59, %v8324_v33  ;;  %v8345_v42 = vpop.eup %6276  ;;  %v3646_v15 = vmax.f32 %v8347_v27, %v8349_v45 }
 0x1f5   : > { %6055 = vmatmul.msk.f32.gmra.mxu0 %vm683_vm0, %v7803_v49  ;;  %5927 = vmatmul.msk.f32.gmra.mxu2 %vm683_vm0, %v7813_v7  ;;  %v8355_v19 = vpop.eup %6278  ;;  %6282 = vpow2.f32 %v1242_v13 }
 0x1f6   : > { %3644 = vmax.xlane.f32.xlu1 %v3643_v47  ;;  %1298 = vadd.xlane.f32.xlu0 %v1297_v44  ;;  %12623 = vst [vmem:[#allocation40_spill] sm:$0xff] %v8355_v19  ;;  %v2327_v47 = vmax.f32 %v8337_v61, %v8339_v23  ;;  %6284 = vpow2.f32 %v1244_v9 }
 0x1f7   : > { %1349 = vadd.xlane.f32.xlu2 %v1348_v6  ;;  %6103 = vmatmul.msk.f32.gmra.mxu1 %vm683_vm0, %v7803_v49  ;;  %6286 = vpow2.f32 %v1180_v2 }
 0x1f8   : > { %5975 = vmatmul.msk.f32.gmra.mxu3 %vm683_vm0, %v7813_v7  ;;  %v1300_v7 = vadd.f32 %v8355_v19, %v8345_v42 }
 0x1f9   : > { %v1068_v31 = vpop.xlane.xlu2 %1067  ;;  %v8369_v13 = vpop.f32.mrf.mxu3 }
 0x1fa   : > { %v1142_v49 = vsub.f32 %v8009_v48, %v1068_v31  ;;  %v1143_v11 = vsub.f32 %v8011_v5, %v1068_v31  ;;  %v8367_v48 = vpop.f32.mrf.mxu2  ;;  %v8371_v6 = vpop.eup %6280  ;;  %v1110_v31 = vsub.f32 %v7993_v34, %v8322_v21 }
 0x1fb   : > { %12624 = vst [vmem:[#allocation41_spill] sm:$0xff] %v8371_v6  ;;  %v8375_v46 = vpop.eup %6282 }
 0x1fc   : > { %v1246_v44 = vmul.f32 1.442695, %v1142_v49  ;;  %v1248_v5 = vmul.f32 1.442695, %v1143_v11  ;;  %12625 = vst [vmem:[#allocation42_spill] sm:$0xff] %v8375_v46  ;;  %v8381_v2 = vpop.eup %6284  ;;  %v8397_v34 = vpop.f32.mrf.mxu1 }
 0x1fd   : > { %6056 = vmatmul.msk.f32.gmra.mxu0 %vm683_vm0, %v7775_v51  ;;  %5928 = vmatmul.msk.f32.gmra.mxu2 %vm683_vm0, %v7785_v3  ;;  %12626 = vst [vmem:[#allocation43_spill] sm:$0xff] %v8381_v2  ;;  %v8385_v49 = vpop.eup %6286  ;;  %v1182_v19 = vmul.f32 1.442695, %v1110_v31 }
 0x1fe   : > { %1301 = vadd.xlane.f32.xlu1 %v1300_v7  ;;  %2328 = vmax.xlane.f32.xlu0 %v2327_v47  ;;  %12627 = vst [vmem:[#allocation44_spill] sm:$0xff] %v8385_v49  ;;  %v1111_v47 = vsub.f32 %v7997_v40, %v8322_v21  ;;  %6288 = vpow2.f32 %v1246_v44  ;;  %v1351_v7 = vadd.f32 %v8381_v2, %v8375_v46  ;;  %v12642_v2 = vld [vmem:[#allocation14_spill] sm:$0xff] }
 0x1ff   : > { %3647 = vmax.xlane.f32.xlu2 %v3646_v15  ;;  %6104 = vmatmul.msk.f32.gmra.mxu1 %vm683_vm0, %v7775_v51  ;;  %v1071_v9 = vpop.xlane.xlu0 %1070  ;;  %v2330_v51 = vmax.f32 %v8367_v48, %v8369_v13  ;;  %6290 = vpow2.f32 %v1248_v5  ;;  %v8392_v15 = vpop.f32.mrf.mxu0  ;;  %v1303_v40 = vadd.f32 %v8385_v49, %v8371_v6 }
 0x200   : > { %5976 = vmatmul.msk.f32.gmra.mxu3 %vm683_vm0, %v7785_v3  ;;  %v1144_v11 = vsub.f32 %v8027_v50, %v1071_v9  ;;  %v1145_v3 = vsub.f32 %v8029_v1, %v1071_v9  ;;  %v1184_v21 = vmul.f32 1.442695, %v1111_v47  ;;  %6292 = vpow2.f32 %v1182_v19 }
 0x201   : > { %v1023_v44 = vpop.xlane.xlu2 %1022  ;;  %v8409_v31 = vpop.f32.mrf.mxu3 }
 0x202   : > { %v1250_v50 = vmul.f32 1.442695, %v1144_v11  ;;  %v1252_v5 = vmul.f32 1.442695, %v1145_v3  ;;  %v8407_v9 = vpop.f32.mrf.mxu2  ;;  %12629 = vst [vmem:[#allocation46_spill] sm:$0xff] %v8409_v31  ;;  %6294 = vpow2.f32 %v1184_v21  ;;  %v1112_v47 = vsub.f32 %v8013_v29, %v1023_v44 }
 0x203   : > { %v2333_v3 = vmax.f32 %v8407_v9, %v8409_v31 }
 0x204   : > { %v8405_v1 = vpop.eup %6288  ;;  %6296 = vpow2.f32 %v1250_v50  ;;  %v8429_v21 = vpop.f32.mrf.mxu1 }
 0x205   : > { %6057 = vmatmul.msk.f32.gmra.mxu0 %vm683_vm0, %v7747_v53  ;;  %12628 = vst [vmem:[#allocation45_spill] sm:$0xff] %v8405_v1  ;;  %5929 = vmatmul.msk.f32.gmra.mxu2 %vm683_vm0, %v7757_v63  ;;  %v8413_v49 = vpop.eup %6290  ;;  %6298 = vpow2.f32 %v1252_v5 }
 0x206   : > { %2331 = vmax.xlane.f32.xlu1 %v2330_v51  ;;  %1352 = vadd.xlane.f32.xlu0 %v1351_v7  ;;  %12630 = vst [vmem:[#allocation47_spill] sm:$0xff] %v8413_v49  ;;  %v12631_v51 = vld [vmem:[#allocation13_spill] sm:$0xff]  ;;  %v1354_v7 = vadd.f32 %v8413_v49, %v8405_v1  ;;  %v8431_v50 = vpop.eup %6292 }
 0x207   : > { %1304 = vadd.xlane.f32.xlu2 %v1303_v40  ;;  %6105 = vmatmul.msk.f32.gmra.mxu1 %vm683_vm0, %v7747_v53  ;;  %v3649_v53 = vmax.f32 %v8392_v15, %v8397_v34  ;;  %v1113_v11 = vsub.f32 %v12631_v51, %v1023_v44  ;;  %v8425_v19 = vpop.f32.mrf.mxu0  ;;  %v12633_v40 = vld [vmem:[#allocation11_spill] sm:$0xff]  ;;  %v1074_v29 = vpop.xlane.xlu1 %1073  ;;  %12635 = vst [vmem:[#allocation48_spill] sm:$0xff] %v8431_v50 }
 0x208   : > { %5977 = vmatmul.msk.f32.gmra.mxu3 %vm683_vm0, %v7757_v63  ;;  %12632 = vst [vmem:[#allocation13_spill] sm:$0xff] %v8425_v19  ;;  %v1186_v63 = vmul.f32 1.442695, %v1112_v47  ;;  %v1026_v51 = vpop.xlane.xlu0 %1025  ;;  %v8435_v5 = vpop.eup %6294  ;;  %v12639_v47 = vld [vmem:[#allocation12_spill] sm:$0xff] }
 0x209   : > { %12634 = vst [vmem:[#allocation11_spill] sm:$0xff] %v8429_v21  ;;  %v1188_v44 = vmul.f32 1.442695, %v1113_v11  ;;  %v8439_v1 = vpop.f32.mrf.mxu3  ;;  %v1114_v6 = vsub.f32 %v8031_v38, %v1026_v51  ;;  %v1115_v46 = vsub.f32 %v12642_v2, %v1026_v51  ;;  %v6832_v2 = vld [vmem:[%s7320_s22 + $0x2b8] sm:$0xff] }
 0x20a   : > { %12636 = vst [vmem:[#allocation49_spill] sm:$0xff] %v8435_v5  ;;  %v8437_v49 = vpop.f32.mrf.mxu2  ;;  %6300 = vpow2.f32 %v1186_v63  ;;  %v12643_v63 = vld [vmem:[#allocation10_spill] sm:$0xff] }
 0x20b   : > { %12637 = vst [vmem:[#allocation50_spill] sm:$0xff] %v8437_v49  ;;  %6302 = vpow2.f32 %v1188_v44 }
 0x20c   : > { %12638 = vst [vmem:[#allocation51_spill] sm:$0xff] %v8439_v1 }
 0x20d   : > { %6058 = vmatmul.msk.f32.gmra.mxu0 %vm683_vm0, %v12633_v40  ;;  %5930 = vmatmul.msk.f32.gmra.mxu2 %vm683_vm0, %v12639_v47 }
 0x20e   : > { %1355 = vadd.xlane.f32.xlu1 %v1354_v7  ;;  %3650 = vmax.xlane.f32.xlu0 %v3649_v53  ;;  %v8443_v53 = vpop.eup %6296  ;;  %v1146_v7 = vsub.f32 %v8047_v52, %v1074_v29  ;;  %v1306_v52 = vadd.f32 %v8435_v5, %v8431_v50  ;;  %v8467_v5 = vpop.f32.mrf.mxu1 }
 0x20f   : > { %2334 = vmax.xlane.f32.xlu2 %v2333_v3  ;;  %6106 = vmatmul.msk.f32.gmra.mxu1 %vm683_vm0, %v12633_v40  ;;  %12640 = vst [vmem:[#allocation12_spill] sm:$0xff] %v8443_v53  ;;  %v8448_v11 = vpop.eup %6298  ;;  %v1147_v3 = vsub.f32 %v8049_v62, %v1074_v29  ;;  %v3652_v40 = vmax.f32 %v8425_v19, %v8429_v21  ;;  %v1190_v29 = vmul.f32 1.442695, %v1114_v6  ;;  %v1077_v44 = vpop.xlane.xlu2 %1076 }
 0x210   : > { %5978 = vmatmul.msk.f32.gmra.mxu3 %vm683_vm0, %v12639_v47  ;;  %12641 = vst [vmem:[#allocation52_spill] sm:$0xff] %v8448_v11  ;;  %v1254_v31 = vmul.f32 1.442695, %v1146_v7  ;;  %v1357_v47 = vadd.f32 %v8448_v11, %v8443_v53  ;;  %v8461_v38 = vpop.f32.mrf.mxu0  ;;  %v8465_v51 = vpop.eup %6300  ;;  %v1192_v7 = vmul.f32 1.442695, %v1115_v46  ;;  %v6833_v11 = vld [vmem:[%s7320_s22 + $0x1b8] sm:$0xff]  ;;  %v1148_v6 = vsub.f32 %v8067_v54, %v1077_v44 }
 0x211   : > { %v1256_v62 = vmul.f32 1.442695, %v1147_v3  ;;  %12644 = vst [vmem:[#allocation14_spill] sm:$0xff] %v8461_v38  ;;  %v8471_v3 = vpop.eup %6302  ;;  %v8479_v46 = vpop.f32.mrf.mxu3 }
 0x212   : > { %12645 = vst [vmem:[#allocation10_spill] sm:$0xff] %v8465_v51  ;;  %6304 = vpow2.f32 %v1254_v31  ;;  %v1309_v31 = vadd.f32 %v8471_v3, %v8465_v51  ;;  %v1258_v54 = vmul.f32 1.442695, %v1148_v6 }
 0x213   : > { %12646 = vst [vmem:[#allocation53_spill] sm:$0xff] %v8467_v5  ;;  %6306 = vpow2.f32 %v1256_v62  ;;  %v1029_v62 = vpop.xlane.xlu1 %1028 }
 0x214   : > { %12647 = vst [vmem:[#allocation54_spill] sm:$0xff] %v8471_v3  ;;  %6308 = vpow2.f32 %v1190_v29  ;;  %v6835_v3 = vld [vmem:[%s7320_s22 + $0x1c0] sm:$0xff] }
 0x215   : > { %6059 = vmatmul.msk.f32.gmra.mxu0 %vm683_vm0, %v12643_v63  ;;  %5931 = vmatmul.msk.f32.gmra.mxu2 %vm683_vm0, %v6833_v11  ;;  %12649 = vst [vmem:[#allocation56_spill] sm:$0xff] %v8479_v46  ;;  %v3655_v63 = vmax.f32 %v8461_v38, %v8467_v5  ;;  %6310 = vpow2.f32 %v1192_v7 }
 0x216   : > { %3653 = vmax.xlane.f32.xlu1 %v3652_v40  ;;  %1307 = vadd.xlane.f32.xlu0 %v1306_v52  ;;  %v2336_v40 = vmax.f32 %v8437_v49, %v8439_v1  ;;  %v8477_v52 = vpop.f32.mrf.mxu2  ;;  %v8495_v53 = vpop.f32.mrf.mxu1  ;;  %6312 = vpow2.f32 %v1258_v54 }
 0x217   : > { %1358 = vadd.xlane.f32.xlu2 %v1357_v47  ;;  %6107 = vmatmul.msk.f32.gmra.mxu1 %vm683_vm0, %v6832_v2  ;;  %12648 = vst [vmem:[#allocation55_spill] sm:$0xff] %v8477_v52  ;;  %v1149_v47 = vsub.f32 %v8069_v60, %v1077_v44  ;;  %v1080_v7 = vpop.xlane.xlu0 %1079  ;;  %v2339_v51 = vmax.f32 %v8477_v52, %v8479_v46  ;;  %v1032_v54 = vpop.xlane.xlu2 %1031 }
 0x218   : > { %5979 = vmatmul.msk.f32.gmra.mxu3 %vm683_vm0, %v6833_v11  ;;  %v6834_v11 = vld [vmem:[%s7320_s22 + $0x2c0] sm:$0xff]  ;;  %v8488_v2 = vpop.eup %6304  ;;  %v8490_v60 = vpop.f32.mrf.mxu0  ;;  %12653 = vst [vmem:[#allocation60_spill] sm:$0xff] %v8495_v53  ;;  %v1150_v50 = vsub.f32 %v8087_v56, %v1080_v7  ;;  %v1151_v5 = vsub.f32 %v8089_v58, %v1080_v7 }
 0x219   : > { %12650 = vst [vmem:[#allocation57_spill] sm:$0xff] %v8488_v2  ;;  %v1260_v29 = vmul.f32 1.442695, %v1149_v47  ;;  %v8493_v44 = vpop.eup %6306 }
 0x21a   : > { %12651 = vst [vmem:[#allocation58_spill] sm:$0xff] %v8490_v60  ;;  %v8499_v6 = vpop.eup %6308  ;;  %v1360_v38 = vadd.f32 %v8493_v44, %v8488_v2  ;;  %v1262_v56 = vmul.f32 1.442695, %v1150_v50  ;;  %v1264_v7 = vmul.f32 1.442695, %v1151_v5  ;;  %v3658_v50 = vmax.f32 %v8490_v60, %v8495_v53  ;;  %v12665_v5 = vld [vmem:[#allocation18_spill] sm:$0xff] }
 0x21b   : > { %12652 = vst [vmem:[#allocation59_spill] sm:$0xff] %v8493_v44  ;;  %v8503_v47 = vpop.eup %6310  ;;  %6314 = vpow2.f32 %v1260_v29  ;;  %v6837_v44 = vld [vmem:[%s7320_s22 + $0x1c8] sm:$0xff]  ;;  %v6838_v53 = vld [vmem:[%s7320_s22 + $0x2d0] sm:$0xff] }
 0x21c   : > { %12654 = vst [vmem:[#allocation61_spill] sm:$0xff] %v8499_v6  ;;  %v8521_v58 = vpop.eup %6312 }
 0x21d   : > { %6060 = vmatmul.msk.f32.gmra.mxu0 %vm683_vm0, %v6834_v11  ;;  %5932 = vmatmul.msk.f32.gmra.mxu2 %vm683_vm0, %v6835_v3  ;;  %12660 = vst [vmem:[#allocation63_spill] sm:$0xff] %v8521_v58 }
 0x21e   : > { %1310 = vadd.xlane.f32.xlu1 %v1309_v31  ;;  %2337 = vmax.xlane.f32.xlu0 %v2336_v40  ;;  %v12655_v31 = vld [vmem:[#allocation15_spill] sm:$0xff] }
 0x21f   : > { %3656 = vmax.xlane.f32.xlu2 %v3655_v63  ;;  %6108 = vmatmul.msk.f32.gmra.mxu1 %vm683_vm0, %v6834_v11  ;;  %v1116_v40 = vsub.f32 %v12655_v31, %v1029_v62  ;;  %12656 = vst [vmem:[#allocation15_spill] sm:$0xff] %v8503_v47  ;;  %v12657_v63 = vld [vmem:[#allocation16_spill] sm:$0xff]  ;;  %v8512_v31 = vpop.f32.mrf.mxu2 }
 0x220   : > { %5980 = vmatmul.msk.f32.gmra.mxu3 %vm683_vm0, %v6835_v3  ;;  %v1117_v11 = vsub.f32 %v12657_v63, %v1029_v62  ;;  %12658 = vst [vmem:[#allocation16_spill] sm:$0xff] %v8512_v31  ;;  %v8514_v3 = vpop.f32.mrf.mxu3  ;;  %v1312_v62 = vadd.f32 %v8503_v47, %v8499_v6  ;;  %v6836_v63 = vld [vmem:[%s7320_s22 + $0x2c8] sm:$0xff]  ;;  %v1083_v47 = vpop.xlane.xlu1 %1082 }
 0x221   : > { %12659 = vst [vmem:[#allocation62_spill] sm:$0xff] %v8514_v3  ;;  %v1194_v1 = vmul.f32 1.442695, %v1116_v40  ;;  %v8525_v40 = vpop.eup %6314  ;;  %v1035_v6 = vpop.xlane.xlu0 %1034 }
 0x222   : > { %v1196_v29 = vmul.f32 1.442695, %v1117_v11  ;;  %12661 = vst [vmem:[#allocation64_spill] sm:$0xff] %v8525_v40  ;;  %v12662_v11 = vld [vmem:[#allocation17_spill] sm:$0xff] }
 0x223   : > { %6316 = vpow2.f32 %v1194_v1  ;;  %v2342_v1 = vmax.f32 %v8512_v31, %v8514_v3  ;;  %v1152_v3 = vsub.f32 %v8107_v28, %v1083_v47 }
 0x224   : > { %6318 = vpow2.f32 %v1196_v29 }
 0x225   : > { %6061 = vmatmul.msk.f32.gmra.mxu0 %vm683_vm0, %v6836_v63  ;;  %5933 = vmatmul.msk.f32.gmra.mxu2 %vm683_vm0, %v6837_v44  ;;  %6320 = vpow2.f32 %v1262_v56 }
 0x226   : > { %2340 = vmax.xlane.f32.xlu1 %v2339_v51  ;;  %1361 = vadd.xlane.f32.xlu0 %v1360_v38  ;;  %v1118_v51 = vsub.f32 %v12662_v11, %v1032_v54  ;;  %v8531_v38 = vpop.f32.mrf.mxu0  ;;  %6322 = vpow2.f32 %v1264_v7 }
 0x227   : > { %1313 = vadd.xlane.f32.xlu2 %v1312_v62  ;;  %6109 = vmatmul.msk.f32.gmra.mxu1 %vm683_vm0, %v6836_v63  ;;  %12663 = vst [vmem:[#allocation17_spill] sm:$0xff] %v8531_v38  ;;  %v8533_v62 = vpop.f32.mrf.mxu1  ;;  %v1119_v63 = vsub.f32 %v12665_v5, %v1032_v54  ;;  %v8540_v29 = vpop.f32.mrf.mxu2 }
 0x228   : > { %5981 = vmatmul.msk.f32.gmra.mxu3 %vm683_vm0, %v6837_v44  ;;  %12664 = vst [vmem:[#allocation65_spill] sm:$0xff] %v8533_v62  ;;  %v1363_v44 = vadd.f32 %v8525_v40, %v8521_v58  ;;  %v8542_v11 = vpop.f32.mrf.mxu3  ;;  %v8544_v2 = vpop.xlane.xlu2 %1085  ;;  %v1198_v54 = vmul.f32 1.442695, %v1118_v51  ;;  %v6839_v40 = vld [vmem:[%s7320_s22 + $0x1d0] sm:$0xff] }
 0x229   : > { %12666 = vst [vmem:[#allocation18_spill] sm:$0xff] %v8540_v29  ;;  %v8548_v56 = vpop.eup %6316  ;;  %v1200_v7 = vmul.f32 1.442695, %v1119_v63  ;;  %v12672_v63 = vld [vmem:[#allocation19_spill] sm:$0xff]  ;;  %v1038_v52 = vpop.xlane.xlu1 %1037 }
 0x22a   : > { %12667 = vst [vmem:[#allocation66_spill] sm:$0xff] %v8542_v11  ;;  %v8551_v5 = vpop.eup %6318  ;;  %6324 = vpow2.f32 %v1198_v54 }
 0x22b   : > { %12668 = vst [vmem:[#allocation67_spill] sm:$0xff] %v8548_v56  ;;  %v8555_v58 = vpop.eup %6320  ;;  %6326 = vpow2.f32 %v1200_v7  ;;  %v1315_v60 = vadd.f32 %v8551_v5, %v8548_v56 }
 0x22c   : > { %12669 = vst [vmem:[#allocation68_spill] sm:$0xff] %v8551_v5  ;;  %v8559_v51 = vpop.eup %6322 }
 0x22d   : > { %6062 = vmatmul.msk.f32.gmra.mxu0 %vm683_vm0, %v6838_v53  ;;  %5934 = vmatmul.msk.f32.gmra.mxu2 %vm683_vm0, %v6839_v40  ;;  %12670 = vst [vmem:[#allocation69_spill] sm:$0xff] %v8555_v58 }
 0x22e   : > { %1364 = vadd.xlane.f32.xlu1 %v1363_v44  ;;  %3659 = vmax.xlane.f32.xlu0 %v3658_v50  ;;  %12671 = vst [vmem:[#allocation70_spill] sm:$0xff] %v8559_v51  ;;  %v1153_v50 = vsub.f32 %v8109_v30, %v1083_v47  ;;  %v12673_v44 = vld [vmem:[#allocation20_spill] sm:$0xff]  ;;  %v8568_v28 = vpop.f32.mrf.mxu0  ;;  %v1366_v30 = vadd.f32 %v8559_v51, %v8555_v58  ;;  %v6840_v47 = vld [vmem:[%s7320_s22 + $0x2d8] sm:$0xff]  ;;  %v12684_v58 = vld [vmem:[#allocation22_spill] sm:$0xff] }
 0x22f   : > { %2343 = vmax.xlane.f32.xlu2 %v2342_v1  ;;  %6110 = vmatmul.msk.f32.gmra.mxu1 %vm683_vm0, %v6838_v53  ;;  %v3661_v53 = vmax.f32 %v8531_v38, %v8533_v62  ;;  %v1120_v1 = vsub.f32 %v12672_v63, %v1035_v6  ;;  %v1121_v31 = vsub.f32 %v12673_v44, %v1035_v6  ;;  %v8570_v46 = vpop.f32.mrf.mxu1  ;;  %v8572_v54 = vpop.xlane.xlu0 %1088  ;;  %v6841_v51 = vld [vmem:[%s7320_s22 + $0x1d8] sm:$0xff]  ;;  %v12691_v62 = vld [vmem:[#allocation24_spill] sm:$0xff] }
 0x230   : > { %5982 = vmatmul.msk.f32.gmra.mxu3 %vm683_vm0, %v6839_v40  ;;  %12674 = vst [vmem:[#allocation19_spill] sm:$0xff] %v8568_v28  ;;  %v1266_v40 = vmul.f32 1.442695, %v1152_v3  ;;  %v1268_v7 = vmul.f32 1.442695, %v1153_v50  ;;  %v8578_v6 = vpop.f32.mrf.mxu2  ;;  %v8580_v63 = vpop.f32.mrf.mxu3 }
 0x231   : > { %12675 = vst [vmem:[#allocation20_spill] sm:$0xff] %v8570_v46  ;;  %v1202_v44 = vmul.f32 1.442695, %v1120_v1  ;;  %v8582_v5 = vpop.xlane.xlu2 %1040  ;;  %v8585_v3 = vpop.eup %6324  ;;  %v1204_v56 = vmul.f32 1.442695, %v1121_v31  ;;  %v1155_v31 = vsub.f32 %v8129_v26, %v8544_v2  ;;  %v3664_v1 = vmax.f32 %v8568_v28, %v8570_v46 }
 0x232   : > { %12676 = vst [vmem:[#allocation71_spill] sm:$0xff] %v8578_v6  ;;  %v8589_v50 = vpop.eup %6326  ;;  %6328 = vpow2.f32 %v1266_v40  ;;  %v1125_v38 = vsub.f32 %v12691_v62, %v8582_v5  ;;  %v12693_v62 = vld [vmem:[#allocation25_spill] sm:$0xff] }
 0x233   : > { %12677 = vst [vmem:[#allocation72_spill] sm:$0xff] %v8580_v63  ;;  %6330 = vpow2.f32 %v1268_v7  ;;  %v1318_v40 = vadd.f32 %v8589_v50, %v8585_v3 }
 0x234   : > { %12678 = vst [vmem:[#allocation73_spill] sm:$0xff] %v8585_v3  ;;  %6332 = vpow2.f32 %v1202_v44  ;;  %v12682_v44 = vld [vmem:[#allocation21_spill] sm:$0xff] }
 0x235   : > { %6063 = vmatmul.msk.f32.gmra.mxu0 %vm683_vm0, %v6840_v47  ;;  %5935 = vmatmul.msk.f32.gmra.mxu2 %vm683_vm0, %v6841_v51  ;;  %12679 = vst [vmem:[#allocation74_spill] sm:$0xff] %v8589_v50  ;;  %6334 = vpow2.f32 %v1204_v56  ;;  %v1122_v26 = vsub.f32 %v12682_v44, %v1038_v52  ;;  %v1272_v56 = vmul.f32 1.442695, %v1155_v31  ;;  %v1123_v50 = vsub.f32 %v12684_v58, %v1038_v52 }
 0x236   : > { %3662 = vmax.xlane.f32.xlu1 %v3661_v53  ;;  %1316 = vadd.xlane.f32.xlu0 %v1315_v60  ;;  %v1154_v60 = vsub.f32 %v8127_v24, %v8544_v2  ;;  %v2345_v53 = vmax.f32 %v8540_v29, %v8542_v11  ;;  %v6842_v24 = vld [vmem:[%s7320_s22 + $0x2e0] sm:$0xff]  ;;  %v1157_v52 = vsub.f32 %v8149_v22, %v8572_v54 }
 0x237   : > { %1367 = vadd.xlane.f32.xlu2 %v1366_v30  ;;  %6111 = vmatmul.msk.f32.gmra.mxu1 %vm683_vm0, %v6840_v47  ;;  %v8602_v30 = vpop.f32.mrf.mxu0  ;;  %v8606_v47 = vpop.xlane.xlu1 %1091  ;;  %v2348_v44 = vmax.f32 %v8578_v6, %v8580_v63  ;;  %v1208_v29 = vmul.f32 1.442695, %v1123_v50  ;;  %v6844_v63 = vld [vmem:[%s7320_s22 + $0x2e8] sm:$0xff] }
 0x238   : > { %5983 = vmatmul.msk.f32.gmra.mxu3 %vm683_vm0, %v6841_v51  ;;  %12680 = vst [vmem:[#allocation75_spill] sm:$0xff] %v8602_v30  ;;  %v8604_v51 = vpop.f32.mrf.mxu1  ;;  %v1270_v7 = vmul.f32 1.442695, %v1154_v60  ;;  %v8611_v2 = vpop.eup %6328  ;;  %v1156_v60 = vsub.f32 %v8147_v20, %v8572_v54  ;;  %v12690_v20 = vld [vmem:[#allocation23_spill] sm:$0xff]  ;;  %v1158_v22 = vsub.f32 %v8167_v16, %v8606_v47  ;;  %v12704_v6 = vld [vmem:[#allocation29_spill] sm:$0xff] }
 0x239   : > { %12681 = vst [vmem:[#allocation76_spill] sm:$0xff] %v8604_v51  ;;  %v1044_v3 = vpop.xlane.xlu0 %1043  ;;  %v8617_v28 = vpop.eup %6330 }
 0x23a   : > { %12683 = vst [vmem:[#allocation21_spill] sm:$0xff] %v8611_v2  ;;  %v8621_v11 = vpop.f32.mrf.mxu2  ;;  %v8627_v31 = vpop.eup %6332  ;;  %6336 = vpow2.f32 %v1270_v7  ;;  %v1274_v49 = vmul.f32 1.442695, %v1156_v60  ;;  %v1369_v54 = vadd.f32 %v8617_v28, %v8611_v2  ;;  %v1276_v7 = vmul.f32 1.442695, %v1157_v52 }
 0x23b   : > { %12685 = vst [vmem:[#allocation22_spill] sm:$0xff] %v8617_v28  ;;  %v8632_v58 = vpop.eup %6334  ;;  %6338 = vpow2.f32 %v1272_v56  ;;  %v1212_v60 = vmul.f32 1.442695, %v1125_v38  ;;  %v3667_v28 = vmax.f32 %v8602_v30, %v8604_v51 }
 0x23c   : > { %12686 = vst [vmem:[#allocation77_spill] sm:$0xff] %v8621_v11 }
 0x23d   : > { %6064 = vmatmul.msk.f32.gmra.mxu0 %vm683_vm0, %v6842_v24  ;;  %12688 = vst [vmem:[#allocation79_spill] sm:$0xff] %v8627_v31 }
 0x23e   : > { %1319 = vadd.xlane.f32.xlu1 %v1318_v40  ;;  %2346 = vmax.xlane.f32.xlu0 %v2345_v53  ;;  %v8623_v40 = vpop.f32.mrf.mxu3  ;;  %v6843_v53 = vld [vmem:[%s7320_s22 + $0x1e0] sm:$0xff]  ;;  %12689 = vst [vmem:[#allocation80_spill] sm:$0xff] %v8632_v58 }
 0x23f   : > { %3665 = vmax.xlane.f32.xlu2 %v3664_v1  ;;  %v8614_v46 = vpop.xlane.xlu2 %1094  ;;  %6112 = vmatmul.msk.f32.gmra.mxu1 %vm683_vm0, %v6842_v24  ;;  %12687 = vst [vmem:[#allocation78_spill] sm:$0xff] %v8623_v40  ;;  %v1206_v1 = vmul.f32 1.442695, %v1122_v26  ;;  %v1124_v24 = vsub.f32 %v12690_v20, %v8582_v5  ;;  %v12692_v26 = vld [vmem:[#allocation27_spill] sm:$0xff]  ;;  %v1321_v20 = vadd.f32 %v8632_v58, %v8627_v31  ;;  %v8651_v16 = vpop.f32.mrf.mxu0 }
 0x240   : > { %5936 = vmatmul.msk.f32.gmra.mxu2 %vm683_vm0, %v6843_v53  ;;  %5984 = vmatmul.msk.f32.gmra.mxu3 %vm683_vm0, %v6843_v53  ;;  %v1159_v53 = vsub.f32 %v12692_v26, %v8606_v47  ;;  %v1126_v5 = vsub.f32 %v12693_v62, %v1044_v3  ;;  %12694 = vst [vmem:[#allocation23_spill] sm:$0xff] %v8651_v16  ;;  %v8653_v56 = vpop.f32.mrf.mxu1  ;;  %v12696_v47 = vld [vmem:[#allocation26_spill] sm:$0xff]  ;;  %v1047_v26 = vpop.xlane.xlu1 %1046 }
 0x241   : > { %6340 = vpow2.f32 %v1206_v1  ;;  %v1210_v50 = vmul.f32 1.442695, %v1124_v24  ;;  %12695 = vst [vmem:[#allocation24_spill] sm:$0xff] %v8653_v56  ;;  %v1127_v52 = vsub.f32 %v12696_v47, %v1044_v3  ;;  %v8657_v1 = vpop.eup %6336  ;;  %v1278_v24 = vmul.f32 1.442695, %v1158_v22  ;;  %v12703_v22 = vld [vmem:[#allocation28_spill] sm:$0xff] }
 0x242   : > { %6342 = vpow2.f32 %v1208_v29  ;;  %12697 = vst [vmem:[#allocation27_spill] sm:$0xff] %v8657_v1  ;;  %v8661_v62 = vpop.f32.mrf.mxu2  ;;  %v6845_v29 = vld [vmem:[%s7320_s22 + $0x1e8] sm:$0xff]  ;;  %v8667_v38 = vpop.eup %6338  ;;  %v1280_v3 = vmul.f32 1.442695, %v1159_v53  ;;  %v1129_v21 = vsub.f32 %v12704_v6, %v1047_v26 }
 0x243   : > { %6344 = vpow2.f32 %v1274_v49  ;;  %12699 = vst [vmem:[#allocation25_spill] sm:$0xff] %v8661_v62  ;;  %v1214_v49 = vmul.f32 1.442695, %v1126_v5  ;;  %v1216_v2 = vmul.f32 1.442695, %v1127_v52  ;;  %v1372_v5 = vadd.f32 %v8667_v38, %v8657_v1 }
 0x244   : > { %6346 = vpow2.f32 %v1276_v7  ;;  %v2351_v7 = vmax.f32 %v8621_v11, %v8623_v40  ;;  %v6848_v40 = vld [vmem:[%s7320_s22 + $0x2f8] sm:$0xff] }
 0x245   : > { %6065 = vmatmul.msk.f32.gmra.mxu0 %vm683_vm0, %v6844_v63  ;;  %6348 = vpow2.f32 %v1210_v50 }
 0x246   : > { %2349 = vmax.xlane.f32.xlu1 %v2348_v44  ;;  %1370 = vadd.xlane.f32.xlu0 %v1369_v54  ;;  %v12698_v44 = vld [vmem:[#allocation30_spill] sm:$0xff]  ;;  %v8663_v31 = vpop.f32.mrf.mxu3  ;;  %6350 = vpow2.f32 %v1212_v60  ;;  %v12707_v60 = vld [vmem:[#allocation33_spill] sm:$0xff] }
 0x247   : > { %1322 = vadd.xlane.f32.xlu2 %v1321_v20  ;;  %v1098_v58 = vpop.xlane.xlu0 %1097  ;;  %6113 = vmatmul.msk.f32.gmra.mxu1 %vm683_vm0, %v6844_v63  ;;  %v1160_v54 = vsub.f32 %v12698_v44, %v8614_v46  ;;  %12700 = vst [vmem:[#allocation26_spill] sm:$0xff] %v8663_v31  ;;  %v12702_v63 = vld [vmem:[#allocation31_spill] sm:$0xff]  ;;  %v1050_v47 = vpop.xlane.xlu2 %1049  ;;  %v1128_v44 = vsub.f32 %v12703_v22, %v1047_v26  ;;  %6352 = vpow2.f32 %v1278_v24  ;;  %v6846_v22 = vld [vmem:[%s7320_s22 + $0x2f0] sm:$0xff] }
 0x248   : > { %5937 = vmatmul.msk.f32.gmra.mxu2 %vm683_vm0, %v6845_v29  ;;  %12701 = vst [vmem:[#allocation30_spill] sm:$0xff] %v8667_v38  ;;  %v1161_v20 = vsub.f32 %v12702_v63, %v8614_v46  ;;  %5985 = vmatmul.msk.f32.gmra.mxu3 %vm683_vm0, %v6845_v29  ;;  %v8678_v53 = vpop.eup %6340  ;;  %v1162_v50 = vsub.f32 %v8207_v8, %v1098_v58  ;;  %6354 = vpow2.f32 %v1280_v3  ;;  %v12710_v3 = vld [vmem:[#allocation32_spill] sm:$0xff] }
 0x249   : > { %12705 = vst [vmem:[#allocation31_spill] sm:$0xff] %v8678_v53  ;;  %v1282_v46 = vmul.f32 1.442695, %v1160_v54  ;;  %v8683_v29 = vpop.eup %6342  ;;  %v1163_v52 = vsub.f32 %v12707_v60, %v1098_v58  ;;  %6356 = vpow2.f32 %v1214_v49  ;;  %v1218_v26 = vmul.f32 1.442695, %v1128_v44  ;;  %v8697_v44 = vpop.f32.mrf.mxu0 }
 0x24a   : > { %12706 = vst [vmem:[#allocation28_spill] sm:$0xff] %v8683_v29  ;;  %v1284_v63 = vmul.f32 1.442695, %v1161_v20  ;;  %v8688_v6 = vpop.eup %6344  ;;  %v1130_v24 = vsub.f32 %v8191_v57, %v1050_v47  ;;  %6358 = vpow2.f32 %v1216_v2  ;;  %v1220_v54 = vmul.f32 1.442695, %v1129_v21  ;;  %v6847_v57 = vld [vmem:[%s7320_s22 + $0x1f0] sm:$0xff] }
 0x24b   : > { %12708 = vst [vmem:[#allocation29_spill] sm:$0xff] %v8688_v6  ;;  %v8691_v8 = vpop.eup %6346  ;;  %v1131_v20 = vsub.f32 %v12710_v3, %v1050_v47  ;;  %6360 = vpow2.f32 %v1282_v46  ;;  %v1286_v49 = vmul.f32 1.442695, %v1162_v50  ;;  %v1288_v21 = vmul.f32 1.442695, %v1163_v52 }
 0x24c   : > { %12709 = vst [vmem:[#allocation33_spill] sm:$0xff] %v8691_v8  ;;  %v8695_v38 = vpop.eup %6348  ;;  %6362 = vpow2.f32 %v1284_v63  ;;  %v1222_v46 = vmul.f32 1.442695, %v1130_v24  ;;  %v3670_v50 = vmax.f32 %v8651_v16, %v8653_v56  ;;  %v1375_v16 = vadd.f32 %v8691_v8, %v8688_v6  ;;  %v12726_v8 = vld [vmem:[#allocation36_spill] sm:$0xff] }
 0x24d   : > { %6066 = vmatmul.msk.f32.gmra.mxu0 %vm683_vm0, %v6846_v22  ;;  %12711 = vst [vmem:[#allocation32_spill] sm:$0xff] %v8695_v38  ;;  %6364 = vpow2.f32 %v1218_v26  ;;  %v1324_v26 = vadd.f32 %v8683_v29, %v8678_v53  ;;  %v6849_v53 = vld [vmem:[%s7320_s22 + $0x1f8] sm:$0xff] }
 0x24e   : > { %1373 = vadd.xlane.f32.xlu1 %v1372_v5  ;;  %3668 = vmax.xlane.f32.xlu0 %v3667_v28  ;;  %12712 = vst [vmem:[#allocation81_spill] sm:$0xff] %v8697_v44  ;;  %v8701_v28 = vpop.eup %6350  ;;  %v8713_v3 = vpop.f32.mrf.mxu3  ;;  %6366 = vpow2.f32 %v1220_v54 }
 0x24f   : > { %2352 = vmax.xlane.f32.xlu2 %v2351_v7  ;;  %v1101_v58 = vpop.xlane.xlu1 %1100  ;;  %v1053_v60 = vpop.xlane.xlu0 %1052  ;;  %6114 = vmatmul.msk.f32.gmra.mxu1 %vm683_vm0, %v6846_v22  ;;  %12713 = vst [vmem:[#allocation82_spill] sm:$0xff] %v8701_v28  ;;  %6368 = vpow2.f32 %v1286_v49  ;;  %v12724_v49 = vld [vmem:[#allocation35_spill] sm:$0xff] }
 0x250   : > { %5938 = vmatmul.msk.f32.gmra.mxu2 %vm683_vm0, %v6847_v57  ;;  %v1164_v2 = vsub.f32 %v8231_v25, %v1101_v58  ;;  %v8704_v7 = vpop.f32.mrf.mxu1  ;;  %5986 = vmatmul.msk.f32.gmra.mxu3 %vm683_vm0, %v6847_v57  ;;  %v8707_v5 = vpop.eup %6352  ;;  %12717 = vst [vmem:[#allocation86_spill] sm:$0xff] %v8713_v3  ;;  %v1224_v25 = vmul.f32 1.442695, %v1131_v20  ;;  %v1165_v57 = vsub.f32 %v8233_v55, %v1101_v58  ;;  %6370 = vpow2.f32 %v1288_v21  ;;  %v12722_v55 = vld [vmem:[#allocation34_spill] sm:$0xff] }
 0x251   : > { %v3639_v47 = vpop.xlane.xlu2 %3638  ;;  %12714 = vst [vmem:[#allocation83_spill] sm:$0xff] %v8704_v7  ;;  %v8711_v22 = vpop.f32.mrf.mxu2  ;;  %v1132_v56 = vsub.f32 %v8211_v17, %v1053_v60  ;;  %6372 = vpow2.f32 %v1222_v46  ;;  %v1133_v20 = vsub.f32 %v12722_v55, %v1053_v60 }
 0x252   : > { %12715 = vst [vmem:[#allocation84_spill] sm:$0xff] %v8707_v5  ;;  %v8715_v63 = vpop.eup %6354  ;;  %v1290_v1 = vmul.f32 1.442695, %v1164_v2  ;;  %6374 = vpow2.f32 %v1224_v25  ;;  %v3733_v21 = vsub.f32 %v12724_v49, %v3639_v47  ;;  %v1292_v2 = vmul.f32 1.442695, %v1165_v57 }
 0x253   : > { %12716 = vst [vmem:[#allocation85_spill] sm:$0xff] %v8711_v22  ;;  %v8717_v52 = vpop.eup %6356  ;;  %v3734_v6 = vsub.f32 %v12726_v8, %v3639_v47  ;;  %v1226_v46 = vmul.f32 1.442695, %v1132_v56  ;;  %v2354_v8 = vmax.f32 %v8661_v62, %v8663_v31  ;;  %v8753_v47 = vpop.f32.mrf.mxu0  ;;  %v1378_v49 = vadd.f32 %v8715_v63, %v8707_v5 }
 0x254   : > { %12718 = vst [vmem:[#allocation87_spill] sm:$0xff] %v8715_v63  ;;  %v8722_v24 = vpop.eup %6358  ;;  %6376 = vpow2.f32 %v1290_v1  ;;  %v3797_v56 = vmul.f32 1.442695, %v3733_v21  ;;  %v2357_v63 = vmax.f32 %v8711_v22, %v8713_v3 }
 0x255   : > { %12719 = vst [vmem:[#allocation88_spill] sm:$0xff] %v8717_v52  ;;  %6067 = vmatmul.msk.f32.gmra.mxu0 %vm683_vm0, %v6848_v40  ;;  %v8729_v54 = vpop.eup %6360  ;;  %v3799_v55 = vmul.f32 1.442695, %v3734_v6  ;;  %v1330_v6 = vadd.f32 %v8722_v24, %v8717_v52 }
 0x256   : > { %12720 = vst [vmem:[#allocation89_spill] sm:$0xff] %v8722_v24  ;;  %3671 = vmax.xlane.f32.xlu1 %v3670_v50  ;;  %1325 = vadd.xlane.f32.xlu0 %v1324_v26  ;;  %v8732_v58 = vpop.eup %6362  ;;  %v8770_v62 = vpop.f32.mrf.mxu3 }
 0x257   : > { %12721 = vst [vmem:[#allocation90_spill] sm:$0xff] %v8729_v54  ;;  %1376 = vadd.xlane.f32.xlu2 %v1375_v16  ;;  %6115 = vmatmul.msk.f32.gmra.mxu1 %vm683_vm0, %v6848_v40  ;;  %v8736_v17 = vpop.eup %6364  ;;  %v2323_v29 = vpop.xlane.xlu1 %2322  ;;  %v1228_v16 = vmul.f32 1.442695, %v1133_v20  ;;  %v1327_v20 = vadd.f32 %v8701_v28, %v8695_v38  ;;  %v8783_v5 = vadd.f32 %v8732_v58, %v8729_v54 }
 0x258   : > { %12723 = vst [vmem:[#allocation34_spill] sm:$0xff] %v8732_v58  ;;  %5939 = vmatmul.msk.f32.gmra.mxu2 %vm683_vm0, %v6849_v53  ;;  %v8741_v60 = vpop.eup %6366  ;;  %5987 = vmatmul.msk.f32.gmra.mxu3 %vm683_vm0, %v6849_v53  ;;  %v8755_v57 = vpop.f32.mrf.mxu1  ;;  %v3673_v53 = vmax.f32 %v8697_v44, %v8704_v7  ;;  %v2417_v11 = vsub.f32 %v8257_v37, %v2323_v29 }
 0x259   : > { %12725 = vst [vmem:[#allocation35_spill] sm:$0xff] %v8736_v17  ;;  %v8743_v50 = vpop.xlane.xlu0 %1343  ;;  %v8745_v25 = vpop.xlane.xlu2 %1295  ;;  %v2418_v7 = vsub.f32 %v8262_v4, %v2323_v29  ;;  %v8793_v29 = vadd.f32 %v8741_v60, %v8736_v17 }
 0x25a   : > { %12727 = vst [vmem:[#allocation36_spill] sm:$0xff] %v8741_v60  ;;  %v8748_v40 = vpop.eup %6368  ;;  %6378 = vrcp.f32 %v8743_v50  ;;  %v8768_v31 = vpop.f32.mrf.mxu2  ;;  %v2481_v4 = vmul.f32 1.442695, %v2417_v11  ;;  %vm1619_vm1 = vweird.f32 %v8743_v50  ;;  %vm1395_vm3 = vweird.f32 %v8745_v25 }
 0x25b   : > { %12728 = vst [vmem:[#allocation91_spill] sm:$0xff] %v8748_v40  ;;  %v8757_v1 = vpop.eup %6370  ;;  %6380 = vrcp.f32 %v8745_v25  ;;  %v2483_v37 = vmul.f32 1.442695, %v2418_v7  ;;  %v1401_v54 = vand.u32 2147483648, %v8745_v25  ;;  %v8832_v22 = vpop.f32.mrf.mxu0 }
 0x25c   : > { %12729 = vst [vmem:[#allocation92_spill] sm:$0xff] %v8757_v1  ;;  %v8762_v26 = vpop.eup %6372  ;;  %6382 = vpow2.f32 %v1292_v2  ;;  %v1623_v2 = vand.u32 2147483647, %v8743_v50 }
 0x25d   : > { %12730 = vst [vmem:[#allocation93_spill] sm:$0xff] %v8762_v26  ;;  %v8772_v21 = vpop.eup %6374  ;;  %6384 = vpow2.f32 %v1226_v46 }
 0x25e   : > { %12731 = vst [vmem:[#allocation94_spill] sm:$0xff] %v8772_v21  ;;  %6386 = vpow2.f32 %v1228_v16  ;;  %1328 = vadd.xlane.f32.xlu1 %v1327_v20  ;;  %2355 = vmax.xlane.f32.xlu0 %v2354_v8  ;;  %v8785_v46 = vpop.eup %6376  ;;  %v1625_v8 = vand.u32 2147483648, %v8743_v50  ;;  %v8800_v20 = vadd.f32 %v8757_v1, %v8748_v40  ;;  %vm8815_vm2 = vcmp.eq.f32.partialorder %v1623_v2, 8.507059e+37 }
 0x25f   : > { %12732 = vst [vmem:[#allocation95_spill] sm:$0xff] %v8785_v46  ;;  %6388 = vpow2.f32 %v3797_v56  ;;  %3674 = vmax.xlane.f32.xlu2 %v3673_v53  ;;  %v8804_v56 = vadd.f32 %v8772_v21, %v8762_v26  ;;  %v1399_v40 = vand.u32 2147483647, %v8745_v25 }
 0x260   : > { %v8795_v16 = vpop.eup %6378  ;;  %6390 = vpow2.f32 %v3799_v55  ;;  %v1626_v52 = vor.u32 1.1754944e-38, %v1625_v8  ;;  %v8834_v44 = vpop.f32.mrf.mxu1 }
 0x261   : > { %v8806_v53 = vpop.eup %6380  ;;  %v1615_v60 = vmul.f32 %v8795_v16, %v8743_v50  ;;  %v8811_v55 = vpop.xlane.xlu1 %1346  ;;  %vm1620_vm4 = vweird.f32 %v8795_v16  ;;  %vm8848_vm6 = vcmp.eq.f32.partialorder %v1399_v40, 8.507059e+37 }
 0x262   : > { %v3642_v17 = vpop.xlane.xlu0 %3641  ;;  %v8813_v58 = vpop.eup %6382  ;;  %v1391_v21 = vmul.f32 %v8806_v53, %v8745_v25  ;;  %6392 = vrcp.f32 %v8811_v55  ;;  %vm1396_vm5 = vweird.f32 %v8806_v53  ;;  %vm1621_vm7 = vmor %vm1619_vm1, %vm1620_vm4  ;;  %vm1633_vm10 = vweird.f32 %v8811_v55 }
 0x263   : > { %12733 = vst [vmem:[#allocation96_spill] sm:$0xff] %v8813_v58  ;;  %v2326_v11 = vpop.xlane.xlu2 %2325  ;;  %v8823_v7 = vpop.eup %6384  ;;  %v1616_v26 = vsub.f32 1.0, %v1615_v60  ;;  %v3735_v2 = vsub.f32 %v8275_v10, %v3642_v17  ;;  %v3736_v38 = vsub.f32 %v8277_v12, %v3642_v17  ;;  %6394 = vpow2.f32 %v2481_v4  ;;  %vm1397_vm8 = vmor %vm1395_vm3, %vm1396_vm5 }
 0x264   : > { %12736 = vst [vmem:[#allocation97_spill] sm:$0xff] %v8823_v7  ;;  %v8828_v24 = vpop.eup %6386  ;;  %v1392_v28 = vsub.f32 1.0, %v1391_v21  ;;  %v2419_v3 = vsub.f32 %v8287_v14, %v2326_v11  ;;  %v2420_v10 = vsub.f32 %v8291_v41, %v2326_v11  ;;  %v8845_v17 = vpop.f32.mrf.mxu2  ;;  %6396 = vpow2.f32 %v2483_v37 }
 0x265   : > { %12737 = vst [vmem:[#allocation98_spill] sm:$0xff] %v8828_v24  ;;  %v8836_v51 = vpop.eup %6388  ;;  %v1617_v60 = vmul.f32 %v8795_v16, %v1616_v26  ;;  %v3801_v30 = vmul.f32 1.442695, %v3735_v2  ;;  %v3803_v14 = vmul.f32 1.442695, %v3736_v38  ;;  %v1402_v41 = vor.u32 1.1754944e-38, %v1401_v54  ;;  %v8861_v40 = vpop.f32.mrf.mxu3 }
 0x266   : > { %12738 = vst [vmem:[#allocation99_spill] sm:$0xff] %v8836_v51  ;;  %v8841_v19 = vpop.eup %6390  ;;  %v1393_v12 = vmul.f32 %v8806_v53, %v1392_v28  ;;  %2358 = vmax.xlane.f32.xlu1 %v2357_v63  ;;  %1379 = vadd.xlane.f32.xlu0 %v1378_v49  ;;  %v1637_v28 = vand.u32 2147483647, %v8811_v55  ;;  %v1639_v63 = vand.u32 2147483648, %v8811_v55  ;;  %v2485_v49 = vmul.f32 1.442695, %v2419_v3 }
 0x267   : > { %12739 = vst [vmem:[#allocation100_spill] sm:$0xff] %v8841_v19  ;;  %v1618_v26 = vadd.f32 %v8795_v16, %v1617_v60  ;;  %1331 = vadd.xlane.f32.xlu2 %v1330_v6  ;;  %6398 = vpow2.f32 %v3801_v30  ;;  %v2487_v50 = vmul.f32 1.442695, %v2420_v10  ;;  %v8905_v21 = vadd.f32 %v8813_v58, %v8785_v46 }
 0x268   : > { %v8852_v8 = vpop.eup %6392  ;;  %v1394_v38 = vadd.f32 %v8806_v53, %v1393_v12  ;;  %6400 = vpow2.f32 %v3803_v14  ;;  %v8901_v14 = vpop.f32.mrf.mxu1  ;;  %vm8914_vm11 = vcmp.eq.f32.partialorder %v1637_v28, 8.507059e+37 }
 0x269   : > { %v1622_v37 = vsel %vm1621_vm7, %v8795_v16, %v1618_v26  ;;  %v1629_v54 = vmul.f32 %v8852_v8, %v8811_v55  ;;  %v3645_v6 = vpop.xlane.xlu1 %3644  ;;  %v8882_v12 = vpop.eup %6394  ;;  %6402 = vpow2.f32 %v2485_v49  ;;  %vm1634_vm9 = vweird.f32 %v8852_v8 }
 0x26a   : > { %v8870_v4 = vpop.xlane.xlu0 %1298  ;;  %v1627_v3 = vsel %vm8815_vm2, %v1626_v52, %v1622_v37  ;;  %v1398_v11 = vsel %vm1397_vm8, %v8806_v53, %v1394_v38  ;;  %v3737_v16 = vsub.f32 %v8307_v35, %v3645_v6  ;;  %12742 = vst [vmem:[#allocation101_spill] sm:$0xff] %v8882_v12  ;;  %v12743_v52 = vld [vmem:[#allocation37_spill] sm:$0xff]  ;;  %v3738_v53 = vsub.f32 %v8309_v36, %v3645_v6  ;;  %v8887_v35 = vpop.eup %6396  ;;  %vm1635_vm12 = vmor %vm1633_vm10, %vm1634_vm9 }
 0x26b   : > { %v8876_v2 = vpop.xlane.xlu2 %1349  ;;  %v1870_v25 = vmul.f32 %v8264_v32, %v1627_v3  ;;  %v1871_v60 = vmul.f32 %v8266_v43, %v1627_v3  ;;  %v1403_v30 = vsel %vm8848_vm6, %v1402_v41, %v1398_v11  ;;  %v1630_v10 = vsub.f32 1.0, %v1629_v54  ;;  %12744 = vst [vmem:[#allocation37_spill] sm:$0xff] %v8887_v35  ;;  %v8899_v36 = vpop.f32.mrf.mxu0 }
 0x26c   : > { %v1838_v1 = vmul.f32 %v8253_v18, %v1403_v30  ;;  %v1839_v26 = vmul.f32 %v12743_v52, %v1403_v30  ;;  %6404 = vrcp.f32 %v8870_v4  ;;  %v3679_v43 = vmax.f32 %v8832_v22, %v8834_v44  ;;  %v8929_v11 = vpop.f32.mrf.mxu2 }
 0x26d   : > { %1934 = vst [vmem:[#allocation2 + $0x98] sm:$0xff] %v1870_v25  ;;  %v1631_v32 = vmul.f32 %v8852_v8, %v1630_v10  ;;  %6406 = vpow2.f32 %v2487_v50  ;;  %v12745_v18 = vmax.f32 %v8753_v47, %v8755_v57  ;;  %v8909_v41 = vadd.f32 %v8828_v24, %v8823_v7  ;;  %v8911_v38 = vpop.eup %6398 }
 0x26e   : > { %1935 = vst [vmem:[#allocation2 + $0xb0] sm:$0xff] %v1871_v60  ;;  %1382 = vadd.xlane.f32.xlu1 %v8783_v5  ;;  %v3805_v37 = vmul.f32 1.442695, %v3737_v16  ;;  %6408 = vrcp.f32 %v8876_v2  ;;  %v12749_v54 = vmax.f32 %v8768_v31, %v8770_v62  ;;  %v8922_v50 = vpop.eup %6400  ;;  %v1640_v6 = vor.u32 1.1754944e-38, %v1639_v63  ;;  %v12753_v63 = vld [vmem:[#allocation39_spill] sm:$0xff] }
 0x26f   : > { %3677 = vmax.xlane.f32.xlu0 %v12745_v18  ;;  %12746 = vst [vmem:[#allocation102_spill] sm:$0xff] %v8911_v38  ;;  %v1632_v5 = vadd.f32 %v8852_v8, %v1631_v32  ;;  %v3807_v28 = vmul.f32 1.442695, %v3738_v53  ;;  %v1413_v3 = vand.u32 2147483647, %v8870_v4  ;;  %v8933_v16 = vadd.f32 %v8841_v19, %v8836_v51  ;;  %v8951_v53 = vpop.f32.mrf.mxu3 }
 0x270   : > { %1902 = vst [vmem:[#allocation2 + $0x2b0] sm:$0xff] %v1838_v1  ;;  %2361 = vmax.xlane.f32.xlu2 %v12749_v54  ;;  %v1415_v60 = vand.u32 2147483648, %v8870_v4  ;;  %v8943_v1 = vpop.eup %6402  ;;  %v8955_v32 = vadd.f32 %v8887_v35, %v8882_v12  ;;  %vm1409_vm13 = vweird.f32 %v8870_v4  ;;  %vm1647_vm15 = vweird.f32 %v8876_v2 }
 0x271   : > { %12750 = vst [vmem:[#allocation103_spill] sm:$0xff] %v8922_v50  ;;  %v1636_v25 = vsel %vm1635_vm12, %v8852_v8, %v1632_v5  ;;  %v8937_v30 = vpop.xlane.xlu1 %1301  ;;  %v12752_v5 = vld [vmem:[#allocation38_spill] sm:$0xff]  ;;  %vm8963_vm14 = vcmp.eq.f32.partialorder %v1413_v3, 8.507059e+37  ;;  %v1653_v35 = vand.u32 2147483648, %v8876_v2 }
 0x272   : > { %1903 = vst [vmem:[#allocation2 + $0x3b0] sm:$0xff] %v1839_v26  ;;  %v2329_v10 = vpop.xlane.xlu0 %2328  ;;  %v1641_v52 = vsel %vm8914_vm11, %v1640_v6, %v1636_v25  ;;  %v1651_v26 = vand.u32 2147483647, %v8876_v2  ;;  %6410 = vrcp.f32 %v8937_v30  ;;  %v6405_v18 = vpop.eup %6404  ;;  %vm1423_vm2 = vweird.f32 %v8937_v30 }
 0x273   : > { %12751 = vst [vmem:[#allocation104_spill] sm:$0xff] %v8943_v1  ;;  %v8949_v8 = vpop.xlane.xlu2 %3647  ;;  %v1872_v54 = vmul.f32 %v12752_v5, %v1641_v52  ;;  %v1873_v55 = vmul.f32 %v12753_v63, %v1641_v52  ;;  %6412 = vpow2.f32 %v3805_v37  ;;  %v8960_v49 = vpop.eup %6406  ;;  %v1405_v6 = vmul.f32 %v6405_v18, %v8870_v4 }
 0x274   : > { %12754 = vst [vmem:[#allocation38_spill] sm:$0xff] %v8960_v49  ;;  %6414 = vpow2.f32 %v3807_v28  ;;  %v6409_v12 = vpop.eup %6408  ;;  %v1416_v5 = vor.u32 1.1754944e-38, %v1415_v60  ;;  %v1427_v37 = vand.u32 2147483647, %v8937_v30  ;;  %v1429_v63 = vand.u32 2147483648, %v8937_v30 }
 0x275   : > { %1936 = vst [vmem:[#allocation2 + $0x2a0] sm:$0xff] %v1872_v54  ;;  %v1406_v52 = vsub.f32 1.0, %v1405_v6  ;;  %v1643_v3 = vmul.f32 %v6409_v12, %v8876_v2  ;;  %vm8974_vm0 = vcmp.eq.f32.partialorder %v1651_v26, 8.507059e+37  ;;  %v2421_v51 = vsub.f32 %v8337_v61, %v2329_v10  ;;  %v9031_v2 = vpop.f32.mrf.mxu1 }
 0x276   : > { %1937 = vst [vmem:[#allocation2 + $0x570] sm:$0xff] %v1873_v55  ;;  %3680 = vmax.xlane.f32.xlu1 %v3679_v43  ;;  %v2422_v60 = vsub.f32 %v8339_v23, %v2329_v10  ;;  %v3739_v54 = vsub.f32 %v8347_v27, %v8949_v8  ;;  %v8986_v55 = vadd.f32 %v8922_v50, %v8911_v38  ;;  %vm1410_vm1 = vweird.f32 %v6405_v18 }
 0x277   : > { %1334 = vadd.xlane.f32.xlu0 %v8793_v29  ;;  %v8990_v26 = vadd.f32 %v8960_v49, %v8943_v1  ;;  %v1407_v61 = vmul.f32 %v6405_v18, %v1406_v52  ;;  %v1644_v29 = vsub.f32 1.0, %v1643_v3  ;;  %v1654_v43 = vor.u32 1.1754944e-38, %v1653_v35  ;;  %vm1411_vm5 = vmor %vm1409_vm13, %vm1410_vm1 }
 0x278   : > { %1385 = vadd.xlane.f32.xlu2 %v8800_v20  ;;  %v8992_v6 = vpop.eup %6410  ;;  %vm8999_vm3 = vcmp.eq.f32.partialorder %v1427_v37, 8.507059e+37  ;;  %v1430_v10 = vor.u32 1.1754944e-38, %v1429_v63  ;;  %vm1648_vm4 = vweird.f32 %v6409_v12  ;;  %v2489_v35 = vmul.f32 1.442695, %v2421_v51 }
 0x279   : > { %v8994_v23 = vpop.eup %6412  ;;  %v1419_v27 = vmul.f32 %v8992_v6, %v8937_v30  ;;  %v2332_v28 = vpop.xlane.xlu1 %2331  ;;  %v1408_v52 = vadd.f32 %v6405_v18, %v1407_v61  ;;  %v1645_v3 = vmul.f32 %v6409_v12, %v1644_v29  ;;  %v2491_v38 = vmul.f32 1.442695, %v2422_v60  ;;  %vm1649_vm6 = vmor %vm1647_vm15, %vm1648_vm4 }
 0x27a   : > { %12759 = vst [vmem:[#allocation39_spill] sm:$0xff] %v8994_v23  ;;  %v9003_v49 = vpop.xlane.xlu0 %1352  ;;  %v9005_v1 = vpop.eup %6414  ;;  %v3740_v63 = vsub.f32 %v8349_v45, %v8949_v8  ;;  %v3809_v24 = vmul.f32 1.442695, %v3739_v54  ;;  %v2423_v46 = vsub.f32 %v8367_v48, %v2332_v28  ;;  %vm1424_vm7 = vweird.f32 %v8992_v6 }
 0x27b   : > { %12762 = vst [vmem:[#allocation105_spill] sm:$0xff] %v9005_v1  ;;  %v9007_v50 = vpop.xlane.xlu2 %1304  ;;  %v1420_v37 = vsub.f32 1.0, %v1419_v27  ;;  %v1412_v7 = vsel %vm1411_vm5, %v6405_v18, %v1408_v52  ;;  %v1646_v58 = vadd.f32 %v6409_v12, %v1645_v3  ;;  %6416 = vrcp.f32 %v9003_v49  ;;  %vm1425_vm8 = vmor %vm1423_vm2, %vm1424_vm7 }
 0x27c   : > { %v1417_v51 = vsel %vm8963_vm14, %v1416_v5, %v1412_v7  ;;  %v2424_v60 = vsub.f32 %v8369_v13, %v2332_v28  ;;  %6418 = vpow2.f32 %v2489_v35  ;;  %v12763_v48 = vmax.f32 %v8845_v17, %v8861_v40  ;;  %v9029_v7 = vpop.f32.mrf.mxu0 }
 0x27d   : > { %v1421_v4 = vmul.f32 %v8992_v6, %v1420_v37  ;;  %v1840_v45 = vmul.f32 %v8311_v39, %v1417_v51  ;;  %v1841_v8 = vmul.f32 %v8319_v0, %v1417_v51  ;;  %v1650_v18 = vsel %vm1649_vm6, %v6409_v12, %v1646_v58  ;;  %v9039_v58 = vpop.f32.mrf.mxu2 }
 0x27e   : > { %1337 = vadd.xlane.f32.xlu1 %v8804_v56  ;;  %v1655_v25 = vsel %vm8974_vm0, %v1654_v43, %v1650_v18  ;;  %6420 = vpow2.f32 %v2491_v38  ;;  %v3811_v39 = vmul.f32 1.442695, %v3740_v63  ;;  %v12764_v0 = vmax.f32 %v8899_v36, %v8901_v14  ;;  %12765 = vst [vmem:[#allocation106_spill] sm:$0xff] %v9039_v58  ;;  %v9041_v56 = vpop.f32.mrf.mxu3  ;;  %v12767_v43 = vld [vmem:[#allocation40_spill] sm:$0xff] }
 0x27f   : > { %2364 = vmax.xlane.f32.xlu0 %v12763_v48  ;;  %v1422_v13 = vadd.f32 %v8992_v6, %v1421_v4  ;;  %12766 = vst [vmem:[#allocation107_spill] sm:$0xff] %v9041_v56  ;;  %v1874_v12 = vmul.f32 %v8324_v33, %v1655_v25  ;;  %v1875_v5 = vmul.f32 %v8329_v59, %v1655_v25  ;;  %v2493_v19 = vmul.f32 1.442695, %v2423_v46 }
 0x280   : > { %3683 = vmax.xlane.f32.xlu2 %v12764_v0  ;;  %1904 = vst [vmem:[#allocation2 + $0x4d8] sm:$0xff] %v1840_v45  ;;  %6422 = vrcp.f32 %v9007_v50  ;;  %v2495_v28 = vmul.f32 1.442695, %v2424_v60  ;;  %v3685_v33 = vmax.f32 %v9029_v7, %v9031_v2  ;;  %v1665_v46 = vand.u32 2147483647, %v9003_v49 }
 0x281   : > { %1905 = vst [vmem:[#allocation2 + $0x18] sm:$0xff] %v1841_v8  ;;  %v1426_v38 = vsel %vm1425_vm8, %v8992_v6, %v1422_v13  ;;  %6424 = vpow2.f32 %v3809_v24  ;;  %v9051_v54 = vpop.xlane.xlu1 %1355  ;;  %v9055_v59 = vpop.eup %6416  ;;  %v1441_v3 = vand.u32 2147483647, %v9007_v50  ;;  %v9075_v35 = vadd.f32 %v9005_v1, %v8994_v23 }
 0x282   : > { %v3651_v61 = vpop.xlane.xlu0 %3650  ;;  %1938 = vst [vmem:[#allocation2 + $0x598] sm:$0xff] %v1874_v12  ;;  %v1431_v30 = vsel %vm8999_vm3, %v1430_v10, %v1426_v38  ;;  %6426 = vrcp.f32 %v9051_v54  ;;  %v1657_v52 = vmul.f32 %v9055_v59, %v9003_v49  ;;  %v9069_v20 = vpop.eup %6418  ;;  %v1667_v10 = vand.u32 2147483648, %v9003_v49 }
 0x283   : > { %v9061_v29 = vpop.xlane.xlu2 %2334  ;;  %1939 = vst [vmem:[#allocation2 + $0x5a8] sm:$0xff] %v1875_v5  ;;  %v1842_v6 = vmul.f32 %v8345_v42, %v1431_v30  ;;  %v1843_v27 = vmul.f32 %v12767_v43, %v1431_v30  ;;  %6428 = vpow2.f32 %v3811_v39  ;;  %vm1661_vm9 = vweird.f32 %v9003_v49 }
 0x284   : > { %12768 = vst [vmem:[#allocation40_spill] sm:$0xff] %v9069_v20  ;;  %6430 = vpow2.f32 %v2493_v19  ;;  %v9077_v37 = vpop.eup %6420  ;;  %v1658_v42 = vsub.f32 1.0, %v1657_v52  ;;  %v1443_v63 = vand.u32 2147483648, %v9007_v50  ;;  %vm9083_vm10 = vcmp.eq.f32.partialorder %v1665_v46, 8.507059e+37 }
 0x285   : > { %12769 = vst [vmem:[#allocation108_spill] sm:$0xff] %v9077_v37  ;;  %6432 = vpow2.f32 %v2495_v28  ;;  %vm1437_vm11 = vweird.f32 %v9007_v50  ;;  %v1679_v60 = vand.u32 2147483647, %v9051_v54  ;;  %v3741_v45 = vsub.f32 %v8392_v15, %v3651_v61 }
 0x286   : > { %1906 = vst [vmem:[#allocation2 + $0x450] sm:$0xff] %v1842_v6  ;;  %v9081_v51 = vpop.eup %6422  ;;  %v12772_v8 = vmax.f32 %v8929_v11, %v8951_v53  ;;  %v1659_v48 = vmul.f32 %v9055_v59, %v1658_v42  ;;  %vm1662_vm12 = vweird.f32 %v9055_v59  ;;  %v3742_v13 = vsub.f32 %v8397_v34, %v3651_v61  ;;  %v9138_v42 = vpop.f32.mrf.mxu1 }
 0x287   : > { %1907 = vst [vmem:[#allocation2 + $0x328] sm:$0xff] %v1843_v27  ;;  %1388 = vadd.xlane.f32.xlu0 %v8905_v21  ;;  %v9094_v18 = vpop.eup %6424  ;;  %v1433_v25 = vmul.f32 %v9081_v51, %v9007_v50  ;;  %v1668_v39 = vor.u32 1.1754944e-38, %v1667_v10  ;;  %vm9104_vm13 = vcmp.eq.f32.partialorder %v1441_v3, 8.507059e+37  ;;  %vm1675_vm14 = vweird.f32 %v9051_v54  ;;  %vm1663_vm15 = vmor %vm1661_vm9, %vm1662_vm12  ;;  %v9136_v3 = vpop.f32.mrf.mxu0 }
 0x288   : > { %2367 = vmax.xlane.f32.xlu1 %v12772_v8  ;;  %12773 = vst [vmem:[#allocation109_spill] sm:$0xff] %v9094_v18  ;;  %1340 = vadd.xlane.f32.xlu2 %v8909_v41  ;;  %v9102_v15 = vpop.eup %6426  ;;  %v2425_v21 = vsub.f32 %v8407_v9, %v9061_v29  ;;  %v1660_v5 = vadd.f32 %v9055_v59, %v1659_v48  ;;  %v1444_v34 = vor.u32 1.1754944e-38, %v1443_v63  ;;  %vm1438_vm0 = vweird.f32 %v9081_v51  ;;  %v9145_v48 = vpop.f32.mrf.mxu2 }
 0x289   : > { %v9111_v12 = vpop.eup %6428  ;;  %v1434_v19 = vsub.f32 1.0, %v1433_v25  ;;  %v1671_v41 = vmul.f32 %v9102_v15, %v9051_v54  ;;  %v3654_v38 = vpop.xlane.xlu1 %3653  ;;  %vm9125_vm1 = vcmp.eq.f32.partialorder %v1679_v60, 8.507059e+37  ;;  %v1681_v30 = vand.u32 2147483648, %v9051_v54  ;;  %12781 = vst [vmem:[#allocation113_spill] sm:$0xff] %v9136_v3  ;;  %v12783_v60 = vld [vmem:[#allocation46_spill] sm:$0xff]  ;;  %vm1439_vm3 = vmor %vm1437_vm11, %vm1438_vm0 }
 0x28a   : > { %12776 = vst [vmem:[#allocation110_spill] sm:$0xff] %v9111_v12  ;;  %v9116_v28 = vpop.xlane.xlu0 %1307  ;;  %v9118_v61 = vpop.eup %6430  ;;  %v3813_v46 = vmul.f32 1.442695, %v3741_v45  ;;  %v1664_v27 = vsel %vm1663_vm15, %v9055_v59, %v1660_v5  ;;  %v3815_v49 = vmul.f32 1.442695, %v3742_v13  ;;  %vm1676_vm2 = vweird.f32 %v9102_v15  ;;  %v12786_v25 = vld [vmem:[#allocation42_spill] sm:$0xff] }
 0x28b   : > { %12777 = vst [vmem:[#allocation111_spill] sm:$0xff] %v9118_v61  ;;  %v9130_v6 = vpop.xlane.xlu2 %1358  ;;  %v9132_v43 = vpop.eup %6432  ;;  %v1435_v52 = vmul.f32 %v9081_v51, %v1434_v19  ;;  %v1672_v10 = vsub.f32 1.0, %v1671_v41  ;;  %v1669_v63 = vsel %vm9083_vm10, %v1668_v39, %v1664_v27  ;;  %v2426_v45 = vsub.f32 %v12783_v60, %v9061_v29  ;;  %v12787_v13 = vld [vmem:[#allocation43_spill] sm:$0xff]  ;;  %v12788_v29 = vld [vmem:[#allocation13_spill] sm:$0xff]  ;;  %vm1677_vm4 = vmor %vm1675_vm14, %vm1676_vm2 }
 0x28c   : > { %12780 = vst [vmem:[#allocation112_spill] sm:$0xff] %v9132_v43  ;;  %v2497_v8 = vmul.f32 1.442695, %v2425_v21  ;;  %v9147_v59 = vpop.f32.mrf.mxu3  ;;  %v1876_v5 = vmul.f32 %v12786_v25, %v1669_v63  ;;  %v1877_v19 = vmul.f32 %v12787_v13, %v1669_v63  ;;  %v1682_v4 = vor.u32 1.1754944e-38, %v1681_v30  ;;  %v12789_v21 = vld [vmem:[#allocation11_spill] sm:$0xff]  ;;  %v12793_v25 = vld [vmem:[#allocation45_spill] sm:$0xff] }
 0x28d   : > { %12782 = vst [vmem:[#allocation114_spill] sm:$0xff] %v9138_v42  ;;  %v1436_v41 = vadd.f32 %v9081_v51, %v1435_v52  ;;  %v1673_v24 = vmul.f32 %v9102_v15, %v1672_v10  ;;  %6434 = vpow2.f32 %v3813_v46  ;;  %v3743_v39 = vsub.f32 %v12788_v29, %v3654_v38  ;;  %v12792_v46 = vld [vmem:[#allocation44_spill] sm:$0xff]  ;;  %v12794_v13 = vld [vmem:[#allocation47_spill] sm:$0xff]  ;;  %v12796_v29 = vld [vmem:[#allocation50_spill] sm:$0xff] }
 0x28e   : > { %12784 = vst [vmem:[#allocation46_spill] sm:$0xff] %v9145_v48  ;;  %v3744_v27 = vsub.f32 %v12789_v21, %v3654_v38  ;;  %6436 = vpow2.f32 %v3815_v49  ;;  %v12790_v50 = vmax.f32 %v9039_v58, %v9041_v56  ;;  %v3688_v30 = vmax.f32 %v9136_v3, %v9138_v42  ;;  %v12815_v3 = vld [vmem:[#allocation56_spill] sm:$0xff] }
 0x28f   : > { %12785 = vst [vmem:[#allocation115_spill] sm:$0xff] %v9147_v59  ;;  %3686 = vmax.xlane.f32.xlu0 %v3685_v33  ;;  %v1440_v52 = vsel %vm1439_vm3, %v9081_v51, %v1436_v41  ;;  %v1674_v10 = vadd.f32 %v9102_v15, %v1673_v24  ;;  %6438 = vpow2.f32 %v2497_v8  ;;  %v2499_v33 = vmul.f32 1.442695, %v2426_v45  ;;  %v12791_v51 = vld [vmem:[#allocation41_spill] sm:$0xff] }
 0x290   : > { %3926 = vadd.xlane.f32.xlu1 %v8933_v16  ;;  %1940 = vst [vmem:[#allocation2 + $0x4c8] sm:$0xff] %v1876_v5  ;;  %2370 = vmax.xlane.f32.xlu2 %v12790_v50  ;;  %v1445_v16 = vsel %vm9104_vm13, %v1444_v34, %v1440_v52  ;;  %6440 = vrcp.f32 %v9116_v28  ;;  %v3817_v60 = vmul.f32 1.442695, %v3743_v39  ;;  %v3819_v8 = vmul.f32 1.442695, %v3744_v27 }
 0x291   : > { %1941 = vst [vmem:[#allocation2 + $0x5e8] sm:$0xff] %v1877_v19  ;;  %v1844_v38 = vmul.f32 %v12791_v51, %v1445_v16  ;;  %v1845_v49 = vmul.f32 %v12792_v46, %v1445_v16  ;;  %v1678_v63 = vsel %vm1677_vm4, %v9102_v15, %v1674_v10  ;;  %v9182_v0 = vpop.xlane.xlu1 %1310  ;;  %6442 = vrcp.f32 %v9130_v6  ;;  %v12798_v10 = vld [vmem:[#allocation51_spill] sm:$0xff]  ;;  %v12799_v16 = vld [vmem:[#allocation14_spill] sm:$0xff] }
 0x292   : > { %v2338_v34 = vpop.xlane.xlu0 %2337  ;;  %v1683_v54 = vsel %vm9125_vm1, %v1682_v4, %v1678_v63  ;;  %v1457_v15 = vand.u32 2147483648, %v9116_v28  ;;  %6444 = vrcp.f32 %v9182_v0  ;;  %v1455_v9 = vand.u32 2147483647, %v9116_v28 }
 0x293   : > { %v3657_v45 = vpop.xlane.xlu2 %3656  ;;  %1908 = vst [vmem:[#allocation2 + $0x440] sm:$0xff] %v1844_v38  ;;  %v1878_v5 = vmul.f32 %v12793_v25, %v1683_v54  ;;  %v1879_v19 = vmul.f32 %v12794_v13, %v1683_v54  ;;  %v9191_v41 = vpop.eup %6434  ;;  %6446 = vpow2.f32 %v2499_v33  ;;  %v1695_v4 = vand.u32 2147483648, %v9130_v6  ;;  %v12803_v54 = vld [vmem:[#allocation53_spill] sm:$0xff] }
 0x294   : > { %12795 = vst [vmem:[#allocation42_spill] sm:$0xff] %v9191_v41  ;;  %v2427_v39 = vsub.f32 %v12796_v29, %v2338_v34  ;;  %v9196_v21 = vpop.eup %6436  ;;  %v1693_v27 = vand.u32 2147483647, %v9130_v6  ;;  %v1471_v52 = vand.u32 2147483648, %v9182_v0  ;;  %v2428_v50 = vsub.f32 %v12798_v10, %v2338_v34  ;;  %v9202_v38 = vpop.f32.mrf.mxu0 }
 0x295   : > { %1909 = vst [vmem:[#allocation2 + $0x378] sm:$0xff] %v1845_v49  ;;  %v3745_v51 = vsub.f32 %v12799_v16, %v3657_v45  ;;  %v9204_v33 = vpop.f32.mrf.mxu1  ;;  %v9206_v46 = vpop.eup %6438  ;;  %6448 = vpow2.f32 %v3817_v60  ;;  %vm1451_vm5 = vweird.f32 %v9116_v28  ;;  %v1469_v49 = vand.u32 2147483647, %v9182_v0 }
 0x296   : > { %12797 = vst [vmem:[#allocation43_spill] sm:$0xff] %v9196_v21  ;;  %v2501_v63 = vmul.f32 1.442695, %v2427_v39  ;;  %v3746_v25 = vsub.f32 %v12803_v54, %v3657_v45  ;;  %v9212_v34 = vpop.f32.mrf.mxu2  ;;  %v6441_v13 = vpop.eup %6440  ;;  %6450 = vpow2.f32 %v3819_v8  ;;  %v1458_v29 = vor.u32 1.1754944e-38, %v1457_v15 }
 0x297   : > { %1942 = vst [vmem:[#allocation2 + $0x1f8] sm:$0xff] %v1878_v5  ;;  %2610 = vadd.xlane.f32.xlu0 %v8955_v32  ;;  %v9214_v5 = vpop.f32.mrf.mxu3  ;;  %vm1689_vm6 = vweird.f32 %v9130_v6  ;;  %v2503_v60 = vmul.f32 1.442695, %v2428_v50  ;;  %v1447_v39 = vmul.f32 %v6441_v13, %v9116_v28  ;;  %vm9221_vm7 = vcmp.eq.f32.partialorder %v1455_v9, 8.507059e+37  ;;  %v12828_v28 = vld [vmem:[#allocation52_spill] sm:$0xff] }
 0x298   : > { %12800 = vst [vmem:[#allocation13_spill] sm:$0xff] %v9202_v38  ;;  %3689 = vmax.xlane.f32.xlu1 %v3688_v30  ;;  %3929 = vadd.xlane.f32.xlu2 %v8986_v55  ;;  %v9225_v32 = vor.u32 1.1754944e-38, %v1695_v4  ;;  %vm1465_vm8 = vweird.f32 %v9182_v0  ;;  %v3691_v8 = vmax.f32 %v9202_v38, %v9204_v33  ;;  %vm9234_vm9 = vcmp.eq.f32.partialorder %v1693_v27, 8.507059e+37 }
 0x299   : > { %12801 = vst [vmem:[#allocation11_spill] sm:$0xff] %v9204_v33  ;;  %v9238_v9 = vor.u32 1.1754944e-38, %v1471_v52  ;;  %v3821_v10 = vmul.f32 1.442695, %v3745_v51  ;;  %v2341_v50 = vpop.xlane.xlu1 %2340  ;;  %v1448_v24 = vsub.f32 1.0, %v1447_v39  ;;  %vm9248_vm10 = vcmp.eq.f32.partialorder %v1469_v49, 8.507059e+37 }
 0x29a   : > { %12802 = vst [vmem:[#allocation41_spill] sm:$0xff] %v9206_v46  ;;  %v9240_v4 = vpop.xlane.xlu0 %1361  ;;  %6452 = vpow2.f32 %v2501_v63  ;;  %v3823_v52 = vmul.f32 1.442695, %v3746_v25  ;;  %vm1452_vm11 = vweird.f32 %v6441_v13  ;;  %v12813_v33 = vld [vmem:[#allocation55_spill] sm:$0xff]  ;;  %v2430_v56 = vsub.f32 %v12815_v3, %v2341_v50 }
 0x29b   : > { %1943 = vst [vmem:[#allocation2 + $0x2f0] sm:$0xff] %v1879_v19  ;;  %v9218_v19 = vpop.eup %6442  ;;  %v9252_v23 = vpop.xlane.xlu2 %1313  ;;  %6454 = vpow2.f32 %v2503_v60  ;;  %v2429_v38 = vsub.f32 %v12813_v33, %v2341_v50  ;;  %v1449_v42 = vmul.f32 %v6441_v13, %v1448_v24  ;;  %vm1453_vm14 = vmor %vm1451_vm5, %vm1452_vm11  ;;  %v9278_v24 = vadd.f32 %v9111_v12, %v9094_v18 }
 0x29c   : > { %12804 = vst [vmem:[#allocation44_spill] sm:$0xff] %v9212_v34  ;;  %v9230_v45 = vpop.eup %6444  ;;  %v1685_v55 = vmul.f32 %v9218_v19, %v9130_v6  ;;  %6456 = vrcp.f32 %v9240_v4  ;;  %vm1690_vm12 = vweird.f32 %v9218_v19  ;;  %vm1703_vm1 = vweird.f32 %v9240_v4  ;;  %v9379_v18 = vpop.f32.mrf.mxu0 }
 0x29d   : > { %12805 = vst [vmem:[#allocation45_spill] sm:$0xff] %v9214_v5  ;;  %v9244_v54 = vpop.eup %6446  ;;  %v1461_v1 = vmul.f32 %v9230_v45, %v9182_v0  ;;  %6458 = vpow2.f32 %v3821_v10  ;;  %v2505_v25 = vmul.f32 1.442695, %v2429_v38  ;;  %vm1466_vm13 = vweird.f32 %v9230_v45  ;;  %vm9286_vm15 = vmor %vm1689_vm6, %vm1690_vm12 }
 0x29e   : > { %12810 = vst [vmem:[#allocation47_spill] sm:$0xff] %v9244_v54  ;;  %v1686_v51 = vsub.f32 1.0, %v1685_v55  ;;  %v9255_v16 = vpop.eup %6448  ;;  %v1450_v55 = vadd.f32 %v6441_v13, %v1449_v42  ;;  %6460 = vrcp.f32 %v9252_v23  ;;  %v2615_v42 = vadd.f32 %v9077_v37, %v9069_v20  ;;  %vm9303_vm0 = vmor %vm1465_vm8, %vm1466_vm13 }
 0x29f   : > { %12814 = vst [vmem:[#allocation50_spill] sm:$0xff] %v9255_v16  ;;  %v1462_v39 = vsub.f32 1.0, %v1461_v1  ;;  %v9259_v49 = vpop.eup %6450  ;;  %v12817_v1 = vmax.f32 %v9145_v48, %v9147_v59  ;;  %6462 = vpow2.f32 %v3823_v52  ;;  %v1707_v10 = vand.u32 2147483647, %v9240_v4 }
 0x2a0   : > { %12816 = vst [vmem:[#allocation51_spill] sm:$0xff] %v9259_v49  ;;  %v1687_v63 = vmul.f32 %v9218_v19, %v1686_v51  ;;  %2613 = vadd.xlane.f32.xlu1 %v8990_v26  ;;  %3692 = vmax.xlane.f32.xlu2 %v3691_v8  ;;  %v9280_v26 = vpop.eup %6452  ;;  %v1454_v38 = vsel %vm1453_vm14, %v6441_v13, %v1450_v55  ;;  %v2507_v8 = vmul.f32 1.442695, %v2430_v56  ;;  %6464 = vpow2.f32 %v2505_v25 }
 0x2a1   : > { %v1463_v60 = vmul.f32 %v9230_v45, %v1462_v39  ;;  %2373 = vmax.xlane.f32.xlu0 %v12817_v1  ;;  %12818 = vst [vmem:[#allocation14_spill] sm:$0xff] %v9280_v26  ;;  %v9292_v50 = vpop.eup %6454  ;;  %v1459_v52 = vsel %vm9221_vm7, %v1458_v29, %v1454_v38  ;;  %v1709_v56 = vand.u32 2147483648, %v9240_v4  ;;  %v9309_v51 = vpop.xlane.xlu1 %1364  ;;  %v12824_v39 = vld [vmem:[#allocation48_spill] sm:$0xff]  ;;  %vm9333_vm2 = vcmp.eq.f32.partialorder %v1707_v10, 8.507059e+37 }
 0x2a2   : > { %v1688_v3 = vadd.f32 %v9218_v19, %v1687_v63  ;;  %12821 = vst [vmem:[#allocation53_spill] sm:$0xff] %v9292_v50  ;;  %v3660_v29 = vpop.xlane.xlu0 %3659  ;;  %v9311_v30 = vpop.eup %6456  ;;  %v12825_v63 = vld [vmem:[#allocation49_spill] sm:$0xff]  ;;  %vm1479_vm3 = vweird.f32 %v9252_v23  ;;  %6466 = vpow2.f32 %v2507_v8 }
 0x2a3   : > { %v1464_v33 = vadd.f32 %v9230_v45, %v1463_v60  ;;  %v1847_v55 = vmul.f32 %v12825_v63, %v1459_v52  ;;  %v2344_v60 = vpop.xlane.xlu2 %2343  ;;  %v9321_v1 = vpop.eup %6458  ;;  %vm1704_vm4 = vweird.f32 %v9311_v30  ;;  %v1710_v10 = vor.u32 1.1754944e-38, %v1709_v56 }
 0x2a4   : > { %v1692_v13 = vsel %vm9286_vm15, %v9218_v19, %v1688_v3  ;;  %v1846_v19 = vmul.f32 %v12824_v39, %v1459_v52  ;;  %12826 = vst [vmem:[#allocation55_spill] sm:$0xff] %v9321_v1  ;;  %v12827_v3 = vld [vmem:[#allocation12_spill] sm:$0xff]  ;;  %v1699_v52 = vmul.f32 %v9311_v30, %v9240_v4  ;;  %v9330_v15 = vpop.eup %6460  ;;  %6468 = vrcp.f32 %v9309_v51  ;;  %vm1705_vm7 = vmor %vm1703_vm1, %vm1704_vm4  ;;  %v9381_v4 = vpop.f32.mrf.mxu1 }
 0x2a5   : > { %v1697_v0 = vsel %vm9234_vm9, %v9225_v32, %v1692_v13  ;;  %v1468_v25 = vsel %vm9303_vm0, %v9230_v45, %v1464_v33  ;;  %v12829_v32 = vld [vmem:[#allocation10_spill] sm:$0xff]  ;;  %v1483_v33 = vand.u32 2147483647, %v9252_v23  ;;  %v9339_v6 = vpop.eup %6462  ;;  %1911 = vst [vmem:[#allocation2 + $0x510] sm:$0xff] %v1847_v55  ;;  %vm1480_vm5 = vweird.f32 %v9330_v15  ;;  %v9443_v37 = vpop.f32.mrf.mxu0 }
 0x2a6   : > { %v1880_v38 = vmul.f32 %v12827_v3, %v1697_v0  ;;  %v1881_v12 = vmul.f32 %v12828_v28, %v1697_v0  ;;  %v1473_v39 = vsel %vm9248_vm10, %v9238_v9, %v1468_v25  ;;  %1910 = vst [vmem:[#allocation2 + $0x108] sm:$0xff] %v1846_v19  ;;  %v12833_v9 = vld [vmem:[#allocation54_spill] sm:$0xff]  ;;  %v1700_v63 = vsub.f32 1.0, %v1699_v52  ;;  %v9351_v55 = vpop.eup %6464  ;;  %vm1481_vm8 = vmor %vm1479_vm3, %vm1480_vm5 }
 0x2a7   : > { %v1848_v13 = vmul.f32 %v12829_v32, %v1473_v39  ;;  %12832 = vst [vmem:[#allocation56_spill] sm:$0xff] %v9339_v6  ;;  %v1849_v27 = vmul.f32 %v12833_v9, %v1473_v39  ;;  %v1475_v19 = vmul.f32 %v9330_v15, %v9252_v23  ;;  %v1485_v0 = vand.u32 2147483648, %v9252_v23  ;;  %v12837_v39 = vld [vmem:[#allocation60_spill] sm:$0xff]  ;;  %v12841_v9 = vld [vmem:[#allocation62_spill] sm:$0xff]  ;;  %v12849_v23 = vld [vmem:[#allocation61_spill] sm:$0xff] }
 0x2a8   : > { %1944 = vst [vmem:[#allocation2 + $0x3c8] sm:$0xff] %v1880_v38  ;;  %v12834_v25 = vmax.f32 %v9212_v34, %v9214_v5  ;;  %v1701_v8 = vmul.f32 %v9311_v30, %v1700_v63  ;;  %v12836_v38 = vld [vmem:[#allocation58_spill] sm:$0xff]  ;;  %v3748_v56 = vsub.f32 %v12837_v39, %v3660_v29  ;;  %2616 = vadd.xlane.f32.xlu2 %v2615_v42  ;;  %vm9357_vm6 = vcmp.eq.f32.partialorder %v1483_v33, 8.507059e+37  ;;  %v12840_v32 = vld [vmem:[#allocation16_spill] sm:$0xff]  ;;  %v12842_v39 = vld [vmem:[#allocation17_spill] sm:$0xff] }
 0x2a9   : > { %3932 = vadd.xlane.f32.xlu0 %v9075_v35  ;;  %12835 = vst [vmem:[#allocation48_spill] sm:$0xff] %v9351_v55  ;;  %v1476_v3 = vsub.f32 1.0, %v1475_v19  ;;  %v3747_v28 = vsub.f32 %v12836_v38, %v3660_v29  ;;  %v2431_v35 = vsub.f32 %v12840_v32, %v2344_v60  ;;  %v3663_v29 = vpop.xlane.xlu1 %3662  ;;  %vm1717_vm10 = vweird.f32 %v9309_v51 }
 0x2aa   : > { %2376 = vmax.xlane.f32.xlu1 %v12834_v25  ;;  %1945 = vst [vmem:[#allocation2 + $0x5c0] sm:$0xff] %v1881_v12  ;;  %v2432_v25 = vsub.f32 %v12841_v9, %v2344_v60  ;;  %v1702_v12 = vadd.f32 %v9311_v30, %v1701_v8  ;;  %v3827_v38 = vmul.f32 1.442695, %v3748_v56  ;;  %v9365_v42 = vpop.xlane.xlu0 %1316  ;;  %v3749_v32 = vsub.f32 %v12842_v39, %v3663_v29  ;;  %v12843_v60 = vld [vmem:[#allocation65_spill] sm:$0xff]  ;;  %v9375_v8 = vpop.eup %6466 }
 0x2ab   : > { %1912 = vst [vmem:[#allocation2 + $0x490] sm:$0xff] %v1848_v13  ;;  %v1477_v63 = vmul.f32 %v9330_v15, %v1476_v3  ;;  %v3825_v19 = vmul.f32 1.442695, %v3747_v28  ;;  %v1486_v13 = vor.u32 1.1754944e-38, %v1485_v0  ;;  %v2509_v33 = vmul.f32 1.442695, %v2431_v35  ;;  %v9373_v9 = vpop.xlane.xlu2 %1367  ;;  %v6469_v0 = vpop.eup %6468 }
 0x2ac   : > { %1913 = vst [vmem:[#allocation2 + $0x318] sm:$0xff] %v1849_v27  ;;  %v3750_v27 = vsub.f32 %v12843_v60, %v3663_v29  ;;  %v1706_v3 = vsel %vm1705_vm7, %v9311_v30, %v1702_v12  ;;  %v2511_v56 = vmul.f32 1.442695, %v2432_v25  ;;  %v3829_v29 = vmul.f32 1.442695, %v3749_v32  ;;  %v12847_v12 = vld [vmem:[#allocation57_spill] sm:$0xff]  ;;  %v9445_v20 = vpop.f32.mrf.mxu1 }
 0x2ad   : > { %12844 = vst [vmem:[#allocation49_spill] sm:$0xff] %v9375_v8  ;;  %v1478_v28 = vadd.f32 %v9330_v15, %v1477_v63  ;;  %6470 = vpow2.f32 %v3825_v19  ;;  %v1711_v35 = vsel %vm9333_vm2, %v1710_v10, %v1706_v3  ;;  %v12848_v19 = vld [vmem:[#allocation59_spill] sm:$0xff]  ;;  %v1713_v60 = vmul.f32 %v6469_v0, %v9309_v51  ;;  %v9573_v48 = vpop.f32.mrf.mxu0 }
 0x2ae   : > { %12845 = vst [vmem:[#allocation12_spill] sm:$0xff] %v9379_v18  ;;  %6472 = vpow2.f32 %v3827_v38  ;;  %v3831_v30 = vmul.f32 1.442695, %v3750_v27  ;;  %v1882_v63 = vmul.f32 %v12847_v12, %v1711_v35  ;;  %v1883_v25 = vmul.f32 %v12848_v19, %v1711_v35  ;;  %v12850_v32 = vld [vmem:[#allocation15_spill] sm:$0xff] }
 0x2af   : > { %12846 = vst [vmem:[#allocation52_spill] sm:$0xff] %v9381_v4  ;;  %v1482_v39 = vsel %vm1481_vm8, %v9330_v15, %v1478_v28  ;;  %v1721_v10 = vand.u32 2147483647, %v9309_v51  ;;  %v1723_v3 = vand.u32 2147483648, %v9309_v51  ;;  %6474 = vpow2.f32 %v2509_v33  ;;  %v9400_v15 = vpop.f32.mrf.mxu2  ;;  %v9402_v28 = vpop.f32.mrf.mxu3 }
 0x2b0   : > { %v1487_v45 = vsel %vm9357_vm6, %v1486_v13, %v1482_v39  ;;  %1946 = vst [vmem:[#allocation2 + $0x338] sm:$0xff] %v1882_v63  ;;  %v1714_v35 = vsub.f32 1.0, %v1713_v60  ;;  %6476 = vpow2.f32 %v2511_v56  ;;  %vm1718_vm9 = vweird.f32 %v6469_v0 }
 0x2b1   : > { %v1850_v38 = vmul.f32 %v12849_v23, %v1487_v45  ;;  %v1851_v27 = vmul.f32 %v12850_v32, %v1487_v45  ;;  %12851 = vst [vmem:[#allocation10_spill] sm:$0xff] %v9400_v15  ;;  %6478 = vpow2.f32 %v3829_v29  ;;  %v9410_v12 = vadd.f32 %v9132_v43, %v9118_v61  ;;  %vm9428_vm12 = vmor %vm1717_vm10, %vm1718_vm9  ;;  %v12861_v32 = vld [vmem:[#allocation18_spill] sm:$0xff]  ;;  %v12863_v43 = vld [vmem:[#allocation19_spill] sm:$0xff] }
 0x2b2   : > { %3935 = vadd.xlane.f32.xlu1 %v9278_v24  ;;  %12852 = vst [vmem:[#allocation54_spill] sm:$0xff] %v9402_v28  ;;  %v1715_v13 = vmul.f32 %v6469_v0, %v1714_v35  ;;  %6480 = vpow2.f32 %v3831_v30  ;;  %v9406_v24 = vpop.xlane.xlu1 %1319  ;;  %v2347_v33 = vpop.xlane.xlu0 %2346  ;;  %v3694_v29 = vmax.f32 %v9379_v18, %v9381_v4  ;;  %v2378_v30 = vmax.f32 %v9400_v15, %v9402_v28  ;;  %v12862_v35 = vld [vmem:[#allocation66_spill] sm:$0xff] }
 0x2b3   : > { %1947 = vst [vmem:[#allocation2 + $0x480] sm:$0xff] %v1883_v25  ;;  %v9404_v52 = vpop.eup %6470  ;;  %6482 = vrcp.f32 %v9365_v42  ;;  %v3666_v63 = vpop.xlane.xlu2 %3665  ;;  %vm9420_vm11 = vcmp.eq.f32.partialorder %v1721_v10, 8.507059e+37  ;;  %v1724_v39 = vor.u32 1.1754944e-38, %v1723_v3  ;;  %v1497_v45 = vand.u32 2147483647, %v9365_v42 }
 0x2b4   : > { %12853 = vst [vmem:[#allocation58_spill] sm:$0xff] %v9404_v52  ;;  %v9412_v56 = vpop.eup %6472  ;;  %v1716_v19 = vadd.f32 %v6469_v0, %v1715_v13  ;;  %6484 = vrcp.f32 %v9373_v9  ;;  %v1499_v23 = vand.u32 2147483648, %v9365_v42  ;;  %3695 = vmax.xlane.f32.xlu0 %v3694_v29  ;;  %2379 = vmax.xlane.f32.xlu2 %v2378_v30  ;;  %v2434_v13 = vsub.f32 %v12862_v35, %v2347_v33 }
 0x2b5   : > { %1914 = vst [vmem:[#allocation2 + $0x548] sm:$0xff] %v1850_v38  ;;  %v9425_v60 = vpop.eup %6474  ;;  %v1737_v38 = vand.u32 2147483648, %v9373_v9  ;;  %6486 = vrcp.f32 %v9406_v24  ;;  %v3751_v61 = vsub.f32 %v12863_v43, %v3666_v63  ;;  %v1735_v30 = vand.u32 2147483647, %v9373_v9  ;;  %v12870_v43 = vld [vmem:[#allocation64_spill] sm:$0xff] }
 0x2b6   : > { %12854 = vst [vmem:[#allocation60_spill] sm:$0xff] %v9412_v56  ;;  %v9436_v10 = vpop.eup %6476  ;;  %v1720_v3 = vsel %vm9428_vm12, %v6469_v0, %v1716_v19  ;;  %v1511_v51 = vand.u32 2147483647, %v9406_v24  ;;  %v12867_v0 = vld [vmem:[#allocation20_spill] sm:$0xff]  ;;  %vm1493_vm13 = vweird.f32 %v9365_v42  ;;  %v2515_v18 = vmul.f32 1.442695, %v2434_v13 }
 0x2b7   : > { %1915 = vst [vmem:[#allocation2 + $0x500] sm:$0xff] %v1851_v27  ;;  %v2433_v27 = vsub.f32 %v12861_v32, %v2347_v33  ;;  %v9447_v28 = vpop.eup %6478  ;;  %v1725_v29 = vsel %vm9420_vm11, %v1724_v39, %v1720_v3  ;;  %v3752_v19 = vsub.f32 %v12867_v0, %v3666_v63  ;;  %v12869_v33 = vld [vmem:[#allocation63_spill] sm:$0xff]  ;;  %v9461_v25 = vor.u32 1.1754944e-38, %v1499_v23 }
 0x2b8   : > { %12857 = vst [vmem:[#allocation16_spill] sm:$0xff] %v9425_v60  ;;  %v9454_v32 = vpop.eup %6480  ;;  %v1884_v35 = vmul.f32 %v12869_v33, %v1725_v29  ;;  %v1885_v15 = vmul.f32 %v12870_v43, %v1725_v29  ;;  %vm1731_vm14 = vweird.f32 %v9373_v9  ;;  %v9464_v39 = vor.u32 1.1754944e-38, %v1737_v38 }
 0x2b9   : > { %12860 = vst [vmem:[#allocation62_spill] sm:$0xff] %v9436_v10  ;;  %v2513_v4 = vmul.f32 1.442695, %v2433_v27  ;;  %v9459_v5 = vpop.eup %6482  ;;  %v3833_v3 = vmul.f32 1.442695, %v3751_v61  ;;  %v3697_v63 = vmax.f32 %v9443_v37, %v9445_v20  ;;  %vm9472_vm15 = vcmp.eq.f32.partialorder %v1497_v45, 8.507059e+37 }
 0x2ba   : > { %12864 = vst [vmem:[#allocation17_spill] sm:$0xff] %v9443_v37  ;;  %v9468_v0 = vpop.eup %6484  ;;  %v1489_v29 = vmul.f32 %v9459_v5, %v9365_v42  ;;  %vm1507_vm0 = vweird.f32 %v9406_v24  ;;  %v1513_v23 = vand.u32 2147483648, %v9406_v24  ;;  %v3835_v38 = vmul.f32 1.442695, %v3752_v19  ;;  %v2350_v13 = vpop.xlane.xlu1 %2349  ;;  %v12886_v27 = vld [vmem:[#allocation67_spill] sm:$0xff] }
 0x2bb   : > { %12865 = vst [vmem:[#allocation65_spill] sm:$0xff] %v9445_v20  ;;  %v9478_v61 = vpop.xlane.xlu0 %1370  ;;  %v9480_v33 = vpop.eup %6486  ;;  %vm9484_vm1 = vcmp.eq.f32.partialorder %v1735_v30, 8.507059e+37  ;;  %6488 = vpow2.f32 %v2513_v4  ;;  %3698 = vmax.xlane.f32.xlu1 %v3697_v63  ;;  %v3937_v45 = vadd.f32 %v9196_v21, %v9191_v41  ;;  %v12875_v20 = vld [vmem:[#allocation71_spill] sm:$0xff]  ;;  %vm9495_vm2 = vcmp.eq.f32.partialorder %v1511_v51, 8.507059e+37  ;;  %v12878_v4 = vld [vmem:[#allocation72_spill] sm:$0xff]  ;;  %v12890_v41 = vld [vmem:[#allocation70_spill] sm:$0xff] }
 0x2bc   : > { %12866 = vst [vmem:[#allocation57_spill] sm:$0xff] %v9447_v28  ;;  %v2435_v19 = vsub.f32 %v12875_v20, %v2350_v13  ;;  %v9491_v37 = vpop.xlane.xlu2 %1322  ;;  %v1490_v34 = vsub.f32 1.0, %v1489_v29  ;;  %6490 = vpow2.f32 %v2515_v18  ;;  %2619 = vadd.xlane.f32.xlu0 %v9410_v12  ;;  %v2436_v63 = vsub.f32 %v12878_v4, %v2350_v13  ;;  %v9508_v12 = vpop.f32.mrf.mxu3 }
 0x2bd   : > { %12868 = vst [vmem:[#allocation59_spill] sm:$0xff] %v9454_v32  ;;  %6492 = vpow2.f32 %v3833_v3  ;;  %3938 = vadd.xlane.f32.xlu2 %v3937_v45  ;;  %vm1494_vm3 = vweird.f32 %v9459_v5  ;;  %vm1732_vm4 = vweird.f32 %v9468_v0  ;;  %v1514_v18 = vor.u32 1.1754944e-38, %v1513_v23  ;;  %v9506_v3 = vpop.f32.mrf.mxu2 }
 0x2be   : > { %1948 = vst [vmem:[#allocation2 + $0x2a8] sm:$0xff] %v1884_v35  ;;  %v1727_v35 = vmul.f32 %v9468_v0, %v9373_v9  ;;  %v2517_v21 = vmul.f32 1.442695, %v2435_v19  ;;  %v1491_v20 = vmul.f32 %v9459_v5, %v1490_v34  ;;  %6494 = vrcp.f32 %v9478_v61  ;;  %vm1495_vm6 = vmor %vm1493_vm13, %vm1494_vm3 }
 0x2bf   : > { %1949 = vst [vmem:[#allocation2 + $0x3e0] sm:$0xff] %v1885_v15  ;;  %v1503_v15 = vmul.f32 %v9480_v33, %v9406_v24  ;;  %6496 = vpow2.f32 %v3835_v38  ;;  %vm1508_vm5 = vweird.f32 %v9480_v33  ;;  %v2519_v38 = vmul.f32 1.442695, %v2436_v63  ;;  %vm9528_vm7 = vmor %vm1731_vm14, %vm1732_vm4 }
 0x2c0   : > { %v1728_v30 = vsub.f32 1.0, %v1727_v35  ;;  %12879 = vst [vmem:[#allocation61_spill] sm:$0xff] %v9506_v3  ;;  %v1492_v13 = vadd.f32 %v9459_v5, %v1491_v20  ;;  %6498 = vrcp.f32 %v9491_v37  ;;  %v2621_v45 = vadd.f32 %v9244_v54, %v9206_v46  ;;  %vm1509_vm8 = vmor %vm1507_vm0, %vm1508_vm5 }
 0x2c1   : > { %v1504_v29 = vsub.f32 1.0, %v1503_v15  ;;  %12880 = vst [vmem:[#allocation15_spill] sm:$0xff] %v9508_v12  ;;  %v9514_v34 = vpop.eup %6488  ;;  %6500 = vpow2.f32 %v2517_v21  ;;  %v1749_v21 = vand.u32 2147483647, %v9478_v61  ;;  %v1751_v4 = vand.u32 2147483648, %v9478_v61 }
 0x2c2   : > { %v1729_v51 = vmul.f32 %v9468_v0, %v1728_v30  ;;  %12881 = vst [vmem:[#allocation18_spill] sm:$0xff] %v9514_v34  ;;  %v9521_v19 = vpop.eup %6490  ;;  %v1496_v15 = vsel %vm1495_vm6, %v9459_v5, %v1492_v13  ;;  %v9535_v63 = vpop.xlane.xlu1 %1373  ;;  %vm1745_vm9 = vweird.f32 %v9478_v61  ;;  %v2381_v13 = vmax.f32 %v9506_v3, %v9508_v12 }
 0x2c3   : > { %v1505_v35 = vmul.f32 %v9480_v33, %v1504_v29  ;;  %12882 = vst [vmem:[#allocation66_spill] sm:$0xff] %v9521_v19  ;;  %v9537_v20 = vpop.xlane.xlu0 %3668  ;;  %v9539_v29 = vpop.eup %6492  ;;  %v1501_v5 = vsel %vm9472_vm15, %v9461_v25, %v1496_v15  ;;  %2622 = vadd.xlane.f32.xlu1 %v2621_v45  ;;  %v12889_v45 = vld [vmem:[#allocation69_spill] sm:$0xff]  ;;  %6502 = vpow2.f32 %v2519_v38  ;;  %vm9580_vm10 = vcmp.eq.f32.partialorder %v1749_v21, 8.507059e+37 }
 0x2c4   : > { %v1730_v23 = vadd.f32 %v9468_v0, %v1729_v51  ;;  %12885 = vst [vmem:[#allocation19_spill] sm:$0xff] %v9539_v29  ;;  %v1525_v51 = vand.u32 2147483647, %v9491_v37  ;;  %v9557_v25 = vpop.eup %6494  ;;  %v1852_v15 = vmul.f32 %v12886_v27, %v1501_v5  ;;  %2382 = vmax.xlane.f32.xlu0 %v2381_v13  ;;  %vm1521_vm11 = vweird.f32 %v9491_v37 }
 0x2c5   : > { %v1506_v42 = vadd.f32 %v9480_v33, %v1505_v35  ;;  %v9555_v35 = vpop.xlane.xlu2 %2352  ;;  %v9565_v54 = vpop.eup %6496  ;;  %v1741_v27 = vmul.f32 %v9557_v25, %v9478_v61  ;;  %12891 = vst [vmem:[#allocation63_spill] sm:$0xff] %v9573_v48  ;;  %vm1746_vm12 = vweird.f32 %v9557_v25  ;;  %v1752_v38 = vor.u32 1.1754944e-38, %v1751_v4 }
 0x2c6   : > { %v1734_v9 = vsel %vm9528_vm7, %v9468_v0, %v1730_v23  ;;  %v12887_v0 = vld [vmem:[#allocation68_spill] sm:$0xff]  ;;  %12888 = vst [vmem:[#allocation20_spill] sm:$0xff] %v9565_v54  ;;  %6504 = vrcp.f32 %v9535_v63  ;;  %vm9596_vm13 = vcmp.eq.f32.partialorder %v1525_v51, 8.507059e+37  ;;  %vm1747_vm15 = vmor %vm1745_vm9, %vm1746_vm12 }
 0x2c7   : > { %v1853_v23 = vmul.f32 %v12887_v0, %v1501_v5  ;;  %v1739_v24 = vsel %vm9484_vm1, %v9464_v39, %v1734_v9  ;;  %v1510_v30 = vsel %vm1509_vm8, %v9480_v33, %v1506_v42  ;;  %v9575_v5 = vpop.f32.mrf.mxu1  ;;  %v9577_v39 = vpop.eup %6498  ;;  %1916 = vst [vmem:[#allocation2 + $0x58] sm:$0xff] %v1852_v15  ;;  %v12893_v33 = vld [vmem:[#allocation73_spill] sm:$0xff]  ;;  %v1742_v9 = vsub.f32 1.0, %v1741_v27 }
 0x2c8   : > { %v1886_v46 = vmul.f32 %v12889_v45, %v1739_v24  ;;  %v1887_v12 = vmul.f32 %v12890_v41, %v1739_v24  ;;  %v1515_v3 = vsel %vm9495_vm2, %v1514_v18, %v1510_v30  ;;  %12892 = vst [vmem:[#allocation64_spill] sm:$0xff] %v9575_v5  ;;  %v9585_v59 = vpop.eup %6500  ;;  %v12897_v41 = vld [vmem:[#allocation74_spill] sm:$0xff]  ;;  %v1517_v13 = vmul.f32 %v9577_v39, %v9491_v37  ;;  %v12900_v24 = vld [vmem:[#allocation75_spill] sm:$0xff]  ;;  %v9604_v45 = vpop.f32.mrf.mxu3  ;;  %v12904_v27 = vld [vmem:[#allocation77_spill] sm:$0xff] }
 0x2c9   : > { %v1854_v43 = vmul.f32 %v12893_v33, %v1515_v3  ;;  %12896 = vst [vmem:[#allocation71_spill] sm:$0xff] %v9585_v59  ;;  %v1855_v18 = vmul.f32 %v12897_v41, %v1515_v3  ;;  %v1527_v15 = vand.u32 2147483648, %v9491_v37  ;;  %v3700_v21 = vmax.f32 %v9573_v48, %v9575_v5  ;;  %v12905_v33 = vld [vmem:[#allocation78_spill] sm:$0xff]  ;;  %v9619_v58 = vpop.eup %6502  ;;  %v9644_v42 = vpop.f32.mrf.mxu0 }
 0x2ca   : > { %1917 = vst [vmem:[#allocation2 + $0x2b8] sm:$0xff] %v1853_v23  ;;  %v1743_v0 = vmul.f32 %v9557_v25, %v1742_v9  ;;  %v1518_v23 = vsub.f32 1.0, %v1517_v13  ;;  %v3753_v30 = vsub.f32 %v12900_v24, %v9537_v20  ;;  %vm1522_vm14 = vweird.f32 %v9577_v39  ;;  %v3672_v9 = vpop.xlane.xlu1 %3671 }
 0x2cb   : > { %1950 = vst [vmem:[#allocation2 + $0x3d8] sm:$0xff] %v1886_v46  ;;  %v9602_v46 = vpop.f32.mrf.mxu2  ;;  %3701 = vmax.xlane.f32.xlu2 %v3700_v21  ;;  %v2437_v51 = vsub.f32 %v12904_v27, %v9555_v35  ;;  %v2438_v41 = vsub.f32 %v12905_v33, %v9555_v35  ;;  %v9613_v13 = vpop.xlane.xlu0 %1325  ;;  %v1528_v5 = vor.u32 1.1754944e-38, %v1527_v15  ;;  %v1765_v35 = vand.u32 2147483648, %v9535_v63  ;;  %vm1523_vm0 = vmor %vm1521_vm11, %vm1522_vm14  ;;  %v12907_v33 = vld [vmem:[#allocation23_spill] sm:$0xff] }
 0x2cc   : > { %1951 = vst [vmem:[#allocation2 + $0x4b0] sm:$0xff] %v1887_v12  ;;  %v12903_v12 = vld [vmem:[#allocation76_spill] sm:$0xff]  ;;  %v1744_v24 = vadd.f32 %v9557_v25, %v1743_v0  ;;  %v3837_v48 = vmul.f32 1.442695, %v3753_v30  ;;  %v2384_v0 = vmax.f32 %v9602_v46, %v9604_v45  ;;  %v6505_v27 = vpop.eup %6504  ;;  %vm1759_vm1 = vweird.f32 %v9535_v63 }
 0x2cd   : > { %12901 = vst [vmem:[#allocation72_spill] sm:$0xff] %v9602_v46  ;;  %v3754_v4 = vsub.f32 %v12903_v12, %v9537_v20  ;;  %v9617_v21 = vpop.xlane.xlu2 %1376  ;;  %v1763_v20 = vand.u32 2147483647, %v9535_v63  ;;  %v2521_v30 = vmul.f32 1.442695, %v2437_v51  ;;  %v3940_v12 = vadd.f32 %v9259_v49, %v9255_v16  ;;  %v12909_v51 = vld [vmem:[#allocation22_spill] sm:$0xff] }
 0x2ce   : > { %12902 = vst [vmem:[#allocation67_spill] sm:$0xff] %v9604_v45  ;;  %v1748_v15 = vsel %vm1747_vm15, %v9557_v25, %v1744_v24  ;;  %6506 = vpow2.f32 %v3837_v48  ;;  %2385 = vmax.xlane.f32.xlu1 %v2384_v0  ;;  %v3755_v25 = vsub.f32 %v12907_v33, %v3672_v9  ;;  %v12908_v24 = vld [vmem:[#allocation21_spill] sm:$0xff]  ;;  %v1755_v16 = vmul.f32 %v6505_v27, %v9535_v63 }
 0x2cf   : > { %1918 = vst [vmem:[#allocation2 + $0x580] sm:$0xff] %v1854_v43  ;;  %v1519_v43 = vmul.f32 %v9577_v39, %v1518_v23  ;;  %v1753_v61 = vsel %vm9580_vm10, %v1752_v38, %v1748_v15  ;;  %3941 = vadd.xlane.f32.xlu0 %v3940_v12  ;;  %v9646_v38 = vpop.f32.mrf.mxu1  ;;  %v2624_v48 = vadd.f32 %v9292_v50, %v9280_v26  ;;  %v12913_v15 = vld [vmem:[#allocation79_spill] sm:$0xff]  ;;  %vm1760_vm2 = vweird.f32 %v6505_v27  ;;  %v12933_v26 = vld [vmem:[#allocation26_spill] sm:$0xff] }
 0x2d0   : > { %1919 = vst [vmem:[#allocation2 + $0x590] sm:$0xff] %v1855_v18  ;;  %v3839_v18 = vmul.f32 1.442695, %v3754_v4  ;;  %v2523_v4 = vmul.f32 1.442695, %v2438_v41  ;;  %v1889_v45 = vmul.f32 %v12909_v51, %v1753_v61  ;;  %v12912_v41 = vld [vmem:[#allocation24_spill] sm:$0xff]  ;;  %vm1761_vm4 = vmor %vm1759_vm1, %vm1760_vm2  ;;  %vm1535_vm5 = vweird.f32 %v9613_v13 }
 0x2d1   : > { %12906 = vst [vmem:[#allocation68_spill] sm:$0xff] %v9619_v58  ;;  %v1520_v23 = vadd.f32 %v9577_v39, %v1519_v43  ;;  %v1888_v43 = vmul.f32 %v12908_v24, %v1753_v61  ;;  %v3756_v0 = vsub.f32 %v12912_v41, %v3672_v9  ;;  %v1756_v33 = vsub.f32 1.0, %v1755_v16  ;;  %v9672_v24 = vpop.f32.mrf.mxu3 }
 0x2d2   : > { %12910 = vst [vmem:[#allocation69_spill] sm:$0xff] %v9644_v42  ;;  %6508 = vpow2.f32 %v3839_v18  ;;  %v3841_v12 = vmul.f32 1.442695, %v3755_v25  ;;  %v9656_v3 = vpop.xlane.xlu1 %1328  ;;  %vm9666_vm3 = vcmp.eq.f32.partialorder %v1763_v20, 8.507059e+37  ;;  %v1766_v18 = vor.u32 1.1754944e-38, %v1765_v35 }
 0x2d3   : > { %v1524_v49 = vsel %vm1523_vm0, %v9577_v39, %v1520_v23  ;;  %12911 = vst [vmem:[#allocation70_spill] sm:$0xff] %v9646_v38  ;;  %v12914_v39 = vld [vmem:[#allocation80_spill] sm:$0xff]  ;;  %6510 = vpow2.f32 %v2521_v30  ;;  %2625 = vadd.xlane.f32.xlu2 %v2624_v48  ;;  %v3843_v30 = vmul.f32 1.442695, %v3756_v0  ;;  %v9670_v25 = vpop.f32.mrf.mxu2  ;;  %v1539_v51 = vand.u32 2147483647, %v9613_v13 }
 0x2d4   : > { %v1529_v37 = vsel %vm9596_vm13, %v1528_v5, %v1524_v49  ;;  %1952 = vst [vmem:[#allocation2 + $0x28] sm:$0xff] %v1888_v43  ;;  %6512 = vrcp.f32 %v9613_v13  ;;  %v9658_v49 = vpop.xlane.xlu0 %2355  ;;  %v1757_v5 = vmul.f32 %v6505_v27, %v1756_v33  ;;  %v9664_v16 = vpop.eup %6506  ;;  %v1777_v20 = vand.u32 2147483647, %v9617_v21 }
 0x2d5   : > { %v1856_v61 = vmul.f32 %v12913_v15, %v1529_v37  ;;  %v1857_v23 = vmul.f32 %v12914_v39, %v1529_v37  ;;  %1953 = vst [vmem:[#allocation2 + $0xf8] sm:$0xff] %v1889_v45  ;;  %6514 = vrcp.f32 %v9617_v21  ;;  %v9662_v9 = vpop.xlane.xlu2 %3674  ;;  %v1541_v37 = vand.u32 2147483648, %v9613_v13 }
 0x2d6   : > { %12915 = vst [vmem:[#allocation73_spill] sm:$0xff] %v9664_v16  ;;  %6516 = vpow2.f32 %v2523_v4  ;;  %v1758_v43 = vadd.f32 %v6505_v27, %v1757_v5  ;;  %v1779_v35 = vand.u32 2147483648, %v9617_v21  ;;  %v3943_v4 = vadd.f32 %v9339_v6, %v9321_v1 }
 0x2d7   : > { %1920 = vst [vmem:[#allocation2 + $0x540] sm:$0xff] %v1856_v61  ;;  %6518 = vpow2.f32 %v3841_v12  ;;  %v3703_v41 = vmax.f32 %v9644_v42, %v9646_v38  ;;  %v2387_v61 = vmax.f32 %v9670_v25, %v9672_v24  ;;  %vm1773_vm6 = vweird.f32 %v9617_v21  ;;  %v12923_v12 = vld [vmem:[#allocation27_spill] sm:$0xff] }
 0x2d8   : > { %1921 = vst [vmem:[#allocation2 + $0x3c0] sm:$0xff] %v1857_v23  ;;  %v9676_v48 = vpop.eup %6508  ;;  %v1762_v15 = vsel %vm1761_vm4, %v6505_v27, %v1758_v43  ;;  %6520 = vrcp.f32 %v9656_v3  ;;  %3944 = vadd.xlane.f32.xlu1 %v3943_v4  ;;  %v12922_v23 = vld [vmem:[#allocation25_spill] sm:$0xff]  ;;  %v12924_v43 = vld [vmem:[#allocation30_spill] sm:$0xff]  ;;  %vm9706_vm7 = vcmp.eq.f32.partialorder %v1539_v51, 8.507059e+37  ;;  %vm9718_vm8 = vcmp.eq.f32.partialorder %v1777_v20, 8.507059e+37 }
 0x2d9   : > { %12918 = vst [vmem:[#allocation74_spill] sm:$0xff] %v9670_v25  ;;  %v9687_v0 = vpop.eup %6510  ;;  %v1767_v39 = vsel %vm9666_vm3, %v1766_v18, %v1762_v15  ;;  %6522 = vpow2.f32 %v3843_v30  ;;  %3704 = vmax.xlane.f32.xlu0 %v3703_v41  ;;  %v2439_v27 = vsub.f32 %v12922_v23, %v9658_v49  ;;  %v9710_v18 = vpop.f32.mrf.mxu0  ;;  %v1542_v41 = vor.u32 1.1754944e-38, %v1541_v37  ;;  %v12934_v25 = vld [vmem:[#allocation81_spill] sm:$0xff] }
 0x2da   : > { %12919 = vst [vmem:[#allocation75_spill] sm:$0xff] %v9672_v24  ;;  %v9693_v63 = vpop.eup %6512  ;;  %v1890_v5 = vmul.f32 %v12923_v12, %v1767_v39  ;;  %v1891_v6 = vmul.f32 %v12924_v43, %v1767_v39  ;;  %v9712_v30 = vpop.f32.mrf.mxu1  ;;  %v1780_v39 = vor.u32 1.1754944e-38, %v1779_v35  ;;  %v2440_v37 = vsub.f32 %v12933_v26, %v9658_v49 }
 0x2db   : > { %12920 = vst [vmem:[#allocation76_spill] sm:$0xff] %v9676_v48  ;;  %v9700_v33 = vpop.eup %6514  ;;  %v1531_v1 = vmul.f32 %v9693_v63, %v9613_v13  ;;  %2388 = vmax.xlane.f32.xlu2 %v2387_v61  ;;  %v9722_v51 = vpop.xlane.xlu1 %2358  ;;  %v2525_v24 = vmul.f32 1.442695, %v2439_v27  ;;  %v3757_v20 = vsub.f32 %v12934_v25, %v9662_v9  ;;  %vm1549_vm9 = vweird.f32 %v9656_v3  ;;  %v12935_v61 = vld [vmem:[#allocation83_spill] sm:$0xff]  ;;  %v12937_v13 = vld [vmem:[#allocation85_spill] sm:$0xff] }
 0x2dc   : > { %12921 = vst [vmem:[#allocation77_spill] sm:$0xff] %v9687_v0  ;;  %v9714_v4 = vpop.eup %6516  ;;  %v1769_v15 = vmul.f32 %v9700_v33, %v9617_v21  ;;  %v9724_v12 = vpop.xlane.xlu0 %1379  ;;  %v3758_v42 = vsub.f32 %v12935_v61, %v9662_v9  ;;  %vm1536_vm10 = vweird.f32 %v9693_v63  ;;  %vm1774_vm11 = vweird.f32 %v9700_v33 }
 0x2dd   : > { %12927 = vst [vmem:[#allocation78_spill] sm:$0xff] %v9710_v18  ;;  %v9726_v43 = vpop.eup %6518  ;;  %v1532_v50 = vsub.f32 1.0, %v1531_v1  ;;  %v9732_v38 = vpop.xlane.xlu2 %1331  ;;  %v2527_v26 = vmul.f32 1.442695, %v2440_v37  ;;  %v3845_v27 = vmul.f32 1.442695, %v3757_v20  ;;  %v2627_v9 = vadd.f32 %v9375_v8, %v9351_v55  ;;  %vm1537_vm12 = vmor %vm1535_vm5, %vm1536_vm10 }
 0x2de   : > { %12928 = vst [vmem:[#allocation23_spill] sm:$0xff] %v9712_v30  ;;  %v1770_v35 = vsub.f32 1.0, %v1769_v15  ;;  %v6521_v1 = vpop.eup %6520  ;;  %v1553_v61 = vand.u32 2147483647, %v9656_v3  ;;  %6524 = vpow2.f32 %v2525_v24  ;;  %v9753_v37 = vpop.f32.mrf.mxu3  ;;  %vm1775_vm13 = vmor %vm1773_vm6, %vm1774_vm11  ;;  %v2441_v24 = vsub.f32 %v12937_v13, %v9722_v51  ;;  %v12940_v13 = vld [vmem:[#allocation86_spill] sm:$0xff] }
 0x2df   : > { %12929 = vst [vmem:[#allocation21_spill] sm:$0xff] %v9714_v4  ;;  %v1533_v46 = vmul.f32 %v9693_v63, %v1532_v50  ;;  %v9742_v49 = vpop.eup %6522  ;;  %v1545_v25 = vmul.f32 %v6521_v1, %v9656_v3  ;;  %v1555_v50 = vand.u32 2147483648, %v9656_v3  ;;  %vm1550_vm14 = vweird.f32 %v6521_v1 }
 0x2e0   : > { %12932 = vst [vmem:[#allocation22_spill] sm:$0xff] %v9726_v43  ;;  %6526 = vpow2.f32 %v2527_v26  ;;  %v2442_v45 = vsub.f32 %v12940_v13, %v9722_v51  ;;  %vm1551_vm15 = vmor %vm1549_vm9, %vm1550_vm14  ;;  %vm1554_vm0 = vcmp.eq.f32.partialorder %v1553_v61, 8.507059e+37  ;;  %v2529_v51 = vmul.f32 1.442695, %v2441_v24  ;;  %v12948_v24 = vld [vmem:[#allocation82_spill] sm:$0xff] }
 0x2e1   : > { %1954 = vst [vmem:[#allocation2 + $0x4e8] sm:$0xff] %v1890_v5  ;;  %v3706_v5 = vmax.f32 %v9710_v18, %v9712_v30  ;;  %v1534_v15 = vadd.f32 %v9693_v63, %v1533_v46  ;;  %v9751_v30 = vpop.f32.mrf.mxu2  ;;  %v1546_v20 = vsub.f32 1.0, %v1545_v25  ;;  %v3847_v18 = vmul.f32 1.442695, %v3758_v42  ;;  %2628 = vadd.xlane.f32.xlu0 %v2627_v9  ;;  %v12938_v9 = vld [vmem:[#allocation31_spill] sm:$0xff] }
 0x2e2   : > { %1955 = vst [vmem:[#allocation2 + $0x120] sm:$0xff] %v1891_v6  ;;  %v1771_v6 = vmul.f32 %v9700_v33, %v1770_v35  ;;  %v3946_v46 = vadd.f32 %v9412_v56, %v9404_v52  ;;  %6528 = vpow2.f32 %v3845_v27  ;;  %v12942_v27 = vld [vmem:[#allocation33_spill] sm:$0xff]  ;;  %v1556_v23 = vor.u32 1.1754944e-38, %v1555_v50 }
 0x2e3   : > { %12936 = vst [vmem:[#allocation24_spill] sm:$0xff] %v9742_v49  ;;  %3707 = vmax.xlane.f32.xlu1 %v3706_v5  ;;  %v1538_v8 = vsel %vm1537_vm12, %v9693_v63, %v1534_v15  ;;  %v9770_v25 = vpop.xlane.xlu1 %1382  ;;  %v12939_v15 = vld [vmem:[#allocation28_spill] sm:$0xff]  ;;  %6530 = vpow2.f32 %v3847_v18  ;;  %v1791_v3 = vand.u32 2147483647, %v9724_v12  ;;  %v2630_v50 = vadd.f32 %v9436_v10, %v9425_v60 }
 0x2e4   : > { %v1772_v35 = vadd.f32 %v9700_v33, %v1771_v6  ;;  %v1543_v42 = vsel %vm9706_vm7, %v1542_v41, %v1538_v8  ;;  %v1547_v6 = vmul.f32 %v6521_v1, %v1546_v20  ;;  %3947 = vadd.xlane.f32.xlu2 %v3946_v46  ;;  %v9772_v63 = vpop.xlane.xlu0 %3677  ;;  %v9784_v46 = vpop.eup %6524  ;;  %6532 = vrcp.f32 %v9724_v12 }
 0x2e5   : > { %v1858_v21 = vmul.f32 %v12938_v9, %v1543_v42  ;;  %v1859_v56 = vmul.f32 %v12939_v15, %v1543_v42  ;;  %v9780_v8 = vpop.xlane.xlu2 %2361  ;;  %12943 = vst [vmem:[#allocation79_spill] sm:$0xff] %v9784_v46  ;;  %6534 = vrcp.f32 %v9732_v38  ;;  %v9791_v42 = vpop.f32.mrf.mxu0  ;;  %v2531_v9 = vmul.f32 1.442695, %v2442_v45 }
 0x2e6   : > { %v1776_v5 = vsel %vm1775_vm13, %v9700_v33, %v1772_v35  ;;  %v12941_v33 = vld [vmem:[#allocation29_spill] sm:$0xff]  ;;  %v1548_v20 = vadd.f32 %v6521_v1, %v1547_v6  ;;  %v9795_v18 = vpop.eup %6526  ;;  %v1793_v15 = vand.u32 2147483648, %v9724_v12  ;;  %v1569_v13 = vand.u32 2147483648, %v9732_v38 }
 0x2e7   : > { %v1781_v26 = vsel %vm9718_vm8, %v1780_v39, %v1776_v5  ;;  %1922 = vst [vmem:[#allocation2 + $0x330] sm:$0xff] %v1858_v21  ;;  %v9793_v5 = vpop.f32.mrf.mxu1  ;;  %v2390_v45 = vmax.f32 %v9751_v30, %v9753_v37  ;;  %6536 = vrcp.f32 %v9770_v25  ;;  %vm1787_vm1 = vweird.f32 %v9724_v12 }
 0x2e8   : > { %v1892_v41 = vmul.f32 %v12941_v33, %v1781_v26  ;;  %v1893_v35 = vmul.f32 %v12942_v27, %v1781_v26  ;;  %1923 = vst [vmem:[#allocation2 + $0x100] sm:$0xff] %v1859_v56  ;;  %v1552_v39 = vsel %vm1551_vm15, %v6521_v1, %v1548_v20  ;;  %v9800_v56 = vpop.eup %6528  ;;  %v12947_v1 = vld [vmem:[#allocation32_spill] sm:$0xff]  ;;  %v1567_v26 = vand.u32 2147483647, %v9732_v38  ;;  %v9814_v27 = vpop.f32.mrf.mxu3 }
 0x2e9   : > { %12944 = vst [vmem:[#allocation80_spill] sm:$0xff] %v9793_v5  ;;  %v1557_v6 = vsel %vm1554_vm0, %v1556_v23, %v1552_v39  ;;  %v3709_v33 = vmax.f32 %v9791_v42, %v9793_v5  ;;  %6538 = vpow2.f32 %v2529_v51  ;;  %v3759_v20 = vsub.f32 %v8753_v47, %v9772_v63  ;;  %2391 = vmax.xlane.f32.xlu0 %v2390_v45 }
 0x2ea   : > { %12945 = vst [vmem:[#allocation25_spill] sm:$0xff] %v9795_v18  ;;  %v1860_v61 = vmul.f32 %v12947_v1, %v1557_v6  ;;  %v1861_v21 = vmul.f32 %v12948_v24, %v1557_v6  ;;  %v3760_v23 = vsub.f32 %v8755_v57, %v9772_v63  ;;  %6540 = vpow2.f32 %v2531_v9  ;;  %v12964_v63 = vld [vmem:[#allocation88_spill] sm:$0xff] }
 0x2eb   : > { %1956 = vst [vmem:[#allocation2 + $0x2f8] sm:$0xff] %v1892_v41  ;;  %2631 = vadd.xlane.f32.xlu1 %v2630_v50  ;;  %v9812_v41 = vpop.f32.mrf.mxu2  ;;  %v9822_v39 = vpop.xlane.xlu1 %3680  ;;  %vm1563_vm2 = vweird.f32 %v9732_v38  ;;  %v2443_v51 = vsub.f32 %v8768_v31, %v9780_v8  ;;  %vm9833_vm3 = vcmp.eq.f32.partialorder %v1791_v3, 8.507059e+37  ;;  %v2444_v9 = vsub.f32 %v8770_v62, %v9780_v8 }
 0x2ec   : > { %12946 = vst [vmem:[#allocation27_spill] sm:$0xff] %v9800_v56  ;;  %v9824_v6 = vpop.xlane.xlu0 %1334  ;;  %3710 = vmax.xlane.f32.xlu2 %v3709_v33  ;;  %vm9840_vm4 = vcmp.eq.f32.partialorder %v1567_v26, 8.507059e+37  ;;  %v1570_v31 = vor.u32 1.1754944e-38, %v1569_v13  ;;  %v3849_v45 = vmul.f32 1.442695, %v3759_v20  ;;  %v2393_v33 = vmax.f32 %v9812_v41, %v9814_v27 }
 0x2ed   : > { %1957 = vst [vmem:[#allocation2 + $0x268] sm:$0xff] %v1893_v35  ;;  %v9816_v35 = vpop.eup %6530  ;;  %v9830_v47 = vpop.xlane.xlu2 %1385  ;;  %vm1801_vm5 = vweird.f32 %v9770_v25  ;;  %v1805_v3 = vand.u32 2147483647, %v9770_v25  ;;  %v2533_v8 = vmul.f32 1.442695, %v2443_v51  ;;  %v3761_v51 = vsub.f32 %v8832_v22, %v9822_v39 }
 0x2ee   : > { %12949 = vst [vmem:[#allocation30_spill] sm:$0xff] %v9812_v41  ;;  %v6533_v50 = vpop.eup %6532  ;;  %v2535_v20 = vmul.f32 1.442695, %v2444_v9  ;;  %6542 = vpow2.f32 %v3849_v45  ;;  %v1807_v5 = vand.u32 2147483648, %v9770_v25  ;;  %v1819_v22 = vand.u32 2147483647, %v9830_v47 }
 0x2ef   : > { %12950 = vst [vmem:[#allocation26_spill] sm:$0xff] %v9814_v27  ;;  %v6535_v1 = vpop.eup %6534  ;;  %v1783_v57 = vmul.f32 %v6533_v50, %v9724_v12  ;;  %vm1788_vm6 = vweird.f32 %v6533_v50  ;;  %vm9875_vm10 = vcmp.eq.f32.partialorder %v1805_v3, 8.507059e+37  ;;  %vm1577_vm13 = vweird.f32 %v9824_v6 }
 0x2f0   : > { %12951 = vst [vmem:[#allocation81_spill] sm:$0xff] %v9816_v35  ;;  %v1559_v24 = vmul.f32 %v6535_v1, %v9732_v38  ;;  %v9848_v60 = vpop.eup %6536  ;;  %vm1564_vm7 = vweird.f32 %v6535_v1  ;;  %vm1789_vm8 = vmor %vm1787_vm1, %vm1788_vm6  ;;  %vm1815_vm15 = vweird.f32 %v9830_v47  ;;  %vm9954_vm1 = vcmp.eq.f32.partialorder %v1819_v22, 8.507059e+37 }
 0x2f1   : > { %1924 = vst [vmem:[#allocation2 + $0x8] sm:$0xff] %v1860_v61  ;;  %v1794_v61 = vor.u32 1.1754944e-38, %v1793_v15  ;;  %v1784_v10 = vsub.f32 1.0, %v1783_v57  ;;  %v3851_v15 = vmul.f32 1.442695, %v3760_v23  ;;  %v9850_v26 = vpop.eup %6538  ;;  %v1797_v13 = vmul.f32 %v9848_v60, %v9770_v25  ;;  %vm1565_vm11 = vmor %vm1563_vm2, %vm1564_vm7 }
 0x2f2   : > { %1925 = vst [vmem:[#allocation2 + $0x188] sm:$0xff] %v1861_v21  ;;  %v1560_v62 = vsub.f32 1.0, %v1559_v24  ;;  %v3949_v57 = vadd.f32 %v9454_v32, %v9447_v28  ;;  %v9856_v27 = vpop.eup %6540  ;;  %v2633_v23 = vadd.f32 %v9521_v19, %v9514_v34  ;;  %v9862_v24 = vpop.f32.mrf.mxu0  ;;  %vm1802_vm9 = vweird.f32 %v9848_v60 }
 0x2f3   : > { %12956 = vst [vmem:[#allocation83_spill] sm:$0xff] %v9850_v26  ;;  %v1785_v52 = vmul.f32 %v6533_v50, %v1784_v10  ;;  %2394 = vmax.xlane.f32.xlu1 %v2393_v33  ;;  %v9864_v10 = vpop.f32.mrf.mxu1  ;;  %v1798_v9 = vsub.f32 1.0, %v1797_v13  ;;  %6544 = vpow2.f32 %v3851_v15  ;;  %v9867_v32 = vpop.xlane.xlu1 %1337  ;;  %v12960_v13 = vld [vmem:[#allocation84_spill] sm:$0xff]  ;;  %vm1803_vm12 = vmor %vm1801_vm5, %vm1802_vm9 }
 0x2f4   : > { %12957 = vst [vmem:[#allocation85_spill] sm:$0xff] %v9856_v27  ;;  %v1561_v41 = vmul.f32 %v6535_v1, %v1560_v62  ;;  %v9869_v62 = vpop.xlane.xlu0 %2364  ;;  %6546 = vpow2.f32 %v2533_v8  ;;  %3950 = vadd.xlane.f32.xlu0 %v3949_v57  ;;  %2634 = vadd.xlane.f32.xlu2 %v2633_v23  ;;  %v3853_v8 = vmul.f32 1.442695, %v3761_v51  ;;  %v1808_v51 = vor.u32 1.1754944e-38, %v1807_v5 }
 0x2f5   : > { %v1786_v55 = vadd.f32 %v6533_v50, %v1785_v52  ;;  %v9879_v52 = vpop.xlane.xlu2 %3683  ;;  %v1799_v12 = vmul.f32 %v9848_v60, %v1798_v9  ;;  %6548 = vrcp.f32 %v9824_v6  ;;  %v9895_v9 = vpop.f32.mrf.mxu2  ;;  %v3952_v5 = vadd.f32 %v9565_v54, %v9539_v29 }
 0x2f6   : > { %v1562_v45 = vadd.f32 %v6535_v1, %v1561_v41  ;;  %v3762_v41 = vsub.f32 %v8834_v44, %v9822_v39  ;;  %6550 = vpow2.f32 %v2535_v20  ;;  %v9897_v44 = vpop.f32.mrf.mxu3  ;;  %v9899_v39 = vpop.eup %6542  ;;  %vm1591_vm2 = vweird.f32 %v9867_v32 }
 0x2f7   : > { %v1790_v33 = vsel %vm1789_vm8, %v6533_v50, %v1786_v55  ;;  %v12961_v55 = vld [vmem:[#allocation87_spill] sm:$0xff]  ;;  %v1800_v23 = vadd.f32 %v9848_v60, %v1799_v12  ;;  %12962 = vst [vmem:[#allocation31_spill] sm:$0xff] %v9897_v44  ;;  %6552 = vrcp.f32 %v9830_v47  ;;  %v1583_v12 = vand.u32 2147483648, %v9824_v6 }
 0x2f8   : > { %v1795_v3 = vsel %vm9833_vm3, %v1794_v61, %v1790_v33  ;;  %v1566_v15 = vsel %vm1565_vm11, %v6535_v1, %v1562_v45  ;;  %12963 = vst [vmem:[#allocation28_spill] sm:$0xff] %v9899_v39  ;;  %v12965_v1 = vld [vmem:[#allocation89_spill] sm:$0xff]  ;;  %v3855_v45 = vmul.f32 1.442695, %v3762_v41  ;;  %v1581_v33 = vand.u32 2147483647, %v9824_v6 }
 0x2f9   : > { %v1894_v57 = vmul.f32 %v12960_v13, %v1795_v3  ;;  %v1895_v50 = vmul.f32 %v12961_v55, %v1795_v3  ;;  %v1571_v38 = vsel %vm9840_vm4, %v1570_v31, %v1566_v15  ;;  %v9908_v21 = vpop.eup %6544  ;;  %v1804_v31 = vsel %vm1803_vm12, %v9848_v60, %v1800_v23  ;;  %v12968_v13 = vld [vmem:[#allocation90_spill] sm:$0xff] }
 0x2fa   : > { %v1862_v61 = vmul.f32 %v12964_v63, %v1571_v38  ;;  %v1863_v20 = vmul.f32 %v12965_v1, %v1571_v38  ;;  %12966 = vst [vmem:[#allocation86_spill] sm:$0xff] %v9908_v21  ;;  %v9913_v3 = vpop.eup %6546  ;;  %v1809_v25 = vsel %vm9875_vm10, %v1808_v51, %v1804_v31  ;;  %v3712_v15 = vmax.f32 %v9862_v24, %v9864_v10  ;;  %v12969_v55 = vld [vmem:[#allocation34_spill] sm:$0xff] }
 0x2fb   : > { %1958 = vst [vmem:[#allocation2 + $0x560] sm:$0xff] %v1894_v57  ;;  %v2396_v60 = vmax.f32 %v9895_v9, %v9897_v44  ;;  %v9923_v41 = vpop.eup %6548  ;;  %v1896_v57 = vmul.f32 %v12968_v13, %v1809_v25  ;;  %v1897_v38 = vmul.f32 %v12969_v55, %v1809_v25  ;;  %6554 = vpow2.f32 %v3853_v8  ;;  %3953 = vadd.xlane.f32.xlu1 %v3952_v5  ;;  %v9945_v31 = vpop.f32.mrf.mxu1 }
 0x2fc   : > { %12967 = vst [vmem:[#allocation29_spill] sm:$0xff] %v9913_v3  ;;  %v9930_v23 = vpop.xlane.xlu0 %1388  ;;  %v9932_v63 = vpop.eup %6550  ;;  %v1573_v1 = vmul.f32 %v9923_v41, %v9824_v6  ;;  %3713 = vmax.xlane.f32.xlu0 %v3712_v15  ;;  %6556 = vrcp.f32 %v9867_v32  ;;  %v1821_v8 = vand.u32 2147483648, %v9830_v47  ;;  %v2445_v51 = vsub.f32 %v8845_v17, %v9869_v62 }
 0x2fd   : > { %1959 = vst [vmem:[#allocation2 + $0x4f8] sm:$0xff] %v1895_v50  ;;  %v9928_v50 = vpop.xlane.xlu1 %2367  ;;  %6558 = vpow2.f32 %v3855_v45  ;;  %2397 = vmax.xlane.f32.xlu2 %v2396_v60  ;;  %v6553_v25 = vpop.eup %6552  ;;  %vm9947_vm14 = vcmp.eq.f32.partialorder %v1581_v33, 8.507059e+37  ;;  %v1584_v45 = vor.u32 1.1754944e-38, %v1583_v12  ;;  %vm1578_vm0 = vweird.f32 %v9923_v41 }
 0x2fe   : > { %1926 = vst [vmem:[#allocation2 + $0x248] sm:$0xff] %v1862_v61  ;;  %v9937_v61 = vpop.xlane.xlu2 %1340  ;;  %v1574_v5 = vsub.f32 1.0, %v1573_v1  ;;  %v1811_v60 = vmul.f32 %v6553_v25, %v9830_v47  ;;  %v2446_v13 = vsub.f32 %v8861_v40, %v9869_v62  ;;  %v1595_v33 = vand.u32 2147483647, %v9867_v32  ;;  %vm9983_vm4 = vmor %vm1577_vm13, %vm1578_vm0 }
 0x2ff   : > { %12970 = vst [vmem:[#allocation33_spill] sm:$0xff] %v9932_v63  ;;  %v3763_v12 = vsub.f32 %v8899_v36, %v9879_v52  ;;  %v1822_v22 = vor.u32 1.1754944e-38, %v1821_v8  ;;  %v2537_v54 = vmul.f32 1.442695, %v2445_v51  ;;  %vm1816_vm3 = vweird.f32 %v6553_v25 }
 0x300   : > { %1927 = vst [vmem:[#allocation2 + $0xc8] sm:$0xff] %v1863_v20  ;;  %v9943_v20 = vpop.f32.mrf.mxu0  ;;  %v1812_v1 = vsub.f32 1.0, %v1811_v60  ;;  %v1597_v62 = vand.u32 2147483648, %v9867_v32  ;;  %v2636_v36 = vadd.f32 %v9619_v58, %v9585_v59  ;;  %v3955_v58 = vadd.f32 %v9676_v48, %v9664_v16  ;;  %vm1817_vm6 = vmor %vm1815_vm15, %vm1816_vm3 }
 0x301   : > { %1960 = vst [vmem:[#allocation2 + $0x2e8] sm:$0xff] %v1896_v57  ;;  %v1575_v57 = vmul.f32 %v9923_v41, %v1574_v5  ;;  %v3715_v55 = vmax.f32 %v9943_v20, %v9945_v31  ;;  %v9975_v5 = vpop.f32.mrf.mxu2  ;;  %vm9998_vm5 = vcmp.eq.f32.partialorder %v1595_v33, 8.507059e+37  ;;  %6560 = vpow2.f32 %v2537_v54 }
 0x302   : > { %12971 = vst [vmem:[#allocation32_spill] sm:$0xff] %v9943_v20  ;;  %v1813_v51 = vmul.f32 %v6553_v25, %v1812_v1  ;;  %v3764_v1 = vsub.f32 %v8901_v14, %v9879_v52  ;;  %v2447_v14 = vsub.f32 %v8929_v11, %v9928_v50  ;;  %v2448_v52 = vsub.f32 %v8951_v53, %v9928_v50  ;;  %v12985_v53 = vld [vmem:[#allocation91_spill] sm:$0xff] }
 0x303   : > { %12972 = vst [vmem:[#allocation82_spill] sm:$0xff] %v9945_v31  ;;  %v1576_v40 = vadd.f32 %v9923_v41, %v1575_v57  ;;  %v2539_v57 = vmul.f32 1.442695, %v2446_v13  ;;  %v3857_v31 = vmul.f32 1.442695, %v3763_v12  ;;  %3716 = vmax.xlane.f32.xlu1 %v3715_v55  ;;  %v10004_v13 = vpop.f32.mrf.mxu3  ;;  %v1598_v54 = vor.u32 1.1754944e-38, %v1597_v62  ;;  %v10026_v11 = vpop.f32.mrf.mxu1 }
 0x304   : > { %1961 = vst [vmem:[#allocation2 + $0x370] sm:$0xff] %v1897_v38  ;;  %v9966_v38 = vpop.eup %6554  ;;  %v9993_v34 = vpop.xlane.xlu0 %3686  ;;  %2637 = vadd.xlane.f32.xlu0 %v2636_v36  ;;  %v1814_v20 = vadd.f32 %v6553_v25, %v1813_v51  ;;  %v2541_v17 = vmul.f32 1.442695, %v2447_v14  ;;  %v2543_v55 = vmul.f32 1.442695, %v2448_v52  ;;  %v2639_v36 = vadd.f32 %v9714_v4, %v9687_v0 }
 0x305   : > { %12977 = vst [vmem:[#allocation84_spill] sm:$0xff] %v9966_v38  ;;  %v9969_v29 = vpop.eup %6556  ;;  %v9991_v59 = vpop.xlane.xlu1 %3926  ;;  %v1580_v6 = vsel %vm9983_vm4, %v9923_v41, %v1576_v40  ;;  %3956 = vadd.xlane.f32.xlu2 %v3955_v58  ;;  %v12983_v41 = vld [vmem:[#allocation35_spill] sm:$0xff]  ;;  %v12984_v40 = vld [vmem:[#allocation36_spill] sm:$0xff]  ;;  %6562 = vpow2.f32 %v2539_v57  ;;  %v1609_v52 = vand.u32 2147483647, %v9937_v61  ;;  %vm1829_vm9 = vweird.f32 %v9930_v23 }
 0x306   : > { %v9977_v19 = vpop.eup %6558  ;;  %v1587_v60 = vmul.f32 %v9969_v29, %v9867_v32  ;;  %v10006_v48 = vpop.xlane.xlu2 %2370  ;;  %v1585_v16 = vsel %vm9947_vm14, %v1584_v45, %v1580_v6  ;;  %v1818_v15 = vsel %vm1817_vm6, %v6553_v25, %v1814_v20  ;;  %vm1592_vm7 = vweird.f32 %v9969_v29  ;;  %v12986_v20 = vld [vmem:[#allocation92_spill] sm:$0xff] }
 0x307   : > { %12978 = vst [vmem:[#allocation87_spill] sm:$0xff] %v9977_v19  ;;  %v1864_v33 = vmul.f32 %v12983_v41, %v1585_v16  ;;  %v1865_v44 = vmul.f32 %v12984_v40, %v1585_v16  ;;  %v1823_v58 = vsel %vm9954_vm1, %v1822_v22, %v1818_v15  ;;  %v3859_v16 = vmul.f32 1.442695, %v3764_v1  ;;  %vm1593_vm8 = vmor %vm1591_vm2, %vm1592_vm7  ;;  %v10035_v62 = vpop.eup %6560  ;;  %v12989_v41 = vld [vmem:[#allocation93_spill] sm:$0xff]  ;;  %v12990_v40 = vld [vmem:[#allocation94_spill] sm:$0xff] }
 0x308   : > { %v1588_v8 = vsub.f32 1.0, %v1587_v60  ;;  %6564 = vrcp.f32 %v9930_v23  ;;  %v10024_v47 = vpop.f32.mrf.mxu0  ;;  %v1898_v50 = vmul.f32 %v12985_v53, %v1823_v58  ;;  %v1899_v25 = vmul.f32 %v12986_v20, %v1823_v58  ;;  %12987 = vst [vmem:[#allocation88_spill] sm:$0xff] %v10035_v62 }
 0x309   : > { %1928 = vst [vmem:[#allocation2 + $0x388] sm:$0xff] %v1864_v33  ;;  %6566 = vpow2.f32 %v3857_v31  ;;  %v1833_v22 = vand.u32 2147483647, %v9930_v23  ;;  %v2399_v31 = vmax.f32 %v9975_v5, %v10004_v13  ;;  %v3718_v32 = vmax.f32 %v10024_v47, %v10026_v11 }
 0x30a   : > { %v1589_v45 = vmul.f32 %v9969_v29, %v1588_v8  ;;  %1929 = vst [vmem:[#allocation2 + $0x520] sm:$0xff] %v1865_v44  ;;  %6568 = vrcp.f32 %v9937_v61  ;;  %v1835_v6 = vand.u32 2147483648, %v9930_v23  ;;  %v3765_v15 = vsub.f32 %v9029_v7, %v9993_v34 }
 0x30b   : > { %1962 = vst [vmem:[#allocation2 + $0x138] sm:$0xff] %v1898_v50  ;;  %6570 = vrcp.f32 %v9991_v59  ;;  %v10055_v8 = vpop.eup %6562  ;;  %2640 = vadd.xlane.f32.xlu1 %v2639_v36  ;;  %v10067_v58 = vpop.f32.mrf.mxu3  ;;  %vm1605_vm10 = vweird.f32 %v9937_v61  ;;  %v4030_v53 = vand.u32 2147483647, %v9991_v59  ;;  %vm10075_vm11 = vcmp.eq.f32.partialorder %v1833_v22, 8.507059e+37  ;;  %v12997_v36 = vld [vmem:[#allocation106_spill] sm:$0xff] }
 0x30c   : > { %v1590_v12 = vadd.f32 %v9969_v29, %v1589_v45  ;;  %v10046_v60 = vpop.xlane.xlu0 %2610  ;;  %1963 = vst [vmem:[#allocation2 + $0x308] sm:$0xff] %v1899_v25  ;;  %6572 = vpow2.f32 %v3859_v16  ;;  %2400 = vmax.xlane.f32.xlu0 %v2399_v31  ;;  %v10065_v45 = vpop.f32.mrf.mxu2  ;;  %v1836_v7 = vor.u32 1.1754944e-38, %v1835_v6  ;;  %vm10082_vm12 = vcmp.eq.f32.partialorder %v1609_v52, 8.507059e+37 }
 0x30d   : > { %v10044_v51 = vpop.xlane.xlu1 %3689  ;;  %12988 = vst [vmem:[#allocation89_spill] sm:$0xff] %v10055_v8  ;;  %6574 = vpow2.f32 %v2541_v17  ;;  %3719 = vmax.xlane.f32.xlu2 %v3718_v32  ;;  %v2449_v31 = vsub.f32 %v12997_v36, %v10006_v48  ;;  %v2402_v22 = vmax.f32 %v10065_v45, %v10067_v58  ;;  %vm4026_vm14 = vweird.f32 %v9991_v59 }
 0x30e   : > { %v1594_v44 = vsel %vm1593_vm8, %v9969_v29, %v1590_v12  ;;  %v1611_v29 = vand.u32 2147483648, %v9937_v61  ;;  %v10053_v1 = vpop.xlane.xlu2 %3929  ;;  %v10060_v28 = vpop.eup %6564  ;;  %12991 = vst [vmem:[#allocation90_spill] sm:$0xff] %v10067_v58  ;;  %6576 = vpow2.f32 %v2543_v55  ;;  %v3766_v12 = vsub.f32 %v9031_v2, %v9993_v34 }
 0x30f   : > { %v1599_v57 = vsel %vm9998_vm5, %v1598_v54, %v1594_v44  ;;  %v10069_v54 = vpop.eup %6566  ;;  %v1825_v16 = vmul.f32 %v10060_v28, %v9930_v23  ;;  %vm1830_vm13 = vweird.f32 %v10060_v28  ;;  %v4032_v2 = vand.u32 2147483648, %v9991_v59  ;;  %v10119_v58 = vpop.f32.mrf.mxu1 }
 0x310   : > { %v1866_v33 = vmul.f32 %v12989_v41, %v1599_v57  ;;  %v1867_v14 = vmul.f32 %v12990_v40, %v1599_v57  ;;  %12992 = vst [vmem:[#allocation34_spill] sm:$0xff] %v10069_v54  ;;  %v6569_v50 = vpop.eup %6568  ;;  %v1612_v25 = vor.u32 1.1754944e-38, %v1611_v29  ;;  %v3861_v34 = vmul.f32 1.442695, %v3765_v15  ;;  %v10114_v36 = vpop.f32.mrf.mxu0  ;;  %vm1831_vm1 = vmor %vm1829_vm9, %vm1830_vm13 }
 0x311   : > { %v1826_v17 = vsub.f32 1.0, %v1825_v16  ;;  %v1601_v55 = vmul.f32 %v6569_v50, %v9937_v61  ;;  %v10090_v32 = vpop.eup %6570  ;;  %vm10100_vm15 = vcmp.eq.f32.partialorder %v4030_v53, 8.507059e+37  ;;  %v3958_v40 = vadd.f32 %v9742_v49, %v9726_v43  ;;  %v13001_v16 = vld [vmem:[#allocation107_spill] sm:$0xff]  ;;  %13002 = vst [vmem:[#allocation36_spill] sm:$0xff] %v10114_v36 }
 0x312   : > { %1930 = vst [vmem:[#allocation2 + $0x3a8] sm:$0xff] %v1866_v33  ;;  %v10095_v57 = vpop.eup %6572  ;;  %v4022_v41 = vmul.f32 %v10090_v32, %v9991_v59  ;;  %vm1606_vm0 = vweird.f32 %v6569_v50  ;;  %v3863_v15 = vmul.f32 1.442695, %v3766_v12  ;;  %v2545_v43 = vmul.f32 1.442695, %v2449_v31  ;;  %v13005_v31 = vld [vmem:[#allocation114_spill] sm:$0xff] }
 0x313   : > { %1931 = vst [vmem:[#allocation2 + $0x5e0] sm:$0xff] %v1867_v14  ;;  %v1827_v6 = vmul.f32 %v10060_v28, %v1826_v17  ;;  %v1602_v29 = vsub.f32 1.0, %v1601_v55  ;;  %v10108_v52 = vpop.eup %6574  ;;  %v2450_v17 = vsub.f32 %v13001_v16, %v10006_v48  ;;  %v2642_v55 = vadd.f32 %v9795_v18, %v9784_v46  ;;  %2403 = vmax.xlane.f32.xlu1 %v2402_v22  ;;  %v13004_v48 = vld [vmem:[#allocation113_spill] sm:$0xff]  ;;  %vm1607_vm3 = vmor %vm1605_vm10, %vm1606_vm0 }
 0x314   : > { %12998 = vst [vmem:[#allocation35_spill] sm:$0xff] %v10095_v57  ;;  %v10116_v53 = vpop.eup %6576  ;;  %v4023_v49 = vsub.f32 1.0, %v4022_v41  ;;  %3959 = vadd.xlane.f32.xlu0 %v3958_v40  ;;  %v10121_v12 = vpop.xlane.xlu0 %2373  ;;  %vm4027_vm2 = vweird.f32 %v10090_v32  ;;  %6578 = vpow2.f32 %v3861_v34  ;;  %v3768_v22 = vsub.f32 %v13005_v31, %v10044_v51  ;;  %v13007_v31 = vld [vmem:[#allocation96_spill] sm:$0xff] }
 0x315   : > { %v10106_v14 = vpop.xlane.xlu1 %2613  ;;  %v1828_v4 = vadd.f32 %v10060_v28, %v1827_v6  ;;  %v1603_v0 = vmul.f32 %v6569_v50, %v1602_v29  ;;  %13003 = vst [vmem:[#allocation91_spill] sm:$0xff] %v10119_v58  ;;  %2643 = vadd.xlane.f32.xlu2 %v2642_v55  ;;  %v3767_v6 = vsub.f32 %v13004_v48, %v10044_v51  ;;  %6580 = vrcp.f32 %v10046_v60  ;;  %v13006_v51 = vld [vmem:[#allocation95_spill] sm:$0xff]  ;;  %vm4028_vm4 = vmor %vm4026_vm14, %vm4027_vm2  ;;  %v10151_v20 = vpop.f32.mrf.mxu2 }
 0x316   : > { %v10132_v29 = vpop.xlane.xlu2 %3692  ;;  %v4024_v16 = vmul.f32 %v10090_v32, %v4023_v49  ;;  %v4033_v34 = vor.u32 1.1754944e-38, %v4032_v2  ;;  %6582 = vpow2.f32 %v3863_v15  ;;  %v2547_v55 = vmul.f32 1.442695, %v2450_v17  ;;  %13008 = vst [vmem:[#allocation92_spill] sm:$0xff] %v10151_v20  ;;  %v13010_v2 = vld [vmem:[#allocation97_spill] sm:$0xff]  ;;  %v13011_v15 = vld [vmem:[#allocation98_spill] sm:$0xff] }
 0x317   : > { %v1832_v41 = vsel %vm1831_vm1, %v10060_v28, %v1828_v4  ;;  %v1604_v40 = vadd.f32 %v6569_v50, %v1603_v0  ;;  %6584 = vpow2.f32 %v2545_v43  ;;  %v3865_v61 = vmul.f32 1.442695, %v3767_v6 }
 0x318   : > { %v1837_v23 = vsel %vm10075_vm11, %v1836_v7, %v1832_v41  ;;  %v4025_v0 = vadd.f32 %v10090_v32, %v4024_v16  ;;  %v3867_v28 = vmul.f32 1.442695, %v3768_v22  ;;  %v10153_v7 = vpop.f32.mrf.mxu3  ;;  %6586 = vrcp.f32 %v10053_v1 }
 0x319   : > { %v1900_v48 = vmul.f32 %v13006_v51, %v1837_v23  ;;  %v1901_v18 = vmul.f32 %v13007_v31, %v1837_v23  ;;  %v1608_v4 = vsel %vm1607_vm3, %v6569_v50, %v1604_v40  ;;  %13009 = vst [vmem:[#allocation93_spill] sm:$0xff] %v10153_v7  ;;  %v2714_v6 = vand.u32 2147483647, %v10046_v60  ;;  %v13013_v23 = vld [vmem:[#allocation100_spill] sm:$0xff]  ;;  %v10181_v31 = vpop.f32.mrf.mxu0 }
 0x31a   : > { %v1613_v49 = vsel %vm10082_vm12, %v1612_v25, %v1608_v4  ;;  %v4029_v44 = vsel %vm4028_vm4, %v10090_v32, %v4025_v0  ;;  %v10161_v59 = vpop.eup %6578  ;;  %v2716_v22 = vand.u32 2147483648, %v10046_v60  ;;  %v3961_v41 = vadd.f32 %v9816_v35, %v9800_v56  ;;  %v13012_v32 = vld [vmem:[#allocation99_spill] sm:$0xff]  ;;  %13015 = vst [vmem:[#allocation106_spill] sm:$0xff] %v10181_v31 }
 0x31b   : > { %1964 = vst [vmem:[#allocation2 + $0x528] sm:$0xff] %v1900_v48  ;;  %v1868_v50 = vmul.f32 %v13010_v2, %v1613_v49  ;;  %v1869_v17 = vmul.f32 %v13011_v15, %v1613_v49  ;;  %v4034_v43 = vsel %vm10100_vm15, %v4033_v34, %v4029_v44  ;;  %v10169_v40 = vpop.eup %6580  ;;  %v2405_v33 = vmax.f32 %v10151_v20, %v10153_v7  ;;  %v10186_v49 = vpop.f32.mrf.mxu1  ;;  %v13029_v7 = vld [vmem:[#allocation37_spill] sm:$0xff] }
 0x31c   : > { %1965 = vst [vmem:[#allocation2 + $0x1c0] sm:$0xff] %v1901_v18  ;;  %v4469_v16 = vmul.f32 %v13012_v32, %v4034_v43  ;;  %v4470_v51 = vmul.f32 %v13013_v23, %v4034_v43  ;;  %v3721_v18 = vmax.f32 %v10114_v36, %v10119_v58  ;;  %v10177_v34 = vpop.eup %6582  ;;  %6588 = vpow2.f32 %v2547_v55  ;;  %3962 = vadd.xlane.f32.xlu1 %v3961_v41  ;;  %v10188_v2 = vpop.xlane.xlu0 %3932  ;;  %v13019_v41 = vld [vmem:[#allocation46_spill] sm:$0xff]  ;;  %v13020_v23 = vld [vmem:[#allocation115_spill] sm:$0xff] }
 0x31d   : > { %v10159_v25 = vpop.xlane.xlu1 %2376  ;;  %1932 = vst [vmem:[#allocation2 + $0x488] sm:$0xff] %v1868_v50  ;;  %v2706_v48 = vmul.f32 %v10169_v40, %v10046_v60  ;;  %v4044_v4 = vand.u32 2147483647, %v10053_v1  ;;  %v4046_v0 = vand.u32 2147483648, %v10053_v1  ;;  %2406 = vmax.xlane.f32.xlu2 %v2405_v33  ;;  %6590 = vrcp.f32 %v10106_v14  ;;  %v10190_v55 = vpop.eup %6584 }
 0x31e   : > { %13014 = vst [vmem:[#allocation94_spill] sm:$0xff] %v10177_v34  ;;  %3722 = vmax.xlane.f32.xlu0 %v3721_v18  ;;  %6592 = vpow2.f32 %v3865_v61  ;;  %vm2710_vm5 = vweird.f32 %v10046_v60  ;;  %vm10193_vm6 = vcmp.eq.f32.partialorder %v2714_v6, 8.507059e+37  ;;  %v6587_v44 = vpop.eup %6586  ;;  %vm2711_vm7 = vweird.f32 %v10169_v40  ;;  %v13023_v18 = vld [vmem:[#allocation13_spill] sm:$0xff] }
 0x31f   : > { %1933 = vst [vmem:[#allocation2 + $0x4d0] sm:$0xff] %v1869_v17  ;;  %v2707_v50 = vsub.f32 1.0, %v2706_v48  ;;  %v10197_v17 = vpop.xlane.xlu2 %2616  ;;  %6594 = vpow2.f32 %v3867_v28  ;;  %v2717_v43 = vor.u32 1.1754944e-38, %v2716_v22  ;;  %v2451_v32 = vsub.f32 %v13019_v41, %v10121_v12  ;;  %vm2712_vm11 = vmor %vm2710_vm5, %vm2711_vm7 }
 0x320   : > { %4534 = vst [vmem:[#allocation2 + $0x190] sm:$0xff] %v4469_v16  ;;  %v4036_v61 = vmul.f32 %v6587_v44, %v10053_v1  ;;  %v2452_v6 = vsub.f32 %v13020_v23, %v10121_v12  ;;  %vm4040_vm8 = vweird.f32 %v10053_v1  ;;  %vm10209_vm9 = vcmp.eq.f32.partialorder %v4044_v4, 8.507059e+37 }
 0x321   : > { %13016 = vst [vmem:[#allocation107_spill] sm:$0xff] %v10186_v49  ;;  %v2708_v16 = vmul.f32 %v10169_v40, %v2707_v50  ;;  %v4047_v22 = vor.u32 1.1754944e-38, %v4046_v0  ;;  %v3769_v33 = vsub.f32 %v13023_v18, %v10132_v29  ;;  %vm2724_vm10 = vweird.f32 %v10106_v14 }
 0x322   : > { %4535 = vst [vmem:[#allocation2 + $0x1a8] sm:$0xff] %v4470_v51  ;;  %v3724_v51 = vmax.f32 %v10181_v31, %v10186_v49  ;;  %v10215_v48 = vpop.eup %6588  ;;  %v4037_v41 = vsub.f32 1.0, %v4036_v61  ;;  %v2728_v12 = vand.u32 2147483647, %v10106_v14  ;;  %v2730_v23 = vand.u32 2147483648, %v10106_v14  ;;  %v10238_v31 = vpop.f32.mrf.mxu2 }
 0x323   : > { %v2709_v50 = vadd.f32 %v10169_v40, %v2708_v16  ;;  %v10221_v35 = vpop.eup %6590  ;;  %vm4041_vm12 = vweird.f32 %v6587_v44  ;;  %v2549_v4 = vmul.f32 1.442695, %v2451_v32  ;;  %v2645_v0 = vadd.f32 %v9856_v27, %v9850_v26 }
 0x324   : > { %v3964_v16 = vadd.f32 %v9908_v21, %v9899_v39  ;;  %v10233_v18 = vpop.eup %6592  ;;  %v4038_v46 = vmul.f32 %v6587_v44, %v4037_v41  ;;  %v2720_v49 = vmul.f32 %v10221_v35, %v10106_v14  ;;  %v2551_v60 = vmul.f32 1.442695, %v2452_v6  ;;  %3725 = vmax.xlane.f32.xlu1 %v3724_v51  ;;  %v13026_v21 = vld [vmem:[#allocation11_spill] sm:$0xff]  ;;  %v10248_v41 = vpop.f32.mrf.mxu3  ;;  %v13028_v6 = vld [vmem:[#allocation101_spill] sm:$0xff]  ;;  %vm4042_vm13 = vmor %vm4040_vm8, %vm4041_vm12 }
 0x325   : > { %v10231_v61 = vpop.xlane.xlu1 %3935  ;;  %13024 = vst [vmem:[#allocation113_spill] sm:$0xff] %v10233_v18  ;;  %v2713_v56 = vsel %vm2712_vm11, %v10169_v40, %v2709_v50  ;;  %v10240_v32 = vpop.eup %6594  ;;  %v3770_v39 = vsub.f32 %v13026_v21, %v10132_v29  ;;  %v3869_v26 = vmul.f32 1.442695, %v3769_v33  ;;  %v13027_v40 = vld [vmem:[#allocation44_spill] sm:$0xff]  ;;  %vm10255_vm14 = vcmp.eq.f32.partialorder %v2728_v12, 8.507059e+37  ;;  %v13032_v29 = vld [vmem:[#allocation45_spill] sm:$0xff] }
 0x326   : > { %13025 = vst [vmem:[#allocation114_spill] sm:$0xff] %v10240_v32  ;;  %v2718_v27 = vsel %vm10193_vm6, %v2717_v43, %v2713_v56  ;;  %2646 = vadd.xlane.f32.xlu0 %v2645_v0  ;;  %3965 = vadd.xlane.f32.xlu2 %v3964_v16  ;;  %v2453_v50 = vsub.f32 %v13027_v40, %v10159_v25  ;;  %v2721_v36 = vsub.f32 1.0, %v2720_v49  ;;  %v2731_v21 = vor.u32 1.1754944e-38, %v2730_v23  ;;  %v10269_v12 = vpop.f32.mrf.mxu0  ;;  %v13035_v23 = vld [vmem:[#allocation102_spill] sm:$0xff]  ;;  %v13041_v56 = vld [vmem:[#allocation12_spill] sm:$0xff] }
 0x327   : > { %v3153_v51 = vmul.f32 %v13028_v6, %v2718_v27  ;;  %v3154_v20 = vmul.f32 %v13029_v7, %v2718_v27  ;;  %v4039_v58 = vadd.f32 %v6587_v44, %v4038_v46  ;;  %6596 = vpow2.f32 %v2549_v4  ;;  %v10261_v43 = vpop.xlane.xlu0 %3695  ;;  %v10265_v27 = vpop.xlane.xlu2 %2379  ;;  %13033 = vst [vmem:[#allocation95_spill] sm:$0xff] %v10269_v12  ;;  %v13039_v6 = vld [vmem:[#allocation104_spill] sm:$0xff] }
 0x328   : > { %v2454_v15 = vsub.f32 %v13032_v29, %v10159_v25  ;;  %v2722_v46 = vmul.f32 %v10221_v35, %v2721_v36  ;;  %vm2725_vm15 = vweird.f32 %v10221_v35  ;;  %6598 = vpow2.f32 %v2551_v60  ;;  %v10271_v25 = vpop.f32.mrf.mxu1  ;;  %v13040_v29 = vld [vmem:[#allocation38_spill] sm:$0xff] }
 0x329   : > { %3218 = vst [vmem:[#allocation2 + $0x5d0] sm:$0xff] %v3153_v51  ;;  %v4043_v33 = vsel %vm4042_vm13, %v6587_v44, %v4039_v58  ;;  %6600 = vpow2.f32 %v3869_v26  ;;  %v3871_v7 = vmul.f32 1.442695, %v3770_v39  ;;  %v2553_v49 = vmul.f32 1.442695, %v2453_v50  ;;  %v13036_v44 = vld [vmem:[#allocation103_spill] sm:$0xff]  ;;  %vm2726_vm0 = vmor %vm2724_vm10, %vm2725_vm15 }
 0x32a   : > { %3219 = vst [vmem:[#allocation2 + $0x260] sm:$0xff] %v3154_v20  ;;  %v4048_v1 = vsel %vm10209_vm9, %v4047_v22, %v4043_v33  ;;  %v2723_v4 = vadd.f32 %v10221_v35, %v2722_v46  ;;  %6602 = vrcp.f32 %v10188_v2  ;;  %v2555_v20 = vmul.f32 1.442695, %v2454_v15  ;;  %v10304_v46 = vpop.f32.mrf.mxu2 }
 0x32b   : > { %13034 = vst [vmem:[#allocation96_spill] sm:$0xff] %v10271_v25  ;;  %v4471_v58 = vmul.f32 %v13035_v23, %v4048_v1  ;;  %v4472_v36 = vmul.f32 %v13036_v44, %v4048_v1  ;;  %v4060_v26 = vand.u32 2147483648, %v10188_v2  ;;  %6604 = vrcp.f32 %v10197_v17 }
 0x32c   : > { %v2408_v39 = vmax.f32 %v10238_v31, %v10248_v41  ;;  %v2727_v28 = vsel %vm2726_vm0, %v10221_v35, %v2723_v4  ;;  %v3727_v22 = vmax.f32 %v10269_v12, %v10271_v25  ;;  %v2648_v0 = vadd.f32 %v9932_v63, %v9913_v3  ;;  %13042 = vst [vmem:[#allocation99_spill] sm:$0xff] %v10304_v46 }
 0x32d   : > { %4536 = vst [vmem:[#allocation2 + $0x398] sm:$0xff] %v4471_v58  ;;  %6606 = vrcp.f32 %v10231_v61  ;;  %v10289_v14 = vpop.eup %6596  ;;  %v2732_v16 = vsel %vm10255_vm14, %v2731_v21, %v2727_v28  ;;  %v4058_v60 = vand.u32 2147483647, %v10188_v2  ;;  %v2744_v40 = vand.u32 2147483648, %v10197_v17  ;;  %v10311_v58 = vpop.f32.mrf.mxu3  ;;  %v13046_v28 = vld [vmem:[#allocation10_spill] sm:$0xff] }
 0x32e   : > { %13037 = vst [vmem:[#allocation97_spill] sm:$0xff] %v10289_v14  ;;  %6608 = vpow2.f32 %v3871_v7  ;;  %2409 = vmax.xlane.f32.xlu0 %v2408_v39  ;;  %v10295_v35 = vpop.xlane.xlu1 %3698  ;;  %v10297_v50 = vpop.eup %6598  ;;  %v3155_v51 = vmul.f32 %v13039_v6, %v2732_v16  ;;  %v3156_v15 = vmul.f32 %v13040_v29, %v2732_v16  ;;  %v2742_v33 = vand.u32 2147483647, %v10197_v17  ;;  %2649 = vadd.xlane.f32.xlu1 %v2648_v0  ;;  %v13044_v7 = vld [vmem:[#allocation52_spill] sm:$0xff] }
 0x32f   : > { %4537 = vst [vmem:[#allocation2 + $0x470] sm:$0xff] %v4472_v36  ;;  %3728 = vmax.xlane.f32.xlu2 %v3727_v22  ;;  %v3771_v21 = vsub.f32 %v13041_v56, %v10261_v43  ;;  %v10306_v1 = vpop.eup %6600  ;;  %6610 = vpow2.f32 %v2553_v49  ;;  %vm4054_vm1 = vweird.f32 %v10188_v2  ;;  %v3772_v23 = vsub.f32 %v13044_v7, %v10261_v43  ;;  %v10313_v44 = vpop.xlane.xlu0 %2619 }
 0x330   : > { %13038 = vst [vmem:[#allocation98_spill] sm:$0xff] %v10297_v50  ;;  %v6603_v36 = vpop.eup %6602  ;;  %6612 = vpow2.f32 %v2555_v20  ;;  %v4061_v4 = vor.u32 1.1754944e-38, %v4060_v26  ;;  %vm2738_vm2 = vweird.f32 %v10197_v17  ;;  %v2455_v22 = vsub.f32 %v13046_v28, %v10265_v27  ;;  %v13049_v20 = vld [vmem:[#allocation54_spill] sm:$0xff]  ;;  %v10341_v56 = vpop.xlane.xlu2 %3938 }
 0x331   : > { %13043 = vst [vmem:[#allocation100_spill] sm:$0xff] %v10306_v1  ;;  %v3873_v39 = vmul.f32 1.442695, %v3771_v21  ;;  %v10318_v49 = vpop.eup %6604  ;;  %v4050_v0 = vmul.f32 %v6603_v36, %v10188_v2  ;;  %vm10321_vm3 = vcmp.eq.f32.partialorder %v4058_v60, 8.507059e+37  ;;  %v2745_v16 = vor.u32 1.1754944e-38, %v2744_v40 }
 0x332   : > { %13045 = vst [vmem:[#allocation46_spill] sm:$0xff] %v10311_v58  ;;  %vm4068_vm4 = vweird.f32 %v10231_v61  ;;  %v2456_v26 = vsub.f32 %v13049_v20, %v10265_v27  ;;  %vm10332_vm5 = vcmp.eq.f32.partialorder %v2742_v33, 8.507059e+37  ;;  %v4072_v60 = vand.u32 2147483647, %v10231_v61 }
 0x333   : > { %3220 = vst [vmem:[#allocation2 + $0x438] sm:$0xff] %v3155_v51  ;;  %v10328_v6 = vpop.eup %6606  ;;  %v2734_v51 = vmul.f32 %v10318_v49, %v10197_v17  ;;  %v3967_v40 = vadd.f32 %v9977_v19, %v9966_v38  ;;  %v4051_v21 = vsub.f32 1.0, %v4050_v0  ;;  %vm4055_vm6 = vweird.f32 %v6603_v36 }
 0x334   : > { %3221 = vst [vmem:[#allocation2 + $0xf0] sm:$0xff] %v3156_v15  ;;  %v2411_v15 = vmax.f32 %v10304_v46, %v10311_v58  ;;  %v10343_v27 = vpop.eup %6608  ;;  %v4064_v33 = vmul.f32 %v10328_v6, %v10231_v61  ;;  %v3875_v7 = vmul.f32 1.442695, %v3772_v23  ;;  %6614 = vpow2.f32 %v3873_v39  ;;  %v13054_v58 = vld [vmem:[#allocation17_spill] sm:$0xff]  ;;  %vm4056_vm9 = vmor %vm4054_vm1, %vm4055_vm6 }
 0x335   : > { %13052 = vst [vmem:[#allocation115_spill] sm:$0xff] %v10343_v27  ;;  %v2735_v28 = vsub.f32 1.0, %v2734_v51  ;;  %v2557_v20 = vmul.f32 1.442695, %v2455_v22  ;;  %v2651_v63 = vadd.f32 %v10055_v8, %v10035_v62  ;;  %v10349_v3 = vpop.eup %6610  ;;  %v4052_v25 = vmul.f32 %v6603_v36, %v4051_v21 }
 0x336   : > { %13053 = vst [vmem:[#allocation13_spill] sm:$0xff] %v10349_v3  ;;  %v4065_v19 = vsub.f32 1.0, %v4064_v33  ;;  %v2559_v38 = vmul.f32 1.442695, %v2456_v26  ;;  %3968 = vadd.xlane.f32.xlu0 %v3967_v40  ;;  %v3773_v0 = vsub.f32 %v13054_v58, %v10295_v35  ;;  %v10353_v12 = vpop.eup %6612  ;;  %vm2739_vm7 = vweird.f32 %v10318_v49  ;;  %2412 = vmax.xlane.f32.xlu1 %v2411_v15  ;;  %v10359_v39 = vpop.xlane.xlu1 %2622  ;;  %v13061_v33 = vld [vmem:[#allocation39_spill] sm:$0xff] }
 0x337   : > { %13055 = vst [vmem:[#allocation11_spill] sm:$0xff] %v10353_v12  ;;  %v2736_v46 = vmul.f32 %v10318_v49, %v2735_v28  ;;  %v4074_v23 = vand.u32 2147483648, %v10231_v61  ;;  %2652 = vadd.xlane.f32.xlu2 %v2651_v63  ;;  %6616 = vrcp.f32 %v10313_v44  ;;  %v4053_v22 = vadd.f32 %v6603_v36, %v4052_v25  ;;  %v10363_v58 = vpop.xlane.xlu0 %2382  ;;  %v13058_v25 = vld [vmem:[#allocation65_spill] sm:$0xff]  ;;  %vm2740_vm11 = vmor %vm2738_vm2, %vm2739_vm7  ;;  %v10406_v28 = vpop.f32.mrf.mxu2 }
 0x338   : > { %v4066_v26 = vmul.f32 %v10328_v6, %v4065_v19  ;;  %vm4069_vm8 = vweird.f32 %v10328_v6  ;;  %6618 = vpow2.f32 %v3875_v7  ;;  %vm10369_vm10 = vcmp.eq.f32.partialorder %v4072_v60, 8.507059e+37  ;;  %13063 = vst [vmem:[#allocation44_spill] sm:$0xff] %v10406_v28 }
 0x339   : > { %v2737_v51 = vadd.f32 %v10318_v49, %v2736_v46  ;;  %6620 = vpow2.f32 %v2557_v20  ;;  %v3774_v15 = vsub.f32 %v13058_v25, %v10295_v35  ;;  %v4057_v19 = vsel %vm4056_vm9, %v6603_v36, %v4053_v22  ;;  %vm10389_vm12 = vmor %vm4068_vm4, %vm4069_vm8  ;;  %v10396_v36 = vpop.f32.mrf.mxu1  ;;  %v10408_v20 = vpop.f32.mrf.mxu3 }
 0x33a   : > { %v4067_v40 = vadd.f32 %v10328_v6, %v4066_v26  ;;  %6622 = vpow2.f32 %v2559_v38  ;;  %v3877_v2 = vmul.f32 1.442695, %v3773_v0  ;;  %v10380_v21 = vpop.eup %6614  ;;  %v4062_v46 = vsel %vm10321_vm3, %v4061_v4, %v4057_v19  ;;  %v10394_v38 = vpop.f32.mrf.mxu0  ;;  %v13062_v4 = vld [vmem:[#allocation105_spill] sm:$0xff]  ;;  %13064 = vst [vmem:[#allocation101_spill] sm:$0xff] %v10408_v20  ;;  %v13066_v26 = vld [vmem:[#allocation108_spill] sm:$0xff] }
 0x33b   : > { %v2741_v60 = vsel %vm2740_vm11, %v10318_v49, %v2737_v51  ;;  %v4075_v17 = vor.u32 1.1754944e-38, %v4074_v23  ;;  %6624 = vrcp.f32 %v10341_v56  ;;  %v4473_v43 = vmul.f32 %v13061_v33, %v4062_v46  ;;  %v13065_v23 = vld [vmem:[#allocation40_spill] sm:$0xff]  ;;  %v13069_v33 = vld [vmem:[#allocation110_spill] sm:$0xff] }
 0x33c   : > { %v4474_v7 = vmul.f32 %v13062_v4, %v4062_v46  ;;  %v2746_v49 = vsel %vm10332_vm5, %v2745_v16, %v2741_v60  ;;  %v4071_v61 = vsel %vm10389_vm12, %v10328_v6, %v4067_v40  ;;  %vm2752_vm13 = vweird.f32 %v10313_v44  ;;  %v13067_v6 = vld [vmem:[#allocation109_spill] sm:$0xff] }
 0x33d   : > { %v10410_v0 = vpop.eup %6616  ;;  %v3157_v22 = vmul.f32 %v13065_v23, %v2746_v49  ;;  %v3158_v51 = vmul.f32 %v13066_v26, %v2746_v49  ;;  %v4076_v29 = vsel %vm10369_vm10, %v4075_v17, %v4071_v61  ;;  %v3879_v16 = vmul.f32 1.442695, %v3774_v15  ;;  %4538 = vst [vmem:[#allocation2 + $0xe0] sm:$0xff] %v4473_v43  ;;  %v13071_v26 = vld [vmem:[#allocation61_spill] sm:$0xff] }
 0x33e   : > { %v10416_v25 = vpop.xlane.xlu2 %3701  ;;  %v10418_v19 = vpop.eup %6618  ;;  %v4475_v40 = vmul.f32 %v13067_v6, %v4076_v29  ;;  %6626 = vpow2.f32 %v3877_v2  ;;  %v2748_v46 = vmul.f32 %v10410_v0, %v10313_v44  ;;  %v2756_v60 = vand.u32 2147483647, %v10313_v44  ;;  %4539 = vst [vmem:[#allocation2 + $0xd0] sm:$0xff] %v4474_v7 }
 0x33f   : > { %v10424_v35 = vpop.eup %6620  ;;  %v4476_v63 = vmul.f32 %v13069_v33, %v4076_v29  ;;  %v2758_v15 = vand.u32 2147483648, %v10313_v44  ;;  %v3730_v17 = vmax.f32 %v10394_v38, %v10396_v36  ;;  %v2414_v43 = vmax.f32 %v10406_v28, %v10408_v20  ;;  %3222 = vst [vmem:[#allocation2 + $0x60] sm:$0xff] %v3157_v22  ;;  %v13080_v28 = vld [vmem:[#allocation112_spill] sm:$0xff] }
 0x340   : > { %13068 = vst [vmem:[#allocation37_spill] sm:$0xff] %v10424_v35  ;;  %v10432_v4 = vpop.eup %6622  ;;  %v2749_v2 = vsub.f32 1.0, %v2748_v46  ;;  %v4086_v49 = vand.u32 2147483647, %v10341_v56  ;;  %v3970_v61 = vadd.f32 %v10095_v57, %v10069_v54  ;;  %6628 = vrcp.f32 %v10359_v39 }
 0x341   : > { %13070 = vst [vmem:[#allocation45_spill] sm:$0xff] %v10432_v4  ;;  %v6625_v7 = vpop.eup %6624  ;;  %6630 = vpow2.f32 %v3879_v16  ;;  %vm4082_vm14 = vweird.f32 %v10341_v56  ;;  %v4088_v23 = vand.u32 2147483648, %v10341_v56  ;;  %3731 = vmax.xlane.f32.xlu0 %v3730_v17  ;;  %2415 = vmax.xlane.f32.xlu2 %v2414_v43  ;;  %v2457_v22 = vsub.f32 %v13071_v26, %v10363_v58  ;;  %v10442_v29 = vpop.xlane.xlu1 %2385 }
 0x342   : > { %3223 = vst [vmem:[#allocation2 + $0x200] sm:$0xff] %v3158_v51  ;;  %v2750_v6 = vmul.f32 %v10410_v0, %v2749_v2  ;;  %vm2753_vm15 = vweird.f32 %v10410_v0  ;;  %v4078_v46 = vmul.f32 %v6625_v7, %v10341_v56  ;;  %3971 = vadd.xlane.f32.xlu1 %v3970_v61  ;;  %v13072_v51 = vld [vmem:[#allocation15_spill] sm:$0xff]  ;;  %v10449_v33 = vpop.xlane.xlu0 %3941  ;;  %vm10451_vm0 = vcmp.eq.f32.partialorder %v2756_v60, 8.507059e+37 }
 0x343   : > { %4540 = vst [vmem:[#allocation2 + $0x38] sm:$0xff] %v4475_v40  ;;  %v2458_v16 = vsub.f32 %v13072_v51, %v10363_v58  ;;  %v2759_v43 = vor.u32 1.1754944e-38, %v2758_v15  ;;  %v2561_v26 = vmul.f32 1.442695, %v2457_v22  ;;  %v13075_v40 = vld [vmem:[#allocation63_spill] sm:$0xff]  ;;  %vm10460_vm1 = vcmp.eq.f32.partialorder %v4086_v49, 8.507059e+37  ;;  %vm2754_vm2 = vmor %vm2752_vm13, %vm2753_vm15 }
 0x344   : > { %4541 = vst [vmem:[#allocation2 + $0x240] sm:$0xff] %v4476_v63  ;;  %v3775_v2 = vsub.f32 %v13075_v40, %v10416_v25  ;;  %v10457_v57 = vpop.eup %6626  ;;  %v2751_v54 = vadd.f32 %v10410_v0, %v2750_v6  ;;  %v4079_v61 = vsub.f32 1.0, %v4078_v46  ;;  %vm4083_vm3 = vweird.f32 %v6625_v7  ;;  %v13078_v15 = vld [vmem:[#allocation64_spill] sm:$0xff] }
 0x345   : > { %v2563_v58 = vmul.f32 1.442695, %v2458_v16  ;;  %v4089_v60 = vor.u32 1.1754944e-38, %v4088_v23  ;;  %v2770_v63 = vand.u32 2147483647, %v10359_v39  ;;  %v3776_v22 = vsub.f32 %v13078_v15, %v10416_v25  ;;  %v13079_v15 = vld [vmem:[#allocation111_spill] sm:$0xff]  ;;  %vm4084_vm4 = vmor %vm4082_vm14, %vm4083_vm3 }
 0x346   : > { %v10471_v51 = vpop.xlane.xlu2 %2625  ;;  %v6629_v6 = vpop.eup %6628  ;;  %v2755_v49 = vsel %vm2754_vm2, %v10410_v0, %v2751_v54  ;;  %v4080_v46 = vmul.f32 %v6625_v7, %v4079_v61  ;;  %6632 = vpow2.f32 %v2561_v26  ;;  %v3881_v16 = vmul.f32 1.442695, %v3775_v2  ;;  %v13081_v2 = vld [vmem:[#allocation72_spill] sm:$0xff] }
 0x347   : > { %v10474_v40 = vpop.eup %6630  ;;  %v2760_v44 = vsel %vm10451_vm0, %v2759_v43, %v2755_v49  ;;  %v2762_v23 = vmul.f32 %v6629_v6, %v10359_v39  ;;  %v2654_v62 = vadd.f32 %v10116_v53, %v10108_v52  ;;  %v2657_v25 = vadd.f32 %v10215_v48, %v10190_v55 }
 0x348   : > { %v3159_v20 = vmul.f32 %v13079_v15, %v2760_v44  ;;  %v3160_v54 = vmul.f32 %v13080_v28, %v2760_v44  ;;  %v4081_v0 = vadd.f32 %v6625_v7, %v4080_v46  ;;  %6634 = vpow2.f32 %v2563_v58  ;;  %v13082_v28 = vld [vmem:[#allocation67_spill] sm:$0xff]  ;;  %v13083_v44 = vld [vmem:[#allocation42_spill] sm:$0xff] }
 0x349   : > { %v2763_v17 = vsub.f32 1.0, %v2762_v23  ;;  %v3883_v43 = vmul.f32 1.442695, %v3776_v22  ;;  %2655 = vadd.xlane.f32.xlu0 %v2654_v62  ;;  %v3973_v26 = vadd.f32 %v10177_v34, %v10161_v59  ;;  %v2459_v61 = vsub.f32 %v13081_v2, %v10442_v29  ;;  %v13100_v34 = vld [vmem:[#allocation50_spill] sm:$0xff] }
 0x34a   : > { %3224 = vst [vmem:[#allocation2 + $0x80] sm:$0xff] %v3159_v20  ;;  %v4085_v49 = vsel %vm4084_vm4, %v6625_v7, %v4081_v0  ;;  %v2772_v15 = vand.u32 2147483648, %v10359_v39  ;;  %2658 = vadd.xlane.f32.xlu1 %v2657_v25  ;;  %v2460_v58 = vsub.f32 %v13082_v28, %v10442_v29  ;;  %6636 = vrcp.f32 %v10449_v33  ;;  %v13084_v25 = vld [vmem:[#allocation43_spill] sm:$0xff] }
 0x34b   : > { %3225 = vst [vmem:[#allocation2 + $0x5a0] sm:$0xff] %v3160_v54  ;;  %v4090_v62 = vsel %vm10460_vm1, %v4089_v60, %v4085_v49  ;;  %v2764_v56 = vmul.f32 %v6629_v6, %v2763_v17  ;;  %vm2767_vm5 = vweird.f32 %v6629_v6  ;;  %3974 = vadd.xlane.f32.xlu2 %v3973_v26  ;;  %v2565_v22 = vmul.f32 1.442695, %v2459_v61  ;;  %v10498_v46 = vpop.xlane.xlu1 %3944  ;;  %v13088_v28 = vld [vmem:[#allocation47_spill] sm:$0xff] }
 0x34c   : > { %v3705_v20 = vpop.xlane.xlu0 %3704  ;;  %v10500_v7 = vpop.eup %6632  ;;  %v4477_v23 = vmul.f32 %v13083_v44, %v4090_v62  ;;  %v4478_v0 = vmul.f32 %v13084_v25, %v4090_v62  ;;  %6638 = vpow2.f32 %v3881_v16  ;;  %vm2766_vm6 = vweird.f32 %v10359_v39  ;;  %v13091_v25 = vld [vmem:[#allocation69_spill] sm:$0xff] }
 0x34d   : > { %v2765_v29 = vadd.f32 %v6629_v6, %v2764_v56  ;;  %vm10505_vm7 = vcmp.eq.f32.partialorder %v2770_v63, 8.507059e+37  ;;  %6640 = vpow2.f32 %v3883_v43  ;;  %vm2768_vm8 = vmor %vm2766_vm6, %vm2767_vm5  ;;  %v2773_v17 = vor.u32 1.1754944e-38, %v2772_v15  ;;  %v13087_v15 = vld [vmem:[#allocation41_spill] sm:$0xff] }
 0x34e   : > { %v2389_v60 = vpop.xlane.xlu2 %2388  ;;  %v10509_v54 = vpop.eup %6634  ;;  %4542 = vst [vmem:[#allocation2 + $0x280] sm:$0xff] %v4477_v23  ;;  %6642 = vpow2.f32 %v2565_v22  ;;  %v2567_v26 = vmul.f32 1.442695, %v2460_v58  ;;  %v4100_v2 = vand.u32 2147483647, %v10449_v33  ;;  %vm4096_vm9 = vweird.f32 %v10449_v33 }
 0x34f   : > { %4543 = vst [vmem:[#allocation2 + $0x518] sm:$0xff] %v4478_v0  ;;  %v2769_v16 = vsel %vm2768_vm8, %v6629_v6, %v2765_v29  ;;  %6644 = vrcp.f32 %v10471_v51  ;;  %v3976_v39 = vadd.f32 %v10240_v32, %v10233_v18  ;;  %v4102_v61 = vand.u32 2147483648, %v10449_v33 }
 0x350   : > { %v6637_v63 = vpop.eup %6636  ;;  %v2774_v43 = vsel %vm10505_vm7, %v2773_v17, %v2769_v16  ;;  %v3979_v49 = vadd.f32 %v10343_v27, %v10306_v1  ;;  %6646 = vrcp.f32 %v10498_v46  ;;  %v2660_v56 = vadd.f32 %v10297_v50, %v10289_v14  ;;  %v13092_v17 = vld [vmem:[#allocation70_spill] sm:$0xff] }
 0x351   : > { %v3161_v6 = vmul.f32 %v13087_v15, %v2774_v43  ;;  %v3162_v58 = vmul.f32 %v13088_v28, %v2774_v43  ;;  %v4092_v62 = vmul.f32 %v6637_v63, %v10449_v33  ;;  %3977 = vadd.xlane.f32.xlu0 %v3976_v39  ;;  %6648 = vpow2.f32 %v2567_v26  ;;  %v13093_v39 = vld [vmem:[#allocation74_spill] sm:$0xff]  ;;  %v13094_v15 = vld [vmem:[#allocation75_spill] sm:$0xff] }
 0x352   : > { %v10528_v22 = vpop.eup %6638  ;;  %vm10530_vm10 = vcmp.eq.f32.partialorder %v4100_v2, 8.507059e+37  ;;  %v2784_v23 = vand.u32 2147483647, %v10471_v51  ;;  %3980 = vadd.xlane.f32.xlu1 %v3979_v49  ;;  %v3777_v0 = vsub.f32 %v13091_v25, %v3705_v20  ;;  %v3778_v16 = vsub.f32 %v13092_v17, %v3705_v20  ;;  %v13099_v33 = vld [vmem:[#allocation23_spill] sm:$0xff] }
 0x353   : > { %v10536_v29 = vpop.eup %6640  ;;  %3226 = vst [vmem:[#allocation2 + $0x4b8] sm:$0xff] %v3161_v6  ;;  %v4093_v8 = vsub.f32 1.0, %v4092_v62  ;;  %2661 = vadd.xlane.f32.xlu2 %v2660_v56  ;;  %v2461_v43 = vsub.f32 %v13093_v39, %v2389_v60  ;;  %v2462_v26 = vsub.f32 %v13094_v15, %v2389_v60  ;;  %vm4097_vm11 = vweird.f32 %v6637_v63 }
 0x354   : > { %v10541_v28 = vpop.eup %6642  ;;  %3227 = vst [vmem:[#allocation2 + $0x310] sm:$0xff] %v3162_v58  ;;  %v4103_v50 = vor.u32 1.1754944e-38, %v4102_v61  ;;  %vm2780_vm12 = vweird.f32 %v10471_v51  ;;  %v2786_v49 = vand.u32 2147483648, %v10471_v51  ;;  %v3885_v25 = vmul.f32 1.442695, %v3777_v0  ;;  %v10545_v6 = vpop.xlane.xlu0 %2628  ;;  %vm4098_vm15 = vmor %vm4096_vm9, %vm4097_vm11 }
 0x355   : > { %v6645_v62 = vpop.eup %6644  ;;  %v4094_v56 = vmul.f32 %v6637_v63, %v4093_v8  ;;  %v4114_v20 = vand.u32 2147483647, %v10498_v46  ;;  %v4116_v17 = vand.u32 2147483648, %v10498_v46  ;;  %v3887_v60 = vmul.f32 1.442695, %v3778_v16 }
 0x356   : > { %v3708_v2 = vpop.xlane.xlu1 %3707  ;;  %v6647_v15 = vpop.eup %6646  ;;  %v2776_v58 = vmul.f32 %v6645_v62, %v10471_v51  ;;  %vm10552_vm13 = vcmp.eq.f32.partialorder %v2784_v23, 8.507059e+37  ;;  %v2569_v14 = vmul.f32 1.442695, %v2461_v43  ;;  %v2571_v0 = vmul.f32 1.442695, %v2462_v26  ;;  %v13098_v26 = vld [vmem:[#allocation78_spill] sm:$0xff] }
 0x357   : > { %v10549_v39 = vpop.xlane.xlu2 %3947  ;;  %v2663_v32 = vadd.f32 %v10353_v12, %v10349_v3  ;;  %v4095_v8 = vadd.f32 %v6637_v63, %v4094_v56  ;;  %vm2781_vm14 = vweird.f32 %v6645_v62  ;;  %v4106_v18 = vmul.f32 %v6647_v15, %v10498_v46  ;;  %v10559_v16 = vpop.eup %6648 }
 0x358   : > { %6650 = vpow2.f32 %v3885_v25  ;;  %13097 = vst [vmem:[#allocation102_spill] sm:$0xff] %v10559_v16  ;;  %v2777_v23 = vsub.f32 1.0, %v2776_v58  ;;  %vm4111_vm0 = vweird.f32 %v6647_v15  ;;  %v2666_v43 = vadd.f32 %v10432_v4, %v10424_v35  ;;  %v13101_v35 = vld [vmem:[#allocation51_spill] sm:$0xff]  ;;  %vm2782_vm2 = vmor %vm2780_vm12, %vm2781_vm14 }
 0x359   : > { %v3779_v27 = vsub.f32 %v13098_v26, %v3708_v2  ;;  %v4099_v1 = vsel %vm4098_vm15, %v6637_v63, %v4095_v8  ;;  %v4107_v12 = vsub.f32 1.0, %v4106_v18  ;;  %6652 = vpow2.f32 %v3887_v60  ;;  %2664 = vadd.xlane.f32.xlu0 %v2663_v32 }
 0x35a   : > { %v3982_v25 = vadd.f32 %v10418_v19, %v10380_v21  ;;  %v4104_v56 = vsel %vm10530_vm10, %v4103_v50, %v4099_v1  ;;  %v2778_v3 = vmul.f32 %v6645_v62, %v2777_v23  ;;  %2667 = vadd.xlane.f32.xlu1 %v2666_v43  ;;  %v3780_v58 = vsub.f32 %v13099_v33, %v3708_v2  ;;  %v13106_v43 = vld [vmem:[#allocation55_spill] sm:$0xff] }
 0x35b   : > { %6654 = vrcp.f32 %v10545_v6  ;;  %v4479_v4 = vmul.f32 %v13100_v34, %v4104_v56  ;;  %v4480_v26 = vmul.f32 %v13101_v35, %v4104_v56  ;;  %v4108_v63 = vmul.f32 %v6647_v15, %v4107_v12  ;;  %v13107_v56 = vld [vmem:[#allocation56_spill] sm:$0xff] }
 0x35c   : > { %3983 = vadd.xlane.f32.xlu2 %v3982_v25  ;;  %v3889_v18 = vmul.f32 1.442695, %v3779_v27  ;;  %v2779_v32 = vadd.f32 %v6645_v62, %v2778_v3  ;;  %v2787_v60 = vor.u32 1.1754944e-38, %v2786_v49  ;;  %vm4110_vm1 = vweird.f32 %v10498_v46  ;;  %v2392_v35 = vpop.xlane.xlu0 %2391 }
 0x35d   : > { %6656 = vpow2.f32 %v2569_v14  ;;  %4544 = vst [vmem:[#allocation2 + $0x148] sm:$0xff] %v4479_v4  ;;  %v4109_v34 = vadd.f32 %v6647_v15, %v4108_v63  ;;  %vm10583_vm3 = vcmp.eq.f32.partialorder %v4114_v20, 8.507059e+37  ;;  %v4117_v12 = vor.u32 1.1754944e-38, %v4116_v17  ;;  %vm4112_vm4 = vmor %vm4110_vm1, %vm4111_vm0  ;;  %v13105_v17 = vld [vmem:[#allocation53_spill] sm:$0xff] }
 0x35e   : > { %v10576_v44 = vpop.xlane.xlu1 %2631  ;;  %v10578_v50 = vpop.eup %6650  ;;  %6658 = vpow2.f32 %v2571_v0  ;;  %4545 = vst [vmem:[#allocation2 + $0x508] sm:$0xff] %v4480_v26  ;;  %v2783_v3 = vsel %vm2782_vm2, %v6645_v62, %v2779_v32  ;;  %v3891_v14 = vmul.f32 1.442695, %v3780_v58  ;;  %v2798_v27 = vand.u32 2147483647, %v10545_v6  ;;  %v13104_v62 = vld [vmem:[#allocation14_spill] sm:$0xff] }
 0x35f   : > { %6660 = vrcp.f32 %v10549_v39  ;;  %v10590_v4 = vpop.xlane.xlu2 %3710  ;;  %v10592_v51 = vpop.eup %6652  ;;  %v2788_v46 = vsel %vm10552_vm13, %v2787_v60, %v2783_v3  ;;  %v4113_v2 = vsel %vm4112_vm4, %v6647_v15, %v4109_v34  ;;  %vm2794_vm5 = vweird.f32 %v10545_v6  ;;  %v13113_v26 = vld [vmem:[#allocation30_spill] sm:$0xff] }
 0x360   : > { %6662 = vpow2.f32 %v3889_v18  ;;  %v3163_v20 = vmul.f32 %v13104_v62, %v2788_v46  ;;  %v3164_v0 = vmul.f32 %v13105_v17, %v2788_v46  ;;  %v4118_v8 = vsel %vm10583_vm3, %v4117_v12, %v4113_v2 }
 0x361   : > { %v6655_v49 = vpop.eup %6654  ;;  %v2800_v23 = vand.u32 2147483648, %v10545_v6  ;;  %v4481_v25 = vmul.f32 %v13106_v43, %v4118_v8  ;;  %v4482_v33 = vmul.f32 %v13107_v56, %v4118_v8  ;;  %v4130_v15 = vand.u32 2147483648, %v10549_v39 }
 0x362   : > { %v2790_v61 = vmul.f32 %v6655_v49, %v10545_v6  ;;  %3228 = vst [vmem:[#allocation2 + $0x1e8] sm:$0xff] %v3163_v20  ;;  %6664 = vpow2.f32 %v3891_v14  ;;  %vm10608_vm6 = vcmp.eq.f32.partialorder %v2798_v27, 8.507059e+37  ;;  %v3985_v63 = vadd.f32 %v10474_v40, %v10457_v57 }
 0x363   : > { %v10606_v58 = vpop.eup %6656  ;;  %v3988_v18 = vadd.f32 %v10536_v29, %v10528_v22  ;;  %3229 = vst [vmem:[#allocation2 + $0x258] sm:$0xff] %v3164_v0  ;;  %vm4124_vm7 = vweird.f32 %v10549_v39  ;;  %v4128_v34 = vand.u32 2147483647, %v10549_v39  ;;  %v2669_v1 = vadd.f32 %v10509_v54, %v10500_v7 }
 0x364   : > { %v10616_v32 = vpop.eup %6658  ;;  %v2791_v60 = vsub.f32 1.0, %v2790_v61  ;;  %6666 = vrcp.f32 %v10576_v44  ;;  %4546 = vst [vmem:[#allocation2 + $0x3d0] sm:$0xff] %v4481_v25  ;;  %vm2795_vm8 = vweird.f32 %v6655_v49  ;;  %v2801_v3 = vor.u32 1.1754944e-38, %v2800_v23  ;;  %3986 = vadd.xlane.f32.xlu0 %v3985_v63 }
 0x365   : > { %v6661_v12 = vpop.eup %6660  ;;  %3989 = vadd.xlane.f32.xlu1 %v3988_v18  ;;  %v2463_v14 = vsub.f32 %v9751_v30, %v2392_v35  ;;  %v2464_v27 = vsub.f32 %v9753_v37, %v2392_v35  ;;  %4547 = vst [vmem:[#allocation2 + $0x68] sm:$0xff] %v4482_v33  ;;  %v4131_v17 = vor.u32 1.1754944e-38, %v4130_v15  ;;  %2670 = vadd.xlane.f32.xlu2 %v2669_v1  ;;  %v2812_v0 = vand.u32 2147483647, %v10576_v44  ;;  %v13110_v33 = vld [vmem:[#allocation80_spill] sm:$0xff]  ;;  %vm2796_vm10 = vmor %vm2794_vm5, %vm2795_vm8 }
 0x366   : > { %v2395_v46 = vpop.xlane.xlu1 %2394  ;;  %v10625_v2 = vpop.eup %6662  ;;  %v2792_v62 = vmul.f32 %v6655_v49, %v2791_v60  ;;  %v4120_v20 = vmul.f32 %v6661_v12, %v10549_v39  ;;  %v2814_v8 = vand.u32 2147483648, %v10576_v44  ;;  %v3781_v30 = vsub.f32 %v9791_v42, %v10590_v4 }
 0x367   : > { %v2573_v23 = vmul.f32 1.442695, %v2463_v14  ;;  %v2575_v43 = vmul.f32 1.442695, %v2464_v27  ;;  %v10632_v25 = vpop.xlane.xlu0 %3950  ;;  %v10634_v37 = vpop.xlane.xlu2 %2634  ;;  %vm4125_vm9 = vweird.f32 %v6661_v12  ;;  %v3782_v61 = vsub.f32 %v13110_v33, %v10590_v4 }
 0x368   : > { %v2793_v35 = vadd.f32 %v6655_v49, %v2792_v62  ;;  %v4121_v56 = vsub.f32 1.0, %v4120_v20  ;;  %v10638_v15 = vpop.eup %6664  ;;  %v3893_v63 = vmul.f32 1.442695, %v3781_v30  ;;  %v2672_v42 = vadd.f32 %v10559_v16, %v10541_v28  ;;  %v13111_v20 = vld [vmem:[#allocation48_spill] sm:$0xff]  ;;  %v13112_v30 = vld [vmem:[#allocation49_spill] sm:$0xff]  ;;  %vm4126_vm11 = vmor %vm4124_vm7, %vm4125_vm9 }
 0x369   : > { %6668 = vpow2.f32 %v2573_v23  ;;  %v2675_v18 = vadd.f32 %v10616_v32, %v10606_v58  ;;  %v3895_v27 = vmul.f32 1.442695, %v3782_v61  ;;  %v3991_v6 = vadd.f32 %v10592_v51, %v10578_v50 }
 0x36a   : > { %v6667_v60 = vpop.eup %6666  ;;  %v2797_v1 = vsel %vm2796_vm10, %v6655_v49, %v2793_v35  ;;  %v4122_v14 = vmul.f32 %v6661_v12, %v4121_v56  ;;  %6670 = vpow2.f32 %v2575_v43  ;;  %v13114_v43 = vld [vmem:[#allocation26_spill] sm:$0xff]  ;;  %vm4129_vm12 = vcmp.eq.f32.partialorder %v4128_v34, 8.507059e+37 }
 0x36b   : > { %v2802_v4 = vsel %vm10608_vm6, %v2801_v3, %v2797_v1  ;;  %v2804_v62 = vmul.f32 %v6667_v60, %v10576_v44  ;;  %6672 = vpow2.f32 %v3893_v63  ;;  %v2465_v3 = vsub.f32 %v13113_v26, %v2395_v46 }
 0x36c   : > { %v3165_v23 = vmul.f32 %v13111_v20, %v2802_v4  ;;  %v3166_v33 = vmul.f32 %v13112_v30, %v2802_v4  ;;  %v4123_v16 = vadd.f32 %v6661_v12, %v4122_v14  ;;  %6674 = vpow2.f32 %v3895_v27  ;;  %2673 = vadd.xlane.f32.xlu0 %v2672_v42 }
 0x36d   : > { %v2805_v49 = vsub.f32 1.0, %v2804_v62  ;;  %2676 = vadd.xlane.f32.xlu1 %v2675_v18  ;;  %v2466_v35 = vsub.f32 %v13114_v43, %v2395_v46  ;;  %6676 = vrcp.f32 %v10632_v25  ;;  %vm2809_vm13 = vweird.f32 %v6667_v60  ;;  %3992 = vadd.xlane.f32.xlu2 %v3991_v6  ;;  %v13116_v46 = vld [vmem:[#allocation58_spill] sm:$0xff]  ;;  %v13117_v62 = vld [vmem:[#allocation60_spill] sm:$0xff] }
 0x36e   : > { %3230 = vst [vmem:[#allocation2 + $0x40] sm:$0xff] %v3165_v23  ;;  %v4127_v56 = vsel %vm4126_vm11, %v6661_v12, %v4123_v16  ;;  %v2577_v1 = vmul.f32 1.442695, %v2465_v3  ;;  %v10662_v42 = vpop.xlane.xlu1 %3953  ;;  %vm2808_vm14 = vweird.f32 %v10576_v44  ;;  %vm10671_vm15 = vcmp.eq.f32.partialorder %v2812_v0, 8.507059e+37 }
 0x36f   : > { %v10660_v61 = vpop.eup %6668  ;;  %3231 = vst [vmem:[#allocation2 + $0x4e0] sm:$0xff] %v3166_v33  ;;  %v4132_v63 = vsel %vm4129_vm12, %v4131_v17, %v4127_v56  ;;  %v2806_v39 = vmul.f32 %v6667_v60, %v2805_v49  ;;  %v2579_v14 = vmul.f32 1.442695, %v2466_v35  ;;  %v3714_v18 = vpop.xlane.xlu0 %3713  ;;  %v2815_v6 = vor.u32 1.1754944e-38, %v2814_v8  ;;  %vm2810_vm0 = vmor %vm2808_vm14, %vm2809_vm13  ;;  %v13122_v35 = vld [vmem:[#allocation16_spill] sm:$0xff]  ;;  %v13127_v17 = vld [vmem:[#allocation31_spill] sm:$0xff] }
 0x370   : > { %v10664_v27 = vpop.eup %6670  ;;  %v4483_v4 = vmul.f32 %v13116_v46, %v4132_v63  ;;  %v4484_v20 = vmul.f32 %v13117_v62, %v4132_v63  ;;  %v2398_v16 = vpop.xlane.xlu2 %2397  ;;  %6678 = vpow2.f32 %v2577_v1  ;;  %v4142_v30 = vand.u32 2147483647, %v10632_v25  ;;  %v13123_v63 = vld [vmem:[#allocation62_spill] sm:$0xff] }
 0x371   : > { %13115 = vst [vmem:[#allocation103_spill] sm:$0xff] %v10664_v27  ;;  %v10669_v34 = vpop.eup %6672  ;;  %v2807_v12 = vadd.f32 %v6667_v60, %v2806_v39  ;;  %6680 = vpow2.f32 %v2579_v14  ;;  %v4144_v44 = vand.u32 2147483648, %v10632_v25  ;;  %v2678_v33 = vadd.f32 %v10664_v27, %v10660_v61 }
 0x372   : > { %13118 = vst [vmem:[#allocation104_spill] sm:$0xff] %v10669_v34  ;;  %v10675_v23 = vpop.eup %6674  ;;  %6682 = vrcp.f32 %v10634_v37  ;;  %v3994_v8 = vadd.f32 %v10638_v15, %v10625_v2  ;;  %vm4138_vm1 = vweird.f32 %v10632_v25  ;;  %vm10694_vm2 = vcmp.eq.f32.partialorder %v4142_v30, 8.507059e+37 }
 0x373   : > { %13121 = vst [vmem:[#allocation38_spill] sm:$0xff] %v10675_v23  ;;  %v6677_v49 = vpop.eup %6676  ;;  %v2811_v0 = vsel %vm2810_vm0, %v6667_v60, %v2807_v12  ;;  %v3997_v26 = vadd.f32 %v10675_v23, %v10669_v34  ;;  %6684 = vrcp.f32 %v10662_v42  ;;  %v4145_v14 = vor.u32 1.1754944e-38, %v4144_v44 }
 0x374   : > { %4548 = vst [vmem:[#allocation2 + $0x358] sm:$0xff] %v4483_v4  ;;  %v2816_v3 = vsel %vm10671_vm15, %v2815_v6, %v2811_v0  ;;  %v4134_v43 = vmul.f32 %v6677_v49, %v10632_v25  ;;  %3995 = vadd.xlane.f32.xlu0 %v3994_v8  ;;  %v3783_v46 = vsub.f32 %v9862_v24, %v3714_v18  ;;  %v2826_v62 = vand.u32 2147483647, %v10634_v37  ;;  %v13131_v25 = vld [vmem:[#allocation57_spill] sm:$0xff] }
 0x375   : > { %4549 = vst [vmem:[#allocation2 + $0x70] sm:$0xff] %v4484_v20  ;;  %v3167_v56 = vmul.f32 %v13122_v35, %v2816_v3  ;;  %v3168_v39 = vmul.f32 %v13123_v63, %v2816_v3  ;;  %3998 = vadd.xlane.f32.xlu1 %v3997_v26  ;;  %2679 = vadd.xlane.f32.xlu2 %v2678_v33  ;;  %vm4139_vm3 = vweird.f32 %v6677_v49  ;;  %v2828_v24 = vand.u32 2147483648, %v10634_v37 }
 0x376   : > { %v4135_v60 = vsub.f32 1.0, %v4134_v43  ;;  %v10699_v4 = vpop.eup %6678  ;;  %v3784_v20 = vsub.f32 %v9864_v10, %v3714_v18  ;;  %v2467_v12 = vsub.f32 %v9895_v9, %v2398_v16  ;;  %v2468_v6 = vsub.f32 %v13127_v17, %v2398_v16  ;;  %v3717_v0 = vpop.xlane.xlu1 %3716  ;;  %vm4140_vm4 = vmor %vm4138_vm1, %vm4139_vm3  ;;  %v13130_v17 = vld [vmem:[#allocation82_spill] sm:$0xff] }
 0x377   : > { %13126 = vst [vmem:[#allocation12_spill] sm:$0xff] %v10699_v4  ;;  %v10705_v30 = vpop.xlane.xlu0 %2637  ;;  %v10707_v8 = vpop.eup %6680  ;;  %v3897_v33 = vmul.f32 1.442695, %v3783_v46  ;;  %v4156_v10 = vand.u32 2147483647, %v10662_v42  ;;  %vm2822_vm6 = vweird.f32 %v10634_v37  ;;  %vm10727_vm7 = vcmp.eq.f32.partialorder %v2826_v62, 8.507059e+37 }
 0x378   : > { %3232 = vst [vmem:[#allocation2 + $0x198] sm:$0xff] %v3167_v56  ;;  %v4136_v44 = vmul.f32 %v6677_v49, %v4135_v60  ;;  %v10710_v26 = vpop.xlane.xlu2 %3956  ;;  %v6683_v3 = vpop.eup %6682  ;;  %v3899_v18 = vmul.f32 1.442695, %v3784_v20  ;;  %v2581_v9 = vmul.f32 1.442695, %v2467_v12  ;;  %v2681_v16 = vadd.f32 %v10707_v8, %v10699_v4  ;;  %v13129_v60 = vld [vmem:[#allocation32_spill] sm:$0xff] }
 0x379   : > { %13128 = vst [vmem:[#allocation52_spill] sm:$0xff] %v10707_v8  ;;  %v2818_v35 = vmul.f32 %v6683_v3, %v10634_v37  ;;  %v4158_v56 = vand.u32 2147483648, %v10662_v42  ;;  %6686 = vpow2.f32 %v3897_v33  ;;  %v6685_v63 = vpop.eup %6684  ;;  %v3785_v46 = vsub.f32 %v13129_v60, %v3717_v0 }
 0x37a   : > { %3233 = vst [vmem:[#allocation2 + $0x550] sm:$0xff] %v3168_v39  ;;  %v4137_v43 = vadd.f32 %v6677_v49, %v4136_v44  ;;  %6688 = vpow2.f32 %v3899_v18  ;;  %v2583_v39 = vmul.f32 1.442695, %v2468_v6  ;;  %v3786_v20 = vsub.f32 %v13130_v17, %v3717_v0  ;;  %v13132_v18 = vld [vmem:[#allocation59_spill] sm:$0xff] }
 0x37b   : > { %v2819_v23 = vsub.f32 1.0, %v2818_v35  ;;  %vm2823_vm5 = vweird.f32 %v6683_v3  ;;  %v4148_v44 = vmul.f32 %v6685_v63, %v10662_v42  ;;  %6690 = vpow2.f32 %v2581_v9 }
 0x37c   : > { %v4141_v12 = vsel %vm4140_vm4, %v6677_v49, %v4137_v43  ;;  %2682 = vadd.xlane.f32.xlu0 %v2681_v16  ;;  %v3901_v33 = vmul.f32 1.442695, %v3785_v46  ;;  %v3903_v4 = vmul.f32 1.442695, %v3786_v20  ;;  %6692 = vpow2.f32 %v2583_v39  ;;  %vm2824_vm9 = vmor %vm2822_vm6, %vm2823_vm5 }
 0x37d   : > { %v4146_v8 = vsel %vm10694_vm2, %v4145_v14, %v4141_v12  ;;  %v2820_v27 = vmul.f32 %v6683_v3, %v2819_v23  ;;  %v4149_v60 = vsub.f32 1.0, %v4148_v44  ;;  %vm4153_vm8 = vweird.f32 %v6685_v63 }
 0x37e   : > { %v4485_v34 = vmul.f32 %v13131_v25, %v4146_v8  ;;  %v4486_v6 = vmul.f32 %v13132_v18, %v4146_v8  ;;  %6694 = vpow2.f32 %v3901_v33  ;;  %v10733_v9 = vpop.xlane.xlu1 %2640  ;;  %v2829_v37 = vor.u32 1.1754944e-38, %v2828_v24  ;;  %v13137_v24 = vld [vmem:[#allocation18_spill] sm:$0xff]  ;;  %v13139_v33 = vld [vmem:[#allocation19_spill] sm:$0xff]  ;;  %v13140_v18 = vld [vmem:[#allocation20_spill] sm:$0xff] }
 0x37f   : > { %v10731_v0 = vpop.eup %6686  ;;  %v2821_v1 = vadd.f32 %v6683_v3, %v2820_v27  ;;  %v4150_v14 = vmul.f32 %v6685_v63, %v4149_v60  ;;  %v2401_v16 = vpop.xlane.xlu0 %2400  ;;  %vm4152_vm10 = vweird.f32 %v10662_v42  ;;  %vm10739_vm11 = vcmp.eq.f32.partialorder %v4156_v10, 8.507059e+37  ;;  %v13138_v10 = vld [vmem:[#allocation66_spill] sm:$0xff] }
 0x380   : > { %4550 = vst [vmem:[#allocation2 + $0xb8] sm:$0xff] %v4485_v34  ;;  %v10735_v8 = vpop.eup %6688  ;;  %6696 = vpow2.f32 %v3903_v4  ;;  %v3720_v27 = vpop.xlane.xlu2 %3719  ;;  %v4159_v43 = vor.u32 1.1754944e-38, %v4158_v56  ;;  %vm4154_vm12 = vmor %vm4152_vm10, %vm4153_vm8  ;;  %v2842_v42 = vand.u32 2147483648, %v10705_v30  ;;  %v2840_v12 = vand.u32 2147483647, %v10705_v30 }
 0x381   : > { %4551 = vst [vmem:[#allocation2 + $0x10] sm:$0xff] %v4486_v6  ;;  %v2825_v34 = vsel %vm2824_vm9, %v6683_v3, %v2821_v1  ;;  %v4151_v62 = vadd.f32 %v6685_v63, %v4150_v14  ;;  %6698 = vrcp.f32 %v10705_v30  ;;  %v10744_v35 = vpop.eup %6690  ;;  %v4000_v4 = vadd.f32 %v10735_v8, %v10731_v0 }
 0x382   : > { %v2830_v39 = vsel %vm10727_vm7, %v2829_v37, %v2825_v34  ;;  %6700 = vrcp.f32 %v10710_v26  ;;  %v10756_v17 = vpop.eup %6692  ;;  %v2469_v60 = vsub.f32 %v9975_v5, %v2401_v16  ;;  %vm2836_vm13 = vweird.f32 %v10705_v30 }
 0x383   : > { %v3169_v3 = vmul.f32 %v13137_v24, %v2830_v39  ;;  %v3170_v56 = vmul.f32 %v13138_v10, %v2830_v39  ;;  %v4155_v46 = vsel %vm4154_vm12, %v6685_v63, %v4151_v62  ;;  %6702 = vrcp.f32 %v10733_v9  ;;  %4001 = vadd.xlane.f32.xlu2 %v4000_v4 }
 0x384   : > { %v4160_v20 = vsel %vm10739_vm11, %v4159_v43, %v4155_v46  ;;  %v10761_v44 = vpop.eup %6694  ;;  %v2684_v63 = vadd.f32 %v10756_v17, %v10744_v35  ;;  %v10771_v1 = vor.u32 1.1754944e-38, %v2842_v42  ;;  %v4170_v14 = vand.u32 2147483647, %v10710_v26 }
 0x385   : > { %3234 = vst [vmem:[#allocation2 + $0x418] sm:$0xff] %v3169_v3  ;;  %v4487_v25 = vmul.f32 %v13139_v33, %v4160_v20  ;;  %v4488_v6 = vmul.f32 %v13140_v18, %v4160_v20  ;;  %v2470_v37 = vsub.f32 %v10004_v13, %v2401_v16  ;;  %v3787_v23 = vsub.f32 %v10024_v47, %v3720_v27 }
 0x386   : > { %v10768_v49 = vpop.eup %6696  ;;  %3235 = vst [vmem:[#allocation2 + $0x5c8] sm:$0xff] %v3170_v56  ;;  %vm4166_vm14 = vweird.f32 %v10710_v26  ;;  %2685 = vadd.xlane.f32.xlu1 %v2684_v63  ;;  %v2854_v5 = vand.u32 2147483647, %v10733_v9  ;;  %v2585_v62 = vmul.f32 1.442695, %v2469_v60  ;;  %v3788_v43 = vsub.f32 %v10026_v11, %v3720_v27  ;;  %v2404_v42 = vpop.xlane.xlu1 %2403 }
 0x387   : > { %13141 = vst [vmem:[#allocation10_spill] sm:$0xff] %v10768_v49  ;;  %v6699_v34 = vpop.eup %6698  ;;  %v4003_v39 = vadd.f32 %v10768_v49, %v10761_v44  ;;  %v10781_v4 = vpop.xlane.xlu0 %3959  ;;  %vm10784_vm15 = vcmp.eq.f32.partialorder %v2840_v12, 8.507059e+37  ;;  %v4172_v16 = vand.u32 2147483648, %v10710_v26  ;;  %v2587_v3 = vmul.f32 1.442695, %v2470_v37 }
 0x388   : > { %4552 = vst [vmem:[#allocation2 + $0x20] sm:$0xff] %v4487_v25  ;;  %v6701_v24 = vpop.eup %6700  ;;  %v2832_v13 = vmul.f32 %v6699_v34, %v10705_v30  ;;  %v3905_v10 = vmul.f32 1.442695, %v3787_v23  ;;  %v10789_v56 = vpop.xlane.xlu2 %2643  ;;  %v2856_v46 = vand.u32 2147483648, %v10733_v9  ;;  %6704 = vpow2.f32 %v2585_v62 }
 0x389   : > { %4553 = vst [vmem:[#allocation2 + $0x78] sm:$0xff] %v4488_v6  ;;  %v6703_v11 = vpop.eup %6702  ;;  %v4162_v27 = vmul.f32 %v6701_v24, %v10710_v26  ;;  %v3907_v20 = vmul.f32 1.442695, %v3788_v43  ;;  %4004 = vadd.xlane.f32.xlu0 %v4003_v39  ;;  %vm2837_vm0 = vweird.f32 %v6699_v34  ;;  %6706 = vpow2.f32 %v2587_v3  ;;  %v13144_v6 = vld [vmem:[#allocation90_spill] sm:$0xff] }
 0x38a   : > { %v2833_v33 = vsub.f32 1.0, %v2832_v13  ;;  %v2846_v12 = vmul.f32 %v6703_v11, %v10733_v9  ;;  %6708 = vpow2.f32 %v3905_v10  ;;  %v2471_v18 = vsub.f32 %v10065_v45, %v2404_v42  ;;  %vm2838_vm4 = vmor %vm2836_vm13, %vm2837_vm0 }
 0x38b   : > { %v4163_v25 = vsub.f32 1.0, %v4162_v27  ;;  %v2472_v63 = vsub.f32 %v13144_v6, %v2404_v42  ;;  %vm4167_vm1 = vweird.f32 %v6701_v24  ;;  %6710 = vpow2.f32 %v3907_v20  ;;  %v13155_v6 = vld [vmem:[#allocation68_spill] sm:$0xff] }
 0x38c   : > { %v2834_v60 = vmul.f32 %v6699_v34, %v2833_v33  ;;  %v2847_v37 = vsub.f32 1.0, %v2846_v12  ;;  %v2589_v49 = vmul.f32 1.442695, %v2471_v18  ;;  %6712 = vrcp.f32 %v10781_v4  ;;  %vm10812_vm6 = vmor %vm4166_vm14, %vm4167_vm1 }
 0x38d   : > { %v4164_v23 = vmul.f32 %v6701_v24, %v4163_v25  ;;  %v2591_v62 = vmul.f32 1.442695, %v2472_v63  ;;  %vm10797_vm2 = vcmp.eq.f32.partialorder %v4170_v14, 8.507059e+37  ;;  %vm2851_vm3 = vweird.f32 %v6703_v11  ;;  %v13154_v25 = vld [vmem:[#allocation71_spill] sm:$0xff] }
 0x38e   : > { %v2835_v43 = vadd.f32 %v6699_v34, %v2834_v60  ;;  %v2848_v13 = vmul.f32 %v6703_v11, %v2847_v37  ;;  %v10801_v3 = vpop.eup %6704  ;;  %v4173_v42 = vor.u32 1.1754944e-38, %v4172_v16  ;;  %vm2850_vm5 = vweird.f32 %v10733_v9 }
 0x38f   : > { %v4165_v45 = vadd.f32 %v6701_v24, %v4164_v23  ;;  %6714 = vpow2.f32 %v2589_v49  ;;  %v10807_v10 = vpop.eup %6706  ;;  %vm10816_vm7 = vcmp.eq.f32.partialorder %v2854_v5, 8.507059e+37  ;;  %v10820_v30 = vpop.xlane.xlu1 %3962  ;;  %vm2852_vm8 = vmor %vm2850_vm5, %vm2851_vm3  ;;  %v13157_v23 = vld [vmem:[#allocation76_spill] sm:$0xff]  ;;  %v4186_v14 = vand.u32 2147483648, %v10781_v4 }
 0x390   : > { %13147 = vst [vmem:[#allocation54_spill] sm:$0xff] %v10807_v10  ;;  %v2839_v27 = vsel %vm2838_vm4, %v6699_v34, %v2835_v43  ;;  %v2849_v20 = vadd.f32 %v6703_v11, %v2848_v13  ;;  %6716 = vpow2.f32 %v2591_v62  ;;  %v10822_v9 = vpop.eup %6708  ;;  %v2857_v34 = vor.u32 1.1754944e-38, %v2856_v46  ;;  %v10831_v16 = vpop.xlane.xlu2 %2406  ;;  %v13158_v43 = vld [vmem:[#allocation77_spill] sm:$0xff] }
 0x391   : > { %13152 = vst [vmem:[#allocation17_spill] sm:$0xff] %v10822_v9  ;;  %v2844_v49 = vsel %vm10784_vm15, %v10771_v1, %v2839_v27  ;;  %v4169_v26 = vsel %vm10812_vm6, %v6701_v24, %v4165_v45  ;;  %6718 = vrcp.f32 %v10789_v56  ;;  %v3723_v5 = vpop.xlane.xlu0 %3722  ;;  %v10833_v12 = vpop.eup %6710  ;;  %v13156_v24 = vld [vmem:[#allocation73_spill] sm:$0xff]  ;;  %v4184_v27 = vand.u32 2147483647, %v10781_v4 }
 0x392   : > { %13153 = vst [vmem:[#allocation65_spill] sm:$0xff] %v10833_v12  ;;  %v3171_v18 = vmul.f32 %v13154_v25, %v2844_v49  ;;  %v3172_v63 = vmul.f32 %v13155_v6, %v2844_v49  ;;  %v4174_v1 = vsel %vm10797_vm2, %v4173_v42, %v4169_v26  ;;  %v2853_v47 = vsel %vm2852_vm8, %v6703_v11, %v2849_v20  ;;  %v6713_v60 = vpop.eup %6712  ;;  %v13160_v11 = vld [vmem:[#allocation21_spill] sm:$0xff] }
 0x393   : > { %v4489_v37 = vmul.f32 %v13156_v24, %v4174_v1  ;;  %v4490_v46 = vmul.f32 %v13157_v23, %v4174_v1  ;;  %v2858_v62 = vsel %vm10816_vm7, %v2857_v34, %v2853_v47  ;;  %v4176_v45 = vmul.f32 %v6713_v60, %v10781_v4  ;;  %v13172_v24 = vld [vmem:[#allocation106_spill] sm:$0xff] }
 0x394   : > { %3236 = vst [vmem:[#allocation2 + $0x340] sm:$0xff] %v3171_v18  ;;  %v3173_v13 = vmul.f32 %v13158_v43, %v2858_v62  ;;  %v3174_v42 = vmul.f32 %v13160_v11, %v2858_v62  ;;  %v2687_v20 = vadd.f32 %v10807_v10, %v10801_v3  ;;  %v4006_v33 = vadd.f32 %v10833_v12, %v10822_v9  ;;  %v13162_v18 = vld [vmem:[#allocation36_spill] sm:$0xff] }
 0x395   : > { %v10847_v39 = vpop.eup %6714  ;;  %3237 = vst [vmem:[#allocation2 + $0x360] sm:$0xff] %v3172_v63  ;;  %6720 = vrcp.f32 %v10820_v30  ;;  %v4177_v26 = vsub.f32 1.0, %v4176_v45  ;;  %vm4180_vm9 = vweird.f32 %v10781_v4  ;;  %vm2864_vm10 = vweird.f32 %v10789_v56  ;;  %v13163_v63 = vld [vmem:[#allocation91_spill] sm:$0xff]  ;;  %v13166_v45 = vld [vmem:[#allocation92_spill] sm:$0xff] }
 0x396   : > { %13159 = vst [vmem:[#allocation39_spill] sm:$0xff] %v10847_v39  ;;  %v10855_v49 = vpop.eup %6716  ;;  %v2868_v25 = vand.u32 2147483647, %v10789_v56  ;;  %2688 = vadd.xlane.f32.xlu2 %v2687_v20  ;;  %4007 = vadd.xlane.f32.xlu1 %v4006_v33  ;;  %v3789_v6 = vsub.f32 %v13162_v18, %v3723_v5  ;;  %v3790_v1 = vsub.f32 %v13163_v63, %v3723_v5  ;;  %vm4181_vm11 = vweird.f32 %v6713_v60  ;;  %v13167_v33 = vld [vmem:[#allocation93_spill] sm:$0xff] }
 0x397   : > { %13161 = vst [vmem:[#allocation105_spill] sm:$0xff] %v10855_v49  ;;  %v6719_v34 = vpop.eup %6718  ;;  %v4178_v47 = vmul.f32 %v6713_v60, %v4177_v26  ;;  %vm10862_vm12 = vcmp.eq.f32.partialorder %v4184_v27, 8.507059e+37  ;;  %v10867_v23 = vpop.xlane.xlu1 %3725  ;;  %v2473_v11 = vsub.f32 %v13166_v45, %v10831_v16  ;;  %v2474_v26 = vsub.f32 %v13167_v33, %v10831_v16  ;;  %vm4182_vm13 = vmor %vm4180_vm9, %vm4181_vm11  ;;  %v13170_v45 = vld [vmem:[#allocation22_spill] sm:$0xff] }
 0x398   : > { %4554 = vst [vmem:[#allocation2 + $0x210] sm:$0xff] %v4489_v37  ;;  %v2860_v37 = vmul.f32 %v6719_v34, %v10789_v56  ;;  %v3909_v62 = vmul.f32 1.442695, %v3789_v6  ;;  %v3911_v43 = vmul.f32 1.442695, %v3790_v1  ;;  %v2690_v18 = vadd.f32 %v10855_v49, %v10847_v39  ;;  %v13171_v49 = vld [vmem:[#allocation24_spill] sm:$0xff] }
 0x399   : > { %4555 = vst [vmem:[#allocation2 + $0x558] sm:$0xff] %v4490_v46  ;;  %v4187_v46 = vor.u32 1.1754944e-38, %v4186_v14  ;;  %v10871_v20 = vpop.xlane.xlu0 %2646  ;;  %v10873_v5 = vpop.xlane.xlu2 %3965  ;;  %vm10882_vm14 = vcmp.eq.f32.partialorder %v2868_v25, 8.507059e+37  ;;  %v2593_v6 = vmul.f32 1.442695, %v2473_v11  ;;  %vm2865_vm15 = vweird.f32 %v6719_v34 }
 0x39a   : > { %3238 = vst [vmem:[#allocation2 + $0x3b8] sm:$0xff] %v3173_v13  ;;  %v4179_v13 = vadd.f32 %v6713_v60, %v4178_v47  ;;  %v2861_v27 = vsub.f32 1.0, %v2860_v37  ;;  %6722 = vpow2.f32 %v3909_v62  ;;  %2691 = vadd.xlane.f32.xlu0 %v2690_v18  ;;  %v4198_v4 = vand.u32 2147483647, %v10820_v30  ;;  %vm2866_vm0 = vmor %vm2864_vm10, %vm2865_vm15 }
 0x39b   : > { %3239 = vst [vmem:[#allocation2 + $0x530] sm:$0xff] %v3174_v42  ;;  %v6721_v63 = vpop.eup %6720  ;;  %v2870_v42 = vand.u32 2147483648, %v10789_v56  ;;  %6724 = vpow2.f32 %v3911_v43  ;;  %v2595_v25 = vmul.f32 1.442695, %v2474_v26  ;;  %v4200_v11 = vand.u32 2147483648, %v10820_v30  ;;  %v13174_v56 = vld [vmem:[#allocation107_spill] sm:$0xff] }
 0x39c   : > { %v4183_v1 = vsel %vm4182_vm13, %v6713_v60, %v4179_v13  ;;  %v2862_v47 = vmul.f32 %v6719_v34, %v2861_v27  ;;  %v4190_v16 = vmul.f32 %v6721_v63, %v10820_v30  ;;  %6726 = vpow2.f32 %v2593_v6 }
 0x39d   : > { %v4188_v37 = vsel %vm10862_vm12, %v4187_v46, %v4183_v1  ;;  %v2871_v60 = vor.u32 1.1754944e-38, %v2870_v42  ;;  %v3791_v46 = vsub.f32 %v13172_v24, %v10867_v23  ;;  %vm4195_vm1 = vweird.f32 %v6721_v63  ;;  %v13175_v42 = vld [vmem:[#allocation79_spill] sm:$0xff]  ;;  %v13176_v1 = vld [vmem:[#allocation25_spill] sm:$0xff] }
 0x39e   : > { %v4491_v33 = vmul.f32 %v13170_v45, %v4188_v37  ;;  %v4492_v39 = vmul.f32 %v13171_v49, %v4188_v37  ;;  %v2863_v12 = vadd.f32 %v6719_v34, %v2862_v47  ;;  %v4191_v62 = vsub.f32 1.0, %v4190_v16 }
 0x39f   : > { %6728 = vpow2.f32 %v2595_v25  ;;  %v3792_v26 = vsub.f32 %v13174_v56, %v10867_v23  ;;  %vm4194_vm2 = vweird.f32 %v10820_v30  ;;  %vm4199_vm4 = vcmp.eq.f32.partialorder %v4198_v4, 8.507059e+37 }
 0x3a0   : > { %4556 = vst [vmem:[#allocation2 + $0x588] sm:$0xff] %v4491_v33  ;;  %v2867_v13 = vsel %vm2866_vm0, %v6719_v34, %v2863_v12  ;;  %v4192_v43 = vmul.f32 %v6721_v63, %v4191_v62  ;;  %v10898_v27 = vpop.eup %6722  ;;  %vm4196_vm3 = vmor %vm4194_vm2, %vm4195_vm1  ;;  %6730 = vrcp.f32 %v10871_v20  ;;  %v3913_v14 = vmul.f32 1.442695, %v3791_v46 }
 0x3a1   : > { %13173 = vst [vmem:[#allocation40_spill] sm:$0xff] %v10898_v27  ;;  %v2872_v49 = vsel %vm10882_vm14, %v2871_v60, %v2867_v13  ;;  %v2410_v18 = vpop.xlane.xlu0 %2409  ;;  %v10907_v12 = vpop.xlane.xlu1 %2649  ;;  %6732 = vrcp.f32 %v10873_v5  ;;  %v3915_v33 = vmul.f32 1.442695, %v3792_v26  ;;  %v2882_v62 = vand.u32 2147483647, %v10871_v20  ;;  %v13180_v60 = vld [vmem:[#allocation27_spill] sm:$0xff] }
 0x3a2   : > { %4557 = vst [vmem:[#allocation2 + $0x48] sm:$0xff] %v4492_v39  ;;  %v3175_v6 = vmul.f32 %v13175_v42, %v2872_v49  ;;  %v3176_v47 = vmul.f32 %v13176_v1, %v2872_v49  ;;  %v4193_v16 = vadd.f32 %v6721_v63, %v4192_v43  ;;  %v10909_v34 = vpop.xlane.xlu2 %3728  ;;  %v10911_v37 = vpop.eup %6724  ;;  %v4201_v39 = vor.u32 1.1754944e-38, %v4200_v11 }
 0x3a3   : > { %13177 = vst [vmem:[#allocation108_spill] sm:$0xff] %v10911_v37  ;;  %v4009_v25 = vadd.f32 %v10911_v37, %v10898_v27  ;;  %v10917_v30 = vpop.eup %6726  ;;  %6734 = vrcp.f32 %v10907_v12  ;;  %v2884_v46 = vand.u32 2147483648, %v10871_v20  ;;  %v4214_v13 = vand.u32 2147483648, %v10873_v5 }
 0x3a4   : > { %3240 = vst [vmem:[#allocation2 + $0x1f0] sm:$0xff] %v3175_v6  ;;  %v4197_v23 = vsel %vm4196_vm3, %v6721_v63, %v4193_v16  ;;  %v13181_v63 = vld [vmem:[#allocation81_spill] sm:$0xff]  ;;  %v4212_v43 = vand.u32 2147483647, %v10873_v5  ;;  %v2475_v56 = vsub.f32 %v10238_v31, %v2410_v18  ;;  %v2476_v26 = vsub.f32 %v10248_v41, %v2410_v18 }
 0x3a5   : > { %13178 = vst [vmem:[#allocation109_spill] sm:$0xff] %v10917_v30  ;;  %v4202_v45 = vsel %vm4199_vm4, %v4201_v39, %v4197_v23  ;;  %v10921_v4 = vpop.eup %6728  ;;  %4010 = vadd.xlane.f32.xlu2 %v4009_v25  ;;  %6736 = vpow2.f32 %v3913_v14  ;;  %vm2878_vm5 = vweird.f32 %v10871_v20  ;;  %vm4208_vm6 = vweird.f32 %v10873_v5 }
 0x3a6   : > { %3241 = vst [vmem:[#allocation2 + $0x3a0] sm:$0xff] %v3176_v47  ;;  %v4493_v11 = vmul.f32 %v13180_v60, %v4202_v45  ;;  %v4494_v24 = vmul.f32 %v13181_v63, %v4202_v45  ;;  %v2693_v49 = vadd.f32 %v10921_v4, %v10917_v30  ;;  %v6731_v42 = vpop.eup %6730  ;;  %6738 = vpow2.f32 %v3915_v33  ;;  %v13186_v60 = vld [vmem:[#allocation99_spill] sm:$0xff]  ;;  %v13199_v45 = vld [vmem:[#allocation33_spill] sm:$0xff] }
 0x3a7   : > { %13179 = vst [vmem:[#allocation110_spill] sm:$0xff] %v10921_v4  ;;  %v2597_v6 = vmul.f32 1.442695, %v2475_v56  ;;  %v2599_v1 = vmul.f32 1.442695, %v2476_v26  ;;  %v6733_v47 = vpop.eup %6732  ;;  %v2874_v16 = vmul.f32 %v6731_v42, %v10871_v20  ;;  %vm10935_vm7 = vcmp.eq.f32.partialorder %v2882_v62, 8.507059e+37 }
 0x3a8   : > { %4558 = vst [vmem:[#allocation2 + $0x118] sm:$0xff] %v4493_v11  ;;  %2694 = vadd.xlane.f32.xlu1 %v2693_v49  ;;  %v2885_v31 = vor.u32 1.1754944e-38, %v2884_v46  ;;  %v4215_v41 = vor.u32 1.1754944e-38, %v4214_v13  ;;  %vm2892_vm8 = vweird.f32 %v10907_v12  ;;  %v4204_v25 = vmul.f32 %v6733_v47, %v10873_v5  ;;  %v13187_v13 = vld [vmem:[#allocation95_spill] sm:$0xff] }
 0x3a9   : > { %4559 = vst [vmem:[#allocation2 + $0x478] sm:$0xff] %v4494_v24  ;;  %v2413_v18 = vpop.xlane.xlu1 %2412  ;;  %v10940_v23 = vpop.xlane.xlu0 %3968  ;;  %vm10943_vm9 = vcmp.eq.f32.partialorder %v4212_v43, 8.507059e+37  ;;  %v2896_v33 = vand.u32 2147483647, %v10907_v12  ;;  %v2898_v62 = vand.u32 2147483648, %v10907_v12  ;;  %v2875_v24 = vsub.f32 1.0, %v2874_v16 }
 0x3aa   : > { %v6735_v14 = vpop.eup %6734  ;;  %v2477_v11 = vsub.f32 %v13186_v60, %v2413_v18  ;;  %v10950_v63 = vpop.xlane.xlu2 %2652  ;;  %6740 = vpow2.f32 %v2597_v6  ;;  %v3793_v49 = vsub.f32 %v13187_v13, %v10909_v34  ;;  %v4205_v56 = vsub.f32 1.0, %v4204_v25  ;;  %v13188_v43 = vld [vmem:[#allocation46_spill] sm:$0xff]  ;;  %v13190_v60 = vld [vmem:[#allocation96_spill] sm:$0xff] }
 0x3ab   : > { %v2888_v46 = vmul.f32 %v6735_v14, %v10907_v12  ;;  %6742 = vpow2.f32 %v2599_v1  ;;  %v2478_v26 = vsub.f32 %v13188_v43, %v2413_v18  ;;  %v10956_v30 = vpop.eup %6736  ;;  %v2876_v37 = vmul.f32 %v6731_v42, %v2875_v24 }
 0x3ac   : > { %v2601_v4 = vmul.f32 1.442695, %v2477_v11  ;;  %13189 = vst [vmem:[#allocation61_spill] sm:$0xff] %v10956_v30  ;;  %vm2879_vm10 = vweird.f32 %v6731_v42  ;;  %v3794_v9 = vsub.f32 %v13190_v60, %v10909_v34  ;;  %v10960_v16 = vpop.eup %6738  ;;  %v4206_v10 = vmul.f32 %v6733_v47, %v4205_v56 }
 0x3ad   : > { %v2889_v27 = vsub.f32 1.0, %v2888_v46  ;;  %13191 = vst [vmem:[#allocation15_spill] sm:$0xff] %v10960_v16  ;;  %vm4209_vm11 = vweird.f32 %v6733_v47  ;;  %vm10962_vm12 = vcmp.eq.f32.partialorder %v2896_v33, 8.507059e+37  ;;  %v2603_v1 = vmul.f32 1.442695, %v2478_v26  ;;  %vm2880_vm14 = vmor %vm2878_vm5, %vm2879_vm10  ;;  %v13196_v26 = vld [vmem:[#allocation28_spill] sm:$0xff] }
 0x3ae   : > { %v2877_v25 = vadd.f32 %v6731_v42, %v2876_v37  ;;  %vm2893_vm13 = vweird.f32 %v6735_v14  ;;  %6744 = vrcp.f32 %v10940_v23  ;;  %v4207_v11 = vadd.f32 %v6733_v47, %v4206_v10  ;;  %vm4210_vm15 = vmor %vm4208_vm6, %vm4209_vm11 }
 0x3af   : > { %v2890_v18 = vmul.f32 %v6735_v14, %v2889_v27  ;;  %v2899_v24 = vor.u32 1.1754944e-38, %v2898_v62  ;;  %v3917_v34 = vmul.f32 1.442695, %v3793_v49  ;;  %6746 = vpow2.f32 %v2601_v4  ;;  %vm2894_vm0 = vmor %vm2892_vm8, %vm2893_vm13  ;;  %v13194_v4 = vld [vmem:[#allocation83_spill] sm:$0xff] }
 0x3b0   : > { %v10969_v46 = vpop.eup %6740  ;;  %v2881_v13 = vsel %vm2880_vm14, %v6731_v42, %v2877_v25  ;;  %v3919_v56 = vmul.f32 1.442695, %v3794_v9  ;;  %6748 = vrcp.f32 %v10950_v63  ;;  %v4211_v37 = vsel %vm4210_vm15, %v6733_v47, %v4207_v11  ;;  %v13195_v42 = vld [vmem:[#allocation85_spill] sm:$0xff] }
 0x3b1   : > { %v2891_v33 = vadd.f32 %v6735_v14, %v2890_v18  ;;  %v10974_v27 = vpop.eup %6742  ;;  %v2886_v20 = vsel %vm10935_vm7, %v2885_v31, %v2881_v13  ;;  %6750 = vpow2.f32 %v2603_v1  ;;  %v4226_v10 = vand.u32 2147483647, %v10940_v23  ;;  %v13197_v31 = vld [vmem:[#allocation86_spill] sm:$0xff]  ;;  %v13198_v18 = vld [vmem:[#allocation29_spill] sm:$0xff] }
 0x3b2   : > { %v3177_v5 = vmul.f32 %v13194_v4, %v2886_v20  ;;  %v3178_v62 = vmul.f32 %v13195_v42, %v2886_v20  ;;  %v4216_v9 = vsel %vm10943_vm9, %v4215_v41, %v4211_v37  ;;  %6752 = vpow2.f32 %v3917_v34  ;;  %v13202_v42 = vld [vmem:[#allocation44_spill] sm:$0xff] }
 0x3b3   : > { %v2895_v49 = vsel %vm2894_vm0, %v6735_v14, %v2891_v33  ;;  %v4495_v39 = vmul.f32 %v13196_v26, %v4216_v9  ;;  %v4496_v47 = vmul.f32 %v13197_v31, %v4216_v9  ;;  %6754 = vpow2.f32 %v3919_v56 }
 0x3b4   : > { %v3732_v43 = vpop.xlane.xlu0 %3731  ;;  %v2900_v12 = vsel %vm10962_vm12, %v2899_v24, %v2895_v49  ;;  %v2416_v1 = vpop.xlane.xlu2 %2415  ;;  %3242 = vst [vmem:[#allocation2 + $0x460] sm:$0xff] %v3177_v5  ;;  %v2696_v41 = vadd.f32 %v10974_v27, %v10969_v46  ;;  %vm4222_vm1 = vweird.f32 %v10940_v23  ;;  %vm11001_vm2 = vcmp.eq.f32.partialorder %v4226_v10, 8.507059e+37  ;;  %v13203_v49 = vld [vmem:[#allocation101_spill] sm:$0xff] }
 0x3b5   : > { %v10990_v60 = vpop.xlane.xlu1 %3971  ;;  %v6745_v25 = vpop.eup %6744  ;;  %v3179_v11 = vmul.f32 %v13198_v18, %v2900_v12  ;;  %3243 = vst [vmem:[#allocation2 + $0x2c8] sm:$0xff] %v3178_v62  ;;  %v3180_v13 = vmul.f32 %v13199_v45, %v2900_v12  ;;  %v4228_v33 = vand.u32 2147483648, %v10940_v23  ;;  %v3795_v56 = vsub.f32 %v10394_v38, %v3732_v43 }
 0x3b6   : > { %v10995_v14 = vpop.eup %6746  ;;  %v4218_v6 = vmul.f32 %v6745_v25, %v10940_v23  ;;  %6756 = vrcp.f32 %v10990_v60  ;;  %4560 = vst [vmem:[#allocation2 + $0x3f8] sm:$0xff] %v4495_v39  ;;  %2697 = vadd.xlane.f32.xlu2 %v2696_v41  ;;  %v3796_v20 = vsub.f32 %v10396_v36, %v3732_v43  ;;  %vm2906_vm3 = vweird.f32 %v10950_v63 }
 0x3b7   : > { %v6749_v24 = vpop.eup %6748  ;;  %4561 = vst [vmem:[#allocation2 + $0x380] sm:$0xff] %v4496_v47  ;;  %v2479_v10 = vsub.f32 %v13202_v42, %v2416_v1  ;;  %vm4223_vm4 = vweird.f32 %v6745_v25  ;;  %v2910_v62 = vand.u32 2147483647, %v10950_v63  ;;  %v3921_v9 = vmul.f32 1.442695, %v3795_v56 }
 0x3b8   : > { %v11008_v37 = vpop.eup %6750  ;;  %v4219_v4 = vsub.f32 1.0, %v4218_v6  ;;  %v2902_v5 = vmul.f32 %v6749_v24, %v10950_v63  ;;  %3244 = vst [vmem:[#allocation2 + $0x1d0] sm:$0xff] %v3179_v11  ;;  %v2480_v26 = vsub.f32 %v13203_v49, %v2416_v1  ;;  %v3923_v39 = vmul.f32 1.442695, %v3796_v20  ;;  %vm4224_vm6 = vmor %vm4222_vm1, %vm4223_vm4  ;;  %v13206_v49 = vld [vmem:[#allocation84_spill] sm:$0xff] }
 0x3b9   : > { %v11015_v38 = vpop.eup %6752  ;;  %3245 = vst [vmem:[#allocation2 + $0x4f0] sm:$0xff] %v3180_v13  ;;  %v2605_v31 = vmul.f32 1.442695, %v2479_v10  ;;  %v2912_v12 = vand.u32 2147483648, %v10950_v63  ;;  %6758 = vpow2.f32 %v3921_v9  ;;  %v2699_v11 = vadd.f32 %v11008_v37, %v10995_v14 }
 0x3ba   : > { %v4220_v36 = vmul.f32 %v6745_v25, %v4219_v4  ;;  %v2903_v43 = vsub.f32 1.0, %v2902_v5  ;;  %v11017_v47 = vpop.eup %6754  ;;  %v2607_v18 = vmul.f32 1.442695, %v2480_v26  ;;  %vm2907_vm5 = vweird.f32 %v6749_v24 }
 0x3bb   : > { %6760 = vpow2.f32 %v3923_v39  ;;  %v4229_v56 = vor.u32 1.1754944e-38, %v4228_v33  ;;  %vm11029_vm7 = vcmp.eq.f32.partialorder %v2910_v62, 8.507059e+37  ;;  %2700 = vadd.xlane.f32.xlu0 %v2699_v11  ;;  %v4240_v10 = vand.u32 2147483647, %v10990_v60  ;;  %vm2908_vm8 = vmor %vm2906_vm3, %vm2907_vm5 }
 0x3bc   : > { %v6757_v41 = vpop.eup %6756  ;;  %v4221_v45 = vadd.f32 %v6745_v25, %v4220_v36  ;;  %v2904_v6 = vmul.f32 %v6749_v24, %v2903_v43  ;;  %v11024_v13 = vpop.xlane.xlu0 %2655  ;;  %6762 = vpow2.f32 %v2605_v31  ;;  %v2913_v33 = vor.u32 1.1754944e-38, %v2912_v12  ;;  %v13210_v12 = vld [vmem:[#allocation88_spill] sm:$0xff] }
 0x3bd   : > { %v11022_v1 = vpop.xlane.xlu1 %2658  ;;  %v4232_v4 = vmul.f32 %v6757_v41, %v10990_v60  ;;  %6764 = vpow2.f32 %v2607_v18  ;;  %v4242_v39 = vand.u32 2147483648, %v10990_v60  ;;  %vm4237_vm9 = vweird.f32 %v6757_v41 }
 0x3be   : > { %v4225_v5 = vsel %vm4224_vm6, %v6745_v25, %v4221_v45  ;;  %v2905_v42 = vadd.f32 %v6749_v24, %v2904_v6  ;;  %v11035_v9 = vpop.xlane.xlu2 %3974  ;;  %6766 = vrcp.f32 %v11022_v1  ;;  %v13207_v25 = vld [vmem:[#allocation87_spill] sm:$0xff]  ;;  %v13211_v45 = vld [vmem:[#allocation89_spill] sm:$0xff]  ;;  %vm4236_vm10 = vweird.f32 %v10990_v60 }
 0x3bf   : > { %v4230_v23 = vsel %vm11001_vm2, %v4229_v56, %v4225_v5  ;;  %v4233_v62 = vsub.f32 1.0, %v4232_v4  ;;  %v11046_v31 = vpop.eup %6758  ;;  %6768 = vrcp.f32 %v11024_v13  ;;  %vm11056_vm11 = vcmp.eq.f32.partialorder %v4240_v10, 8.507059e+37  ;;  %vm4238_vm12 = vmor %vm4236_vm10, %vm4237_vm9 }
 0x3c0   : > { %v4497_v26 = vmul.f32 %v13206_v49, %v4230_v23  ;;  %v4498_v36 = vmul.f32 %v13207_v25, %v4230_v23  ;;  %v2909_v43 = vsel %vm2908_vm8, %v6749_v24, %v2905_v42  ;;  %13208 = vst [vmem:[#allocation63_spill] sm:$0xff] %v11046_v31  ;;  %v2938_v4 = vand.u32 2147483647, %v11022_v1 }
 0x3c1   : > { %v2914_v34 = vsel %vm11029_vm7, %v2913_v33, %v2909_v43  ;;  %v4234_v18 = vmul.f32 %v6757_v41, %v4233_v62  ;;  %v11051_v63 = vpop.eup %6760  ;;  %6770 = vrcp.f32 %v11035_v9  ;;  %v4012_v5 = vadd.f32 %v10960_v16, %v10956_v30 }
 0x3c2   : > { %13209 = vst [vmem:[#allocation64_spill] sm:$0xff] %v11051_v63  ;;  %v3181_v11 = vmul.f32 %v13210_v12, %v2914_v34  ;;  %v3182_v6 = vmul.f32 %v13211_v45, %v2914_v34  ;;  %v11060_v56 = vpop.eup %6762  ;;  %v4243_v60 = vor.u32 1.1754944e-38, %v4242_v39  ;;  %v2940_v10 = vand.u32 2147483648, %v11022_v1  ;;  %v13216_v12 = vld [vmem:[#allocation34_spill] sm:$0xff]  ;;  %v13217_v45 = vld [vmem:[#allocation35_spill] sm:$0xff] }
 0x3c3   : > { %4562 = vst [vmem:[#allocation2 + $0x578] sm:$0xff] %v4497_v26  ;;  %v4235_v20 = vadd.f32 %v6757_v41, %v4234_v18  ;;  %v11066_v42 = vpop.eup %6764  ;;  %v2924_v23 = vand.u32 2147483647, %v11024_v13  ;;  %v4018_v33 = vadd.f32 %v11051_v63, %v11046_v31  ;;  %v2926_v25 = vand.u32 2147483648, %v11024_v13  ;;  %4013 = vadd.xlane.f32.xlu0 %v4012_v5 }
 0x3c4   : > { %13214 = vst [vmem:[#allocation111_spill] sm:$0xff] %v11060_v56  ;;  %v6767_v49 = vpop.eup %6766  ;;  %vm2934_vm13 = vweird.f32 %v11022_v1  ;;  %vm2920_vm14 = vweird.f32 %v11024_v13  ;;  %v4254_v34 = vand.u32 2147483647, %v11035_v9  ;;  %vm11089_vm15 = vcmp.eq.f32.partialorder %v2938_v4, 8.507059e+37 }
 0x3c5   : > { %4563 = vst [vmem:[#allocation2 + $0x170] sm:$0xff] %v4498_v36  ;;  %v11073_v62 = vpop.xlane.xlu1 %3980  ;;  %v4239_v26 = vsel %vm4238_vm12, %v6757_v41, %v4235_v20  ;;  %v2702_v36 = vadd.f32 %v11066_v42, %v11060_v56  ;;  %v2930_v39 = vmul.f32 %v6767_v49, %v11022_v1  ;;  %4019 = vadd.xlane.f32.xlu2 %v4018_v33  ;;  %v11085_v41 = vpop.xlane.xlu0 %3977  ;;  %v4256_v24 = vand.u32 2147483648, %v11035_v9 }
 0x3c6   : > { %13215 = vst [vmem:[#allocation112_spill] sm:$0xff] %v11066_v42  ;;  %6772 = vrcp.f32 %v11073_v62  ;;  %v4244_v43 = vsel %vm11056_vm11, %v4243_v60, %v4239_v26  ;;  %v6769_v18 = vpop.eup %6768  ;;  %v2941_v60 = vor.u32 1.1754944e-38, %v2940_v10  ;;  %vm4250_vm0 = vweird.f32 %v11035_v9  ;;  %v11096_v33 = vpop.xlane.xlu2 %2661 }
 0x3c7   : > { %3246 = vst [vmem:[#allocation2 + $0x50] sm:$0xff] %v3181_v11  ;;  %v4499_v11 = vmul.f32 %v13216_v12, %v4244_v43  ;;  %2703 = vadd.xlane.f32.xlu1 %v2702_v36  ;;  %v2931_v5 = vsub.f32 1.0, %v2930_v39  ;;  %v2916_v26 = vmul.f32 %v6769_v18, %v11024_v13  ;;  %v6771_v42 = vpop.eup %6770  ;;  %vm11098_vm1 = vcmp.eq.f32.partialorder %v2924_v23, 8.507059e+37 }
 0x3c8   : > { %3247 = vst [vmem:[#allocation2 + $0x4a0] sm:$0xff] %v3182_v6  ;;  %v4500_v6 = vmul.f32 %v13217_v45, %v4244_v43  ;;  %v2927_v4 = vor.u32 1.1754944e-38, %v2926_v25  ;;  %v4282_v43 = vand.u32 2147483647, %v11073_v62  ;;  %6774 = vrcp.f32 %v11085_v41 }
 0x3c9   : > { %4564 = vst [vmem:[#allocation2 + $0x1a0] sm:$0xff] %v4499_v11  ;;  %v2932_v36 = vmul.f32 %v6767_v49, %v2931_v5  ;;  %vm2935_vm2 = vweird.f32 %v6767_v49  ;;  %v2917_v10 = vsub.f32 1.0, %v2916_v26  ;;  %v4246_v39 = vmul.f32 %v6771_v42, %v11035_v9 }
 0x3ca   : > { %4565 = vst [vmem:[#allocation2 + $0x288] sm:$0xff] %v4500_v6  ;;  %vm11105_vm3 = vcmp.eq.f32.partialorder %v4254_v34, 8.507059e+37  ;;  %vm2921_vm4 = vweird.f32 %v6769_v18  ;;  %v4257_v23 = vor.u32 1.1754944e-38, %v4256_v24  ;;  %v4284_v56 = vand.u32 2147483648, %v11073_v62  ;;  %vm2936_vm5 = vmor %vm2934_vm13, %vm2935_vm2 }
 0x3cb   : > { %6776 = vrcp.f32 %v11096_v33  ;;  %v2933_v25 = vadd.f32 %v6767_v49, %v2932_v36  ;;  %v2918_v16 = vmul.f32 %v6769_v18, %v2917_v10  ;;  %v4247_v63 = vsub.f32 1.0, %v4246_v39  ;;  %vm2922_vm9 = vmor %vm2920_vm14, %vm2921_vm4 }
 0x3cc   : > { %v6773_v11 = vpop.eup %6772  ;;  %vm4251_vm6 = vweird.f32 %v6771_v42  ;;  %vm4278_vm7 = vweird.f32 %v11073_v62  ;;  %vm11115_vm8 = vcmp.eq.f32.partialorder %v4282_v43, 8.507059e+37  ;;  %v4268_v24 = vand.u32 2147483647, %v11085_v41 }
 0x3cd   : > { %v4274_v6 = vmul.f32 %v6773_v11, %v11073_v62  ;;  %v2937_v5 = vsel %vm2936_vm5, %v6767_v49, %v2933_v25  ;;  %v2919_v26 = vadd.f32 %v6769_v18, %v2918_v16  ;;  %v4248_v31 = vmul.f32 %v6771_v42, %v4247_v63  ;;  %vm4252_vm10 = vmor %vm4250_vm0, %vm4251_vm6  ;;  %v11144_v12 = vpop.xlane.xlu0 %2664 }
 0x3ce   : > { %v11120_v10 = vpop.eup %6774  ;;  %v2942_v39 = vsel %vm11089_vm15, %v2941_v60, %v2937_v5  ;;  %v4285_v1 = vor.u32 1.1754944e-38, %v4284_v56  ;;  %v4270_v43 = vand.u32 2147483648, %v11085_v41  ;;  %v4015_v30 = vadd.f32 %v11017_v47, %v11015_v38 }
 0x3cf   : > { %v4275_v36 = vsub.f32 1.0, %v4274_v6  ;;  %v3185_v49 = vmul.f32 %v10190_v55, %v2942_v39  ;;  %v3186_v16 = vmul.f32 %v10215_v48, %v2942_v39  ;;  %v2923_v63 = vsel %vm2922_vm9, %v6769_v18, %v2919_v26  ;;  %v11132_v6 = vpop.xlane.xlu1 %2667 }
 0x3d0   : > { %v4249_v25 = vadd.f32 %v6771_v42, %v4248_v31  ;;  %v2928_v60 = vsel %vm11098_vm1, %v2927_v4, %v2923_v63  ;;  %vm4279_vm11 = vweird.f32 %v6773_v11  ;;  %v4260_v56 = vmul.f32 %v11120_v10, %v11085_v41  ;;  %4016 = vadd.xlane.f32.xlu1 %v4015_v30 }
 0x3d1   : > { %v6777_v20 = vpop.eup %6776  ;;  %v4276_v13 = vmul.f32 %v6773_v11, %v4275_v36  ;;  %3250 = vst [vmem:[#allocation2 + $0x458] sm:$0xff] %v3185_v49  ;;  %v3183_v55 = vmul.f32 %v10108_v52, %v2928_v60  ;;  %v3184_v48 = vmul.f32 %v10116_v53, %v2928_v60  ;;  %v2952_v26 = vand.u32 2147483647, %v11096_v33  ;;  %v13226_v36 = vld [vmem:[#allocation94_spill] sm:$0xff]  ;;  %vm4280_vm12 = vmor %vm4278_vm7, %vm4279_vm11  ;;  %v13227_v49 = vld [vmem:[#allocation100_spill] sm:$0xff] }
 0x3d2   : > { %v4253_v31 = vsel %vm4252_vm10, %v6771_v42, %v4249_v25  ;;  %v2944_v18 = vmul.f32 %v6777_v20, %v11096_v33  ;;  %3251 = vst [vmem:[#allocation2 + $0x498] sm:$0xff] %v3186_v16  ;;  %v4261_v5 = vsub.f32 1.0, %v4260_v56  ;;  %v2954_v42 = vand.u32 2147483648, %v11096_v33 }
 0x3d3   : > { %v4258_v9 = vsel %vm11105_vm3, %v4257_v23, %v4253_v31  ;;  %v4277_v4 = vadd.f32 %v6773_v11, %v4276_v13  ;;  %3248 = vst [vmem:[#allocation2 + $0x468] sm:$0xff] %v3183_v55  ;;  %vm4265_vm13 = vweird.f32 %v11120_v10  ;;  %6778 = vrcp.f32 %v11132_v6  ;;  %v11158_v23 = vpop.xlane.xlu2 %3983  ;;  %v13229_v31 = vld [vmem:[#allocation113_spill] sm:$0xff] }
 0x3d4   : > { %v4501_v30 = vmul.f32 %v10161_v59, %v4258_v9  ;;  %v4502_v52 = vmul.f32 %v13226_v36, %v4258_v9  ;;  %v2945_v53 = vsub.f32 1.0, %v2944_v18  ;;  %3249 = vst [vmem:[#allocation2 + $0x278] sm:$0xff] %v3184_v48  ;;  %v4262_v45 = vmul.f32 %v11120_v10, %v4261_v5  ;;  %v13230_v18 = vld [vmem:[#allocation114_spill] sm:$0xff] }
 0x3d5   : > { %v4281_v39 = vsel %vm4280_vm12, %v6773_v11, %v4277_v4  ;;  %vm4264_vm14 = vweird.f32 %v11085_v41  ;;  %vm2949_vm15 = vweird.f32 %v6777_v20  ;;  %v13228_v11 = vld [vmem:[#allocation115_spill] sm:$0xff]  ;;  %6780 = vrcp.f32 %v11144_v12  ;;  %v13231_v4 = vld [vmem:[#allocation97_spill] sm:$0xff] }
 0x3d6   : > { %4566 = vst [vmem:[#allocation2 + $0x140] sm:$0xff] %v4501_v30  ;;  %v4286_v59 = vsel %vm11115_vm8, %v4285_v1, %v4281_v39  ;;  %v2946_v62 = vmul.f32 %v6777_v20, %v2945_v53  ;;  %v4263_v25 = vadd.f32 %v11120_v10, %v4262_v45  ;;  %vm4266_vm0 = vmor %vm4264_vm14, %vm4265_vm13  ;;  %vm4269_vm1 = vcmp.eq.f32.partialorder %v4268_v24, 8.507059e+37 }
 0x3d7   : > { %4567 = vst [vmem:[#allocation2 + $0x300] sm:$0xff] %v4502_v52  ;;  %v4505_v16 = vmul.f32 %v13227_v49, %v4286_v59  ;;  %v4506_v63 = vmul.f32 %v13228_v11, %v4286_v59  ;;  %v4271_v60 = vor.u32 1.1754944e-38, %v4270_v43  ;;  %vm2948_vm2 = vweird.f32 %v11096_v33  ;;  %v11179_v52 = vpop.xlane.xlu0 %3986 }
 0x3d8   : > { %v2947_v13 = vadd.f32 %v6777_v20, %v2946_v62  ;;  %v4267_v41 = vsel %vm4266_vm0, %v11120_v10, %v4263_v25  ;;  %vm2950_vm3 = vmor %vm2948_vm2, %vm2949_vm15  ;;  %vm2953_vm4 = vcmp.eq.f32.partialorder %v2952_v26, 8.507059e+37  ;;  %v2955_v34 = vor.u32 1.1754944e-38, %v2954_v42  ;;  %v11172_v24 = vpop.xlane.xlu1 %3989  ;;  %v13232_v26 = vld [vmem:[#allocation98_spill] sm:$0xff] }
 0x3d9   : > { %4570 = vst [vmem:[#allocation2 + $0x158] sm:$0xff] %v4505_v16  ;;  %6782 = vrcp.f32 %v11158_v23  ;;  %v4272_v1 = vsel %vm4269_vm1, %v4271_v60, %v4267_v41  ;;  %v2980_v55 = vand.u32 2147483647, %v11132_v6  ;;  %v2982_v48 = vand.u32 2147483648, %v11132_v6  ;;  %v6779_v43 = vpop.eup %6778 }
 0x3da   : > { %4571 = vst [vmem:[#allocation2 + $0x348] sm:$0xff] %v4506_v63  ;;  %v2951_v56 = vsel %vm2950_vm3, %v6777_v20, %v2947_v13  ;;  %v4503_v33 = vmul.f32 %v13229_v31, %v4272_v1  ;;  %v4504_v9 = vmul.f32 %v13230_v18, %v4272_v1  ;;  %v2972_v36 = vmul.f32 %v6779_v43, %v11132_v6 }
 0x3db   : > { %v2956_v10 = vsel %vm2953_vm4, %v2955_v34, %v2951_v56  ;;  %v6781_v20 = vpop.eup %6780  ;;  %vm2976_vm5 = vweird.f32 %v11132_v6  ;;  %v2966_v53 = vand.u32 2147483647, %v11144_v12  ;;  %v2968_v42 = vand.u32 2147483648, %v11144_v12  ;;  %v11194_v11 = vpop.xlane.xlu2 %2670 }
 0x3dc   : > { %v3187_v5 = vmul.f32 %v13231_v4, %v2956_v10  ;;  %v3188_v30 = vmul.f32 %v13232_v26, %v2956_v10  ;;  %4568 = vst [vmem:[#allocation2] sm:$0xff] %v4503_v33  ;;  %6784 = vrcp.f32 %v11172_v24  ;;  %v2973_v39 = vsub.f32 1.0, %v2972_v36 }
 0x3dd   : > { %4569 = vst [vmem:[#allocation2 + $0x320] sm:$0xff] %v4504_v9  ;;  %vm11185_vm6 = vcmp.eq.f32.partialorder %v2980_v55, 8.507059e+37  ;;  %v2983_v59 = vor.u32 1.1754944e-38, %v2982_v48  ;;  %v2958_v62 = vmul.f32 %v6781_v20, %v11144_v12  ;;  %vm2962_vm7 = vweird.f32 %v11144_v12 }
 0x3de   : > { %3252 = vst [vmem:[#allocation2 + $0x400] sm:$0xff] %v3187_v5  ;;  %vm4292_vm8 = vweird.f32 %v11158_v23  ;;  %v4296_v16 = vand.u32 2147483647, %v11158_v23  ;;  %6786 = vrcp.f32 %v11179_v52  ;;  %v2974_v63 = vmul.f32 %v6779_v43, %v2973_v39 }
 0x3df   : > { %v6783_v49 = vpop.eup %6782  ;;  %3253 = vst [vmem:[#allocation2 + $0x5d8] sm:$0xff] %v3188_v30  ;;  %vm2977_vm9 = vweird.f32 %v6779_v43  ;;  %v2959_v25 = vsub.f32 1.0, %v2958_v62  ;;  %vm11197_vm10 = vcmp.eq.f32.partialorder %v2966_v53, 8.507059e+37  ;;  %v2969_v41 = vor.u32 1.1754944e-38, %v2968_v42  ;;  %v13241_v53 = vld [vmem:[#allocation37_spill] sm:$0xff] }
 0x3e0   : > { %v4288_v60 = vmul.f32 %v6783_v49, %v11158_v23  ;;  %v4298_v34 = vand.u32 2147483648, %v11158_v23  ;;  %v4324_v1 = vand.u32 2147483647, %v11172_v24  ;;  %v2975_v56 = vadd.f32 %v6779_v43, %v2974_v63  ;;  %vm2978_vm12 = vmor %vm2976_vm5, %vm2977_vm9  ;;  %v13242_v42 = vld [vmem:[#allocation45_spill] sm:$0xff]  ;;  %v11223_v63 = vpop.xlane.xlu1 %2676 }
 0x3e1   : > { %v2960_v55 = vmul.f32 %v6781_v20, %v2959_v25  ;;  %vm2963_vm11 = vweird.f32 %v6781_v20  ;;  %vm4293_vm13 = vweird.f32 %v6783_v49  ;;  %vm11205_vm14 = vcmp.eq.f32.partialorder %v4296_v16, 8.507059e+37 }
 0x3e2   : > { %v4289_v48 = vsub.f32 1.0, %v4288_v60  ;;  %v6785_v31 = vpop.eup %6784  ;;  %vm4320_vm15 = vweird.f32 %v11172_v24  ;;  %6788 = vrcp.f32 %v11194_v11  ;;  %v2979_v18 = vsel %vm2978_vm12, %v6779_v43, %v2975_v56  ;;  %vm2964_vm0 = vmor %vm2962_vm7, %vm2963_vm11  ;;  %v13243_v60 = vld [vmem:[#allocation13_spill] sm:$0xff] }
 0x3e3   : > { %v2961_v9 = vadd.f32 %v6781_v20, %v2960_v55  ;;  %v4316_v4 = vmul.f32 %v6785_v31, %v11172_v24  ;;  %v2984_v26 = vsel %vm11185_vm6, %v2983_v59, %v2979_v18  ;;  %v4299_v6 = vor.u32 1.1754944e-38, %v4298_v34  ;;  %vm4294_vm2 = vmor %vm4292_vm8, %vm4293_vm13  ;;  %v11234_v55 = vpop.xlane.xlu0 %2673  ;;  %v11239_v18 = vpop.xlane.xlu2 %3992 }
 0x3e4   : > { %v4290_v10 = vmul.f32 %v6783_v49, %v4289_v48  ;;  %v6787_v5 = vpop.eup %6786  ;;  %vm11216_vm1 = vcmp.eq.f32.partialorder %v4324_v1, 8.507059e+37  ;;  %v4326_v36 = vand.u32 2147483648, %v11172_v24  ;;  %v3191_v43 = vmul.f32 %v13241_v53, %v2984_v26  ;;  %v13244_v1 = vld [vmem:[#allocation11_spill] sm:$0xff] }
 0x3e5   : > { %v3192_v39 = vmul.f32 %v13242_v42, %v2984_v26  ;;  %v2965_v62 = vsel %vm2964_vm0, %v6781_v20, %v2961_v9  ;;  %v4317_v12 = vsub.f32 1.0, %v4316_v4  ;;  %v4302_v59 = vmul.f32 %v6787_v5, %v11179_v52 }
 0x3e6   : > { %v4291_v16 = vadd.f32 %v6783_v49, %v4290_v10  ;;  %v2970_v45 = vsel %vm11197_vm10, %v2969_v41, %v2965_v62  ;;  %v4310_v25 = vand.u32 2147483647, %v11179_v52  ;;  %3256 = vst [vmem:[#allocation2 + $0x178] sm:$0xff] %v3191_v43  ;;  %vm4321_vm3 = vweird.f32 %v6785_v31 }
 0x3e7   : > { %v3189_v34 = vmul.f32 %v13243_v60, %v2970_v45  ;;  %v3190_v20 = vmul.f32 %v13244_v1, %v2970_v45  ;;  %3257 = vst [vmem:[#allocation2 + $0x538] sm:$0xff] %v3192_v39  ;;  %v4318_v41 = vmul.f32 %v6785_v31, %v4317_v12  ;;  %v4303_v48 = vsub.f32 1.0, %v4302_v59  ;;  %vm4322_vm5 = vmor %vm4320_vm15, %vm4321_vm3 }
 0x3e8   : > { %v4295_v56 = vsel %vm4294_vm2, %v6783_v49, %v4291_v16  ;;  %v6789_v13 = vpop.eup %6788  ;;  %6790 = vrcp.f32 %v11223_v63  ;;  %v4312_v49 = vand.u32 2147483648, %v11179_v52  ;;  %v4327_v53 = vor.u32 1.1754944e-38, %v4326_v36 }
 0x3e9   : > { %v4300_v23 = vsel %vm11205_vm14, %v4299_v6, %v4295_v56  ;;  %3254 = vst [vmem:[#allocation2 + $0xe8] sm:$0xff] %v3189_v34  ;;  %v2986_v4 = vmul.f32 %v6789_v13, %v11194_v11  ;;  %v4319_v26 = vadd.f32 %v6785_v31, %v4318_v41  ;;  %v4304_v33 = vmul.f32 %v6787_v5, %v4303_v48 }
 0x3ea   : > { %v4507_v9 = vmul.f32 %v10380_v21, %v4300_v23  ;;  %v4508_v10 = vmul.f32 %v10418_v19, %v4300_v23  ;;  %3255 = vst [vmem:[#allocation2 + $0x160] sm:$0xff] %v3190_v20  ;;  %vm4307_vm4 = vweird.f32 %v6787_v5  ;;  %vm4306_vm6 = vweird.f32 %v11179_v52 }
 0x3eb   : > { %v2987_v6 = vsub.f32 1.0, %v2986_v4  ;;  %v2994_v21 = vand.u32 2147483647, %v11194_v11  ;;  %6792 = vrcp.f32 %v11234_v55  ;;  %v4323_v19 = vsel %vm4322_vm5, %v6785_v31, %v4319_v26  ;;  %vm4308_vm8 = vmor %vm4306_vm6, %vm4307_vm4  ;;  %v11267_v20 = vpop.xlane.xlu0 %3995  ;;  %v11273_v23 = vpop.xlane.xlu2 %2679 }
 0x3ec   : > { %4572 = vst [vmem:[#allocation2 + $0x2d8] sm:$0xff] %v4507_v9  ;;  %v4305_v43 = vadd.f32 %v6787_v5, %v4304_v33  ;;  %vm4311_vm7 = vcmp.eq.f32.partialorder %v4310_v25, 8.507059e+37  ;;  %v2996_v36 = vand.u32 2147483648, %v11194_v11  ;;  %v4328_v42 = vsel %vm11216_vm1, %v4327_v53, %v4323_v19 }
 0x3ed   : > { %4573 = vst [vmem:[#allocation2 + $0x168] sm:$0xff] %v4508_v10  ;;  %v4313_v39 = vor.u32 1.1754944e-38, %v4312_v49  ;;  %v2988_v24 = vmul.f32 %v6789_v13, %v2987_v6  ;;  %vm2991_vm9 = vweird.f32 %v6789_v13  ;;  %v4511_v52 = vmul.f32 %v10528_v22, %v4328_v42 }
 0x3ee   : > { %v6791_v62 = vpop.eup %6790  ;;  %v4512_v16 = vmul.f32 %v10536_v29, %v4328_v42  ;;  %v4309_v45 = vsel %vm4308_vm8, %v6787_v5, %v4305_v43  ;;  %vm2990_vm10 = vweird.f32 %v11194_v11  ;;  %vm11257_vm11 = vcmp.eq.f32.partialorder %v2994_v21, 8.507059e+37  ;;  %v11290_v21 = vpop.xlane.xlu1 %3998 }
 0x3ef   : > { %v4314_v31 = vsel %vm4311_vm7, %v4313_v39, %v4309_v45  ;;  %v2989_v12 = vadd.f32 %v6789_v13, %v2988_v24  ;;  %v3014_v30 = vmul.f32 %v6791_v62, %v11223_v63  ;;  %4576 = vst [vmem:[#allocation2 + $0x408] sm:$0xff] %v4511_v52  ;;  %vm2992_vm12 = vmor %vm2990_vm10, %vm2991_vm9  ;;  %v2997_v22 = vor.u32 1.1754944e-38, %v2996_v36 }
 0x3f0   : > { %v4509_v25 = vmul.f32 %v10457_v57, %v4314_v31  ;;  %v4510_v60 = vmul.f32 %v10474_v40, %v4314_v31  ;;  %6794 = vrcp.f32 %v11239_v18  ;;  %4577 = vst [vmem:[#allocation2 + $0x5f8] sm:$0xff] %v4512_v16  ;;  %v3022_v34 = vand.u32 2147483647, %v11223_v63 }
 0x3f1   : > { %v6793_v29 = vpop.eup %6792  ;;  %v2993_v11 = vsel %vm2992_vm12, %v6789_v13, %v2989_v12  ;;  %v3015_v5 = vsub.f32 1.0, %v3014_v30  ;;  %v3024_v1 = vand.u32 2147483648, %v11223_v63  ;;  %vm3019_vm13 = vweird.f32 %v6791_v62 }
 0x3f2   : > { %4574 = vst [vmem:[#allocation2 + $0x1c8] sm:$0xff] %v4509_v25  ;;  %v2998_v57 = vsel %vm11257_vm11, %v2997_v22, %v2993_v11  ;;  %v3000_v40 = vmul.f32 %v6793_v29, %v11234_v55  ;;  %v3008_v56 = vand.u32 2147483647, %v11234_v55  ;;  %v3010_v9 = vand.u32 2147483648, %v11234_v55  ;;  %v13251_v25 = vld [vmem:[#allocation102_spill] sm:$0xff] }
 0x3f3   : > { %4575 = vst [vmem:[#allocation2 + $0xa0] sm:$0xff] %v4510_v60  ;;  %v3193_v13 = vmul.f32 %v10500_v7, %v2998_v57  ;;  %v3194_v41 = vmul.f32 %v10509_v54, %v2998_v57  ;;  %v3016_v48 = vmul.f32 %v6791_v62, %v3015_v5  ;;  %vm3018_vm14 = vweird.f32 %v11223_v63  ;;  %v11308_v59 = vpop.xlane.xlu0 %2682 }
 0x3f4   : > { %v3001_v10 = vsub.f32 1.0, %v3000_v40  ;;  %v4338_v49 = vand.u32 2147483647, %v11239_v18  ;;  %6796 = vrcp.f32 %v11267_v20  ;;  %vm3023_vm15 = vcmp.eq.f32.partialorder %v3022_v34, 8.507059e+37  ;;  %vm3020_vm1 = vmor %vm3018_vm14, %vm3019_vm13 }
 0x3f5   : > { %3258 = vst [vmem:[#allocation2 + $0x1e0] sm:$0xff] %v3193_v13  ;;  %v3017_v4 = vadd.f32 %v6791_v62, %v3016_v48  ;;  %vm3004_vm0 = vweird.f32 %v11234_v55  ;;  %6798 = vrcp.f32 %v11273_v23  ;;  %v3025_v54 = vor.u32 1.1754944e-38, %v3024_v1 }
 0x3f6   : > { %v6795_v7 = vpop.eup %6794  ;;  %3259 = vst [vmem:[#allocation2 + $0x390] sm:$0xff] %v3194_v41  ;;  %v3002_v26 = vmul.f32 %v6793_v29, %v3001_v10  ;;  %vm3005_vm2 = vweird.f32 %v6793_v29  ;;  %vm11284_vm3 = vcmp.eq.f32.partialorder %v3008_v56, 8.507059e+37  ;;  %v3011_v33 = vor.u32 1.1754944e-38, %v3010_v9  ;;  %v11315_v1 = vpop.xlane.xlu2 %4001 }
 0x3f7   : > { %v3021_v53 = vsel %vm3020_vm1, %v6791_v62, %v3017_v4  ;;  %v4330_v6 = vmul.f32 %v6795_v7, %v11239_v18  ;;  %vm4334_vm4 = vweird.f32 %v11239_v18  ;;  %vm11292_vm5 = vcmp.eq.f32.partialorder %v4338_v49, 8.507059e+37  ;;  %vm3006_vm6 = vmor %vm3004_vm0, %vm3005_vm2 }
 0x3f8   : > { %v3026_v19 = vsel %vm3023_vm15, %v3025_v54, %v3021_v53  ;;  %v3003_v43 = vadd.f32 %v6793_v29, %v3002_v26  ;;  %v4340_v42 = vand.u32 2147483648, %v11239_v18  ;;  %vm4348_vm7 = vweird.f32 %v11267_v20 }
 0x3f9   : > { %v3197_v39 = vmul.f32 %v10606_v58, %v3026_v19  ;;  %v3198_v24 = vmul.f32 %v10616_v32, %v3026_v19  ;;  %v4331_v62 = vsub.f32 1.0, %v4330_v6  ;;  %v4352_v45 = vand.u32 2147483647, %v11267_v20 }
 0x3fa   : > { %v6797_v52 = vpop.eup %6796  ;;  %v3007_v16 = vsel %vm3006_vm6, %v6793_v29, %v3003_v43  ;;  %v4354_v31 = vand.u32 2147483648, %v11267_v20  ;;  %6800 = vrcp.f32 %v11290_v21  ;;  %vm4335_vm8 = vweird.f32 %v6795_v7 }
 0x3fb   : > { %v6799_v12 = vpop.eup %6798  ;;  %3262 = vst [vmem:[#allocation2 + $0x5b0] sm:$0xff] %v3197_v39  ;;  %v3012_v58 = vsel %vm11284_vm3, %v3011_v33, %v3007_v16  ;;  %v4332_v32 = vmul.f32 %v6795_v7, %v4331_v62  ;;  %v4344_v55 = vmul.f32 %v6797_v52, %v11267_v20  ;;  %v4341_v22 = vor.u32 1.1754944e-38, %v4340_v42  ;;  %vm4336_vm10 = vmor %vm4334_vm4, %vm4335_vm8 }
 0x3fc   : > { %3263 = vst [vmem:[#allocation2 + $0xc0] sm:$0xff] %v3198_v24  ;;  %v3195_v30 = vmul.f32 %v10541_v28, %v3012_v58  ;;  %v3196_v60 = vmul.f32 %v13251_v25, %v3012_v58  ;;  %v3028_v29 = vmul.f32 %v6799_v12, %v11273_v23  ;;  %vm3032_vm9 = vweird.f32 %v11273_v23 }
 0x3fd   : > { %v4333_v11 = vadd.f32 %v6795_v7, %v4332_v32  ;;  %v4345_v5 = vsub.f32 1.0, %v4344_v55  ;;  %v3036_v34 = vand.u32 2147483647, %v11273_v23  ;;  %vm11319_vm11 = vcmp.eq.f32.partialorder %v4352_v45, 8.507059e+37 }
 0x3fe   : > { %3260 = vst [vmem:[#allocation2 + $0x2c0] sm:$0xff] %v3195_v30  ;;  %v4355_v28 = vor.u32 1.1754944e-38, %v4354_v31  ;;  %v3029_v40 = vsub.f32 1.0, %v3028_v29  ;;  %6802 = vrcp.f32 %v11308_v59  ;;  %vm4349_vm12 = vweird.f32 %v6797_v52 }
 0x3ff   : > { %3261 = vst [vmem:[#allocation2 + $0x228] sm:$0xff] %v3196_v60  ;;  %v4337_v56 = vsel %vm4336_vm10, %v6795_v7, %v4333_v11  ;;  %v4346_v13 = vmul.f32 %v6797_v52, %v4345_v5  ;;  %v3038_v41 = vand.u32 2147483648, %v11273_v23  ;;  %vm3033_vm13 = vweird.f32 %v6799_v12  ;;  %v11331_v7 = vpop.xlane.xlu1 %2685  ;;  %vm4350_vm14 = vmor %vm4348_vm7, %vm4349_vm12 }
 0x400   : > { %v6801_v48 = vpop.eup %6800  ;;  %v4342_v9 = vsel %vm11292_vm5, %v4341_v22, %v4337_v56  ;;  %v3030_v18 = vmul.f32 %v6799_v12, %v3029_v40  ;;  %6804 = vrcp.f32 %v11315_v1  ;;  %vm11335_vm15 = vcmp.eq.f32.partialorder %v3036_v34, 8.507059e+37  ;;  %vm3034_vm1 = vmor %vm3032_vm9, %vm3033_vm13  ;;  %v13259_v34 = vld [vmem:[#allocation104_spill] sm:$0xff] }
 0x401   : > { %v4513_v10 = vmul.f32 %v10578_v50, %v4342_v9  ;;  %v4514_v49 = vmul.f32 %v10592_v51, %v4342_v9  ;;  %v4347_v4 = vadd.f32 %v6797_v52, %v4346_v13  ;;  %v4358_v54 = vmul.f32 %v6801_v48, %v11290_v21 }
 0x402   : > { %v3031_v26 = vadd.f32 %v6799_v12, %v3030_v18  ;;  %vm4362_vm0 = vweird.f32 %v11290_v21  ;;  %v4366_v53 = vand.u32 2147483647, %v11290_v21  ;;  %v3039_v51 = vor.u32 1.1754944e-38, %v3038_v41 }
 0x403   : > { %4578 = vst [vmem:[#allocation2 + $0x270] sm:$0xff] %v4513_v10  ;;  %v4351_v50 = vsel %vm4350_vm14, %v6797_v52, %v4347_v4  ;;  %v4359_v33 = vsub.f32 1.0, %v4358_v54  ;;  %v4368_v6 = vand.u32 2147483648, %v11290_v21  ;;  %vm4363_vm2 = vweird.f32 %v6801_v48  ;;  %v13256_v52 = vld [vmem:[#allocation103_spill] sm:$0xff] }
 0x404   : > { %v6803_v20 = vpop.eup %6802  ;;  %4579 = vst [vmem:[#allocation2 + $0x250] sm:$0xff] %v4514_v49  ;;  %v4356_v19 = vsel %vm11319_vm11, %v4355_v28, %v4351_v50  ;;  %v3035_v43 = vsel %vm3034_vm1, %v6799_v12, %v3031_v26  ;;  %6806 = vrcp.f32 %v11331_v7  ;;  %vm11353_vm3 = vcmp.eq.f32.partialorder %v4366_v53, 8.507059e+37  ;;  %v11358_v12 = vpop.xlane.xlu0 %4004  ;;  %vm4364_vm5 = vmor %vm4362_vm0, %vm4363_vm2  ;;  %v13260_v28 = vld [vmem:[#allocation38_spill] sm:$0xff] }
 0x405   : > { %v4515_v36 = vmul.f32 %v10625_v2, %v4356_v19  ;;  %v4516_v42 = vmul.f32 %v10638_v15, %v4356_v19  ;;  %v3040_v23 = vsel %vm11335_vm15, %v3039_v51, %v3035_v43  ;;  %v4360_v39 = vmul.f32 %v6801_v48, %v4359_v33  ;;  %v13265_v33 = vld [vmem:[#allocation12_spill] sm:$0xff] }
 0x406   : > { %v6805_v24 = vpop.eup %6804  ;;  %v3199_v62 = vmul.f32 %v10660_v61, %v3040_v23  ;;  %v3200_v16 = vmul.f32 %v13256_v52, %v3040_v23  ;;  %v3042_v31 = vmul.f32 %v6803_v20, %v11308_v59  ;;  %vm3046_vm4 = vweird.f32 %v11308_v59  ;;  %v13266_v19 = vld [vmem:[#allocation52_spill] sm:$0xff] }
 0x407   : > { %4580 = vst [vmem:[#allocation2 + $0x2d0] sm:$0xff] %v4515_v36  ;;  %v4361_v2 = vadd.f32 %v6801_v48, %v4360_v39  ;;  %v3050_v15 = vand.u32 2147483647, %v11308_v59  ;;  %v4372_v58 = vmul.f32 %v6805_v24, %v11315_v1  ;;  %v4369_v61 = vor.u32 1.1754944e-38, %v4368_v6 }
 0x408   : > { %4581 = vst [vmem:[#allocation2 + $0x1b8] sm:$0xff] %v4516_v42  ;;  %v3043_v32 = vsub.f32 1.0, %v3042_v31  ;;  %v3052_v55 = vand.u32 2147483648, %v11308_v59  ;;  %v4380_v30 = vand.u32 2147483647, %v11315_v1  ;;  %v4382_v22 = vand.u32 2147483648, %v11315_v1 }
 0x409   : > { %3264 = vst [vmem:[#allocation2 + $0xd8] sm:$0xff] %v3199_v62  ;;  %v4365_v25 = vsel %vm4364_vm5, %v6801_v48, %v4361_v2  ;;  %v4373_v60 = vsub.f32 1.0, %v4372_v58  ;;  %6808 = vrcp.f32 %v11358_v12  ;;  %vm3047_vm6 = vweird.f32 %v6803_v20  ;;  %v11372_v5 = vpop.xlane.xlu2 %2688  ;;  %v11394_v51 = vpop.xlane.xlu1 %4007 }
 0x40a   : > { %v6807_v29 = vpop.eup %6806  ;;  %3265 = vst [vmem:[#allocation2 + $0x428] sm:$0xff] %v3200_v16  ;;  %v4370_v11 = vsel %vm11353_vm3, %v4369_v61, %v4365_v25  ;;  %v3044_v21 = vmul.f32 %v6803_v20, %v3043_v32  ;;  %vm4377_vm7 = vweird.f32 %v6805_v24  ;;  %vm11377_vm8 = vcmp.eq.f32.partialorder %v3050_v15, 8.507059e+37  ;;  %vm3048_vm10 = vmor %vm3046_vm4, %vm3047_vm6 }
 0x40b   : > { %v4517_v57 = vmul.f32 %v13259_v34, %v4370_v11  ;;  %v4518_v40 = vmul.f32 %v13260_v28, %v4370_v11  ;;  %v4374_v56 = vmul.f32 %v6805_v24, %v4373_v60  ;;  %v3056_v13 = vmul.f32 %v6807_v29, %v11331_v7 }
 0x40c   : > { %v3045_v41 = vadd.f32 %v6803_v20, %v3044_v21  ;;  %v3053_v9 = vor.u32 1.1754944e-38, %v3052_v55  ;;  %vm4376_vm9 = vweird.f32 %v11315_v1  ;;  %vm11384_vm11 = vcmp.eq.f32.partialorder %v4380_v30, 8.507059e+37  ;;  %v13267_v21 = vld [vmem:[#allocation10_spill] sm:$0xff] }
 0x40d   : > { %4582 = vst [vmem:[#allocation2 + $0x150] sm:$0xff] %v4517_v57  ;;  %v4375_v18 = vadd.f32 %v6805_v24, %v4374_v56  ;;  %v3057_v49 = vsub.f32 1.0, %v3056_v13  ;;  %6810 = vrcp.f32 %v11372_v5  ;;  %vm4378_vm12 = vmor %vm4376_vm9, %vm4377_vm7  ;;  %v4383_v54 = vor.u32 1.1754944e-38, %v4382_v22 }
 0x40e   : > { %4583 = vst [vmem:[#allocation2 + $0x1b0] sm:$0xff] %v4518_v40  ;;  %v3049_v4 = vsel %vm3048_vm10, %v6803_v20, %v3045_v41  ;;  %v3064_v26 = vand.u32 2147483647, %v11331_v7  ;;  %v3066_v1 = vand.u32 2147483648, %v11331_v7  ;;  %vm3061_vm13 = vweird.f32 %v6807_v29 }
 0x40f   : > { %v6809_v63 = vpop.eup %6808  ;;  %v3054_v59 = vsel %vm11377_vm8, %v3053_v9, %v3049_v4  ;;  %v4379_v53 = vsel %vm4378_vm12, %v6805_v24, %v4375_v18  ;;  %v3058_v50 = vmul.f32 %v6807_v29, %v3057_v49  ;;  %vm3060_vm14 = vweird.f32 %v11331_v7  ;;  %v13268_v4 = vld [vmem:[#allocation54_spill] sm:$0xff] }
 0x410   : > { %v3201_v6 = vmul.f32 %v13265_v33, %v3054_v59  ;;  %v3202_v20 = vmul.f32 %v13266_v19, %v3054_v59  ;;  %v4384_v43 = vsel %vm11384_vm11, %v4383_v54, %v4379_v53  ;;  %v4386_v36 = vmul.f32 %v6809_v63, %v11358_v12  ;;  %vm3062_vm15 = vmor %vm3060_vm14, %vm3061_vm13 }
 0x411   : > { %v4519_v42 = vmul.f32 %v10731_v0, %v4384_v43  ;;  %v4520_v23 = vmul.f32 %v10735_v8, %v4384_v43  ;;  %v3059_v39 = vadd.f32 %v6807_v29, %v3058_v50  ;;  %v3067_v24 = vor.u32 1.1754944e-38, %v3066_v1  ;;  %v11407_v0 = vpop.xlane.xlu0 %2691 }
 0x412   : > { %3266 = vst [vmem:[#allocation2 + $0x30] sm:$0xff] %v3201_v6  ;;  %v4387_v62 = vsub.f32 1.0, %v4386_v36  ;;  %6812 = vrcp.f32 %v11394_v51  ;;  %vm3065_vm0 = vcmp.eq.f32.partialorder %v3064_v26, 8.507059e+37  ;;  %v4394_v45 = vand.u32 2147483647, %v11358_v12 }
 0x413   : > { %v6811_v52 = vpop.eup %6810  ;;  %3267 = vst [vmem:[#allocation2 + $0x410] sm:$0xff] %v3202_v20  ;;  %v3063_v16 = vsel %vm3062_vm15, %v6807_v29, %v3059_v39  ;;  %v4396_v31 = vand.u32 2147483648, %v11358_v12  ;;  %vm4391_vm1 = vweird.f32 %v6809_v63  ;;  %vm4390_vm2 = vweird.f32 %v11358_v12 }
 0x414   : > { %4584 = vst [vmem:[#allocation2 + $0x220] sm:$0xff] %v4519_v42  ;;  %v3068_v8 = vsel %vm3065_vm0, %v3067_v24, %v3063_v16  ;;  %v4388_v2 = vmul.f32 %v6809_v63, %v4387_v62  ;;  %v3070_v7 = vmul.f32 %v6811_v52, %v11372_v5  ;;  %6814 = vrcp.f32 %v11407_v0  ;;  %vm4392_vm3 = vmor %vm4390_vm2, %vm4391_vm1  ;;  %v13272_v24 = vld [vmem:[#allocation65_spill] sm:$0xff] }
 0x415   : > { %4585 = vst [vmem:[#allocation2 + $0x1d8] sm:$0xff] %v4520_v23  ;;  %v3203_v15 = vmul.f32 %v10744_v35, %v3068_v8  ;;  %v3204_v58 = vmul.f32 %v10756_v17, %v3068_v8  ;;  %vm4395_vm4 = vcmp.eq.f32.partialorder %v4394_v45, 8.507059e+37  ;;  %v4397_v55 = vor.u32 1.1754944e-38, %v4396_v31  ;;  %v13271_v23 = vld [vmem:[#allocation17_spill] sm:$0xff] }
 0x416   : > { %v4389_v61 = vadd.f32 %v6809_v63, %v4388_v2  ;;  %v3071_v32 = vsub.f32 1.0, %v3070_v7  ;;  %v3078_v30 = vand.u32 2147483647, %v11372_v5  ;;  %v3080_v25 = vand.u32 2147483648, %v11372_v5 }
 0x417   : > { %3268 = vst [vmem:[#allocation2 + $0x208] sm:$0xff] %v3203_v15  ;;  %vm3075_vm5 = vweird.f32 %v6811_v52  ;;  %vm3074_vm6 = vweird.f32 %v11372_v5  ;;  %v4408_v28 = vand.u32 2147483647, %v11394_v51  ;;  %v4410_v41 = vand.u32 2147483648, %v11394_v51 }
 0x418   : > { %v11416_v60 = vpop.xlane.xlu2 %4010  ;;  %v6813_v22 = vpop.eup %6812  ;;  %3269 = vst [vmem:[#allocation2 + $0x4a8] sm:$0xff] %v3204_v58  ;;  %v4393_v35 = vsel %vm4392_vm3, %v6809_v63, %v4389_v61  ;;  %v3072_v17 = vmul.f32 %v6811_v52, %v3071_v32  ;;  %vm3076_vm7 = vmor %vm3074_vm6, %vm3075_vm5  ;;  %v3081_v56 = vor.u32 1.1754944e-38, %v3080_v25  ;;  %vm3079_vm8 = vcmp.eq.f32.partialorder %v3078_v30, 8.507059e+37  ;;  %v13274_v30 = vld [vmem:[#allocation105_spill] sm:$0xff] }
 0x419   : > { %6816 = vrcp.f32 %v11416_v60  ;;  %v4398_v12 = vsel %vm4395_vm4, %v4397_v55, %v4393_v35  ;;  %v4400_v29 = vmul.f32 %v6813_v22, %v11394_v51  ;;  %vm4405_vm9 = vweird.f32 %v6813_v22 }
 0x41a   : > { %v4521_v11 = vmul.f32 %v10761_v44, %v4398_v12  ;;  %v4522_v34 = vmul.f32 %v13267_v21, %v4398_v12  ;;  %v3073_v57 = vadd.f32 %v6811_v52, %v3072_v17  ;;  %v6815_v48 = vpop.eup %6814  ;;  %vm4404_vm10 = vweird.f32 %v11394_v51  ;;  %v13275_v17 = vld [vmem:[#allocation40_spill] sm:$0xff] }
 0x41b   : > { %v11424_v40 = vpop.xlane.xlu1 %2694  ;;  %v4401_v13 = vsub.f32 1.0, %v4400_v29  ;;  %v3084_v18 = vmul.f32 %v6815_v48, %v11407_v0  ;;  %vm11432_vm11 = vcmp.eq.f32.partialorder %v4408_v28, 8.507059e+37  ;;  %v4411_v63 = vor.u32 1.1754944e-38, %v4410_v41  ;;  %vm4406_vm12 = vmor %vm4404_vm10, %vm4405_vm9  ;;  %v13276_v29 = vld [vmem:[#allocation108_spill] sm:$0xff]  ;;  %v13278_v41 = vld [vmem:[#allocation110_spill] sm:$0xff] }
 0x41c   : > { %6818 = vrcp.f32 %v11424_v40  ;;  %4586 = vst [vmem:[#allocation2 + $0x3e8] sm:$0xff] %v4521_v11  ;;  %v3077_v5 = vsel %vm3076_vm7, %v6811_v52, %v3073_v57  ;;  %vm3088_vm13 = vweird.f32 %v11407_v0  ;;  %v3092_v50 = vand.u32 2147483647, %v11407_v0 }
 0x41d   : > { %4587 = vst [vmem:[#allocation2 + $0x448] sm:$0xff] %v4522_v34  ;;  %v3082_v44 = vsel %vm3079_vm8, %v3081_v56, %v3077_v5  ;;  %v4402_v9 = vmul.f32 %v6813_v22, %v4401_v13  ;;  %v3085_v59 = vsub.f32 1.0, %v3084_v18  ;;  %v4422_v33 = vand.u32 2147483647, %v11416_v60  ;;  %v13277_v56 = vld [vmem:[#allocation109_spill] sm:$0xff] }
 0x41e   : > { %v3205_v49 = vmul.f32 %v10801_v3, %v3082_v44  ;;  %v3206_v54 = vmul.f32 %v13268_v4, %v3082_v44  ;;  %v3094_v3 = vand.u32 2147483648, %v11407_v0  ;;  %vm3089_vm14 = vweird.f32 %v6815_v48  ;;  %v13273_v0 = vld [vmem:[#allocation39_spill] sm:$0xff] }
 0x41f   : > { %v6817_v10 = vpop.eup %6816  ;;  %v4403_v1 = vadd.f32 %v6813_v22, %v4402_v9  ;;  %v3086_v19 = vmul.f32 %v6815_v48, %v3085_v59  ;;  %v4424_v36 = vand.u32 2147483648, %v11416_v60  ;;  %vm3090_vm0 = vmor %vm3088_vm13, %vm3089_vm14  ;;  %vm3093_vm1 = vcmp.eq.f32.partialorder %v3092_v50, 8.507059e+37 }
 0x420   : > { %v4414_v53 = vmul.f32 %v6817_v10, %v11416_v60  ;;  %3270 = vst [vmem:[#allocation2 + $0x5b8] sm:$0xff] %v3205_v49  ;;  %vm4419_vm15 = vweird.f32 %v6817_v10  ;;  %v3095_v45 = vor.u32 1.1754944e-38, %v3094_v3  ;;  %vm4418_vm2 = vweird.f32 %v11416_v60 }
 0x421   : > { %3271 = vst [vmem:[#allocation2 + $0x218] sm:$0xff] %v3206_v54  ;;  %v4407_v6 = vsel %vm4406_vm12, %v6813_v22, %v4403_v1  ;;  %v3087_v52 = vadd.f32 %v6815_v48, %v3086_v19  ;;  %v3106_v7 = vand.u32 2147483647, %v11424_v40  ;;  %v3108_v15 = vand.u32 2147483648, %v11424_v40  ;;  %vm4420_vm3 = vmor %vm4418_vm2, %vm4419_vm15 }
 0x422   : > { %v6819_v51 = vpop.eup %6818  ;;  %v4415_v20 = vsub.f32 1.0, %v4414_v53  ;;  %v4412_v43 = vsel %vm11432_vm11, %v4411_v63, %v4407_v6  ;;  %v4425_v61 = vor.u32 1.1754944e-38, %v4424_v36  ;;  %vm4423_vm5 = vcmp.eq.f32.partialorder %v4422_v33, 8.507059e+37 }
 0x423   : > { %v3098_v42 = vmul.f32 %v6819_v51, %v11424_v40  ;;  %v4523_v39 = vmul.f32 %v13271_v23, %v4412_v43  ;;  %v4524_v62 = vmul.f32 %v13272_v24, %v4412_v43  ;;  %v3091_v8 = vsel %vm3090_vm0, %v6815_v48, %v3087_v52 }
 0x424   : > { %v4416_v16 = vmul.f32 %v6817_v10, %v4415_v20  ;;  %v3096_v58 = vsel %vm3093_vm1, %v3095_v45, %v3091_v8  ;;  %vm3103_vm4 = vweird.f32 %v6819_v51  ;;  %vm3102_vm6 = vweird.f32 %v11424_v40 }
 0x425   : > { %v3099_v31 = vsub.f32 1.0, %v3098_v42  ;;  %4588 = vst [vmem:[#allocation2 + $0x430] sm:$0xff] %v4523_v39  ;;  %v3207_v55 = vmul.f32 %v13273_v0, %v3096_v58  ;;  %v3208_v25 = vmul.f32 %v13274_v30, %v3096_v58  ;;  %vm3104_vm7 = vmor %vm3102_vm6, %vm3103_vm4  ;;  %v3109_v21 = vor.u32 1.1754944e-38, %v3108_v15 }
 0x426   : > { %v4417_v2 = vadd.f32 %v6817_v10, %v4416_v16  ;;  %4589 = vst [vmem:[#allocation2 + $0x180] sm:$0xff] %v4524_v62  ;;  %vm3107_vm8 = vcmp.eq.f32.partialorder %v3106_v7, 8.507059e+37 }
 0x427   : > { %v3100_v32 = vmul.f32 %v6819_v51, %v3099_v31  ;;  %3272 = vst [vmem:[#allocation2 + $0x368] sm:$0xff] %v3207_v55 }
 0x428   : > { %v4421_v60 = vsel %vm4420_vm3, %v6817_v10, %v4417_v2  ;;  %3273 = vst [vmem:[#allocation2 + $0x298] sm:$0xff] %v3208_v25 }
 0x429   : > { %v4426_v22 = vsel %vm4423_vm5, %v4425_v61, %v4421_v60  ;;  %v3101_v35 = vadd.f32 %v6819_v51, %v3100_v32  ;;  %v2698_v34 = vpop.xlane.xlu2 %2697 }
 0x42a   : > { %v4525_v12 = vmul.f32 %v13275_v17, %v4426_v22  ;;  %v4526_v11 = vmul.f32 %v13276_v29, %v4426_v22  ;;  %6820 = vrcp.f32 %v2698_v34  ;;  %v3122_v18 = vand.u32 2147483648, %v2698_v34 }
 0x42b   : > { %v3105_v57 = vsel %vm3104_vm7, %v6819_v51, %v3101_v35  ;;  %v3120_v49 = vand.u32 2147483647, %v2698_v34  ;;  %vm3116_vm10 = vweird.f32 %v2698_v34 }
 0x42c   : > { %4590 = vst [vmem:[#allocation2 + $0x350] sm:$0xff] %v4525_v12  ;;  %v3110_v28 = vsel %vm3107_vm8, %v3109_v21, %v3105_v57  ;;  %v3123_v63 = vor.u32 1.1754944e-38, %v3122_v18 }
 0x42d   : > { %4591 = vst [vmem:[#allocation2 + $0x4c0] sm:$0xff] %v4526_v11  ;;  %v3209_v13 = vmul.f32 %v13277_v56, %v3110_v28  ;;  %v3210_v48 = vmul.f32 %v13278_v41, %v3110_v28  ;;  %vm3121_vm12 = vcmp.eq.f32.partialorder %v3120_v49, 8.507059e+37 }
 0x42e   : > { %v2701_v40 = vpop.xlane.xlu0 %2700 }
 0x42f   : > { %3274 = vst [vmem:[#allocation2 + $0x420] sm:$0xff] %v3209_v13  ;;  %6822 = vrcp.f32 %v2701_v40  ;;  %v3134_v51 = vand.u32 2147483647, %v2701_v40  ;;  %v3136_v6 = vand.u32 2147483648, %v2701_v40  ;;  %vm3130_vm14 = vweird.f32 %v2701_v40  ;;  %v13280_v13 = vld [vmem:[#allocation63_spill] sm:$0xff] }
 0x430   : > { %3275 = vst [vmem:[#allocation2 + $0x88] sm:$0xff] %v3210_v48  ;;  %v6821_v5 = vpop.eup %6820  ;;  %v13281_v48 = vld [vmem:[#allocation64_spill] sm:$0xff] }
 0x431   : > { %v3112_v44 = vmul.f32 %v6821_v5, %v2698_v34  ;;  %vm3117_vm9 = vweird.f32 %v6821_v5  ;;  %v3137_v23 = vor.u32 1.1754944e-38, %v3136_v6  ;;  %vm3135_vm0 = vcmp.eq.f32.partialorder %v3134_v51, 8.507059e+37  ;;  %v13279_v34 = vld [vmem:[#allocation61_spill] sm:$0xff] }
 0x432   : > { %vm3118_vm11 = vmor %vm3116_vm10, %vm3117_vm9 }
 0x433   : > { %v3113_v9 = vsub.f32 1.0, %v3112_v44 }
 0x435   : > { %v3114_v10 = vmul.f32 %v6821_v5, %v3113_v9  ;;  %v6823_v4 = vpop.eup %6822 }
 0x436   : > { %v3126_v26 = vmul.f32 %v6823_v4, %v2701_v40  ;;  %v4014_v1 = vpop.xlane.xlu0 %4013  ;;  %vm3131_vm13 = vweird.f32 %v6823_v4 }
 0x437   : > { %v3115_v54 = vadd.f32 %v6821_v5, %v3114_v10  ;;  %6824 = vrcp.f32 %v4014_v1  ;;  %vm3132_vm15 = vmor %vm3130_vm14, %vm3131_vm13  ;;  %v4436_v31 = vand.u32 2147483647, %v4014_v1  ;;  %v4438_v15 = vand.u32 2147483648, %v4014_v1 }
 0x438   : > { %v11460_v59 = vpop.xlane.xlu2 %4019  ;;  %v3127_v50 = vsub.f32 1.0, %v3126_v26  ;;  %vm4432_vm1 = vweird.f32 %v4014_v1  ;;  %v13284_v26 = vld [vmem:[#allocation112_spill] sm:$0xff] }
 0x439   : > { %v3119_v53 = vsel %vm3118_vm11, %v6821_v5, %v3115_v54  ;;  %6826 = vrcp.f32 %v11460_v59  ;;  %v4466_v7 = vand.u32 2147483648, %v11460_v59  ;;  %vm4460_vm4 = vweird.f32 %v11460_v59  ;;  %v13282_v5 = vld [vmem:[#allocation15_spill] sm:$0xff] }
 0x43a   : > { %v11463_v3 = vpop.xlane.xlu1 %2703  ;;  %v3124_v33 = vsel %vm3121_vm12, %v3123_v63, %v3119_v53  ;;  %v3128_v43 = vmul.f32 %v6823_v4, %v3127_v50  ;;  %vm4437_vm5 = vcmp.eq.f32.partialorder %v4436_v31, 8.507059e+37  ;;  %v4439_v60 = vor.u32 1.1754944e-38, %v4438_v15 }
 0x43b   : > { %v3211_v19 = vmul.f32 %v10969_v46, %v3124_v33  ;;  %v3212_v20 = vmul.f32 %v10974_v27, %v3124_v33  ;;  %6828 = vrcp.f32 %v11463_v3  ;;  %v4467_v25 = vor.u32 1.1754944e-38, %v4466_v7 }
 0x43c   : > { %v3129_v36 = vadd.f32 %v6823_v4, %v3128_v43  ;;  %v3150_v22 = vand.u32 2147483648, %v11463_v3  ;;  %v3148_v12 = vand.u32 2147483647, %v11463_v3  ;;  %vm3144_vm10 = vweird.f32 %v11463_v3 }
 0x43d   : > { %3276 = vst [vmem:[#allocation2 + $0x130] sm:$0xff] %v3211_v19  ;;  %v6825_v42 = vpop.eup %6824 }
 0x43e   : > { %3277 = vst [vmem:[#allocation2 + $0x5f0] sm:$0xff] %v3212_v20  ;;  %v3133_v24 = vsel %vm3132_vm15, %v6823_v4, %v3129_v36  ;;  %v4428_v62 = vmul.f32 %v6825_v42, %v4014_v1  ;;  %vm4433_vm2 = vweird.f32 %v6825_v42  ;;  %v3151_v9 = vor.u32 1.1754944e-38, %v3150_v22  ;;  %v13283_v4 = vld [vmem:[#allocation111_spill] sm:$0xff] }
 0x43f   : > { %v6827_v39 = vpop.eup %6826  ;;  %v3138_v52 = vsel %vm3135_vm0, %v3137_v23, %v3133_v24  ;;  %vm4434_vm6 = vmor %vm4432_vm1, %vm4433_vm2  ;;  %vm3149_vm12 = vcmp.eq.f32.partialorder %v3148_v12, 8.507059e+37 }
 0x440   : > { %v4456_v46 = vmul.f32 %v6827_v39, %v11460_v59  ;;  %v3213_v27 = vmul.f32 %v10995_v14, %v3138_v52  ;;  %v3214_v16 = vmul.f32 %v11008_v37, %v3138_v52  ;;  %v4429_v45 = vsub.f32 1.0, %v4428_v62 }
 0x441   : > { %v6829_v8 = vpop.eup %6828  ;;  %vm4461_vm3 = vweird.f32 %v6827_v39  ;;  %v4464_v14 = vand.u32 2147483647, %v11460_v59 }
 0x442   : > { %v4457_v2 = vsub.f32 1.0, %v4456_v46  ;;  %3278 = vst [vmem:[#allocation2 + $0x230] sm:$0xff] %v3213_v27  ;;  %v4430_v58 = vmul.f32 %v6825_v42, %v4429_v45  ;;  %v3140_v61 = vmul.f32 %v6829_v8, %v11463_v3  ;;  %vm4462_vm7 = vmor %vm4460_vm4, %vm4461_vm3  ;;  %vm3145_vm8 = vweird.f32 %v6829_v8 }
 0x443   : > { %v4017_v32 = vpop.xlane.xlu1 %4016  ;;  %3279 = vst [vmem:[#allocation2 + $0x2e0] sm:$0xff] %v3214_v16  ;;  %vm4465_vm9 = vcmp.eq.f32.partialorder %v4464_v14, 8.507059e+37  ;;  %vm3146_vm11 = vmor %vm3144_vm10, %vm3145_vm8 }
 0x444   : > { %v4458_v0 = vmul.f32 %v6827_v39, %v4457_v2  ;;  %6830 = vrcp.f32 %v4017_v32  ;;  %v4431_v37 = vadd.f32 %v6825_v42, %v4430_v58  ;;  %v3141_v55 = vsub.f32 1.0, %v3140_v61 }
 0x445   : > { %v4452_v59 = vand.u32 2147483648, %v4017_v32  ;;  %v4450_v50 = vand.u32 2147483647, %v4017_v32  ;;  %vm4446_vm14 = vweird.f32 %v4017_v32 }
 0x446   : > { %v4459_v30 = vadd.f32 %v6827_v39, %v4458_v0  ;;  %v4435_v35 = vsel %vm4434_vm6, %v6825_v42, %v4431_v37  ;;  %v3142_v17 = vmul.f32 %v6829_v8, %v3141_v55 }
 0x447   : > { %v4440_v11 = vsel %vm4437_vm5, %v4439_v60, %v4435_v35  ;;  %v4453_v33 = vor.u32 1.1754944e-38, %v4452_v59  ;;  %vm4451_vm0 = vcmp.eq.f32.partialorder %v4450_v50, 8.507059e+37 }
 0x448   : > { %v4463_v29 = vsel %vm4462_vm7, %v6827_v39, %v4459_v30  ;;  %v4527_v57 = vmul.f32 %v13279_v34, %v4440_v11  ;;  %v3143_v28 = vadd.f32 %v6829_v8, %v3142_v17  ;;  %v4528_v44 = vmul.f32 %v13282_v5, %v4440_v11 }
 0x449   : > { %v4468_v21 = vsel %vm4465_vm9, %v4467_v25, %v4463_v29 }
 0x44a   : > { %v6831_v56 = vpop.eup %6830  ;;  %v4531_v41 = vmul.f32 %v13280_v13, %v4468_v21  ;;  %v4532_v40 = vmul.f32 %v13281_v48, %v4468_v21  ;;  %4592 = vst [vmem:[#allocation2 + $0x128] sm:$0xff] %v4527_v57  ;;  %v3147_v18 = vsel %vm3146_vm11, %v6829_v8, %v3143_v28 }
 0x44b   : > { %v4442_v10 = vmul.f32 %v6831_v56, %v4017_v32  ;;  %v3152_v49 = vsel %vm3149_vm12, %v3151_v9, %v3147_v18  ;;  %4593 = vst [vmem:[#allocation2 + $0x3f0] sm:$0xff] %v4528_v44  ;;  %vm4447_vm13 = vweird.f32 %v6831_v56 }
 0x44c   : > { %4596 = vst [vmem:[#allocation2 + $0x568] sm:$0xff] %v4531_v41  ;;  %v3215_v54 = vmul.f32 %v13283_v4, %v3152_v49  ;;  %v3216_v1 = vmul.f32 %v13284_v26, %v3152_v49  ;;  %vm4448_vm15 = vmor %vm4446_vm14, %vm4447_vm13 }
 0x44d   : > { %4597 = vst [vmem:[#allocation2 + $0x90] sm:$0xff] %v4532_v40  ;;  %v4443_v63 = vsub.f32 1.0, %v4442_v10 }
 0x44e   : > { %3280 = vst [vmem:[#allocation2 + $0x110] sm:$0xff] %v3215_v54 }
 0x44f   : > { %v4444_v53 = vmul.f32 %v6831_v56, %v4443_v63  ;;  %3281 = vst [vmem:[#allocation2 + $0xa8] sm:$0xff] %v3216_v1 }
 0x451   : > { %v4445_v3 = vadd.f32 %v6831_v56, %v4444_v53 }
 0x453   : > { %v4449_v51 = vsel %vm4448_vm15, %v6831_v56, %v4445_v3 }
 0x454   : > { %v4454_v6 = vsel %vm4451_vm0, %v4453_v33, %v4449_v51 }
 0x455   : > { %v4529_v19 = vmul.f32 %v11015_v38, %v4454_v6  ;;  %v4530_v20 = vmul.f32 %v11017_v47, %v4454_v6 }
 0x457   : > { %4594 = vst [vmem:[#allocation2 + $0x238] sm:$0xff] %v4529_v19 }
 0x458   : > { %4595 = vst [vmem:[#allocation2 + $0x290] sm:$0xff] %v4530_v20 }
 0x459 PF: > { %s6116_s22 = sshll.u32 %s6963_s17, 7  ;;  %v4662_v43 = vld [vmem:[#allocation2 + $0x528] sm:$0xff]  ;;  %v4794_v36 = vld [vmem:[#allocation2 + $0x110] sm:$0xff]  ;;  %v4663_v42 = vld [vmem:[#allocation2 + $0x1c0] sm:$0xff]  ;;  %s6118_s23 = sshll.u32 %s6967_s18, 1  ;;  %vm5614_vm1 = vcmask 1043456  }
 0x45a   : > { %s4599_s9 = sld [smem:[#allocation3 + %s6116_s22]]  ;;  %s4729_s4 = sadd.s32 1, %s6116_s22  ;;  %v4660_v23 = vld [vmem:[#allocation2 + $0x138] sm:$0xff]  ;;  %v4990_v39 = vld [vmem:[#allocation2 + $0x568] sm:$0xff]  ;;  %v4792_v62 = vld [vmem:[#allocation2 + $0x230] sm:$0xff] }
 0x45b   : > { %s4730_s15 = sld [smem:[#allocation3 + %s4729_s4]]  ;;  %s4925_s5 = sadd.s32 2, %s6116_s22  ;;  %v4795_v24 = vld [vmem:[#allocation2 + $0xa8] sm:$0xff]  ;;  %v4991_v47 = vld [vmem:[#allocation2 + $0x90] sm:$0xff]  ;;  %v4793_v8 = vld [vmem:[#allocation2 + $0x2e0] sm:$0xff] }
 0x45c   : > { %s4926_s11 = sld [smem:[#allocation3 + %s4925_s5]]  ;;  %v4661_v46 = vld [vmem:[#allocation2 + $0x308] sm:$0xff]  ;;  %v4958_v14 = vld [vmem:[#allocation2 + $0x1a0] sm:$0xff]  ;;  %v4631_v12 = vld [vmem:[#allocation2 + $0x4d0] sm:$0xff]  ;;  %s6119_s27 = sshll.u32 %s6963_s17, 2 }
 0x45d   : > { %v4630_v32 = vld [vmem:[#allocation2 + $0x488] sm:$0xff]  ;;  %v4763_v29 = vld [vmem:[#allocation2 + $0x278] sm:$0xff]  ;;  %v4790_v13 = vld [vmem:[#allocation2 + $0x130] sm:$0xff]  ;;  %s5631_s28 = sadd.s32 %s6119_s27, %s6118_s23  ;;  %s5635_s17 = sshll.u32 %s637_s0, 4  ;;  %s5636_s17 = int_to_ptr.vmem [resolvable:$true] %s5635_s17 }
 0x45e   : > { %v4988_v52 = vld [vmem:[#allocation2 + $0x238] sm:$0xff]  ;;  %v4762_v0 = vld [vmem:[#allocation2 + $0x468] sm:$0xff]  ;;  %v4659_v9 = vld [vmem:[#allocation2 + $0x370] sm:$0xff] }
 0x45f   : > { %v4989_v2 = vld [vmem:[#allocation2 + $0x290] sm:$0xff]  ;;  %v4959_v11 = vld [vmem:[#allocation2 + $0x288] sm:$0xff]  ;;  %v4956_v3 = vld [vmem:[#allocation2 + $0x578] sm:$0xff] }
 0x460   : > { %v11488_v38 = vstv %s4599_s9  ;;  %v4658_v56 = vld [vmem:[#allocation2 + $0x2e8] sm:$0xff]  ;;  %v4791_v54 = vld [vmem:[#allocation2 + $0x5f0] sm:$0xff]  ;;  %v4629_v33 = vld [vmem:[#allocation2 + $0x5e0] sm:$0xff] }
 0x461   : > { %v4727_v27 = vmul.f32 %v11488_v38, %v4662_v43  ;;  %v11491_v16 = vstv %s4730_s15  ;;  %v4728_v45 = vmul.f32 %v11488_v38, %v4663_v42  ;;  %v4725_v31 = vmul.f32 %v11488_v38, %v4660_v23  ;;  %v4986_v44 = vld [vmem:[#allocation2 + $0x128] sm:$0xff]  ;;  %v4987_v26 = vld [vmem:[#allocation2 + $0x3f0] sm:$0xff]  ;;  %v4761_v43 = vld [vmem:[#allocation2 + $0x4a0] sm:$0xff]  ;;  %s5620_s15 = scalar_lea.sflag [#allocation4], %s635_s10 }
 0x462   : > { %v4859_v7 = vmul.f32 %v11491_v16, %v4794_v36  ;;  %v11496_v15 = vstv %s4926_s11  ;;  %v4860_v58 = vmul.f32 %v11491_v16, %v4795_v24  ;;  %v4857_v61 = vmul.f32 %v11491_v16, %v4792_v62  ;;  %v4628_v1 = vld [vmem:[#allocation2 + $0x3a8] sm:$0xff]  ;;  %v4760_v50 = vld [vmem:[#allocation2 + $0x50] sm:$0xff]  ;;  %v4656_v62 = vld [vmem:[#allocation2 + $0x560] sm:$0xff] }
 0x463   : > { %v5055_v37 = vmul.f32 %v11496_v15, %v4990_v39  ;;  %v5056_v55 = vmul.f32 %v11496_v15, %v4991_v47  ;;  %v5053_v30 = vmul.f32 %v11496_v15, %v4988_v52  ;;  %v4726_v25 = vmul.f32 %v11488_v38, %v4661_v46  ;;  %v4957_v24 = vld [vmem:[#allocation2 + $0x170] sm:$0xff]  ;;  %v4788_v47 = vld [vmem:[#allocation2 + $0x420] sm:$0xff] }
 0x464   : > { %v4923_v60 = vadd.f32 %v4859_v7, %v4727_v27  ;;  %v4924_v22 = vadd.f32 %v4860_v58, %v4728_v45  ;;  %v4921_v35 = vadd.f32 %v4857_v61, %v4725_v31  ;;  %v4858_v17 = vmul.f32 %v11491_v16, %v4793_v8  ;;  %v4984_v31 = vld [vmem:[#allocation2 + $0x350] sm:$0xff]  ;;  %v4657_v8 = vld [vmem:[#allocation2 + $0x4f8] sm:$0xff]  ;;  %v4789_v61 = vld [vmem:[#allocation2 + $0x88] sm:$0xff] }
 0x465   : > { %v5054_v21 = vmul.f32 %v11496_v15, %v4989_v2  ;;  %v4695_v34 = vmul.f32 %v11488_v38, %v4630_v32  ;;  %v4827_v57 = vmul.f32 %v11491_v16, %v4762_v0  ;;  %v5023_v28 = vmul.f32 %v11496_v15, %v4958_v14  ;;  %v4985_v32 = vld [vmem:[#allocation2 + $0x4c0] sm:$0xff] }
 0x466   : > { %v11509_v41 = vadd.f32 %v5055_v37, %v4923_v60  ;;  %v11511_v48 = vadd.f32 %v5056_v55, %v4924_v22  ;;  %v11513_v40 = vadd.f32 %v5053_v30, %v4921_v35  ;;  %v4922_v5 = vadd.f32 %v4858_v17, %v4726_v25  ;;  %v4626_v30 = vld [vmem:[#allocation2 + $0x388] sm:$0xff]  ;;  %v4758_v25 = vld [vmem:[#allocation2 + $0x1d0] sm:$0xff] }
 0x467   : > { %v4891_v18 = vadd.f32 %v4827_v57, %v4695_v34  ;;  %v4696_v10 = vmul.f32 %v11488_v38, %v4631_v12  ;;  %v4828_v49 = vmul.f32 %v11491_v16, %v4763_v29  ;;  %v5024_v4 = vmul.f32 %v11496_v15, %v4959_v11  ;;  %v4954_v12 = vld [vmem:[#allocation2 + $0x3f8] sm:$0xff]  ;;  %v4627_v29 = vld [vmem:[#allocation2 + $0x520] sm:$0xff] }
 0x468   : > { %5168 = vmatpush.xpose.msra.mxu2 %v11509_v41  ;;  %5188 = vmatpush.xpose.msra.mxu3 %v11511_v48  ;;  %v11520_v63 = vadd.f32 %v5054_v21, %v4922_v5  ;;  %v4723_v59 = vmul.f32 %v11488_v38, %v4658_v56  ;;  %v4855_v53 = vmul.f32 %v11491_v16, %v4790_v13  ;;  %v4955_v56 = vld [vmem:[#allocation2 + $0x380] sm:$0xff]  ;;  %v4654_v13 = vld [vmem:[#allocation2 + $0x2f8] sm:$0xff] }
 0x469   : > { %v11524_v51 = vadd.f32 %v5023_v28, %v4891_v18  ;;  %v4892_v6 = vadd.f32 %v4828_v49, %v4696_v10  ;;  %v5051_v19 = vmul.f32 %v11496_v15, %v4986_v44  ;;  %v4724_v20 = vmul.f32 %v11488_v38, %v4659_v9  ;;  %v4759_v28 = vld [vmem:[#allocation2 + $0x4f0] sm:$0xff]  ;;  %v4786_v18 = vld [vmem:[#allocation2 + $0x368] sm:$0xff] }
 0x46a   : > { %v4919_v36 = vadd.f32 %v4855_v53, %v4723_v59  ;;  %v4856_v42 = vmul.f32 %v11491_v16, %v4791_v54  ;;  %v5052_v23 = vmul.f32 %v11496_v15, %v4987_v26  ;;  %v4693_v39 = vmul.f32 %v11488_v38, %v4628_v1  ;;  %v4982_v10 = vld [vmem:[#allocation2 + $0x430] sm:$0xff]  ;;  %v4655_v49 = vld [vmem:[#allocation2 + $0x268] sm:$0xff]  ;;  %v4787_v59 = vld [vmem:[#allocation2 + $0x298] sm:$0xff] }
 0x46b   : > { %5128 = vmatpush.xpose.msra.mxu0 %v11524_v51  ;;  %v11532_v52 = vadd.f32 %v5024_v4, %v4892_v6  ;;  %v4825_v46 = vmul.f32 %v11491_v16, %v4760_v50  ;;  %v5021_v27 = vmul.f32 %v11496_v15, %v4956_v3  ;;  %v4694_v45 = vmul.f32 %v11488_v38, %v4629_v33  ;;  %v4983_v53 = vld [vmem:[#allocation2 + $0x180] sm:$0xff] }
 0x46c   : > { %5169 = vmatpush.xpose.msra.mxu2 %v11513_v40  ;;  %5189 = vmatpush.xpose.msra.mxu3 %v11520_v63  ;;  %v11539_v2 = vadd.f32 %v5051_v19, %v4919_v36  ;;  %v4920_v7 = vadd.f32 %v4856_v42, %v4724_v20  ;;  %v4826_v58 = vmul.f32 %v11491_v16, %v4761_v43  ;;  %v4624_v19 = vld [vmem:[#allocation2 + $0x248] sm:$0xff]  ;;  %v4756_v20 = vld [vmem:[#allocation2 + $0x460] sm:$0xff]  ;;  %v4952_v43 = vld [vmem:[#allocation2 + $0x118] sm:$0xff] }
 0x46d   : > { %5148 = vmatpush.xpose.msra.mxu1 %v11532_v52  ;;  %v4889_v0 = vadd.f32 %v4825_v46, %v4693_v39  ;;  %v5022_v14 = vmul.f32 %v11496_v15, %v4957_v24  ;;  %v4721_v37 = vmul.f32 %v11488_v38, %v4656_v62  ;;  %v4853_v55 = vmul.f32 %v11491_v16, %v4788_v47  ;;  %v4625_v24 = vld [vmem:[#allocation2 + $0xc8] sm:$0xff] }
 0x46e   : > { %v11546_v60 = vadd.f32 %v5052_v23, %v4920_v7  ;;  %v4890_v22 = vadd.f32 %v4826_v58, %v4694_v45  ;;  %v5049_v35 = vmul.f32 %v11496_v15, %v4984_v31  ;;  %v4722_v17 = vmul.f32 %v11488_v38, %v4657_v8  ;;  %v4757_v62 = vld [vmem:[#allocation2 + $0x2c8] sm:$0xff]  ;;  %v4953_v31 = vld [vmem:[#allocation2 + $0x478] sm:$0xff] }
 0x46f   : > { %v11550_v11 = vadd.f32 %v5021_v27, %v4889_v0  ;;  %v4917_v21 = vadd.f32 %v4853_v55, %v4721_v37  ;;  %v4854_v34 = vmul.f32 %v11491_v16, %v4789_v61  ;;  %v5050_v57 = vmul.f32 %v11496_v15, %v4985_v32  ;;  %v4652_v8 = vld [vmem:[#allocation2 + $0x4e8] sm:$0xff]  ;;  %v4784_v0 = vld [vmem:[#allocation2 + $0x5b8] sm:$0xff] }
 0x470   : > { %5170 = vmatpush.xpose.msra.mxu2 %v11539_v2  ;;  %5190 = vmatpush.xpose.msra.mxu3 %v11546_v60  ;;  %v11556_v5 = vadd.f32 %v5022_v14, %v4890_v22  ;;  %v4691_v44 = vmul.f32 %v11488_v38, %v4626_v30  ;;  %v4823_v9 = vmul.f32 %v11491_v16, %v4758_v25  ;;  %v4980_v14 = vld [vmem:[#allocation2 + $0x3e8] sm:$0xff]  ;;  %v4653_v22 = vld [vmem:[#allocation2 + $0x120] sm:$0xff] }
 0x471   : > { %5129 = vmatpush.xpose.msra.mxu0 %v11550_v11  ;;  %v11561_v4 = vadd.f32 %v5049_v35, %v4917_v21  ;;  %v4918_v54 = vadd.f32 %v4854_v34, %v4722_v17  ;;  %v5019_v26 = vmul.f32 %v11496_v15, %v4954_v12  ;;  %v4692_v1 = vmul.f32 %v11488_v38, %v4627_v29  ;;  %v4785_v35 = vld [vmem:[#allocation2 + $0x218] sm:$0xff]  ;;  %v4981_v17 = vld [vmem:[#allocation2 + $0x448] sm:$0xff] }
 0x472   : > { %5149 = vmatpush.xpose.msra.mxu1 %v11556_v5  ;;  %v4887_v50 = vadd.f32 %v4823_v9, %v4691_v44  ;;  %v4824_v3 = vmul.f32 %v11491_v16, %v4759_v28  ;;  %v5020_v33 = vmul.f32 %v11496_v15, %v4955_v56  ;;  %v4719_v6 = vmul.f32 %v11488_v38, %v4654_v13  ;;  %v4754_v28 = vld [vmem:[#allocation2 + $0x1f0] sm:$0xff] }
 0x473   : > { %v11569_v36 = vadd.f32 %v5050_v57, %v4918_v54  ;;  %v4851_v42 = vmul.f32 %v11491_v16, %v4786_v18  ;;  %v5047_v23 = vmul.f32 %v11496_v15, %v4982_v10  ;;  %v4720_v39 = vmul.f32 %v11488_v38, %v4655_v49  ;;  %v4622_v57 = vld [vmem:[#allocation2 + $0x8] sm:$0xff]  ;;  %v4755_v49 = vld [vmem:[#allocation2 + $0x3a0] sm:$0xff] }
 0x474   : > { %5171 = vmatpush.xpose.msra.mxu2 %v11561_v4  ;;  %v11575_v47 = vadd.f32 %v5019_v26, %v4887_v50  ;;  %v4888_v46 = vadd.f32 %v4824_v3, %v4692_v1  ;;  %v4852_v27 = vmul.f32 %v11491_v16, %v4787_v59  ;;  %v5048_v45 = vmul.f32 %v11496_v15, %v4983_v53  ;;  %v4950_v18 = vld [vmem:[#allocation2 + $0x588] sm:$0xff] }
 0x475   : > { %5191 = vmatpush.xpose.msra.mxu3 %v11569_v36  ;;  %v4915_v7 = vadd.f32 %v4851_v42, %v4719_v6  ;;  %v4689_v58 = vmul.f32 %v11488_v38, %v4624_v19  ;;  %v4821_v61 = vmul.f32 %v11491_v16, %v4756_v20  ;;  %v5017_v32 = vmul.f32 %v11496_v15, %v4952_v43  ;;  %v4623_v10 = vld [vmem:[#allocation2 + $0x188] sm:$0xff]  ;;  %v4978_v43 = vld [vmem:[#allocation2 + $0x220] sm:$0xff] }
 0x476   : > { %5130 = vmatpush.xpose.msra.mxu0 %v11575_v47  ;;  %v11584_v37 = vadd.f32 %v5020_v33, %v4888_v46  ;;  %v4916_v55 = vadd.f32 %v4852_v27, %v4720_v39  ;;  %v4690_v30 = vmul.f32 %v11488_v38, %v4625_v24  ;;  %v4822_v25 = vmul.f32 %v11491_v16, %v4757_v62  ;;  %v4951_v53 = vld [vmem:[#allocation2 + $0x48] sm:$0xff]  ;;  %v4651_v62 = vld [vmem:[#allocation2 + $0xf8] sm:$0xff] }
 0x477   : > { %v11588_v12 = vadd.f32 %v5047_v23, %v4915_v7  ;;  %v4885_v29 = vadd.f32 %v4821_v61, %v4689_v58  ;;  %v5018_v21 = vmul.f32 %v11496_v15, %v4953_v31  ;;  %v4717_v34 = vmul.f32 %v11488_v38, %v4652_v8  ;;  %v4650_v50 = vld [vmem:[#allocation2 + $0x28] sm:$0xff]  ;;  %v4979_v27 = vld [vmem:[#allocation2 + $0x1d8] sm:$0xff]  ;;  %v4620_v58 = vld [vmem:[#allocation2 + $0x330] sm:$0xff] }
 0x478   : > { %5150 = vmatpush.xpose.msra.mxu1 %v11584_v37  ;;  %v11593_v56 = vadd.f32 %v5048_v45, %v4916_v55  ;;  %v4886_v13 = vadd.f32 %v4822_v25, %v4690_v30  ;;  %v4849_v44 = vmul.f32 %v11491_v16, %v4784_v0  ;;  %v5045_v9 = vmul.f32 %v11496_v15, %v4980_v14  ;;  %v4782_v20 = vld [vmem:[#allocation2 + $0x208] sm:$0xff]  ;;  %v4752_v61 = vld [vmem:[#allocation2 + $0x3b8] sm:$0xff]  ;;  %v4948_v30 = vld [vmem:[#allocation2 + $0x210] sm:$0xff] }
 0x479   : > { %5172 = vmatpush.xpose.msra.mxu2 %v11588_v12  ;;  %v11598_v54 = vadd.f32 %v5017_v32, %v4885_v29  ;;  %v4718_v26 = vmul.f32 %v11488_v38, %v4653_v22  ;;  %v4850_v1 = vmul.f32 %v11491_v16, %v4785_v35  ;;  %v5046_v59 = vmul.f32 %v11496_v15, %v4981_v17  ;;  %v4783_v46 = vld [vmem:[#allocation2 + $0x4a8] sm:$0xff]  ;;  %v4621_v25 = vld [vmem:[#allocation2 + $0x100] sm:$0xff]  ;;  %v4753_v22 = vld [vmem:[#allocation2 + $0x530] sm:$0xff] }
 0x47a   : > { %5192 = vmatpush.xpose.msra.mxu3 %v11593_v56  ;;  %v11604_v3 = vadd.f32 %v5018_v21, %v4886_v13  ;;  %v4913_v33 = vadd.f32 %v4849_v44, %v4717_v34  ;;  %v4687_v6 = vmul.f32 %v11488_v38, %v4622_v57  ;;  %v4819_v19 = vmul.f32 %v11491_v16, %v4754_v28  ;;  %v4949_v34 = vld [vmem:[#allocation2 + $0x558] sm:$0xff] }
 0x47b   : > { %5131 = vmatpush.xpose.msra.mxu0 %v11598_v54  ;;  %v4914_v42 = vadd.f32 %v4850_v1, %v4718_v26  ;;  %v5015_v23 = vmul.f32 %v11496_v15, %v4950_v18  ;;  %v4688_v39 = vmul.f32 %v11488_v38, %v4623_v10  ;;  %v4820_v24 = vmul.f32 %v11491_v16, %v4755_v49  ;;  %v4648_v57 = vld [vmem:[#allocation2 + $0x3d8] sm:$0xff]  ;;  %v4780_v18 = vld [vmem:[#allocation2 + $0x30] sm:$0xff] }
 0x47c   : > { %5151 = vmatpush.xpose.msra.mxu1 %v11604_v3  ;;  %v11613_v45 = vadd.f32 %v5045_v9, %v4913_v33  ;;  %v4883_v31 = vadd.f32 %v4819_v19, %v4687_v6  ;;  %v5016_v8 = vmul.f32 %v11496_v15, %v4951_v53  ;;  %v4715_v7 = vmul.f32 %v11488_v38, %v4650_v50  ;;  %v4976_v10 = vld [vmem:[#allocation2 + $0x150] sm:$0xff] }
 0x47d   : > { %v11617_v32 = vadd.f32 %v5046_v59, %v4914_v42  ;;  %v4884_v0 = vadd.f32 %v4820_v24, %v4688_v39  ;;  %v4847_v14 = vmul.f32 %v11491_v16, %v4782_v20  ;;  %v5043_v55 = vmul.f32 %v11496_v15, %v4978_v43  ;;  %v4649_v53 = vld [vmem:[#allocation2 + $0x4b0] sm:$0xff]  ;;  %v4618_v42 = vld [vmem:[#allocation2 + $0x540] sm:$0xff] }
 0x47e   : > { %5173 = vmatpush.xpose.msra.mxu2 %v11613_v45  ;;  %v11622_v35 = vadd.f32 %v5015_v23, %v4883_v31  ;;  %v4716_v17 = vmul.f32 %v11488_v38, %v4651_v62  ;;  %v4848_v29 = vmul.f32 %v11491_v16, %v4783_v46  ;;  %v5044_v21 = vmul.f32 %v11496_v15, %v4979_v27  ;;  %v4781_v50 = vld [vmem:[#allocation2 + $0x410] sm:$0xff]  ;;  %v4750_v23 = vld [vmem:[#allocation2 + $0x340] sm:$0xff] }
 0x47f   : > { %5193 = vmatpush.xpose.msra.mxu3 %v11617_v32  ;;  %v11628_v28 = vadd.f32 %v5016_v8, %v4884_v0  ;;  %v4911_v13 = vadd.f32 %v4847_v14, %v4715_v7  ;;  %v4685_v44 = vmul.f32 %v11488_v38, %v4620_v58  ;;  %v4817_v9 = vmul.f32 %v11491_v16, %v4752_v61  ;;  %v4977_v33 = vld [vmem:[#allocation2 + $0x1b0] sm:$0xff]  ;;  %v4946_v27 = vld [vmem:[#allocation2 + $0x20] sm:$0xff]  ;;  %v4947_v14 = vld [vmem:[#allocation2 + $0x78] sm:$0xff] }
 0x480   : > { %5132 = vmatpush.xpose.msra.mxu0 %v11622_v35  ;;  %v4912_v49 = vadd.f32 %v4848_v29, %v4716_v17  ;;  %v5013_v26 = vmul.f32 %v11496_v15, %v4948_v30  ;;  %v4686_v1 = vmul.f32 %v11488_v38, %v4621_v25  ;;  %v4818_v59 = vmul.f32 %v11491_v16, %v4753_v22  ;;  %v4619_v31 = vld [vmem:[#allocation2 + $0x3c0] sm:$0xff]  ;;  %v4778_v29 = vld [vmem:[#allocation2 + $0xd8] sm:$0xff] }
 0x481   : > { %5152 = vmatpush.xpose.msra.mxu1 %v11628_v28  ;;  %v11637_v6 = vadd.f32 %v5043_v55, %v4911_v13  ;;  %v4881_v19 = vadd.f32 %v4817_v9, %v4685_v44  ;;  %v5014_v20 = vmul.f32 %v11496_v15, %v4949_v34  ;;  %v4713_v43 = vmul.f32 %v11488_v38, %v4648_v57  ;;  %v4751_v8 = vld [vmem:[#allocation2 + $0x360] sm:$0xff]  ;;  %v4646_v55 = vld [vmem:[#allocation2 + $0x2a8] sm:$0xff] }
 0x482   : > { %v11641_v39 = vadd.f32 %v5044_v21, %v4912_v49  ;;  %v4882_v24 = vadd.f32 %v4818_v59, %v4686_v1  ;;  %v4845_v62 = vmul.f32 %v11491_v16, %v4780_v18  ;;  %v5041_v46 = vmul.f32 %v11496_v15, %v4976_v10  ;;  %v4974_v21 = vld [vmem:[#allocation2 + $0x2d0] sm:$0xff]  ;;  %v4647_v9 = vld [vmem:[#allocation2 + $0x3e0] sm:$0xff]  ;;  %v4779_v18 = vld [vmem:[#allocation2 + $0x428] sm:$0xff] }
 0x483   : > { %5174 = vmatpush.xpose.msra.mxu2 %v11637_v6  ;;  %v11646_v7 = vadd.f32 %v5013_v26, %v4881_v19  ;;  %v4714_v58 = vmul.f32 %v11488_v38, %v4649_v53  ;;  %v4846_v61 = vmul.f32 %v11491_v16, %v4781_v50  ;;  %v5042_v0 = vmul.f32 %v11496_v15, %v4977_v33  ;;  %v4975_v10 = vld [vmem:[#allocation2 + $0x1b8] sm:$0xff]  ;;  %v4616_v53 = vld [vmem:[#allocation2 + $0x580] sm:$0xff] }
 0x484   : > { %5194 = vmatpush.xpose.msra.mxu3 %v11641_v39  ;;  %v11652_v30 = vadd.f32 %v5014_v20, %v4882_v24  ;;  %v4909_v25 = vadd.f32 %v4845_v62, %v4713_v43  ;;  %v4683_v22 = vmul.f32 %v11488_v38, %v4618_v42  ;;  %v4815_v17 = vmul.f32 %v11491_v16, %v4750_v23  ;;  %v4748_v50 = vld [vmem:[#allocation2 + $0x418] sm:$0xff]  ;;  %v4617_v23 = vld [vmem:[#allocation2 + $0x590] sm:$0xff]  ;;  %v4749_v24 = vld [vmem:[#allocation2 + $0x5c8] sm:$0xff] }
 0x485   : > { %5133 = vmatpush.xpose.msra.mxu0 %v11646_v7  ;;  %v4910_v34 = vadd.f32 %v4846_v61, %v4714_v58  ;;  %v5011_v57 = vmul.f32 %v11496_v15, %v4946_v27  ;;  %v4684_v13 = vmul.f32 %v11488_v38, %v4619_v31  ;;  %v4816_v44 = vmul.f32 %v11491_v16, %v4751_v8  ;;  %v4944_v42 = vld [vmem:[#allocation2 + $0xb8] sm:$0xff]  ;;  %v4945_v8 = vld [vmem:[#allocation2 + $0x10] sm:$0xff] }
 0x486   : > { %5153 = vmatpush.xpose.msra.mxu1 %v11652_v30  ;;  %v11661_v49 = vadd.f32 %v5041_v46, %v4909_v25  ;;  %v4879_v26 = vadd.f32 %v4815_v17, %v4683_v22  ;;  %v5012_v1 = vmul.f32 %v11496_v15, %v4947_v14  ;;  %v4711_v59 = vmul.f32 %v11488_v38, %v4646_v55  ;;  %v4644_v58 = vld [vmem:[#allocation2 + $0x338] sm:$0xff]  ;;  %v4776_v25 = vld [vmem:[#allocation2 + $0x5b0] sm:$0xff] }
 0x487   : > { %v11665_v33 = vadd.f32 %v5042_v0, %v4910_v34  ;;  %v4880_v19 = vadd.f32 %v4816_v44, %v4684_v13  ;;  %v4843_v20 = vmul.f32 %v11491_v16, %v4778_v29  ;;  %v5039_v43 = vmul.f32 %v11496_v15, %v4974_v21  ;;  %v4972_v22 = vld [vmem:[#allocation2 + $0x270] sm:$0xff]  ;;  %v4777_v13 = vld [vmem:[#allocation2 + $0xc0] sm:$0xff] }
 0x488   : > { %5175 = vmatpush.xpose.msra.mxu2 %v11661_v49  ;;  %v11670_v62 = vadd.f32 %v5011_v57, %v4879_v26  ;;  %v4712_v46 = vmul.f32 %v11488_v38, %v4647_v9  ;;  %v4844_v27 = vmul.f32 %v11491_v16, %v4779_v18  ;;  %v5040_v31 = vmul.f32 %v11496_v15, %v4975_v10  ;;  %v4645_v57 = vld [vmem:[#allocation2 + $0x480] sm:$0xff]  ;;  %v4973_v44 = vld [vmem:[#allocation2 + $0x250] sm:$0xff] }
 0x489   : > { %5195 = vmatpush.xpose.msra.mxu3 %v11665_v33  ;;  %v11676_v61 = vadd.f32 %v5012_v1, %v4880_v19  ;;  %v4907_v0 = vadd.f32 %v4843_v20, %v4711_v59  ;;  %v4681_v14 = vmul.f32 %v11488_v38, %v4616_v53  ;;  %v4813_v55 = vmul.f32 %v11491_v16, %v4748_v50  ;;  %v4614_v1 = vld [vmem:[#allocation2 + $0x58] sm:$0xff] }
 0x48a   : > { %5134 = vmatpush.xpose.msra.mxu0 %v11670_v62  ;;  %v4908_v17 = vadd.f32 %v4844_v27, %v4712_v46  ;;  %v5009_v29 = vmul.f32 %v11496_v15, %v4944_v42  ;;  %v4682_v21 = vmul.f32 %v11488_v38, %v4617_v23  ;;  %v4814_v34 = vmul.f32 %v11491_v16, %v4749_v24  ;;  %v4746_v59 = vld [vmem:[#allocation2 + $0x198] sm:$0xff]  ;;  %v4747_v24 = vld [vmem:[#allocation2 + $0x550] sm:$0xff] }
 0x48b   : > { %5154 = vmatpush.xpose.msra.mxu1 %v11676_v61  ;;  %v11685_v9 = vadd.f32 %v5039_v43, %v4907_v0  ;;  %v4877_v18 = vadd.f32 %v4813_v55, %v4681_v14  ;;  %v5010_v10 = vmul.f32 %v11496_v15, %v4945_v8  ;;  %v4709_v26 = vmul.f32 %v11488_v38, %v4644_v58  ;;  %v4942_v42 = vld [vmem:[#allocation2 + $0x358] sm:$0xff]  ;;  %v4642_v58 = vld [vmem:[#allocation2 + $0x3c8] sm:$0xff] }
 0x48c   : > { %v11689_v53 = vadd.f32 %v5040_v31, %v4908_v17  ;;  %v4878_v50 = vadd.f32 %v4814_v34, %v4682_v21  ;;  %v4841_v19 = vmul.f32 %v11491_v16, %v4776_v25  ;;  %v5037_v20 = vmul.f32 %v11496_v15, %v4972_v22  ;;  %v4615_v23 = vld [vmem:[#allocation2 + $0x2b8] sm:$0xff]  ;;  %v4943_v31 = vld [vmem:[#allocation2 + $0x70] sm:$0xff]  ;;  %v4774_v22 = vld [vmem:[#allocation2 + $0x2c0] sm:$0xff] }
 0x48d   : > { %13285 = vst [vmem:[#allocation116_spill] sm:$0xff] %v11685_v9  ;;  %5176 = vmatpush.xpose.msra.mxu2 %v11685_v9  ;;  %v11694_v43 = vadd.f32 %v5009_v29, %v4877_v18  ;;  %v4710_v46 = vmul.f32 %v11488_v38, %v4645_v57  ;;  %v4842_v27 = vmul.f32 %v11491_v16, %v4777_v13  ;;  %v4970_v17 = vld [vmem:[#allocation2 + $0x408] sm:$0xff]  ;;  %v4643_v13 = vld [vmem:[#allocation2 + $0x5c0] sm:$0xff]  ;;  %v4971_v18 = vld [vmem:[#allocation2 + $0x5f8] sm:$0xff] }
 0x48e   : > { %13286 = vst [vmem:[#allocation117_spill] sm:$0xff] %v11689_v53  ;;  %v5038_v8 = vmul.f32 %v11496_v15, %v4973_v44  ;;  %5196 = vmatpush.xpose.msra.mxu3 %v11689_v53  ;;  %v11700_v0 = vadd.f32 %v5010_v10, %v4878_v50  ;;  %v4905_v14 = vadd.f32 %v4841_v19, %v4709_v26  ;;  %v4775_v44 = vld [vmem:[#allocation2 + $0x228] sm:$0xff]  ;;  %v4744_v19 = vld [vmem:[#allocation2 + $0x40] sm:$0xff]  ;;  %v4741_v9 = vld [vmem:[#allocation2 + $0x310] sm:$0xff] }
 0x48f   : > { %13287 = vst [vmem:[#allocation118_spill] sm:$0xff] %v11694_v43  ;;  %v4679_v55 = vmul.f32 %v11488_v38, %v4614_v1  ;;  %v4811_v25 = vmul.f32 %v11491_v16, %v4746_v59  ;;  %5135 = vmatpush.xpose.msra.mxu0 %v11694_v43  ;;  %v4906_v29 = vadd.f32 %v4842_v27, %v4710_v46  ;;  %v4612_v50 = vld [vmem:[#allocation2 + $0x548] sm:$0xff]  ;;  %v4940_v27 = vld [vmem:[#allocation2 + $0x3d0] sm:$0xff]  ;;  %v4613_v43 = vld [vmem:[#allocation2 + $0x500] sm:$0xff] }
 0x490   : > { %13288 = vst [vmem:[#allocation119_spill] sm:$0xff] %v11700_v0  ;;  %v5007_v21 = vmul.f32 %v11496_v15, %v4942_v42  ;;  %v4680_v34 = vmul.f32 %v11488_v38, %v4615_v23  ;;  %v4812_v57 = vmul.f32 %v11491_v16, %v4747_v24  ;;  %5155 = vmatpush.xpose.msra.mxu1 %v11700_v0  ;;  %v4745_v53 = vld [vmem:[#allocation2 + $0x4e0] sm:$0xff]  ;;  %v4609_v0 = vld [vmem:[#allocation2 + $0x510] sm:$0xff] }
 0x491   : > { %v11709_v10 = vadd.f32 %v5037_v20, %v4905_v14  ;;  %v4875_v26 = vadd.f32 %v4811_v25, %v4679_v55  ;;  %v5008_v1 = vmul.f32 %v11496_v15, %v4943_v31  ;;  %v4707_v59 = vmul.f32 %v11488_v38, %v4642_v58  ;;  %v4640_v55 = vld [vmem:[#allocation2 + $0x1f8] sm:$0xff] }
 0x492   : > { %v11713_v46 = vadd.f32 %v5038_v8, %v4906_v29  ;;  %v4876_v42 = vadd.f32 %v4812_v57, %v4680_v34  ;;  %v4839_v23 = vmul.f32 %v11491_v16, %v4774_v22  ;;  %v5035_v24 = vmul.f32 %v11496_v15, %v4970_v17  ;;  %v4941_v8 = vld [vmem:[#allocation2 + $0x68] sm:$0xff]  ;;  %v4772_v34 = vld [vmem:[#allocation2 + $0x1e0] sm:$0xff] }
 0x493   : > { %13289 = vst [vmem:[#allocation120_spill] sm:$0xff] %v11709_v10  ;;  %5177 = vmatpush.xpose.msra.mxu2 %v11709_v10  ;;  %v11718_v20 = vadd.f32 %v5007_v21, %v4875_v26  ;;  %v4708_v31 = vmul.f32 %v11488_v38, %v4643_v13  ;;  %v4840_v58 = vmul.f32 %v11491_v16, %v4775_v44  ;;  %v4968_v21 = vld [vmem:[#allocation2 + $0x1c8] sm:$0xff]  ;;  %v4641_v26 = vld [vmem:[#allocation2 + $0x2f0] sm:$0xff]  ;;  %v4611_v10 = vld [vmem:[#allocation2 + $0x318] sm:$0xff] }
 0x494   : > { %13290 = vst [vmem:[#allocation121_spill] sm:$0xff] %v11713_v46  ;;  %v5036_v14 = vmul.f32 %v11496_v15, %v4971_v18  ;;  %5197 = vmatpush.xpose.msra.mxu3 %v11713_v46  ;;  %v11724_v25 = vadd.f32 %v5008_v1, %v4876_v42  ;;  %v4903_v22 = vadd.f32 %v4839_v23, %v4707_v59  ;;  %v4773_v46 = vld [vmem:[#allocation2 + $0x390] sm:$0xff]  ;;  %v4969_v1 = vld [vmem:[#allocation2 + $0xa0] sm:$0xff] }
 0x495   : > { %13291 = vst [vmem:[#allocation122_spill] sm:$0xff] %v11718_v20  ;;  %v4677_v17 = vmul.f32 %v11488_v38, %v4612_v50  ;;  %v4809_v29 = vmul.f32 %v11491_v16, %v4744_v19  ;;  %5136 = vmatpush.xpose.msra.mxu0 %v11718_v20  ;;  %v4904_v57 = vadd.f32 %v4840_v58, %v4708_v31  ;;  %v4610_v23 = vld [vmem:[#allocation2 + $0x490] sm:$0xff]  ;;  %v4742_v31 = vld [vmem:[#allocation2 + $0x1e8] sm:$0xff] }
 0x496   : > { %13292 = vst [vmem:[#allocation123_spill] sm:$0xff] %v11724_v25  ;;  %v5005_v13 = vmul.f32 %v11496_v15, %v4940_v27  ;;  %v4678_v44 = vmul.f32 %v11488_v38, %v4613_v43  ;;  %v4810_v18 = vmul.f32 %v11491_v16, %v4745_v53  ;;  %5156 = vmatpush.xpose.msra.mxu1 %v11724_v25  ;;  %v4938_v20 = vld [vmem:[#allocation2 + $0x148] sm:$0xff]  ;;  %v4743_v25 = vld [vmem:[#allocation2 + $0x258] sm:$0xff] }
 0x497   : > { %v11733_v59 = vadd.f32 %v5035_v24, %v4903_v22  ;;  %v4873_v50 = vadd.f32 %v4809_v29, %v4677_v17  ;;  %v5006_v19 = vmul.f32 %v11496_v15, %v4941_v8  ;;  %v4705_v42 = vmul.f32 %v11488_v38, %v4640_v55  ;;  %v4939_v22 = vld [vmem:[#allocation2 + $0x508] sm:$0xff] }
 0x498   : > { %v11737_v58 = vadd.f32 %v5036_v14, %v4904_v57  ;;  %v4874_v27 = vadd.f32 %v4810_v18, %v4678_v44  ;;  %v4837_v43 = vmul.f32 %v11491_v16, %v4772_v34  ;;  %v5033_v53 = vmul.f32 %v11496_v15, %v4968_v21  ;;  %v4638_v17 = vld [vmem:[#allocation2 + $0x4c8] sm:$0xff]  ;;  %v4770_v44 = vld [vmem:[#allocation2 + $0x178] sm:$0xff] }
 0x499   : > { %13293 = vst [vmem:[#allocation124_spill] sm:$0xff] %v11733_v59  ;;  %5178 = vmatpush.xpose.msra.mxu2 %v11733_v59  ;;  %v11742_v24 = vadd.f32 %v5005_v13, %v4873_v50  ;;  %v4706_v8 = vmul.f32 %v11488_v38, %v4641_v26  ;;  %v4838_v55 = vmul.f32 %v11491_v16, %v4773_v46  ;;  %v4966_v13 = vld [vmem:[#allocation2 + $0x2d8] sm:$0xff]  ;;  %v4936_v59 = vld [vmem:[#allocation2 + $0x280] sm:$0xff] }
 0x49a   : > { %13294 = vst [vmem:[#allocation125_spill] sm:$0xff] %v11737_v58  ;;  %v5034_v14 = vmul.f32 %v11496_v15, %v4969_v1  ;;  %5198 = vmatpush.xpose.msra.mxu3 %v11737_v58  ;;  %v11748_v29 = vadd.f32 %v5006_v19, %v4874_v27  ;;  %v4901_v34 = vadd.f32 %v4837_v43, %v4705_v42  ;;  %v11753_v18 = vld [vmem:[%s7334_s26] sm:$0xff]  ;;  %v4639_v19 = vld [vmem:[#allocation2 + $0x5e8] sm:$0xff]  ;;  %s6120_s26 = sshll.u32 %s5631_s28, 2  ;;  %s6885_s28 = scalar_lea.hbm %s12261_s3, 32 }
 0x49b   : > { %13295 = vst [vmem:[#allocation126_spill] sm:$0xff] %v11742_v24  ;;  %v4675_v21 = vmul.f32 %v11488_v38, %v4610_v23  ;;  %v4807_v57 = vmul.f32 %v11491_v16, %v4742_v31  ;;  %5137 = vmatpush.xpose.msra.mxu0 %v11742_v24  ;;  %v4902_v46 = vadd.f32 %v4838_v55, %v4706_v8  ;;  %v4771_v27 = vld [vmem:[#allocation2 + $0x538] sm:$0xff]  ;;  %v4967_v42 = vld [vmem:[#allocation2 + $0x168] sm:$0xff]  ;;  %s5633_s4 = scalar_lea.hbm %s12261_s3, %s6120_s26 }
 0x49c   : > { %13296 = vst [vmem:[#allocation127_spill] sm:$0xff] %v11753_v18  ;;  %v5003_v26 = vmul.f32 %v11496_v15, %v4938_v20  ;;  %v4676_v1 = vmul.f32 %v11488_v38, %v4611_v10  ;;  %v4808_v50 = vmul.f32 %v11491_v16, %v4743_v25  ;;  %5157 = vmatpush.xpose.msra.mxu1 %v11748_v29  ;;  %v4608_v24 = vld [vmem:[#allocation2 + $0x108] sm:$0xff]  ;;  %v4740_v8 = vld [vmem:[#allocation2 + $0x4b8] sm:$0xff]  ;;  %s5637_s18 = sshll.u32 %s5633_s4, 4  ;;  %s5638_s18 = int_to_ptr.hbm [resolvable:$true] %s5637_s18 }
 0x49d   : > { %v11760_v23 = vadd.f32 %v5033_v53, %v4901_v34  ;;  %v4871_v31 = vadd.f32 %v4807_v57, %v4675_v21  ;;  %v5004_v43 = vmul.f32 %v11496_v15, %v4939_v22  ;;  %v4703_v58 = vmul.f32 %v11488_v38, %v4638_v17  ;;  %5123 = vst [vmem:[#allocation1] ss:$2 sm:$0xff] %v11753_v18  ;;  %v4937_v34 = vld [vmem:[#allocation2 + $0x518] sm:$0xff]  ;;  %v4769_v18 = vld [vmem:[#allocation2 + $0x160] sm:$0xff]  ;;  %s6879_s5 = sshra.s32 %s5638_s18, 4  ;;  %s6880_s5 = int_to_ptr.hbm [resolvable:$true] %s6879_s5 }
 0x49e   : > { %v11764_v55 = vadd.f32 %v5034_v14, %v4902_v46  ;;  %v4872_v20 = vadd.f32 %v4808_v50, %v4676_v1  ;;  %v4835_v10 = vmul.f32 %v11491_v16, %v4770_v44  ;;  %v5031_v25 = vmul.f32 %v11496_v15, %v4966_v13  ;;  %v4636_v21 = vld [vmem:[#allocation2 + $0x598] sm:$0xff]  ;;  %v4768_v1 = vld [vmem:[#allocation2 + $0xe8] sm:$0xff]  ;;  %s6881_s11 = scalar_lea.hbm %s6880_s5, 8  ;;  %p6886_p0 = scmp.lt.s32.totalorder %s6880_s5, %s12261_s3 }
 0x49f   : > { %13297 = vst [vmem:[#allocation128_spill] sm:$0xff] %v11760_v23  ;;  %5179 = vmatpush.xpose.msra.mxu2 %v11760_v23  ;;  %v11770_v53 = vadd.f32 %v5003_v26, %v4871_v31  ;;  %v4704_v22 = vmul.f32 %v11488_v38, %v4639_v19  ;;  %v4836_v17 = vmul.f32 %v11491_v16, %v4771_v27  ;;  %v4964_v26 = vld [vmem:[#allocation2 + $0x158] sm:$0xff]  ;;  %v4637_v31 = vld [vmem:[#allocation2 + $0x5a8] sm:$0xff]  ;;  %v4739_v23 = vld [vmem:[#allocation2 + $0x5a0] sm:$0xff]  ;;  %p6882_p10 = scmp.ne.s32.totalorder %s6880_s5, %s6881_s11  ;;  %p6887_p1 = scmp.lt.s32.totalorder %s6885_s28, %s6881_s11 }
 0x4a0   : > { %13298 = vst [vmem:[#allocation129_spill] sm:$0xff] %v11764_v55  ;;  %v5032_v14 = vmul.f32 %v11496_v15, %v4967_v42  ;;  %5199 = vmatpush.xpose.msra.mxu3 %v11764_v55  ;;  %v11776_v57 = vadd.f32 %v5004_v43, %v4872_v20  ;;  %v4899_v44 = vadd.f32 %v4835_v10, %v4703_v58  ;;  %v4965_v43 = vld [vmem:[#allocation2 + $0x348] sm:$0xff]  ;;  %v4606_v10 = vld [vmem:[#allocation2 + $0x440] sm:$0xff]  ;;  %v4607_v55 = vld [vmem:[#allocation2 + $0x378] sm:$0xff] }
 0x4a1   : > { %13299 = vst [vmem:[#allocation130_spill] sm:$0xff] %v11770_v53  ;;  %v4673_v13 = vmul.f32 %v11488_v38, %v4608_v24  ;;  %v4805_v46 = vmul.f32 %v11491_v16, %v4740_v8  ;;  %5138 = vmatpush.xpose.msra.mxu0 %v11770_v53  ;;  %v4900_v50 = vadd.f32 %v4836_v17, %v4704_v22  ;;  %v4738_v22 = vld [vmem:[#allocation2 + $0x80] sm:$0xff]  ;;  %v4934_v53 = vld [vmem:[#allocation2 + $0x38] sm:$0xff]  ;;  %p6883_p11 = pnand %p6882_p10, %p7074_p7  ;;  %p6888_p2 = por %p6887_p1, %p6886_p0 }
 0x4a2   : > { %13300 = vst [vmem:[#allocation131_spill] sm:$0xff] %v11776_v57  ;;  %v5001_v19 = vmul.f32 %v11496_v15, %v4936_v59  ;;  %v4674_v27 = vmul.f32 %v11488_v38, %v4609_v0  ;;  %v4806_v42 = vmul.f32 %v11491_v16, %v4741_v9  ;;  %5158 = vmatpush.xpose.msra.mxu1 %v11776_v57  ;;  %v4737_v57 = vld [vmem:[#allocation2 + $0x200] sm:$0xff] }
 0x4a3   : > { %v11785_v58 = vadd.f32 %v5031_v25, %v4899_v44  ;;  %v4869_v24 = vadd.f32 %v4805_v46, %v4673_v13  ;;  %v5002_v8 = vmul.f32 %v11496_v15, %v4937_v34  ;;  %v4701_v20 = vmul.f32 %v11488_v38, %v4636_v21  ;;  %v4634_v13 = vld [vmem:[#allocation2 + $0x2a0] sm:$0xff]  ;;  %p6884_p13 = pneg %p6883_p11 }
 0x4a4   : > { %v11789_v17 = vadd.f32 %v5032_v14, %v4900_v50  ;;  %v4870_v59 = vadd.f32 %v4806_v42, %v4674_v27  ;;  %v4833_v0 = vmul.f32 %v11491_v16, %v4768_v1  ;;  %v5029_v9 = vmul.f32 %v11496_v15, %v4964_v26  ;;  %v4935_v14 = vld [vmem:[#allocation2 + $0x240] sm:$0xff] }
 0x4a5   : > { %13301 = vst [vmem:[#allocation132_spill] sm:$0xff] %v11785_v58  ;;  %5180 = vmatpush.xpose.msra.mxu2 %v11785_v58  ;;  %v11794_v25 = vadd.f32 %v5001_v19, %v4869_v24  ;;  %v4702_v34 = vmul.f32 %v11488_v38, %v4637_v31  ;;  %v4834_v21 = vmul.f32 %v11491_v16, %v4769_v18  ;;  %v4766_v27 = vld [vmem:[#allocation2 + $0x400] sm:$0xff]  ;;  %v4635_v24 = vld [vmem:[#allocation2 + $0x570] sm:$0xff]  ;;  %v4605_v58 = vld [vmem:[#allocation2 + $0x328] sm:$0xff]  ;;  %p6889_p4 = pnand %p6888_p2, %p6884_p13 }
 0x4a6   : > { %13302 = vst [vmem:[#allocation133_spill] sm:$0xff] %v11789_v17  ;;  %v5030_v44 = vmul.f32 %v11496_v15, %v4965_v43  ;;  %5200 = vmatpush.xpose.msra.mxu3 %v11789_v17  ;;  %v11800_v46 = vadd.f32 %v5002_v8, %v4870_v59  ;;  %v4897_v1 = vadd.f32 %v4833_v0, %v4701_v20  ;;  %v4962_v19 = vld [vmem:[#allocation2] sm:$0xff]  ;;  %v4767_v17 = vld [vmem:[#allocation2 + $0x5d8] sm:$0xff]  ;;  %v4604_v0 = vld [vmem:[#allocation2 + $0x450] sm:$0xff] }
 0x4a7   : > { %13303 = vst [vmem:[#allocation134_spill] sm:$0xff] %v11794_v25  ;;  %v4671_v26 = vmul.f32 %v11488_v38, %v4606_v10  ;;  %v4803_v50 = vmul.f32 %v11491_v16, %v4738_v22  ;;  %5139 = vmatpush.xpose.msra.mxu0 %v11794_v25  ;;  %v4898_v42 = vadd.f32 %v4834_v21, %v4702_v34  ;;  %v4963_v8 = vld [vmem:[#allocation2 + $0x320] sm:$0xff] }
 0x4a8   : > { %13304 = vst [vmem:[#allocation135_spill] sm:$0xff] %v11800_v46  ;;  %v4999_v18 = vmul.f32 %v11496_v15, %v4934_v53  ;;  %v4672_v31 = vmul.f32 %v11488_v38, %v4607_v55  ;;  %v4804_v43 = vmul.f32 %v11491_v16, %v4739_v23  ;;  %5159 = vmatpush.xpose.msra.mxu1 %v11800_v46  ;;  %v4736_v34 = vld [vmem:[#allocation2 + $0x60] sm:$0xff]  ;;  %v4735_v46 = vld [vmem:[#allocation2 + $0xf0] sm:$0xff] }
 0x4a9   : > { %v11809_v20 = vadd.f32 %v5029_v9, %v4897_v1  ;;  %v4867_v10 = vadd.f32 %v4803_v50, %v4671_v26  ;;  %v5000_v22 = vmul.f32 %v11496_v15, %v4935_v14  ;;  %v4699_v59 = vmul.f32 %v11488_v38, %v4634_v13  ;;  %v4932_v25 = vld [vmem:[#allocation2 + $0xe0] sm:$0xff]  ;;  %v4632_v26 = vld [vmem:[#allocation2 + $0x98] sm:$0xff] }
 0x4aa   : > { %v11813_v21 = vadd.f32 %v5030_v44, %v4898_v42  ;;  %v4868_v53 = vadd.f32 %v4804_v43, %v4672_v31  ;;  %v4831_v55 = vmul.f32 %v11491_v16, %v4766_v27  ;;  %v5027_v23 = vmul.f32 %v11496_v15, %v4962_v19  ;;  %v4933_v44 = vld [vmem:[#allocation2 + $0xd0] sm:$0xff]  ;;  %v4764_v31 = vld [vmem:[#allocation2 + $0x458] sm:$0xff] }
 0x4ab   : > { %13305 = vst [vmem:[#allocation136_spill] sm:$0xff] %v11809_v20  ;;  %5181 = vmatpush.xpose.msra.mxu2 %v11809_v20  ;;  %v11818_v9 = vadd.f32 %v4999_v18, %v4867_v10  ;;  %v4700_v14 = vmul.f32 %v11488_v38, %v4635_v24  ;;  %v4832_v13 = vmul.f32 %v11491_v16, %v4767_v17  ;;  %v4960_v18 = vld [vmem:[#allocation2 + $0x140] sm:$0xff]  ;;  %v4633_v10 = vld [vmem:[#allocation2 + $0xb0] sm:$0xff]  ;;  %v4603_v20 = vld [vmem:[#allocation2 + $0x18] sm:$0xff] }
 0x4ac   : > { %13306 = vst [vmem:[#allocation137_spill] sm:$0xff] %v11813_v21  ;;  %v5028_v1 = vmul.f32 %v11496_v15, %v4963_v8  ;;  %5201 = vmatpush.xpose.msra.mxu3 %v11813_v21  ;;  %v11824_v50 = vadd.f32 %v5000_v22, %v4868_v53  ;;  %v4895_v27 = vadd.f32 %v4831_v55, %v4699_v59  ;;  %v4765_v21 = vld [vmem:[#allocation2 + $0x498] sm:$0xff]  ;;  %v4961_v22 = vld [vmem:[#allocation2 + $0x300] sm:$0xff] }
 0x4ad   : > { %13307 = vst [vmem:[#allocation138_spill] sm:$0xff] %v11818_v9  ;;  %v4669_v19 = vmul.f32 %v11488_v38, %v4604_v0  ;;  %v4801_v42 = vmul.f32 %v11491_v16, %v4736_v34  ;;  %5140 = vmatpush.xpose.msra.mxu0 %v11818_v9  ;;  %v4896_v43 = vadd.f32 %v4832_v13, %v4700_v14  ;;  %v4602_v55 = vld [vmem:[#allocation2 + $0x4d8] sm:$0xff] }
 0x4ae   : > { %13308 = vst [vmem:[#allocation139_spill] sm:$0xff] %v11824_v50  ;;  %v4997_v17 = vmul.f32 %v11496_v15, %v4932_v25  ;;  %v4670_v24 = vmul.f32 %v11488_v38, %v4605_v58  ;;  %v4802_v8 = vmul.f32 %v11491_v16, %v4737_v57  ;;  %5160 = vmatpush.xpose.msra.mxu1 %v11824_v50  ;;  %v4734_v14 = vld [vmem:[#allocation2 + $0x438] sm:$0xff] }
 0x4af   : > { %v11833_v59 = vadd.f32 %v5027_v23, %v4895_v27  ;;  %v4865_v0 = vadd.f32 %v4801_v42, %v4669_v19  ;;  %v4998_v34 = vmul.f32 %v11496_v15, %v4933_v44  ;;  %v4697_v53 = vmul.f32 %v11488_v38, %v4632_v26  ;;  %v4930_v9 = vld [vmem:[#allocation2 + $0x398] sm:$0xff]  ;;  %v4600_v19 = vld [vmem:[#allocation2 + $0x2b0] sm:$0xff] }
 0x4b0   : > { %v11837_v13 = vadd.f32 %v5028_v1, %v4896_v43  ;;  %v4866_v25 = vadd.f32 %v4802_v8, %v4670_v24  ;;  %v4829_v58 = vmul.f32 %v11491_v16, %v4764_v31  ;;  %v5025_v57 = vmul.f32 %v11496_v15, %v4960_v18  ;;  %v4931_v1 = vld [vmem:[#allocation2 + $0x470] sm:$0xff] }
 0x4b1   : > { %13309 = vst [vmem:[#allocation140_spill] sm:$0xff] %v11833_v59  ;;  %5182 = vmatpush.xpose.msra.mxu2 %v11833_v59  ;;  %v11842_v23 = vadd.f32 %v4997_v17, %v4865_v0  ;;  %v4698_v44 = vmul.f32 %v11488_v38, %v4633_v10  ;;  %v4830_v26 = vmul.f32 %v11491_v16, %v4765_v21  ;;  %v4732_v24 = vld [vmem:[#allocation2 + $0x5d0] sm:$0xff] }
 0x4b2   : > { %13310 = vst [vmem:[#allocation141_spill] sm:$0xff] %v11837_v13  ;;  %v5026_v27 = vmul.f32 %v11496_v15, %v4961_v22  ;;  %5202 = vmatpush.xpose.msra.mxu3 %v11837_v13  ;;  %v11848_v42 = vadd.f32 %v4998_v34, %v4866_v25  ;;  %v4893_v31 = vadd.f32 %v4829_v58, %v4697_v53  ;;  %v4928_v17 = vld [vmem:[#allocation2 + $0x190] sm:$0xff]  ;;  %v4733_v13 = vld [vmem:[#allocation2 + $0x260] sm:$0xff]  ;;  %v4929_v34 = vld [vmem:[#allocation2 + $0x1a8] sm:$0xff] }
 0x4b3   : > { %13311 = vst [vmem:[#allocation142_spill] sm:$0xff] %v11842_v23  ;;  %v4667_v18 = vmul.f32 %v11488_v38, %v4602_v55  ;;  %v4799_v43 = vmul.f32 %v11491_v16, %v4734_v14  ;;  %5141 = vmatpush.xpose.msra.mxu0 %v11842_v23  ;;  %v4894_v8 = vadd.f32 %v4830_v26, %v4698_v44  ;;  %v4601_v0 = vld [vmem:[#allocation2 + $0x3b0] sm:$0xff]  ;;  %v5124_v26 = vld.sshfl [vmem:[#allocation1] sm:$0xff pattern:$0x75316420] }
 0x4b4   : > { %13312 = vst [vmem:[#allocation143_spill] sm:$0xff] %v11848_v42  ;;  %v4995_v21 = vmul.f32 %v11496_v15, %v4930_v9  ;;  %v4668_v10 = vmul.f32 %v11488_v38, %v4603_v20  ;;  %v4800_v22 = vmul.f32 %v11491_v16, %v4735_v46  ;;  %5161 = vmatpush.xpose.msra.mxu1 %v11848_v42 }
 0x4b5   : > { %v11857_v53 = vadd.f32 %v5025_v57, %v4893_v31  ;;  %v4863_v55 = vadd.f32 %v4799_v43, %v4667_v18  ;;  %v4996_v14 = vmul.f32 %v11496_v15, %v4931_v1  ;;  %v4665_v25 = vmul.f32 %v11488_v38, %v4600_v19  ;;  %v5125_v19 = vld.sshfl [vmem:[#allocation1 + $0x8] sm:$0xff pattern:$0x75316420] }
 0x4b6   : > { %v11861_v58 = vadd.f32 %v5026_v27, %v4894_v8  ;;  %v4864_v44 = vadd.f32 %v4800_v22, %v4668_v10  ;;  %v4797_v9 = vmul.f32 %v11491_v16, %v4732_v24  ;;  %v4993_v20 = vmul.f32 %v11496_v15, %v4928_v17  ;;  %v13319_v24 = vld [vmem:[#allocation118_spill] sm:$0xff]  ;;  %v13320_v17 = vld [vmem:[#allocation119_spill] sm:$0xff]  ;;  %v13321_v8 = vld [vmem:[#allocation120_spill] sm:$0xff] }
 0x4b7   : > { %13313 = vst [vmem:[#allocation144_spill] sm:$0xff] %v11857_v53  ;;  %5183 = vmatpush.xpose.msra.mxu2 %v11857_v53  ;;  %v11866_v46 = vadd.f32 %v4995_v21, %v4863_v55  ;;  %v4666_v57 = vmul.f32 %v11488_v38, %v4601_v0  ;;  %v4798_v31 = vmul.f32 %v11491_v16, %v4733_v13  ;;  %v13318_v13 = vld [vmem:[#allocation117_spill] sm:$0xff]  ;;  %v13323_v10 = vld [vmem:[#allocation122_spill] sm:$0xff]  ;;  %v13324_v22 = vld [vmem:[#allocation123_spill] sm:$0xff] }
 0x4b8   : > { %v4994_v1 = vmul.f32 %v11496_v15, %v4929_v34  ;;  %5203 = vmatpush.xpose.msra.mxu3 %v11861_v58  ;;  %v11872_v27 = vadd.f32 %v4996_v14, %v4864_v44  ;;  %v4861_v18 = vadd.f32 %v4797_v9, %v4665_v25  ;;  %v13317_v15 = vld [vmem:[#allocation116_spill] sm:$0xff]  ;;  %v13322_v21 = vld [vmem:[#allocation121_spill] sm:$0xff]  ;;  %v13327_v55 = vld [vmem:[#allocation126_spill] sm:$0xff] }
 0x4b9   : > { %13314 = vst [vmem:[#allocation145_spill] sm:$0xff] %v11866_v46  ;;  %5142 = vmatpush.xpose.msra.mxu0 %v11866_v46  ;;  %v4862_v43 = vadd.f32 %v4798_v31, %v4666_v57  ;;  %v13325_v0 = vld [vmem:[#allocation124_spill] sm:$0xff]  ;;  %v13326_v34 = vld [vmem:[#allocation125_spill] sm:$0xff]  ;;  %v13330_v44 = vld [vmem:[#allocation130_spill] sm:$0xff] }
 0x4ba   : > { %13315 = vst [vmem:[#allocation146_spill] sm:$0xff] %v11872_v27  ;;  %5162 = vmatpush.xpose.msra.mxu1 %v11872_v27  ;;  %5184 = vmatmul.f32.vlgmr.msra.gmra.mxu2 %v5124_v26  ;;  %v11878_v38 = vadd.f32 %v4993_v20, %v4861_v18  ;;  %v13328_v14 = vld [vmem:[#allocation128_spill] sm:$0xff]  ;;  %v13329_v25 = vld [vmem:[#allocation129_spill] sm:$0xff]  ;;  %v13331_v9 = vld [vmem:[#allocation131_spill] sm:$0xff] }
 0x4bb   : > { %5248 = vmatpush.xpose.msrb.mxu2 %v11509_v41  ;;  %5204 = vmatmul.f32.vlgmr.msra.gmra.mxu3 %v5125_v19  ;;  %v11880_v16 = vadd.f32 %v4994_v1, %v4862_v43  ;;  %v13332_v20 = vld [vmem:[#allocation132_spill] sm:$0xff]  ;;  %v13334_v57 = vld [vmem:[#allocation134_spill] sm:$0xff]  ;;  %v13335_v31 = vld [vmem:[#allocation135_spill] sm:$0xff] }
 0x4bc   : > { %5268 = vmatpush.xpose.msrb.mxu3 %v11511_v48  ;;  %13316 = vst [vmem:[#allocation147_spill] sm:$0xff] %v11878_v38  ;;  %v13336_v1 = vld [vmem:[#allocation136_spill] sm:$0xff]  ;;  %v13338_v18 = vld [vmem:[#allocation138_spill] sm:$0xff]  ;;  %v13339_v43 = vld [vmem:[#allocation141_spill] sm:$0xff] }
 0x4bd   : > { %5143 = vmatpush.xpose.msra.mxu0 %v11878_v38 }
 0x4be   : > { %5163 = vmatpush.xpose.msra.mxu1 %v11880_v16 }
 0x4bf   : > { %5249 = vmatpush.xpose.msrb.mxu2 %v11513_v40 }
 0x4c0   : > { %5269 = vmatpush.xpose.msrb.mxu3 %v11520_v63  ;;  %5144 = vmatmul.f32.vlgmr.msra.gmra.mxu0 %v5124_v26  ;;  %v13333_v26 = vld [vmem:[#allocation133_spill] sm:$0xff] }
 0x4c1   : > { %5208 = vmatpush.xpose.msrb.mxu0 %v11524_v51  ;;  %5164 = vmatmul.f32.vlgmr.msra.gmra.mxu1 %v5125_v19  ;;  %v13337_v19 = vld [vmem:[#allocation137_spill] sm:$0xff] }
 0x4c2   : > { %5228 = vmatpush.xpose.msrb.mxu1 %v11532_v52 }
 0x4c3   : > { %5250 = vmatpush.xpose.msrb.mxu2 %v11539_v2 }
 0x4c4   : > { %5270 = vmatpush.xpose.msrb.mxu3 %v11546_v60 }
 0x4c5   : > { %5209 = vmatpush.xpose.msrb.mxu0 %v11550_v11 }
 0x4c6   : > { %5229 = vmatpush.xpose.msrb.mxu1 %v11556_v5 }
 0x4c7   : > { %5251 = vmatpush.xpose.msrb.mxu2 %v11561_v4 }
 0x4c8   : > { %5271 = vmatpush.xpose.msrb.mxu3 %v11569_v36 }
 0x4c9   : > { %5210 = vmatpush.xpose.msrb.mxu0 %v11575_v47 }
 0x4ca   : > { %5230 = vmatpush.xpose.msrb.mxu1 %v11584_v37 }
 0x4cb   : > { %5252 = vmatpush.xpose.msrb.mxu2 %v11588_v12 }
 0x4cc   : > { %5272 = vmatpush.xpose.msrb.mxu3 %v11593_v56 }
 0x4cd   : > { %5211 = vmatpush.xpose.msrb.mxu0 %v11598_v54 }
 0x4ce   : > { %5231 = vmatpush.xpose.msrb.mxu1 %v11604_v3 }
 0x4cf   : > { %5253 = vmatpush.xpose.msrb.mxu2 %v11613_v45 }
 0x4d0   : > { %5273 = vmatpush.xpose.msrb.mxu3 %v11617_v32 }
 0x4d1   : > { %5212 = vmatpush.xpose.msrb.mxu0 %v11622_v35 }
 0x4d2   : > { %5232 = vmatpush.xpose.msrb.mxu1 %v11628_v28 }
 0x4d3   : > { %5254 = vmatpush.xpose.msrb.mxu2 %v11637_v6 }
 0x4d4   : > { %5274 = vmatpush.xpose.msrb.mxu3 %v11641_v39 }
 0x4d5   : > { %5213 = vmatpush.xpose.msrb.mxu0 %v11646_v7 }
 0x4d6   : > { %5233 = vmatpush.xpose.msrb.mxu1 %v11652_v30 }
 0x4d7   : > { %5255 = vmatpush.xpose.msrb.mxu2 %v11661_v49 }
 0x4d8   : > { %5275 = vmatpush.xpose.msrb.mxu3 %v11665_v33 }
 0x4d9   : > { %5214 = vmatpush.xpose.msrb.mxu0 %v11670_v62 }
 0x4da   : > { %5234 = vmatpush.xpose.msrb.mxu1 %v11676_v61 }
 0x4db   : > { %5256 = vmatpush.xpose.msrb.mxu2 %v13317_v15 }
 0x4dc   : > { %5276 = vmatpush.xpose.msrb.mxu3 %v13318_v13 }
 0x4dd   : > { %5215 = vmatpush.xpose.msrb.mxu0 %v13319_v24 }
 0x4de   : > { %5235 = vmatpush.xpose.msrb.mxu1 %v13320_v17 }
 0x4df   : > { %5257 = vmatpush.xpose.msrb.mxu2 %v13321_v8 }
 0x4e0   : > { %5277 = vmatpush.xpose.msrb.mxu3 %v13322_v21 }
 0x4e1   : > { %5216 = vmatpush.xpose.msrb.mxu0 %v13323_v10 }
 0x4e2   : > { %5236 = vmatpush.xpose.msrb.mxu1 %v13324_v22 }
 0x4e3   : > { %5258 = vmatpush.xpose.msrb.mxu2 %v13325_v0 }
 0x4e4   : > { %5278 = vmatpush.xpose.msrb.mxu3 %v13326_v34 }
 0x4e5   : > { %5217 = vmatpush.xpose.msrb.mxu0 %v13327_v55 }
 0x4e6   : > { %5237 = vmatpush.xpose.msrb.mxu1 %v11748_v29 }
 0x4e7   : > { %5259 = vmatpush.xpose.msrb.mxu2 %v13328_v14 }
 0x4e8   : > { %5279 = vmatpush.xpose.msrb.mxu3 %v13329_v25 }
 0x4e9   : > { %5218 = vmatpush.xpose.msrb.mxu0 %v13330_v44 }
 0x4ea   : > { %5238 = vmatpush.xpose.msrb.mxu1 %v13331_v9 }
 0x4eb   : > { %5260 = vmatpush.xpose.msrb.mxu2 %v13332_v20 }
 0x4ec   : > { %5280 = vmatpush.xpose.msrb.mxu3 %v13333_v26 }
 0x4ed   : > { %5219 = vmatpush.xpose.msrb.mxu0 %v13334_v57 }
 0x4ee   : > { %5239 = vmatpush.xpose.msrb.mxu1 %v13335_v31 }
 0x4ef   : > { %5261 = vmatpush.xpose.msrb.mxu2 %v13336_v1 }
 0x4f0   : > { %5281 = vmatpush.xpose.msrb.mxu3 %v13337_v19 }
 0x4f1   : > { %5220 = vmatpush.xpose.msrb.mxu0 %v13338_v18 }
 0x4f2   : > { %5240 = vmatpush.xpose.msrb.mxu1 %v11824_v50 }
 0x4f3   : > { %5262 = vmatpush.xpose.msrb.mxu2 %v11833_v59 }
 0x4f4   : > { %5282 = vmatpush.xpose.msrb.mxu3 %v13339_v43 }
 0x4f5   : > { %5221 = vmatpush.xpose.msrb.mxu0 %v11842_v23 }
 0x4f6   : > { %5241 = vmatpush.xpose.msrb.mxu1 %v11848_v42 }
 0x4f7   : > { %5263 = vmatpush.xpose.msrb.mxu2 %v11857_v53 }
 0x4f8   : > { %5283 = vmatpush.xpose.msrb.mxu3 %v11861_v58 }
 0x4f9   : > { %5222 = vmatpush.xpose.msrb.mxu0 %v11866_v46 }
 0x4fa   : > { %5242 = vmatpush.xpose.msrb.mxu1 %v11872_v27 }
 0x4fb   : > { %5328 = vmatpush.xpose.msra.mxu2 %v11509_v41 }
 0x4fc   : > { %5348 = vmatpush.xpose.msra.mxu3 %v11511_v48 }
 0x4fd   : > { %5223 = vmatpush.xpose.msrb.mxu0 %v11878_v38 }
 0x4fe   : > { %5243 = vmatpush.xpose.msrb.mxu1 %v11880_v16 }
 0x4ff   : > { %5329 = vmatpush.xpose.msra.mxu2 %v11513_v40 }
 0x500   : > { %5349 = vmatpush.xpose.msra.mxu3 %v11520_v63 }
 0x501   : > { %5288 = vmatpush.xpose.msra.mxu0 %v11524_v51 }
 0x502   : > { %5308 = vmatpush.xpose.msra.mxu1 %v11532_v52 }
 0x503   : > { %5330 = vmatpush.xpose.msra.mxu2 %v11539_v2 }
 0x504   : > { %5350 = vmatpush.xpose.msra.mxu3 %v11546_v60 }
 0x505   : > { %5289 = vmatpush.xpose.msra.mxu0 %v11550_v11 }
 0x506   : > { %5309 = vmatpush.xpose.msra.mxu1 %v11556_v5 }
 0x507   : > { %5331 = vmatpush.xpose.msra.mxu2 %v11561_v4 }
 0x508   : > { %5351 = vmatpush.xpose.msra.mxu3 %v11569_v36 }
 0x509   : > { %5290 = vmatpush.xpose.msra.mxu0 %v11575_v47 }
 0x50a   : > { %5310 = vmatpush.xpose.msra.mxu1 %v11584_v37 }
 0x50b   : > { %5332 = vmatpush.xpose.msra.mxu2 %v11588_v12 }
 0x50c   : > { %5352 = vmatpush.xpose.msra.mxu3 %v11593_v56 }
 0x50d   : > { %5291 = vmatpush.xpose.msra.mxu0 %v11598_v54 }
 0x50e   : > { %5311 = vmatpush.xpose.msra.mxu1 %v11604_v3 }
 0x50f   : > { %5333 = vmatpush.xpose.msra.mxu2 %v11613_v45 }
 0x510   : > { %5353 = vmatpush.xpose.msra.mxu3 %v11617_v32 }
 0x511   : > { %5292 = vmatpush.xpose.msra.mxu0 %v11622_v35 }
 0x512   : > { %5312 = vmatpush.xpose.msra.mxu1 %v11628_v28 }
 0x513   : > { %5334 = vmatpush.xpose.msra.mxu2 %v11637_v6 }
 0x514   : > { %5354 = vmatpush.xpose.msra.mxu3 %v11641_v39 }
 0x515   : > { %5293 = vmatpush.xpose.msra.mxu0 %v11646_v7 }
 0x516   : > { %5313 = vmatpush.xpose.msra.mxu1 %v11652_v30 }
 0x517   : > { %5335 = vmatpush.xpose.msra.mxu2 %v11661_v49 }
 0x518   : > { %5355 = vmatpush.xpose.msra.mxu3 %v11665_v33 }
 0x519   : > { %5294 = vmatpush.xpose.msra.mxu0 %v11670_v62 }
 0x51a   : > { %5314 = vmatpush.xpose.msra.mxu1 %v11676_v61 }
 0x51b   : > { %5336 = vmatpush.xpose.msra.mxu2 %v13317_v15 }
 0x51c   : > { %5356 = vmatpush.xpose.msra.mxu3 %v13318_v13 }
 0x51d   : > { %5295 = vmatpush.xpose.msra.mxu0 %v13319_v24 }
 0x51e   : > { %5315 = vmatpush.xpose.msra.mxu1 %v13320_v17 }
 0x51f   : > { %5337 = vmatpush.xpose.msra.mxu2 %v13321_v8 }
 0x520   : > { %5357 = vmatpush.xpose.msra.mxu3 %v13322_v21 }
 0x521   : > { %5296 = vmatpush.xpose.msra.mxu0 %v13323_v10 }
 0x522   : > { %5316 = vmatpush.xpose.msra.mxu1 %v13324_v22 }
 0x523   : > { %5338 = vmatpush.xpose.msra.mxu2 %v13325_v0 }
 0x524   : > { %5358 = vmatpush.xpose.msra.mxu3 %v13326_v34 }
 0x525   : > { %5297 = vmatpush.xpose.msra.mxu0 %v13327_v55 }
 0x526   : > { %5317 = vmatpush.xpose.msra.mxu1 %v11748_v29 }
 0x527   : > { %5339 = vmatpush.xpose.msra.mxu2 %v13328_v14 }
 0x528   : > { %5359 = vmatpush.xpose.msra.mxu3 %v13329_v25 }
 0x529   : > { %5298 = vmatpush.xpose.msra.mxu0 %v13330_v44 }
 0x52a   : > { %5318 = vmatpush.xpose.msra.mxu1 %v13331_v9 }
 0x52b   : > { %5340 = vmatpush.xpose.msra.mxu2 %v13332_v20 }
 0x52c   : > { %5360 = vmatpush.xpose.msra.mxu3 %v13333_v26 }
 0x52d   : > { %5299 = vmatpush.xpose.msra.mxu0 %v13334_v57 }
 0x52e   : > { %5319 = vmatpush.xpose.msra.mxu1 %v13335_v31 }
 0x52f   : > { %5341 = vmatpush.xpose.msra.mxu2 %v13336_v1 }
 0x530   : > { %5361 = vmatpush.xpose.msra.mxu3 %v13337_v19 }
 0x531   : > { %5300 = vmatpush.xpose.msra.mxu0 %v13338_v18 }
 0x532   : > { %5320 = vmatpush.xpose.msra.mxu1 %v11824_v50 }
 0x533   : > { %5342 = vmatpush.xpose.msra.mxu2 %v11833_v59 }
 0x534   : > { %5362 = vmatpush.xpose.msra.mxu3 %v13339_v43 }
 0x535   : > { %5301 = vmatpush.xpose.msra.mxu0 %v11842_v23 }
 0x536   : > { %5321 = vmatpush.xpose.msra.mxu1 %v11848_v42 }
 0x537   : > { %5343 = vmatpush.xpose.msra.mxu2 %v11857_v53 }
 0x538   : > { %5363 = vmatpush.xpose.msra.mxu3 %v11861_v58 }
 0x539   : > { %5302 = vmatpush.xpose.msra.mxu0 %v11866_v46 }
 0x53a   : > { %5322 = vmatpush.xpose.msra.mxu1 %v11872_v27 }
 0x53d   : > { %5303 = vmatpush.xpose.msra.mxu0 %v11878_v38  ;;  %v5145_v19 = vpop.f32.mrf.mxu0  ;;  %v5185_v59 = vpop.f32.mrf.mxu2 }
 0x53e   : > { %5323 = vmatpush.xpose.msra.mxu1 %v11880_v16  ;;  %v5165_v1 = vpop.f32.mrf.mxu1  ;;  %v5205_v43 = vpop.f32.mrf.mxu3 }
 0x53f   : > { %v5166_v26 = vadd.f32 %v5165_v1, %v5145_v19  ;;  %v5206_v23 = vadd.f32 %v5205_v43, %v5185_v59  ;;  %v13340_v59 = vld [vmem:[#allocation133_spill] sm:$0xff]  ;;  %v13344_v19 = vld [vmem:[#allocation140_spill] sm:$0xff] }
 0x540   : > { %v13343_v1 = vld [vmem:[#allocation137_spill] sm:$0xff] }
 0x541   : > { %5224 = vmatmul.f32.vlgmr.msrb.gmra.mxu0 %v5166_v26  ;;  %5244 = vmatmul.f32.vlgmr.msrb.gmra.mxu1 %v5206_v23  ;;  %v13345_v43 = vld [vmem:[#allocation141_spill] sm:$0xff] }
 0x542   : > { %5264 = vmatmul.f32.vlgmr.msrb.gmra.mxu2 %v5166_v26  ;;  %5284 = vmatmul.f32.vlgmr.msrb.gmra.mxu3 %v5206_v23  ;;  %v13341_v23 = vld [vmem:[#allocation142_spill] sm:$0xff]  ;;  %v13342_v26 = vld [vmem:[#allocation136_spill] sm:$0xff] }
 0x543   : > { %5368 = vmatpush.xpose.msrb.mxu0 %v11524_v51  ;;  %5408 = vmatpush.xpose.msrb.mxu2 %v11509_v41 }
 0x544   : > { %5388 = vmatpush.xpose.msrb.mxu1 %v11532_v52  ;;  %5428 = vmatpush.xpose.msrb.mxu3 %v11511_v48 }
 0x547   : > { %5369 = vmatpush.xpose.msrb.mxu0 %v11550_v11  ;;  %5409 = vmatpush.xpose.msrb.mxu2 %v11513_v40 }
 0x548   : > { %5389 = vmatpush.xpose.msrb.mxu1 %v11556_v5  ;;  %5429 = vmatpush.xpose.msrb.mxu3 %v11520_v63 }
 0x54b   : > { %5370 = vmatpush.xpose.msrb.mxu0 %v11575_v47  ;;  %5410 = vmatpush.xpose.msrb.mxu2 %v11539_v2 }
 0x54c   : > { %5390 = vmatpush.xpose.msrb.mxu1 %v11584_v37  ;;  %5430 = vmatpush.xpose.msrb.mxu3 %v11546_v60 }
 0x54f   : > { %5371 = vmatpush.xpose.msrb.mxu0 %v11598_v54  ;;  %5411 = vmatpush.xpose.msrb.mxu2 %v11561_v4 }
 0x550   : > { %5391 = vmatpush.xpose.msrb.mxu1 %v11604_v3  ;;  %5431 = vmatpush.xpose.msrb.mxu3 %v11569_v36 }
 0x553   : > { %5372 = vmatpush.xpose.msrb.mxu0 %v11622_v35  ;;  %5412 = vmatpush.xpose.msrb.mxu2 %v11588_v12 }
 0x554   : > { %5392 = vmatpush.xpose.msrb.mxu1 %v11628_v28  ;;  %5432 = vmatpush.xpose.msrb.mxu3 %v11593_v56 }
 0x557   : > { %5373 = vmatpush.xpose.msrb.mxu0 %v11646_v7  ;;  %5413 = vmatpush.xpose.msrb.mxu2 %v11613_v45 }
 0x558   : > { %5393 = vmatpush.xpose.msrb.mxu1 %v11652_v30  ;;  %5433 = vmatpush.xpose.msrb.mxu3 %v11617_v32 }
 0x55b   : > { %5374 = vmatpush.xpose.msrb.mxu0 %v11670_v62  ;;  %5414 = vmatpush.xpose.msrb.mxu2 %v11637_v6 }
 0x55c   : > { %5394 = vmatpush.xpose.msrb.mxu1 %v11676_v61  ;;  %5434 = vmatpush.xpose.msrb.mxu3 %v11641_v39 }
 0x55f   : > { %5375 = vmatpush.xpose.msrb.mxu0 %v13319_v24  ;;  %5415 = vmatpush.xpose.msrb.mxu2 %v11661_v49 }
 0x560   : > { %5395 = vmatpush.xpose.msrb.mxu1 %v13320_v17  ;;  %5435 = vmatpush.xpose.msrb.mxu3 %v11665_v33 }
 0x563   : > { %5376 = vmatpush.xpose.msrb.mxu0 %v13323_v10  ;;  %5416 = vmatpush.xpose.msrb.mxu2 %v13317_v15 }
 0x564   : > { %5396 = vmatpush.xpose.msrb.mxu1 %v13324_v22  ;;  %5436 = vmatpush.xpose.msrb.mxu3 %v13318_v13 }
 0x567   : > { %5377 = vmatpush.xpose.msrb.mxu0 %v13327_v55  ;;  %5417 = vmatpush.xpose.msrb.mxu2 %v13321_v8 }
 0x568   : > { %5397 = vmatpush.xpose.msrb.mxu1 %v11748_v29  ;;  %5437 = vmatpush.xpose.msrb.mxu3 %v13322_v21 }
 0x56b   : > { %5378 = vmatpush.xpose.msrb.mxu0 %v13330_v44  ;;  %5418 = vmatpush.xpose.msrb.mxu2 %v13325_v0 }
 0x56c   : > { %5398 = vmatpush.xpose.msrb.mxu1 %v13331_v9  ;;  %5438 = vmatpush.xpose.msrb.mxu3 %v13326_v34 }
 0x56f   : > { %5379 = vmatpush.xpose.msrb.mxu0 %v13334_v57  ;;  %5419 = vmatpush.xpose.msrb.mxu2 %v13328_v14 }
 0x570   : > { %5399 = vmatpush.xpose.msrb.mxu1 %v13335_v31  ;;  %5439 = vmatpush.xpose.msrb.mxu3 %v13329_v25 }
 0x573   : > { %5380 = vmatpush.xpose.msrb.mxu0 %v13338_v18  ;;  %5420 = vmatpush.xpose.msrb.mxu2 %v13332_v20 }
 0x574   : > { %5400 = vmatpush.xpose.msrb.mxu1 %v11824_v50  ;;  %5440 = vmatpush.xpose.msrb.mxu3 %v13340_v59 }
 0x577   : > { %5381 = vmatpush.xpose.msrb.mxu0 %v13341_v23  ;;  %5421 = vmatpush.xpose.msrb.mxu2 %v13342_v26 }
 0x578   : > { %5401 = vmatpush.xpose.msrb.mxu1 %v11848_v42  ;;  %5441 = vmatpush.xpose.msrb.mxu3 %v13343_v1 }
 0x57b   : > { %5382 = vmatpush.xpose.msrb.mxu0 %v11866_v46  ;;  %5422 = vmatpush.xpose.msrb.mxu2 %v13344_v19 }
 0x57c   : > { %5402 = vmatpush.xpose.msrb.mxu1 %v11872_v27  ;;  %5442 = vmatpush.xpose.msrb.mxu3 %v13345_v43 }
 0x57f   : > { %5383 = vmatpush.xpose.msrb.mxu0 %v11878_v38  ;;  %5423 = vmatpush.xpose.msrb.mxu2 %v11857_v53 }
 0x580   : > { %5403 = vmatpush.xpose.msrb.mxu1 %v11880_v16  ;;  %5443 = vmatpush.xpose.msrb.mxu3 %v11861_v58 }
 0x5be   : > { %v5225_v59 = vpop.f32.mrf.mxu0  ;;  %v5245_v42 = vpop.f32.mrf.mxu1 }
 0x5bf   : > { %v5246_v50 = vadd.f32 %v5245_v42, %v5225_v59  ;;  %v13347_v42 = vld [vmem:[#allocation133_spill] sm:$0xff] }
 0x5c0   : > { %v13349_v59 = vld [vmem:[#allocation137_spill] sm:$0xff] }
 0x5c1   : > { %5304 = vmatmul.f32.vlgmr.msra.gmra.mxu0 %v5246_v50  ;;  %5344 = vmatmul.f32.vlgmr.msra.gmra.mxu2 %v5246_v50  ;;  %v13346_v50 = vld [vmem:[#allocation139_spill] sm:$0xff] }
 0x5c2   : > { %5448 = vmatpush.xpose.msra.mxu0 %v11524_v51  ;;  %5488 = vmatpush.xpose.msra.mxu2 %v11509_v41 }
 0x5c5   : > { %v5265_v27 = vpop.f32.mrf.mxu2  ;;  %v5285_v1 = vpop.f32.mrf.mxu3 }
 0x5c6   : > { %v5286_v43 = vadd.f32 %v5285_v1, %v5265_v27  ;;  %5449 = vmatpush.xpose.msra.mxu0 %v11550_v11  ;;  %5489 = vmatpush.xpose.msra.mxu2 %v11513_v40  ;;  %v13348_v27 = vld [vmem:[#allocation143_spill] sm:$0xff]  ;;  %v13350_v1 = vld [vmem:[#allocation146_spill] sm:$0xff] }
 0x5c8   : > { %5324 = vmatmul.f32.vlgmr.msra.gmra.mxu1 %v5286_v43  ;;  %5364 = vmatmul.f32.vlgmr.msra.gmra.mxu3 %v5286_v43  ;;  %v13351_v43 = vld [vmem:[#allocation141_spill] sm:$0xff] }
 0x5c9   : > { %5468 = vmatpush.xpose.msra.mxu1 %v11532_v52  ;;  %5508 = vmatpush.xpose.msra.mxu3 %v11511_v48 }
 0x5ca   : > { %5450 = vmatpush.xpose.msra.mxu0 %v11575_v47  ;;  %5490 = vmatpush.xpose.msra.mxu2 %v11539_v2 }
 0x5cd   : > { %5469 = vmatpush.xpose.msra.mxu1 %v11556_v5  ;;  %5509 = vmatpush.xpose.msra.mxu3 %v11520_v63 }
 0x5ce   : > { %5451 = vmatpush.xpose.msra.mxu0 %v11598_v54  ;;  %5491 = vmatpush.xpose.msra.mxu2 %v11561_v4 }
 0x5d1   : > { %5470 = vmatpush.xpose.msra.mxu1 %v11584_v37  ;;  %5510 = vmatpush.xpose.msra.mxu3 %v11546_v60 }
 0x5d2   : > { %5452 = vmatpush.xpose.msra.mxu0 %v11622_v35  ;;  %5492 = vmatpush.xpose.msra.mxu2 %v11588_v12 }
 0x5d5   : > { %5471 = vmatpush.xpose.msra.mxu1 %v11604_v3  ;;  %5511 = vmatpush.xpose.msra.mxu3 %v11569_v36 }
 0x5d6   : > { %5453 = vmatpush.xpose.msra.mxu0 %v11646_v7  ;;  %5493 = vmatpush.xpose.msra.mxu2 %v11613_v45 }
 0x5d9   : > { %5472 = vmatpush.xpose.msra.mxu1 %v11628_v28  ;;  %5512 = vmatpush.xpose.msra.mxu3 %v11593_v56 }
 0x5da   : > { %5454 = vmatpush.xpose.msra.mxu0 %v11670_v62  ;;  %5494 = vmatpush.xpose.msra.mxu2 %v11637_v6 }
 0x5dd   : > { %5473 = vmatpush.xpose.msra.mxu1 %v11652_v30  ;;  %5513 = vmatpush.xpose.msra.mxu3 %v11617_v32 }
 0x5de   : > { %5455 = vmatpush.xpose.msra.mxu0 %v13319_v24  ;;  %5495 = vmatpush.xpose.msra.mxu2 %v11661_v49 }
 0x5e1   : > { %5474 = vmatpush.xpose.msra.mxu1 %v11676_v61  ;;  %5514 = vmatpush.xpose.msra.mxu3 %v11641_v39 }
 0x5e2   : > { %5456 = vmatpush.xpose.msra.mxu0 %v13323_v10  ;;  %5496 = vmatpush.xpose.msra.mxu2 %v13317_v15 }
 0x5e5   : > { %5475 = vmatpush.xpose.msra.mxu1 %v13320_v17  ;;  %5515 = vmatpush.xpose.msra.mxu3 %v11665_v33 }
 0x5e6   : > { %5457 = vmatpush.xpose.msra.mxu0 %v13327_v55  ;;  %5497 = vmatpush.xpose.msra.mxu2 %v13321_v8 }
 0x5e9   : > { %5476 = vmatpush.xpose.msra.mxu1 %v13324_v22  ;;  %5516 = vmatpush.xpose.msra.mxu3 %v13318_v13 }
 0x5ea   : > { %5458 = vmatpush.xpose.msra.mxu0 %v13330_v44  ;;  %5498 = vmatpush.xpose.msra.mxu2 %v13325_v0 }
 0x5ed   : > { %5477 = vmatpush.xpose.msra.mxu1 %v11748_v29  ;;  %5517 = vmatpush.xpose.msra.mxu3 %v13322_v21 }
 0x5ee   : > { %5459 = vmatpush.xpose.msra.mxu0 %v13334_v57  ;;  %5499 = vmatpush.xpose.msra.mxu2 %v13328_v14 }
 0x5f1   : > { %5478 = vmatpush.xpose.msra.mxu1 %v13331_v9  ;;  %5518 = vmatpush.xpose.msra.mxu3 %v13326_v34 }
 0x5f2   : > { %5460 = vmatpush.xpose.msra.mxu0 %v13338_v18  ;;  %5500 = vmatpush.xpose.msra.mxu2 %v13332_v20 }
 0x5f5   : > { %5479 = vmatpush.xpose.msra.mxu1 %v13335_v31  ;;  %5519 = vmatpush.xpose.msra.mxu3 %v13329_v25 }
 0x5f6   : > { %5461 = vmatpush.xpose.msra.mxu0 %v13341_v23  ;;  %5501 = vmatpush.xpose.msra.mxu2 %v13342_v26 }
 0x5f9   : > { %5480 = vmatpush.xpose.msra.mxu1 %v13346_v50  ;;  %5520 = vmatpush.xpose.msra.mxu3 %v13347_v42 }
 0x5fa   : > { %5462 = vmatpush.xpose.msra.mxu0 %v11866_v46  ;;  %5502 = vmatpush.xpose.msra.mxu2 %v13344_v19 }
 0x5fd   : > { %5481 = vmatpush.xpose.msra.mxu1 %v13348_v27  ;;  %5521 = vmatpush.xpose.msra.mxu3 %v13349_v59 }
 0x5fe   : > { %5463 = vmatpush.xpose.msra.mxu0 %v11878_v38  ;;  %5503 = vmatpush.xpose.msra.mxu2 %v11857_v53 }
 0x601   : > { %5482 = vmatpush.xpose.msra.mxu1 %v13350_v1  ;;  %5522 = vmatpush.xpose.msra.mxu3 %v13351_v43 }
 0x605   : > { %5483 = vmatpush.xpose.msra.mxu1 %v11880_v16  ;;  %5523 = vmatpush.xpose.msra.mxu3 %v11861_v58 }
 0x63e   : > { %v5305_v42 = vpop.f32.mrf.mxu0 }
 0x644   : > { %v5345_v38 = vpop.f32.mrf.mxu2 }
 0x645   : > { %v5325_v46 = vpop.f32.mrf.mxu1 }
 0x646   : > { %v5326_v50 = vadd.f32 %v5325_v46, %v5305_v42 }
 0x648   : > { %5384 = vmatmul.f32.vlgmr.msrb.gmra.mxu0 %v5326_v50  ;;  %5424 = vmatmul.f32.vlgmr.msrb.gmra.mxu2 %v5326_v50 }
 0x649   : > { %5528 = vmatpush.xpose.msrb.mxu0 %v11524_v51  ;;  %5568 = vmatpush.xpose.msrb.mxu2 %v11509_v41  ;;  %v13352_v41 = vld [vmem:[#allocation139_spill] sm:$0xff] }
 0x64a   : > { %v13356_v51 = vld [vmem:[#allocation147_spill] sm:$0xff] }
 0x64b   : > { %v5365_v59 = vpop.f32.mrf.mxu3 }
 0x64c   : > { %v5366_v53 = vadd.f32 %v5365_v59, %v5345_v38 }
 0x64d   : > { %5529 = vmatpush.xpose.msrb.mxu0 %v11550_v11  ;;  %5569 = vmatpush.xpose.msrb.mxu2 %v11513_v40  ;;  %v13354_v40 = vld [vmem:[#allocation145_spill] sm:$0xff] }
 0x64e   : > { %5404 = vmatmul.f32.vlgmr.msrb.gmra.mxu1 %v5366_v53  ;;  %5444 = vmatmul.f32.vlgmr.msrb.gmra.mxu3 %v5366_v53 }
 0x64f   : > { %5548 = vmatpush.xpose.msrb.mxu1 %v11532_v52  ;;  %5588 = vmatpush.xpose.msrb.mxu3 %v11511_v48  ;;  %v13353_v48 = vld [vmem:[#allocation133_spill] sm:$0xff]  ;;  %v13357_v52 = vld [vmem:[#allocation144_spill] sm:$0xff] }
 0x651   : > { %5530 = vmatpush.xpose.msrb.mxu0 %v11575_v47  ;;  %5570 = vmatpush.xpose.msrb.mxu2 %v11539_v2 }
 0x653   : > { %5549 = vmatpush.xpose.msrb.mxu1 %v11556_v5  ;;  %5589 = vmatpush.xpose.msrb.mxu3 %v11520_v63  ;;  %v13355_v63 = vld [vmem:[#allocation137_spill] sm:$0xff] }
 0x655   : > { %5531 = vmatpush.xpose.msrb.mxu0 %v11598_v54  ;;  %5571 = vmatpush.xpose.msrb.mxu2 %v11561_v4 }
 0x657   : > { %5550 = vmatpush.xpose.msrb.mxu1 %v11584_v37  ;;  %5590 = vmatpush.xpose.msrb.mxu3 %v11546_v60 }
 0x659   : > { %5532 = vmatpush.xpose.msrb.mxu0 %v11622_v35  ;;  %5572 = vmatpush.xpose.msrb.mxu2 %v11588_v12 }
 0x65b   : > { %5551 = vmatpush.xpose.msrb.mxu1 %v11604_v3  ;;  %5591 = vmatpush.xpose.msrb.mxu3 %v11569_v36 }
 0x65d   : > { %5533 = vmatpush.xpose.msrb.mxu0 %v11646_v7  ;;  %5573 = vmatpush.xpose.msrb.mxu2 %v11613_v45 }
 0x65f   : > { %5552 = vmatpush.xpose.msrb.mxu1 %v11628_v28  ;;  %5592 = vmatpush.xpose.msrb.mxu3 %v11593_v56 }
 0x661   : > { %5534 = vmatpush.xpose.msrb.mxu0 %v11670_v62  ;;  %5574 = vmatpush.xpose.msrb.mxu2 %v11637_v6 }
 0x663   : > { %5553 = vmatpush.xpose.msrb.mxu1 %v11652_v30  ;;  %5593 = vmatpush.xpose.msrb.mxu3 %v11617_v32  ;;  %v13358_v30 = vld [vmem:[#allocation127_spill] sm:$0xff] }
 0x665   : > { %5535 = vmatpush.xpose.msrb.mxu0 %v13319_v24  ;;  %5575 = vmatpush.xpose.msrb.mxu2 %v11661_v49  ;;  %v5608_v49 = vmul.f32 0.95, %v13358_v30 }
 0x667   : > { %5554 = vmatpush.xpose.msrb.mxu1 %v11676_v61  ;;  %5594 = vmatpush.xpose.msrb.mxu3 %v11641_v39 }
 0x669   : > { %5536 = vmatpush.xpose.msrb.mxu0 %v13323_v10  ;;  %5576 = vmatpush.xpose.msrb.mxu2 %v13317_v15 }
 0x66b   : > { %5555 = vmatpush.xpose.msrb.mxu1 %v13320_v17  ;;  %5595 = vmatpush.xpose.msrb.mxu3 %v11665_v33 }
 0x66d   : > { %5537 = vmatpush.xpose.msrb.mxu0 %v13327_v55  ;;  %5577 = vmatpush.xpose.msrb.mxu2 %v13321_v8 }
 0x66f   : > { %5556 = vmatpush.xpose.msrb.mxu1 %v13324_v22  ;;  %5596 = vmatpush.xpose.msrb.mxu3 %v13318_v13 }
 0x671   : > { %5538 = vmatpush.xpose.msrb.mxu0 %v13330_v44  ;;  %5578 = vmatpush.xpose.msrb.mxu2 %v13325_v0 }
 0x673   : > { %5557 = vmatpush.xpose.msrb.mxu1 %v11748_v29  ;;  %5597 = vmatpush.xpose.msrb.mxu3 %v13322_v21 }
 0x675   : > { %5539 = vmatpush.xpose.msrb.mxu0 %v13334_v57  ;;  %5579 = vmatpush.xpose.msrb.mxu2 %v13328_v14 }
 0x677   : > { %5558 = vmatpush.xpose.msrb.mxu1 %v13331_v9  ;;  %5598 = vmatpush.xpose.msrb.mxu3 %v13326_v34 }
 0x679   : > { %5540 = vmatpush.xpose.msrb.mxu0 %v13338_v18  ;;  %5580 = vmatpush.xpose.msrb.mxu2 %v13332_v20 }
 0x67b   : > { %5559 = vmatpush.xpose.msrb.mxu1 %v13335_v31  ;;  %5599 = vmatpush.xpose.msrb.mxu3 %v13329_v25 }
 0x67d   : > { %5541 = vmatpush.xpose.msrb.mxu0 %v13341_v23  ;;  %5581 = vmatpush.xpose.msrb.mxu2 %v13342_v26 }
 0x67f   : > { %5560 = vmatpush.xpose.msrb.mxu1 %v13352_v41  ;;  %5600 = vmatpush.xpose.msrb.mxu3 %v13353_v48 }
 0x681   : > { %5542 = vmatpush.xpose.msrb.mxu0 %v13354_v40  ;;  %5582 = vmatpush.xpose.msrb.mxu2 %v13344_v19 }
 0x683   : > { %5561 = vmatpush.xpose.msrb.mxu1 %v13348_v27  ;;  %5601 = vmatpush.xpose.msrb.mxu3 %v13355_v63 }
 0x685   : > { %5543 = vmatpush.xpose.msrb.mxu0 %v13356_v51  ;;  %5583 = vmatpush.xpose.msrb.mxu2 %v13357_v52 }
 0x687   : > { %5562 = vmatpush.xpose.msrb.mxu1 %v13350_v1  ;;  %5602 = vmatpush.xpose.msrb.mxu3 %v13351_v43 }
 0x68b   : > { %5563 = vmatpush.xpose.msrb.mxu1 %v11880_v16  ;;  %5603 = vmatpush.xpose.msrb.mxu3 %v11861_v58 }
 0x6c5   : > { %v5385_v2 = vpop.f32.mrf.mxu0 }
 0x6cb   : > { %v5405_v60 = vpop.f32.mrf.mxu1  ;;  %v5425_v5 = vpop.f32.mrf.mxu2 }
 0x6cc   : > { %v5406_v11 = vadd.f32 %v5405_v60, %v5385_v2 }
 0x6ce   : > { %5464 = vmatmul.f32.vlgmr.msra.gmra.mxu0 %v5406_v11  ;;  %5504 = vmatmul.f32.vlgmr.msra.gmra.mxu2 %v5406_v11 }
 0x6d1   : > { %v5445_v4 = vpop.f32.mrf.mxu3 }
 0x6d2   : > { %v5446_v36 = vadd.f32 %v5445_v4, %v5425_v5 }
 0x6d4   : > { %5484 = vmatmul.f32.vlgmr.msra.gmra.mxu1 %v5446_v36  ;;  %5524 = vmatmul.f32.vlgmr.msra.gmra.mxu3 %v5446_v36 }
 0x74b   : > { %v5465_v47 = vpop.f32.mrf.mxu0 }
 0x751   : > { %v5485_v37 = vpop.f32.mrf.mxu1  ;;  %v5505_v56 = vpop.f32.mrf.mxu2 }
 0x752   : > { %v5486_v12 = vadd.f32 %v5485_v37, %v5465_v47 }
 0x754   : > { %5544 = vmatmul.f32.vlgmr.msrb.gmra.mxu0 %v5486_v12  ;;  %5584 = vmatmul.f32.vlgmr.msrb.gmra.mxu2 %v5486_v12 }
 0x757   : > { %v5525_v54 = vpop.f32.mrf.mxu3 }
 0x758   : > { %v5526_v3 = vadd.f32 %v5525_v54, %v5505_v56 }
 0x75a   : > { %5564 = vmatmul.f32.vlgmr.msrb.gmra.mxu1 %v5526_v3  ;;  %5604 = vmatmul.f32.vlgmr.msrb.gmra.mxu3 %v5526_v3 }
 0x7d1   : > { %v5545_v32 = vpop.f32.mrf.mxu0 }
 0x7d7   : > { %v5565_v45 = vpop.f32.mrf.mxu1  ;;  %v5585_v35 = vpop.f32.mrf.mxu2 }
 0x7d8   : > { %v5566_v6 = vadd.f32 %v5565_v45, %v5545_v32 }
 0x7da   : > { %v5609_v33 = vmul.f32 0.05, %v5566_v6 }
 0x7dd   : > { %v5605_v28 = vpop.f32.mrf.mxu3 }
 0x7de   : > { %v5606_v39 = vadd.f32 %v5605_v28, %v5585_v35 }
 0x7e0   : > { %v5610_v7 = vmul.f32 0.05, %v5606_v39 }
 0x7e2   : > { %v5613_v62 = vrot.slane %v5610_v7, 4 }
 0x7e4   : > { %v5615_v61 = vsel %vm5614_vm1, %v5609_v33, %v5613_v62 }
 0x7e5   : > { %v5617_v29 = vadd.f32 %v5615_v61, %v5608_v49 }
 0x7e7   : > { %5618 = vst [vmem:[%s637_s0] sm:$0xff] %v5617_v29 }
 0x7e8   : > { %6892 = shalt.err (!%p6889_p4)
}
 0x7e9   : > { %6162 = dma.vmem_to_hbm [thread:$0]  (%p7074_p7), %s5636_s17, 128, %s5638_s18, %s5620_s15  }
 0x7ea PF: > { %p6174_p5 = scmp.ge.s32.totalorder %s6979_s21, 2  ;;  %s5649_s0 = sand.u32 1, %s6943_s12  }
 0x7eb   : > { %s5650_s10 = scalar_lea.sflag [#allocation4], %s5649_s0 }
 0x7ec   : > { %p6169_p6 = pnand %p6174_p5, %p7082_p12 }
 0x7ee   : > { %p6170_p3 = pneg %p6169_p6 }
 0x7f0   : > { %6938 = dma.done.wait (%p6170_p3), %s5650_s10, 128  }
 0x7f1   : > { %6940 = vsyncadd (%p6170_p3), %s5650_s10, 4294967168  ;;  %s17_s21 = sadd.s32 1, %s6979_s21   ;;  %s13359_s12 = smov %s6947_s13 }
 0x7f2   : > { %p14_p8 = scmp.ge.s32.totalorder %s17_s21, 6   ;;  %s13360_s13 = smov %s6951_s14 }
 0x7f3   : > { %s13361_s14 = smov %s7090_s8  ;;  %s13362_s15 = smov %s6959_s16 }
 0x7f4   : > { %s13363_s16 = smov %s7087_s7  ;;  %s13364_s17 = smov %s6971_s19 }
 0x7f5   : > { %s13365_s18 = smov %s6975_s20  ;;  %s13366_s19 = smov %s13369_s24 }
 0x7f6   : > { %s13367_s20 = smov %s13373_s25  ;;  %16 = sbr.rel (!%p14_p8) target bundleno = 9 (0x9), region = 128 }
 0x7fb   :  { %5656 = vsyncpa [#allocation4], 1 }
 0x7fc   :  { %5658 = vsyncpa [#allocation4 + $0x1], 1 }
 0x7fd   :  { %5659 = vsyncpa [#allocation5], 1 }
 0x7fe   :  { %5661 = vsyncpa [#allocation5 + $0x1], 1 }

</bundles_post_ra>
